<compile_context>
chip_gen: v7x
topology: tpu7x:2x2x1
jax: 0.10.0
libtpu: 0.0.40
codegen_flags: <defaults>
</compile_context>

<pallas_src>
import numpy as np

import jax
import jax.numpy as jnp
from jax.experimental import pallas as pl
from jax.experimental.pallas import tpu as pltpu


# ------------------------------ fused kernel --------------------------------

def _lenet_kernel(x_ref, a1_ref, b1_ref, ph1_ref, pw1_ref,
                  a2_ref, b2_ref, ph2_ref, pw2_ref,
                  v1_ref, bf1_ref, w2_ref, bf2_ref, w3_ref, bf3_ref,
                  out_ref, feats_ref):
    f32 = jnp.float32
    bf16 = jnp.bfloat16

    TB = x_ref.shape[0]            # samples per grid step
    KH = a2_ref.shape[0]           # 5   conv kernel height
    H2 = ph2_ref.shape[2]          # 10  conv2 output height
    HP2 = ph2_ref.shape[1]         # 5   pool2 output height
    NP = pw2_ref.shape[2]          # 128 padded pooled-feature lane stride

    # ---- per-sample conv/pool chain (unrolled over the batch block) --------
    for s in range(TB):
        # conv1 + bias + ReLU as ONE matmul: kernel-row im2col was done by the
        # wrapper; width shifts live in the banded weight matrix A1.
        acc1 = jnp.dot(x_ref[s], a1_ref[...], preferred_element_type=f32)
        act1 = jnp.maximum(acc1 + b1_ref[...], 0.0).astype(bf16)      # (28,168)

        # 2x2 max-pool via 0/1 selection matmuls (bf16 operands, f32 compare).
        hmax = jnp.maximum(
            jnp.dot(ph1_ref[0], act1, preferred_element_type=f32),
            jnp.dot(ph1_ref[1], act1, preferred_element_type=f32)).astype(bf16)
        p1 = jnp.maximum(
            jnp.dot(hmax, pw1_ref[0], preferred_element_type=f32),
            jnp.dot(hmax, pw1_ref[1], preferred_element_type=f32)).astype(bf16)

        # conv2 + bias + ReLU: 5 shifted matmuls, single f32 accumulator
        # (sum-of-dots form so v7x can use MRB in-place accumulation).
        acc2 = jnp.dot(p1[0:H2, :], a2_ref[0], preferred_element_type=f32)
        for i in range(1, KH):
            acc2 = acc2 + jnp.dot(p1[i:i + H2, :], a2_ref[i],
                                  preferred_element_type=f32)
        act2 = jnp.maximum(acc2 + b2_ref[...], 0.0).astype(bf16)      # (10,160)

        # 2x2 max-pool; PW2 is column-padded to 128 so p2 lanes 80..127 are 0.
        gmax = jnp.maximum(
            jnp.dot(ph2_ref[0], act2, preferred_element_type=f32),
            jnp.dot(ph2_ref[1], act2, preferred_element_type=f32)).astype(bf16)
        p2 = jnp.maximum(
            jnp.dot(gmax, pw2_ref[0], preferred_element_type=f32),
            jnp.dot(gmax, pw2_ref[1], preferred_element_type=f32))    # (5,128)
        p2 = p2.astype(bf16)

        # Stage this sample's flattened features (lane = h*128 + w*16 + c)
        # with aligned (1,128) stores into the (TB, 640) scratch.
        for h in range(HP2):
            feats_ref[s:s + 1, h * NP:(h + 1) * NP] = p2[h:h + 1, :]

    # ---- batched fully-connected tail: one matmul per layer for TB samples --
    feats = feats_ref[...]                                            # (TB,640)
    f1 = jnp.dot(feats, v1_ref[...], preferred_element_type=f32)
    f1 = jnp.maximum(f1 + bf1_ref[...], 0.0).astype(bf16)             # (TB,128)
    f2 = jnp.dot(f1, w2_ref[...], preferred_element_type=f32)
    f2 = jnp.maximum(f2 + bf2_ref[...], 0.0).astype(bf16)             # (TB,128)
    out_ref[...] = (jnp.dot(f2, w3_ref[...], preferred_element_type=f32)
                    + bf3_ref[...])


# -------------------------- one-time weight packing --------------------------

def pack_params(params, num_classes, channels):
    """Pre-pack PyTorch-layout LeNet weights into kernel-friendly matrices."""
    K, C1, C2 = 5, 6, 16
    H0 = W0 = 32
    W1 = W0 - K + 1            # 28
    Wp1 = W1 // 2              # 14
    W2 = Wp1 - K + 1           # 10
    Wp2 = W2 // 2              # 5
    NPAD = 128
    NOUT = max(128, ((num_classes + 127) // 128) * 128)
    Cin = channels

    w1 = np.asarray(params["conv1_w"], np.float32)   # (6, Cin, 5, 5)
    b1 = np.asarray(params["conv1_b"], np.float32)
    w2 = np.asarray(params["conv2_w"], np.float32)   # (16, 6, 5, 5)
    b2 = np.asarray(params["conv2_b"], np.float32)
    fw1 = np.asarray(params["fc1_w"], np.float32)    # (120, 400)
    fb1 = np.asarray(params["fc1_b"], np.float32)
    fw2 = np.asarray(params["fc2_w"], np.float32)    # (84, 120)
    fb2 = np.asarray(params["fc2_b"], np.float32)
    fw3 = np.asarray(params["fc3_w"], np.float32)    # (ncls, 84)
    fb3 = np.asarray(params["fc3_b"], np.float32)

    def banded(w, cin, cout, win, wout):
        # A[i, wi*cin + ci, wo*cout + co] = w[co, ci, i, wi - wo]  (0<=wi-wo<K)
        A = np.zeros((K, win * cin, wout * cout), np.float32)
        for i in range(K):
            for j in range(K):
                blk = w[:, :, i, j].T                        # (cin, cout)
                for wo in range(wout):
                    wi = wo + j
                    A[i, wi * cin:(wi + 1) * cin,
                      wo * cout:(wo + 1) * cout] = blk
        return A

    def pool_mats(hin, win, c, npad_w=None):
        hout, wout = hin // 2, win // 2
        PH = np.zeros((2, hout, hin), np.float32)
        for a in range(2):
            for ph in range(hout):
                PH[a, ph, 2 * ph + a] = 1.0
        ncols = wout * c if npad_w is None else npad_w
        PW = np.zeros((2, win * c, ncols), np.float32)
        for b in range(2):
            for pw in range(wout):
                for cc in range(c):
                    PW[b, (2 * pw + b) * c + cc, pw * c + cc] = 1.0
        return PH, PW

    # conv1: kernel-row dimension concatenated into K (wrapper does the im2col)
    A1 = banded(w1, Cin, C1, W0, W1).reshape(K * W0 * Cin, W1 * C1)  # (160*Cin,168)
    A2 = banded(w2, C1, C2, Wp1, W2)                                 # (5,84,160)
    b1_row = np.tile(b1, W1)[None, :]                                # (1,168)
    b2_row = np.tile(b2, W2)[None, :]                                # (1,160)
    PH1, PW1 = pool_mats(W1, W1, C1)                                 # (2,14,28),(2,168,84)
    PH2, PW2 = pool_mats(W2, W2, C2, npad_w=NPAD)                    # (2,5,10),(2,160,128)

    # fc1: feature lane layout is h*128 + (w*C2 + c); PyTorch NCHW-flatten
    # order (c*25 + h*5 + w) is folded into V1.
    V1 = np.zeros((Wp2 * NPAD, NPAD), np.float32)                    # (640,128)
    for h in range(Wp2):
        for w in range(Wp2):
            for c in range(C2):
                V1[h * NPAD + w * C2 + c, :120] = fw1[:, c * Wp2 * Wp2 + h * Wp2 + w]
    bf1 = np.zeros((1, NPAD), np.float32); bf1[0, :120] = fb1

    W2p = np.zeros((NPAD, NPAD), np.float32); W2p[:120, :84] = fw2.T
    bf2 = np.zeros((1, NPAD), np.float32); bf2[0, :84] = fb2

    W3p = np.zeros((NPAD, NOUT), np.float32); W3p[:84, :num_classes] = fw3.T
    bf3 = np.zeros((1, NOUT), np.float32); bf3[0, :num_classes] = fb3

    bf = lambda a: jnp.asarray(a, jnp.bfloat16)
    f32 = lambda a: jnp.asarray(a, jnp.float32)
    return {
        "A1": bf(A1), "b1": f32(b1_row),
        "PH1": bf(PH1), "PW1": bf(PW1),
        "A2": bf(A2), "b2": f32(b2_row),
        "PH2": bf(PH2), "PW2": bf(PW2),
        "V1": bf(V1), "bf1": f32(bf1),
        "W2": bf(W2p), "bf2": f32(bf2),
        "W3": bf(W3p), "bf3": f32(bf3),
    }


# ------------------------------ forward wrapper -------------------------------

def lenet_forward(packed, x, num_classes, tb=8):
    # x: (B, channels, 32, 32) NCHW float32 (32x32 required: fc1 expects 400)
    B, Cin, H, W = x.shape
    assert H == 32 and W == 32, "LeNet fc1 expects a 32x32 input"
    KH = 5
    H1 = H - KH + 1                                           # 28

    # NCHW -> (B, H, W*Cin), kernel-row im2col -> (B, 28, 5*W*Cin), bf16.
    x2d = jnp.transpose(x, (0, 2, 3, 1)).reshape(B, H, W * Cin)
    xcat = jnp.concatenate([x2d[:, i:i + H1, :] for i in range(KH)], axis=2)
    xcat = xcat.astype(jnp.bfloat16)

    # Pad the batch to a multiple of the batch block TB.
    Bp = ((B + tb - 1) // tb) * tb
    if Bp != B:
        xcat = jnp.pad(xcat, ((0, Bp - B), (0, 0), (0, 0)))

    order = ("A1", "b1", "PH1", "PW1", "A2", "b2", "PH2", "PW2",
             "V1", "bf1", "W2", "bf2", "W3", "bf3")
    weights = [packed[k] for k in order]

    def _resident(arr):
        zeros = (0,) * arr.ndim
        return pl.BlockSpec(arr.shape, lambda b: zeros)   # VMEM-resident weight

    nout = packed["bf3"].shape[1]
    feat_w = packed["V1"].shape[0]                         # 640
    kw = xcat.shape[2]                                     # 5*32*Cin

    out = pl.pallas_call(
        _lenet_kernel,
        out_shape=jax.ShapeDtypeStruct((Bp, nout), jnp.float32),
        grid=(Bp // tb,),
        in_specs=[pl.BlockSpec((tb, H1, kw), lambda b: (b, 0, 0))]
                 + [_resident(a) for a in weights],
        out_specs=pl.BlockSpec((tb, nout), lambda b: (b, 0)),
        scratch_shapes=[pltpu.VMEM((tb, feat_w), jnp.bfloat16)],
        compiler_params=pltpu.CompilerParams(
            dimension_semantics=("parallel",)),
    )(xcat, *weights)
    return out[:B, :num_classes]


# --------------------------------- init ---------------------------------------

def init_lenet_params(key, num_classes, channels=1):
    ks = jax.random.split(key, 10)

    def init(k, shape, fan_in):
        bound = 1.0 / jnp.sqrt(jnp.float32(fan_in))
        return jax.random.uniform(k, shape, jnp.float32, -bound, bound)

    return {
        "conv1_w": init(ks[0], (6, channels, 5, 5), channels * 25),
        "conv1_b": init(ks[1], (6,), channels * 25),
        "conv2_w": init(ks[2], (16, 6, 5, 5), 6 * 25),
        "conv2_b": init(ks[3], (16,), 6 * 25),
        "fc1_w": init(ks[4], (120, 400), 400),
        "fc1_b": init(ks[5], (120,), 400),
        "fc2_w": init(ks[6], (84, 120), 120),
        "fc2_b": init(ks[7], (84,), 120),
        "fc3_w": init(ks[8], (num_classes, 84), 84),
        "fc3_b": init(ks[9], (num_classes,), 84),
    }


if __name__ == "__main__":
    key = jax.random.PRNGKey(0)
    k_param, k_x = jax.random.split(key)
    num_classes, channels, batch = 10, 1, 2

    params = init_lenet_params(k_param, num_classes, channels)
    packed = pack_params(params, num_classes, channels)   # once, outside jit
    x = jax.random.normal(k_x, (batch, channels, 32, 32), jnp.float32)

    fwd = jax.jit(lambda p, xx: lenet_forward(p, xx, num_classes))
    logits = fwd(packed, x)
    jax.block_until_ready(logits)
    assert logits.shape == (batch, num_classes)
    print("KERNEL_OK")
</pallas_src>

<mosaic_0001>
module attributes {stable_mosaic.version = 11 : i64} {
  func.func @_lenet_kernel(%arg0: i32, %arg1: memref<8x28x160xbf16, #tpu.memory_space<vmem>>, %arg2: memref<160x168xbf16, #tpu.memory_space<vmem>>, %arg3: memref<1x168xf32, #tpu.memory_space<vmem>>, %arg4: memref<2x14x28xbf16, #tpu.memory_space<vmem>>, %arg5: memref<2x168x84xbf16, #tpu.memory_space<vmem>>, %arg6: memref<5x84x160xbf16, #tpu.memory_space<vmem>>, %arg7: memref<1x160xf32, #tpu.memory_space<vmem>>, %arg8: memref<2x5x10xbf16, #tpu.memory_space<vmem>>, %arg9: memref<2x160x128xbf16, #tpu.memory_space<vmem>>, %arg10: memref<640x128xbf16, #tpu.memory_space<vmem>>, %arg11: memref<1x128xf32, #tpu.memory_space<vmem>>, %arg12: memref<128x128xbf16, #tpu.memory_space<vmem>>, %arg13: memref<1x128xf32, #tpu.memory_space<vmem>>, %arg14: memref<128x128xbf16, #tpu.memory_space<vmem>>, %arg15: memref<1x128xf32, #tpu.memory_space<vmem>>, %arg16: memref<8x128xf32, #tpu.memory_space<vmem>>, %arg17: memref<8x640xbf16, #tpu.memory_space<vmem>>) attributes {dimension_semantics = [#tpu.dimension_semantics<parallel>], iteration_bounds = array<i64: 1>, scalar_prefetch = 0 : i64, scratch_operands = 1 : i64, tpu.core_type = #tpu.core_type<tc>, window_params = [{transform_indices = @transform_0, window_bounds = array<i64: 8, 28, 160>}, {pipeline_mode = #tpu.pipeline_mode<synchronous>, transform_indices = @transform_1, window_bounds = array<i64: 160, 168>}, {pipeline_mode = #tpu.pipeline_mode<synchronous>, transform_indices = @transform_2, window_bounds = array<i64: 1, 168>}, {pipeline_mode = #tpu.pipeline_mode<synchronous>, transform_indices = @transform_3, window_bounds = array<i64: 2, 14, 28>}, {pipeline_mode = #tpu.pipeline_mode<synchronous>, transform_indices = @transform_4, window_bounds = array<i64: 2, 168, 84>}, {pipeline_mode = #tpu.pipeline_mode<synchronous>, transform_indices = @transform_5, window_bounds = array<i64: 5, 84, 160>}, {pipeline_mode = #tpu.pipeline_mode<synchronous>, transform_indices = @transform_6, window_bounds = array<i64: 1, 160>}, {pipeline_mode = #tpu.pipeline_mode<synchronous>, transform_indices = @transform_7, window_bounds = array<i64: 2, 5, 10>}, {pipeline_mode = #tpu.pipeline_mode<synchronous>, transform_indices = @transform_8, window_bounds = array<i64: 2, 160, 128>}, {pipeline_mode = #tpu.pipeline_mode<synchronous>, transform_indices = @transform_9, window_bounds = array<i64: 640, 128>}, {pipeline_mode = #tpu.pipeline_mode<synchronous>, transform_indices = @transform_10, window_bounds = array<i64: 1, 128>}, {pipeline_mode = #tpu.pipeline_mode<synchronous>, transform_indices = @transform_11, window_bounds = array<i64: 128, 128>}, {pipeline_mode = #tpu.pipeline_mode<synchronous>, transform_indices = @transform_12, window_bounds = array<i64: 1, 128>}, {pipeline_mode = #tpu.pipeline_mode<synchronous>, transform_indices = @transform_13, window_bounds = array<i64: 128, 128>}, {pipeline_mode = #tpu.pipeline_mode<synchronous>, transform_indices = @transform_14, window_bounds = array<i64: 1, 128>}, {transform_indices = @transform_15, window_bounds = array<i64: 8, 128>}]} {
    %c0 = arith.constant 0 : index
    %c0_0 = arith.constant 0 : index
    %c0_1 = arith.constant 0 : index
    %0 = vector.load %arg1[%c0, %c0_0, %c0_1] : memref<8x28x160xbf16, #tpu.memory_space<vmem>>, vector<1x28x160xbf16>
    %1 = vector.shape_cast %0 : vector<1x28x160xbf16> to vector<28x160xbf16>
    %c0_2 = arith.constant 0 : index
    %c0_3 = arith.constant 0 : index
    %2 = vector.load %arg2[%c0_2, %c0_3] : memref<160x168xbf16, #tpu.memory_space<vmem>>, vector<160x168xbf16>
    %cst = arith.constant dense<0.000000e+00> : vector<28x168xf32>
    %3 = tpu.matmul %1, %2, %cst {dimension_numbers = #tpu.dot_dimension_numbers<[1], [0], [0], [1], [0, 0, 1, 1], [], []>} : vector<28x160xbf16>, vector<160x168xbf16>, vector<28x168xf32> -> vector<28x168xf32>
    %c0_4 = arith.constant 0 : index
    %c0_5 = arith.constant 0 : index
    %4 = vector.load %arg3[%c0_4, %c0_5] : memref<1x168xf32, #tpu.memory_space<vmem>>, vector<1x168xf32>
    %5 = vector.broadcast %4 : vector<1x168xf32> to vector<28x168xf32>
    %6 = arith.addf %3, %5 : vector<28x168xf32>
    %cst_6 = arith.constant 0.000000e+00 : f32
    %7 = vector.broadcast %cst_6 : f32 to vector<28x168xf32>
    %8 = arith.maximumf %6, %7 : vector<28x168xf32>
    %9 = arith.truncf %8 : vector<28x168xf32> to vector<28x168xbf16>
    %c0_7 = arith.constant 0 : index
    %c0_8 = arith.constant 0 : index
    %c0_9 = arith.constant 0 : index
    %10 = vector.load %arg4[%c0_7, %c0_8, %c0_9] : memref<2x14x28xbf16, #tpu.memory_space<vmem>>, vector<1x14x28xbf16>
    %11 = vector.shape_cast %10 : vector<1x14x28xbf16> to vector<14x28xbf16>
    %cst_10 = arith.constant dense<0.000000e+00> : vector<14x168xf32>
    %12 = tpu.matmul %11, %9, %cst_10 {dimension_numbers = #tpu.dot_dimension_numbers<[1], [0], [0], [1], [0, 0, 1, 1], [], []>} : vector<14x28xbf16>, vector<28x168xbf16>, vector<14x168xf32> -> vector<14x168xf32>
    %c1 = arith.constant 1 : index
    %c0_11 = arith.constant 0 : index
    %c0_12 = arith.constant 0 : index
    %13 = vector.load %arg4[%c1, %c0_11, %c0_12] : memref<2x14x28xbf16, #tpu.memory_space<vmem>>, vector<1x14x28xbf16>
    %14 = vector.shape_cast %13 : vector<1x14x28xbf16> to vector<14x28xbf16>
    %cst_13 = arith.constant dense<0.000000e+00> : vector<14x168xf32>
    %15 = tpu.matmul %14, %9, %cst_13 {dimension_numbers = #tpu.dot_dimension_numbers<[1], [0], [0], [1], [0, 0, 1, 1], [], []>} : vector<14x28xbf16>, vector<28x168xbf16>, vector<14x168xf32> -> vector<14x168xf32>
    %16 = arith.maximumf %12, %15 : vector<14x168xf32>
    %17 = arith.truncf %16 : vector<14x168xf32> to vector<14x168xbf16>
    %c0_14 = arith.constant 0 : index
    %c0_15 = arith.constant 0 : index
    %c0_16 = arith.constant 0 : index
    %18 = vector.load %arg5[%c0_14, %c0_15, %c0_16] : memref<2x168x84xbf16, #tpu.memory_space<vmem>>, vector<1x168x84xbf16>
    %19 = vector.shape_cast %18 : vector<1x168x84xbf16> to vector<168x84xbf16>
    %cst_17 = arith.constant dense<0.000000e+00> : vector<14x84xf32>
    %20 = tpu.matmul %17, %19, %cst_17 {dimension_numbers = #tpu.dot_dimension_numbers<[1], [0], [0], [1], [0, 0, 1, 1], [], []>} : vector<14x168xbf16>, vector<168x84xbf16>, vector<14x84xf32> -> vector<14x84xf32>
    %c1_18 = arith.constant 1 : index
    %c0_19 = arith.constant 0 : index
    %c0_20 = arith.constant 0 : index
    %21 = vector.load %arg5[%c1_18, %c0_19, %c0_20] : memref<2x168x84xbf16, #tpu.memory_space<vmem>>, vector<1x168x84xbf16>
    %22 = vector.shape_cast %21 : vector<1x168x84xbf16> to vector<168x84xbf16>
    %cst_21 = arith.constant dense<0.000000e+00> : vector<14x84xf32>
    %23 = tpu.matmul %17, %22, %cst_21 {dimension_numbers = #tpu.dot_dimension_numbers<[1], [0], [0], [1], [0, 0, 1, 1], [], []>} : vector<14x168xbf16>, vector<168x84xbf16>, vector<14x84xf32> -> vector<14x84xf32>
    %24 = arith.maximumf %20, %23 : vector<14x84xf32>
    %25 = arith.truncf %24 : vector<14x84xf32> to vector<14x84xbf16>
    %26 = vector.extract_strided_slice %25 {offsets = [0, 0], sizes = [10, 84], strides = [1, 1]} : vector<14x84xbf16> to vector<10x84xbf16>
    %c0_22 = arith.constant 0 : index
    %c0_23 = arith.constant 0 : index
    %c0_24 = arith.constant 0 : index
    %27 = vector.load %arg6[%c0_22, %c0_23, %c0_24] : memref<5x84x160xbf16, #tpu.memory_space<vmem>>, vector<1x84x160xbf16>
    %28 = vector.shape_cast %27 : vector<1x84x160xbf16> to vector<84x160xbf16>
    %cst_25 = arith.constant dense<0.000000e+00> : vector<10x160xf32>
    %29 = tpu.matmul %26, %28, %cst_25 {dimension_numbers = #tpu.dot_dimension_numbers<[1], [0], [0], [1], [0, 0, 1, 1], [], []>} : vector<10x84xbf16>, vector<84x160xbf16>, vector<10x160xf32> -> vector<10x160xf32>
    %30 = vector.extract_strided_slice %25 {offsets = [1, 0], sizes = [10, 84], strides = [1, 1]} : vector<14x84xbf16> to vector<10x84xbf16>
    %c1_26 = arith.constant 1 : index
    %c0_27 = arith.constant 0 : index
    %c0_28 = arith.constant 0 : index
    %31 = vector.load %arg6[%c1_26, %c0_27, %c0_28] : memref<5x84x160xbf16, #tpu.memory_space<vmem>>, vector<1x84x160xbf16>
    %32 = vector.shape_cast %31 : vector<1x84x160xbf16> to vector<84x160xbf16>
    %cst_29 = arith.constant dense<0.000000e+00> : vector<10x160xf32>
    %33 = tpu.matmul %30, %32, %cst_29 {dimension_numbers = #tpu.dot_dimension_numbers<[1], [0], [0], [1], [0, 0, 1, 1], [], []>} : vector<10x84xbf16>, vector<84x160xbf16>, vector<10x160xf32> -> vector<10x160xf32>
    %34 = arith.addf %29, %33 : vector<10x160xf32>
    %35 = vector.extract_strided_slice %25 {offsets = [2, 0], sizes = [10, 84], strides = [1, 1]} : vector<14x84xbf16> to vector<10x84xbf16>
    %c2 = arith.constant 2 : index
    %c0_30 = arith.constant 0 : index
    %c0_31 = arith.constant 0 : index
    %36 = vector.load %arg6[%c2, %c0_30, %c0_31] : memref<5x84x160xbf16, #tpu.memory_space<vmem>>, vector<1x84x160xbf16>
    %37 = vector.shape_cast %36 : vector<1x84x160xbf16> to vector<84x160xbf16>
    %cst_32 = arith.constant dense<0.000000e+00> : vector<10x160xf32>
    %38 = tpu.matmul %35, %37, %cst_32 {dimension_numbers = #tpu.dot_dimension_numbers<[1], [0], [0], [1], [0, 0, 1, 1], [], []>} : vector<10x84xbf16>, vector<84x160xbf16>, vector<10x160xf32> -> vector<10x160xf32>
    %39 = arith.addf %34, %38 : vector<10x160xf32>
    %40 = vector.extract_strided_slice %25 {offsets = [3, 0], sizes = [10, 84], strides = [1, 1]} : vector<14x84xbf16> to vector<10x84xbf16>
    %c3 = arith.constant 3 : index
    %c0_33 = arith.constant 0 : index
    %c0_34 = arith.constant 0 : index
    %41 = vector.load %arg6[%c3, %c0_33, %c0_34] : memref<5x84x160xbf16, #tpu.memory_space<vmem>>, vector<1x84x160xbf16>
    %42 = vector.shape_cast %41 : vector<1x84x160xbf16> to vector<84x160xbf16>
    %cst_35 = arith.constant dense<0.000000e+00> : vector<10x160xf32>
    %43 = tpu.matmul %40, %42, %cst_35 {dimension_numbers = #tpu.dot_dimension_numbers<[1], [0], [0], [1], [0, 0, 1, 1], [], []>} : vector<10x84xbf16>, vector<84x160xbf16>, vector<10x160xf32> -> vector<10x160xf32>
    %44 = arith.addf %39, %43 : vector<10x160xf32>
    %45 = vector.extract_strided_slice %25 {offsets = [4, 0], sizes = [10, 84], strides = [1, 1]} : vector<14x84xbf16> to vector<10x84xbf16>
    %c4 = arith.constant 4 : index
    %c0_36 = arith.constant 0 : index
    %c0_37 = arith.constant 0 : index
    %46 = vector.load %arg6[%c4, %c0_36, %c0_37] : memref<5x84x160xbf16, #tpu.memory_space<vmem>>, vector<1x84x160xbf16>
    %47 = vector.shape_cast %46 : vector<1x84x160xbf16> to vector<84x160xbf16>
    %cst_38 = arith.constant dense<0.000000e+00> : vector<10x160xf32>
    %48 = tpu.matmul %45, %47, %cst_38 {dimension_numbers = #tpu.dot_dimension_numbers<[1], [0], [0], [1], [0, 0, 1, 1], [], []>} : vector<10x84xbf16>, vector<84x160xbf16>, vector<10x160xf32> -> vector<10x160xf32>
    %49 = arith.addf %44, %48 : vector<10x160xf32>
    %c0_39 = arith.constant 0 : index
    %c0_40 = arith.constant 0 : index
    %50 = vector.load %arg7[%c0_39, %c0_40] : memref<1x160xf32, #tpu.memory_space<vmem>>, vector<1x160xf32>
    %51 = vector.broadcast %50 : vector<1x160xf32> to vector<10x160xf32>
    %52 = arith.addf %49, %51 : vector<10x160xf32>
    %cst_41 = arith.constant 0.000000e+00 : f32
    %53 = vector.broadcast %cst_41 : f32 to vector<10x160xf32>
    %54 = arith.maximumf %52, %53 : vector<10x160xf32>
    %55 = arith.truncf %54 : vector<10x160xf32> to vector<10x160xbf16>
    %c0_42 = arith.constant 0 : index
    %c0_43 = arith.constant 0 : index
    %c0_44 = arith.constant 0 : index
    %56 = vector.load %arg8[%c0_42, %c0_43, %c0_44] : memref<2x5x10xbf16, #tpu.memory_space<vmem>>, vector<1x5x10xbf16>
    %57 = vector.shape_cast %56 : vector<1x5x10xbf16> to vector<5x10xbf16>
    %cst_45 = arith.constant dense<0.000000e+00> : vector<5x160xf32>
    %58 = tpu.matmul %57, %55, %cst_45 {dimension_numbers = #tpu.dot_dimension_numbers<[1], [0], [0], [1], [0, 0, 1, 1], [], []>} : vector<5x10xbf16>, vector<10x160xbf16>, vector<5x160xf32> -> vector<5x160xf32>
    %c1_46 = arith.constant 1 : index
    %c0_47 = arith.constant 0 : index
    %c0_48 = arith.constant 0 : index
    %59 = vector.load %arg8[%c1_46, %c0_47, %c0_48] : memref<2x5x10xbf16, #tpu.memory_space<vmem>>, vector<1x5x10xbf16>
    %60 = vector.shape_cast %59 : vector<1x5x10xbf16> to vector<5x10xbf16>
    %cst_49 = arith.constant dense<0.000000e+00> : vector<5x160xf32>
    %61 = tpu.matmul %60, %55, %cst_49 {dimension_numbers = #tpu.dot_dimension_numbers<[1], [0], [0], [1], [0, 0, 1, 1], [], []>} : vector<5x10xbf16>, vector<10x160xbf16>, vector<5x160xf32> -> vector<5x160xf32>
    %62 = arith.maximumf %58, %61 : vector<5x160xf32>
    %63 = arith.truncf %62 : vector<5x160xf32> to vector<5x160xbf16>
    %c0_50 = arith.constant 0 : index
    %c0_51 = arith.constant 0 : index
    %c0_52 = arith.constant 0 : index
    %64 = vector.load %arg9[%c0_50, %c0_51, %c0_52] : memref<2x160x128xbf16, #tpu.memory_space<vmem>>, vector<1x160x128xbf16>
    %65 = vector.shape_cast %64 : vector<1x160x128xbf16> to vector<160x128xbf16>
    %cst_53 = arith.constant dense<0.000000e+00> : vector<5x128xf32>
    %66 = tpu.matmul %63, %65, %cst_53 {dimension_numbers = #tpu.dot_dimension_numbers<[1], [0], [0], [1], [0, 0, 1, 1], [], []>} : vector<5x160xbf16>, vector<160x128xbf16>, vector<5x128xf32> -> vector<5x128xf32>
    %c1_54 = arith.constant 1 : index
    %c0_55 = arith.constant 0 : index
    %c0_56 = arith.constant 0 : index
    %67 = vector.load %arg9[%c1_54, %c0_55, %c0_56] : memref<2x160x128xbf16, #tpu.memory_space<vmem>>, vector<1x160x128xbf16>
    %68 = vector.shape_cast %67 : vector<1x160x128xbf16> to vector<160x128xbf16>
    %cst_57 = arith.constant dense<0.000000e+00> : vector<5x128xf32>
    %69 = tpu.matmul %63, %68, %cst_57 {dimension_numbers = #tpu.dot_dimension_numbers<[1], [0], [0], [1], [0, 0, 1, 1], [], []>} : vector<5x160xbf16>, vector<160x128xbf16>, vector<5x128xf32> -> vector<5x128xf32>
    %70 = arith.maximumf %66, %69 : vector<5x128xf32>
    %71 = arith.truncf %70 : vector<5x128xf32> to vector<5x128xbf16>
    %72 = vector.extract_strided_slice %71 {offsets = [0, 0], sizes = [1, 128], strides = [1, 1]} : vector<5x128xbf16> to vector<1x128xbf16>
    %c0_58 = arith.constant 0 : index
    %c0_59 = arith.constant 0 : index
    %73 = vector.load %arg17[%c0_58, %c0_59] : memref<8x640xbf16, #tpu.memory_space<vmem>>, vector<1x128xbf16>
    tpu.vector_store %arg17[%c0_58, %c0_59], %72 {strides = array<i32>} : memref<8x640xbf16, #tpu.memory_space<vmem>>, vector<1x128xbf16>,
    %74 = vector.extract_strided_slice %71 {offsets = [1, 0], sizes = [1, 128], strides = [1, 1]} : vector<5x128xbf16> to vector<1x128xbf16>
    %c0_60 = arith.constant 0 : index
    %c128 = arith.constant 128 : index
    %75 = vector.load %arg17[%c0_60, %c128] : memref<8x640xbf16, #tpu.memory_space<vmem>>, vector<1x128xbf16>
    tpu.vector_store %arg17[%c0_60, %c128], %74 {strides = array<i32>} : memref<8x640xbf16, #tpu.memory_space<vmem>>, vector<1x128xbf16>,
    %76 = vector.extract_strided_slice %71 {offsets = [2, 0], sizes = [1, 128], strides = [1, 1]} : vector<5x128xbf16> to vector<1x128xbf16>
    %c0_61 = arith.constant 0 : index
    %c256 = arith.constant 256 : index
    %77 = vector.load %arg17[%c0_61, %c256] : memref<8x640xbf16, #tpu.memory_space<vmem>>, vector<1x128xbf16>
    tpu.vector_store %arg17[%c0_61, %c256], %76 {strides = array<i32>} : memref<8x640xbf16, #tpu.memory_space<vmem>>, vector<1x128xbf16>,
    %78 = vector.extract_strided_slice %71 {offsets = [3, 0], sizes = [1, 128], strides = [1, 1]} : vector<5x128xbf16> to vector<1x128xbf16>
    %c0_62 = arith.constant 0 : index
    %c384 = arith.constant 384 : index
    %79 = vector.load %arg17[%c0_62, %c384] : memref<8x640xbf16, #tpu.memory_space<vmem>>, vector<1x128xbf16>
    tpu.vector_store %arg17[%c0_62, %c384], %78 {strides = array<i32>} : memref<8x640xbf16, #tpu.memory_space<vmem>>, vector<1x128xbf16>,
    %80 = vector.extract_strided_slice %71 {offsets = [4, 0], sizes = [1, 128], strides = [1, 1]} : vector<5x128xbf16> to vector<1x128xbf16>
    %c0_63 = arith.constant 0 : index
    %c512 = arith.constant 512 : index
    %81 = vector.load %arg17[%c0_63, %c512] : memref<8x640xbf16, #tpu.memory_space<vmem>>, vector<1x128xbf16>
    tpu.vector_store %arg17[%c0_63, %c512], %80 {strides = array<i32>} : memref<8x640xbf16, #tpu.memory_space<vmem>>, vector<1x128xbf16>,
    %c1_64 = arith.constant 1 : index
    %c0_65 = arith.constant 0 : index
    %c0_66 = arith.constant 0 : index
    %82 = vector.load %arg1[%c1_64, %c0_65, %c0_66] : memref<8x28x160xbf16, #tpu.memory_space<vmem>>, vector<1x28x160xbf16>
    %83 = vector.shape_cast %82 : vector<1x28x160xbf16> to vector<28x160xbf16>
    %c0_67 = arith.constant 0 : index
    %c0_68 = arith.constant 0 : index
    %84 = vector.load %arg2[%c0_67, %c0_68] : memref<160x168xbf16, #tpu.memory_space<vmem>>, vector<160x168xbf16>
    %cst_69 = arith.constant dense<0.000000e+00> : vector<28x168xf32>
    %85 = tpu.matmul %83, %84, %cst_69 {dimension_numbers = #tpu.dot_dimension_numbers<[1], [0], [0], [1], [0, 0, 1, 1], [], []>} : vector<28x160xbf16>, vector<160x168xbf16>, vector<28x168xf32> -> vector<28x168xf32>
    %c0_70 = arith.constant 0 : index
    %c0_71 = arith.constant 0 : index
    %86 = vector.load %arg3[%c0_70, %c0_71] : memref<1x168xf32, #tpu.memory_space<vmem>>, vector<1x168xf32>
    %87 = vector.broadcast %86 : vector<1x168xf32> to vector<28x168xf32>
    %88 = arith.addf %85, %87 : vector<28x168xf32>
    %cst_72 = arith.constant 0.000000e+00 : f32
    %89 = vector.broadcast %cst_72 : f32 to vector<28x168xf32>
    %90 = arith.maximumf %88, %89 : vector<28x168xf32>
    %91 = arith.truncf %90 : vector<28x168xf32> to vector<28x168xbf16>
    %c0_73 = arith.constant 0 : index
    %c0_74 = arith.constant 0 : index
    %c0_75 = arith.constant 0 : index
    %92 = vector.load %arg4[%c0_73, %c0_74, %c0_75] : memref<2x14x28xbf16, #tpu.memory_space<vmem>>, vector<1x14x28xbf16>
    %93 = vector.shape_cast %92 : vector<1x14x28xbf16> to vector<14x28xbf16>
    %cst_76 = arith.constant dense<0.000000e+00> : vector<14x168xf32>
    %94 = tpu.matmul %93, %91, %cst_76 {dimension_numbers = #tpu.dot_dimension_numbers<[1], [0], [0], [1], [0, 0, 1, 1], [], []>} : vector<14x28xbf16>, vector<28x168xbf16>, vector<14x168xf32> -> vector<14x168xf32>
    %c1_77 = arith.constant 1 : index
    %c0_78 = arith.constant 0 : index
    %c0_79 = arith.constant 0 : index
    %95 = vector.load %arg4[%c1_77, %c0_78, %c0_79] : memref<2x14x28xbf16, #tpu.memory_space<vmem>>, vector<1x14x28xbf16>
    %96 = vector.shape_cast %95 : vector<1x14x28xbf16> to vector<14x28xbf16>
    %cst_80 = arith.constant dense<0.000000e+00> : vector<14x168xf32>
    %97 = tpu.matmul %96, %91, %cst_80 {dimension_numbers = #tpu.dot_dimension_numbers<[1], [0], [0], [1], [0, 0, 1, 1], [], []>} : vector<14x28xbf16>, vector<28x168xbf16>, vector<14x168xf32> -> vector<14x168xf32>
    %98 = arith.maximumf %94, %97 : vector<14x168xf32>
    %99 = arith.truncf %98 : vector<14x168xf32> to vector<14x168xbf16>
    %c0_81 = arith.constant 0 : index
    %c0_82 = arith.constant 0 : index
    %c0_83 = arith.constant 0 : index
    %100 = vector.load %arg5[%c0_81, %c0_82, %c0_83] : memref<2x168x84xbf16, #tpu.memory_space<vmem>>, vector<1x168x84xbf16>
    %101 = vector.shape_cast %100 : vector<1x168x84xbf16> to vector<168x84xbf16>
    %cst_84 = arith.constant dense<0.000000e+00> : vector<14x84xf32>
    %102 = tpu.matmul %99, %101, %cst_84 {dimension_numbers = #tpu.dot_dimension_numbers<[1], [0], [0], [1], [0, 0, 1, 1], [], []>} : vector<14x168xbf16>, vector<168x84xbf16>, vector<14x84xf32> -> vector<14x84xf32>
    %c1_85 = arith.constant 1 : index
    %c0_86 = arith.constant 0 : index
    %c0_87 = arith.constant 0 : index
    %103 = vector.load %arg5[%c1_85, %c0_86, %c0_87] : memref<2x168x84xbf16, #tpu.memory_space<vmem>>, vector<1x168x84xbf16>
    %104 = vector.shape_cast %103 : vector<1x168x84xbf16> to vector<168x84xbf16>
    %cst_88 = arith.constant dense<0.000000e+00> : vector<14x84xf32>
    %105 = tpu.matmul %99, %104, %cst_88 {dimension_numbers = #tpu.dot_dimension_numbers<[1], [0], [0], [1], [0, 0, 1, 1], [], []>} : vector<14x168xbf16>, vector<168x84xbf16>, vector<14x84xf32> -> vector<14x84xf32>
    %106 = arith.maximumf %102, %105 : vector<14x84xf32>
    %107 = arith.truncf %106 : vector<14x84xf32> to vector<14x84xbf16>
    %108 = vector.extract_strided_slice %107 {offsets = [0, 0], sizes = [10, 84], strides = [1, 1]} : vector<14x84xbf16> to vector<10x84xbf16>
    %c0_89 = arith.constant 0 : index
    %c0_90 = arith.constant 0 : index
    %c0_91 = arith.constant 0 : index
    %109 = vector.load %arg6[%c0_89, %c0_90, %c0_91] : memref<5x84x160xbf16, #tpu.memory_space<vmem>>, vector<1x84x160xbf16>
    %110 = vector.shape_cast %109 : vector<1x84x160xbf16> to vector<84x160xbf16>
    %cst_92 = arith.constant dense<0.000000e+00> : vector<10x160xf32>
    %111 = tpu.matmul %108, %110, %cst_92 {dimension_numbers = #tpu.dot_dimension_numbers<[1], [0], [0], [1], [0, 0, 1, 1], [], []>} : vector<10x84xbf16>, vector<84x160xbf16>, vector<10x160xf32> -> vector<10x160xf32>
    %112 = vector.extract_strided_slice %107 {offsets = [1, 0], sizes = [10, 84], strides = [1, 1]} : vector<14x84xbf16> to vector<10x84xbf16>
    %c1_93 = arith.constant 1 : index
    %c0_94 = arith.constant 0 : index
    %c0_95 = arith.constant 0 : index
    %113 = vector.load %arg6[%c1_93, %c0_94, %c0_95] : memref<5x84x160xbf16, #tpu.memory_space<vmem>>, vector<1x84x160xbf16>
    %114 = vector.shape_cast %113 : vector<1x84x160xbf16> to vector<84x160xbf16>
    %cst_96 = arith.constant dense<0.000000e+00> : vector<10x160xf32>
    %115 = tpu.matmul %112, %114, %cst_96 {dimension_numbers = #tpu.dot_dimension_numbers<[1], [0], [0], [1], [0, 0, 1, 1], [], []>} : vector<10x84xbf16>, vector<84x160xbf16>, vector<10x160xf32> -> vector<10x160xf32>
    %116 = arith.addf %111, %115 : vector<10x160xf32>
    %117 = vector.extract_strided_slice %107 {offsets = [2, 0], sizes = [10, 84], strides = [1, 1]} : vector<14x84xbf16> to vector<10x84xbf16>
    %c2_97 = arith.constant 2 : index
    %c0_98 = arith.constant 0 : index
    %c0_99 = arith.constant 0 : index
    %118 = vector.load %arg6[%c2_97, %c0_98, %c0_99] : memref<5x84x160xbf16, #tpu.memory_space<vmem>>, vector<1x84x160xbf16>
    %119 = vector.shape_cast %118 : vector<1x84x160xbf16> to vector<84x160xbf16>
    %cst_100 = arith.constant dense<0.000000e+00> : vector<10x160xf32>
    %120 = tpu.matmul %117, %119, %cst_100 {dimension_numbers = #tpu.dot_dimension_numbers<[1], [0], [0], [1], [0, 0, 1, 1], [], []>} : vector<10x84xbf16>, vector<84x160xbf16>, vector<10x160xf32> -> vector<10x160xf32>
    %121 = arith.addf %116, %120 : vector<10x160xf32>
    %122 = vector.extract_strided_slice %107 {offsets = [3, 0], sizes = [10, 84], strides = [1, 1]} : vector<14x84xbf16> to vector<10x84xbf16>
    %c3_101 = arith.constant 3 : index
    %c0_102 = arith.constant 0 : index
    %c0_103 = arith.constant 0 : index
    %123 = vector.load %arg6[%c3_101, %c0_102, %c0_103] : memref<5x84x160xbf16, #tpu.memory_space<vmem>>, vector<1x84x160xbf16>
    %124 = vector.shape_cast %123 : vector<1x84x160xbf16> to vector<84x160xbf16>
    %cst_104 = arith.constant dense<0.000000e+00> : vector<10x160xf32>
    %125 = tpu.matmul %122, %124, %cst_104 {dimension_numbers = #tpu.dot_dimension_numbers<[1], [0], [0], [1], [0, 0, 1, 1], [], []>} : vector<10x84xbf16>, vector<84x160xbf16>, vector<10x160xf32> -> vector<10x160xf32>
    %126 = arith.addf %121, %125 : vector<10x160xf32>
    %127 = vector.extract_strided_slice %107 {offsets = [4, 0], sizes = [10, 84], strides = [1, 1]} : vector<14x84xbf16> to vector<10x84xbf16>
    %c4_105 = arith.constant 4 : index
    %c0_106 = arith.constant 0 : index
    %c0_107 = arith.constant 0 : index
    %128 = vector.load %arg6[%c4_105, %c0_106, %c0_107] : memref<5x84x160xbf16, #tpu.memory_space<vmem>>, vector<1x84x160xbf16>
    %129 = vector.shape_cast %128 : vector<1x84x160xbf16> to vector<84x160xbf16>
    %cst_108 = arith.constant dense<0.000000e+00> : vector<10x160xf32>
    %130 = tpu.matmul %127, %129, %cst_108 {dimension_numbers = #tpu.dot_dimension_numbers<[1], [0], [0], [1], [0, 0, 1, 1], [], []>} : vector<10x84xbf16>, vector<84x160xbf16>, vector<10x160xf32> -> vector<10x160xf32>
    %131 = arith.addf %126, %130 : vector<10x160xf32>
    %c0_109 = arith.constant 0 : index
    %c0_110 = arith.constant 0 : index
    %132 = vector.load %arg7[%c0_109, %c0_110] : memref<1x160xf32, #tpu.memory_space<vmem>>, vector<1x160xf32>
    %133 = vector.broadcast %132 : vector<1x160xf32> to vector<10x160xf32>
    %134 = arith.addf %131, %133 : vector<10x160xf32>
    %cst_111 = arith.constant 0.000000e+00 : f32
    %135 = vector.broadcast %cst_111 : f32 to vector<10x160xf32>
    %136 = arith.maximumf %134, %135 : vector<10x160xf32>
    %137 = arith.truncf %136 : vector<10x160xf32> to vector<10x160xbf16>
    %c0_112 = arith.constant 0 : index
    %c0_113 = arith.constant 0 : index
    %c0_114 = arith.constant 0 : index
    %138 = vector.load %arg8[%c0_112, %c0_113, %c0_114] : memref<2x5x10xbf16, #tpu.memory_space<vmem>>, vector<1x5x10xbf16>
    %139 = vector.shape_cast %138 : vector<1x5x10xbf16> to vector<5x10xbf16>
    %cst_115 = arith.constant dense<0.000000e+00> : vector<5x160xf32>
    %140 = tpu.matmul %139, %137, %cst_115 {dimension_numbers = #tpu.dot_dimension_numbers<[1], [0], [0], [1], [0, 0, 1, 1], [], []>} : vector<5x10xbf16>, vector<10x160xbf16>, vector<5x160xf32> -> vector<5x160xf32>
    %c1_116 = arith.constant 1 : index
    %c0_117 = arith.constant 0 : index
    %c0_118 = arith.constant 0 : index
    %141 = vector.load %arg8[%c1_116, %c0_117, %c0_118] : memref<2x5x10xbf16, #tpu.memory_space<vmem>>, vector<1x5x10xbf16>
    %142 = vector.shape_cast %141 : vector<1x5x10xbf16> to vector<5x10xbf16>
    %cst_119 = arith.constant dense<0.000000e+00> : vector<5x160xf32>
    %143 = tpu.matmul %142, %137, %cst_119 {dimension_numbers = #tpu.dot_dimension_numbers<[1], [0], [0], [1], [0, 0, 1, 1], [], []>} : vector<5x10xbf16>, vector<10x160xbf16>, vector<5x160xf32> -> vector<5x160xf32>
    %144 = arith.maximumf %140, %143 : vector<5x160xf32>
    %145 = arith.truncf %144 : vector<5x160xf32> to vector<5x160xbf16>
    %c0_120 = arith.constant 0 : index
    %c0_121 = arith.constant 0 : index
    %c0_122 = arith.constant 0 : index
    %146 = vector.load %arg9[%c0_120, %c0_121, %c0_122] : memref<2x160x128xbf16, #tpu.memory_space<vmem>>, vector<1x160x128xbf16>
    %147 = vector.shape_cast %146 : vector<1x160x128xbf16> to vector<160x128xbf16>
    %cst_123 = arith.constant dense<0.000000e+00> : vector<5x128xf32>
    %148 = tpu.matmul %145, %147, %cst_123 {dimension_numbers = #tpu.dot_dimension_numbers<[1], [0], [0], [1], [0, 0, 1, 1], [], []>} : vector<5x160xbf16>, vector<160x128xbf16>, vector<5x128xf32> -> vector<5x128xf32>
    %c1_124 = arith.constant 1 : index
    %c0_125 = arith.constant 0 : index
    %c0_126 = arith.constant 0 : index
    %149 = vector.load %arg9[%c1_124, %c0_125, %c0_126] : memref<2x160x128xbf16, #tpu.memory_space<vmem>>, vector<1x160x128xbf16>
    %150 = vector.shape_cast %149 : vector<1x160x128xbf16> to vector<160x128xbf16>
    %cst_127 = arith.constant dense<0.000000e+00> : vector<5x128xf32>
    %151 = tpu.matmul %145, %150, %cst_127 {dimension_numbers = #tpu.dot_dimension_numbers<[1], [0], [0], [1], [0, 0, 1, 1], [], []>} : vector<5x160xbf16>, vector<160x128xbf16>, vector<5x128xf32> -> vector<5x128xf32>
    %152 = arith.maximumf %148, %151 : vector<5x128xf32>
    %153 = arith.truncf %152 : vector<5x128xf32> to vector<5x128xbf16>
    %154 = vector.extract_strided_slice %153 {offsets = [0, 0], sizes = [1, 128], strides = [1, 1]} : vector<5x128xbf16> to vector<1x128xbf16>
    %c1_128 = arith.constant 1 : index
    %c0_129 = arith.constant 0 : index
    %155 = vector.load %arg17[%c1_128, %c0_129] : memref<8x640xbf16, #tpu.memory_space<vmem>>, vector<1x128xbf16>
    tpu.vector_store %arg17[%c1_128, %c0_129], %154 {strides = array<i32>} : memref<8x640xbf16, #tpu.memory_space<vmem>>, vector<1x128xbf16>,
    %156 = vector.extract_strided_slice %153 {offsets = [1, 0], sizes = [1, 128], strides = [1, 1]} : vector<5x128xbf16> to vector<1x128xbf16>
    %c1_130 = arith.constant 1 : index
    %c128_131 = arith.constant 128 : index
    %157 = vector.load %arg17[%c1_130, %c128_131] : memref<8x640xbf16, #tpu.memory_space<vmem>>, vector<1x128xbf16>
    tpu.vector_store %arg17[%c1_130, %c128_131], %156 {strides = array<i32>} : memref<8x640xbf16, #tpu.memory_space<vmem>>, vector<1x128xbf16>,
    %158 = vector.extract_strided_slice %153 {offsets = [2, 0], sizes = [1, 128], strides = [1, 1]} : vector<5x128xbf16> to vector<1x128xbf16>
    %c1_132 = arith.constant 1 : index
    %c256_133 = arith.constant 256 : index
    %159 = vector.load %arg17[%c1_132, %c256_133] : memref<8x640xbf16, #tpu.memory_space<vmem>>, vector<1x128xbf16>
    tpu.vector_store %arg17[%c1_132, %c256_133], %158 {strides = array<i32>} : memref<8x640xbf16, #tpu.memory_space<vmem>>, vector<1x128xbf16>,
    %160 = vector.extract_strided_slice %153 {offsets = [3, 0], sizes = [1, 128], strides = [1, 1]} : vector<5x128xbf16> to vector<1x128xbf16>
    %c1_134 = arith.constant 1 : index
    %c384_135 = arith.constant 384 : index
    %161 = vector.load %arg17[%c1_134, %c384_135] : memref<8x640xbf16, #tpu.memory_space<vmem>>, vector<1x128xbf16>
    tpu.vector_store %arg17[%c1_134, %c384_135], %160 {strides = array<i32>} : memref<8x640xbf16, #tpu.memory_space<vmem>>, vector<1x128xbf16>,
    %162 = vector.extract_strided_slice %153 {offsets = [4, 0], sizes = [1, 128], strides = [1, 1]} : vector<5x128xbf16> to vector<1x128xbf16>
    %c1_136 = arith.constant 1 : index
    %c512_137 = arith.constant 512 : index
    %163 = vector.load %arg17[%c1_136, %c512_137] : memref<8x640xbf16, #tpu.memory_space<vmem>>, vector<1x128xbf16>
    tpu.vector_store %arg17[%c1_136, %c512_137], %162 {strides = array<i32>} : memref<8x640xbf16, #tpu.memory_space<vmem>>, vector<1x128xbf16>,
    %c2_138 = arith.constant 2 : index
    %c0_139 = arith.constant 0 : index
    %c0_140 = arith.constant 0 : index
    %164 = vector.load %arg1[%c2_138, %c0_139, %c0_140] : memref<8x28x160xbf16, #tpu.memory_space<vmem>>, vector<1x28x160xbf16>
    %165 = vector.shape_cast %164 : vector<1x28x160xbf16> to vector<28x160xbf16>
    %c0_141 = arith.constant 0 : index
    %c0_142 = arith.constant 0 : index
    %166 = vector.load %arg2[%c0_141, %c0_142] : memref<160x168xbf16, #tpu.memory_space<vmem>>, vector<160x168xbf16>
    %cst_143 = arith.constant dense<0.000000e+00> : vector<28x168xf32>
    %167 = tpu.matmul %165, %166, %cst_143 {dimension_numbers = #tpu.dot_dimension_numbers<[1], [0], [0], [1], [0, 0, 1, 1], [], []>} : vector<28x160xbf16>, vector<160x168xbf16>, vector<28x168xf32> -> vector<28x168xf32>
    %c0_144 = arith.constant 0 : index
    %c0_145 = arith.constant 0 : index
    %168 = vector.load %arg3[%c0_144, %c0_145] : memref<1x168xf32, #tpu.memory_space<vmem>>, vector<1x168xf32>
    %169 = vector.broadcast %168 : vector<1x168xf32> to vector<28x168xf32>
    %170 = arith.addf %167, %169 : vector<28x168xf32>
    %cst_146 = arith.constant 0.000000e+00 : f32
    %171 = vector.broadcast %cst_146 : f32 to vector<28x168xf32>
    %172 = arith.maximumf %170, %171 : vector<28x168xf32>
    %173 = arith.truncf %172 : vector<28x168xf32> to vector<28x168xbf16>
    %c0_147 = arith.constant 0 : index
    %c0_148 = arith.constant 0 : index
    %c0_149 = arith.constant 0 : index
    %174 = vector.load %arg4[%c0_147, %c0_148, %c0_149] : memref<2x14x28xbf16, #tpu.memory_space<vmem>>, vector<1x14x28xbf16>
    %175 = vector.shape_cast %174 : vector<1x14x28xbf16> to vector<14x28xbf16>
    %cst_150 = arith.constant dense<0.000000e+00> : vector<14x168xf32>
    %176 = tpu.matmul %175, %173, %cst_150 {dimension_numbers = #tpu.dot_dimension_numbers<[1], [0], [0], [1], [0, 0, 1, 1], [], []>} : vector<14x28xbf16>, vector<28x168xbf16>, vector<14x168xf32> -> vector<14x168xf32>
    %c1_151 = arith.constant 1 : index
    %c0_152 = arith.constant 0 : index
    %c0_153 = arith.constant 0 : index
    %177 = vector.load %arg4[%c1_151, %c0_152, %c0_153] : memref<2x14x28xbf16, #tpu.memory_space<vmem>>, vector<1x14x28xbf16>
    %178 = vector.shape_cast %177 : vector<1x14x28xbf16> to vector<14x28xbf16>
    %cst_154 = arith.constant dense<0.000000e+00> : vector<14x168xf32>
    %179 = tpu.matmul %178, %173, %cst_154 {dimension_numbers = #tpu.dot_dimension_numbers<[1], [0], [0], [1], [0, 0, 1, 1], [], []>} : vector<14x28xbf16>, vector<28x168xbf16>, vector<14x168xf32> -> vector<14x168xf32>
    %180 = arith.maximumf %176, %179 : vector<14x168xf32>
    %181 = arith.truncf %180 : vector<14x168xf32> to vector<14x168xbf16>
    %c0_155 = arith.constant 0 : index
    %c0_156 = arith.constant 0 : index
    %c0_157 = arith.constant 0 : index
    %182 = vector.load %arg5[%c0_155, %c0_156, %c0_157] : memref<2x168x84xbf16, #tpu.memory_space<vmem>>, vector<1x168x84xbf16>
    %183 = vector.shape_cast %182 : vector<1x168x84xbf16> to vector<168x84xbf16>
    %cst_158 = arith.constant dense<0.000000e+00> : vector<14x84xf32>
    %184 = tpu.matmul %181, %183, %cst_158 {dimension_numbers = #tpu.dot_dimension_numbers<[1], [0], [0], [1], [0, 0, 1, 1], [], []>} : vector<14x168xbf16>, vector<168x84xbf16>, vector<14x84xf32> -> vector<14x84xf32>
    %c1_159 = arith.constant 1 : index
    %c0_160 = arith.constant 0 : index
    %c0_161 = arith.constant 0 : index
    %185 = vector.load %arg5[%c1_159, %c0_160, %c0_161] : memref<2x168x84xbf16, #tpu.memory_space<vmem>>, vector<1x168x84xbf16>
    %186 = vector.shape_cast %185 : vector<1x168x84xbf16> to vector<168x84xbf16>
    %cst_162 = arith.constant dense<0.000000e+00> : vector<14x84xf32>
    %187 = tpu.matmul %181, %186, %cst_162 {dimension_numbers = #tpu.dot_dimension_numbers<[1], [0], [0], [1], [0, 0, 1, 1], [], []>} : vector<14x168xbf16>, vector<168x84xbf16>, vector<14x84xf32> -> vector<14x84xf32>
    %188 = arith.maximumf %184, %187 : vector<14x84xf32>
    %189 = arith.truncf %188 : vector<14x84xf32> to vector<14x84xbf16>
    %190 = vector.extract_strided_slice %189 {offsets = [0, 0], sizes = [10, 84], strides = [1, 1]} : vector<14x84xbf16> to vector<10x84xbf16>
    %c0_163 = arith.constant 0 : index
    %c0_164 = arith.constant 0 : index
    %c0_165 = arith.constant 0 : index
    %191 = vector.load %arg6[%c0_163, %c0_164, %c0_165] : memref<5x84x160xbf16, #tpu.memory_space<vmem>>, vector<1x84x160xbf16>
    %192 = vector.shape_cast %191 : vector<1x84x160xbf16> to vector<84x160xbf16>
    %cst_166 = arith.constant dense<0.000000e+00> : vector<10x160xf32>
    %193 = tpu.matmul %190, %192, %cst_166 {dimension_numbers = #tpu.dot_dimension_numbers<[1], [0], [0], [1], [0, 0, 1, 1], [], []>} : vector<10x84xbf16>, vector<84x160xbf16>, vector<10x160xf32> -> vector<10x160xf32>
    %194 = vector.extract_strided_slice %189 {offsets = [1, 0], sizes = [10, 84], strides = [1, 1]} : vector<14x84xbf16> to vector<10x84xbf16>
    %c1_167 = arith.constant 1 : index
    %c0_168 = arith.constant 0 : index
    %c0_169 = arith.constant 0 : index
    %195 = vector.load %arg6[%c1_167, %c0_168, %c0_169] : memref<5x84x160xbf16, #tpu.memory_space<vmem>>, vector<1x84x160xbf16>
    %196 = vector.shape_cast %195 : vector<1x84x160xbf16> to vector<84x160xbf16>
    %cst_170 = arith.constant dense<0.000000e+00> : vector<10x160xf32>
    %197 = tpu.matmul %194, %196, %cst_170 {dimension_numbers = #tpu.dot_dimension_numbers<[1], [0], [0], [1], [0, 0, 1, 1], [], []>} : vector<10x84xbf16>, vector<84x160xbf16>, vector<10x160xf32> -> vector<10x160xf32>
    %198 = arith.addf %193, %197 : vector<10x160xf32>
    %199 = vector.extract_strided_slice %189 {offsets = [2, 0], sizes = [10, 84], strides = [1, 1]} : vector<14x84xbf16> to vector<10x84xbf16>
    %c2_171 = arith.constant 2 : index
    %c0_172 = arith.constant 0 : index
    %c0_173 = arith.constant 0 : index
    %200 = vector.load %arg6[%c2_171, %c0_172, %c0_173] : memref<5x84x160xbf16, #tpu.memory_space<vmem>>, vector<1x84x160xbf16>
    %201 = vector.shape_cast %200 : vector<1x84x160xbf16> to vector<84x160xbf16>
    %cst_174 = arith.constant dense<0.000000e+00> : vector<10x160xf32>
    %202 = tpu.matmul %199, %201, %cst_174 {dimension_numbers = #tpu.dot_dimension_numbers<[1], [0], [0], [1], [0, 0, 1, 1], [], []>} : vector<10x84xbf16>, vector<84x160xbf16>, vector<10x160xf32> -> vector<10x160xf32>
    %203 = arith.addf %198, %202 : vector<10x160xf32>
    %204 = vector.extract_strided_slice %189 {offsets = [3, 0], sizes = [10, 84], strides = [1, 1]} : vector<14x84xbf16> to vector<10x84xbf16>
    %c3_175 = arith.constant 3 : index
    %c0_176 = arith.constant 0 : index
    %c0_177 = arith.constant 0 : index
    %205 = vector.load %arg6[%c3_175, %c0_176, %c0_177] : memref<5x84x160xbf16, #tpu.memory_space<vmem>>, vector<1x84x160xbf16>
    %206 = vector.shape_cast %205 : vector<1x84x160xbf16> to vector<84x160xbf16>
    %cst_178 = arith.constant dense<0.000000e+00> : vector<10x160xf32>
    %207 = tpu.matmul %204, %206, %cst_178 {dimension_numbers = #tpu.dot_dimension_numbers<[1], [0], [0], [1], [0, 0, 1, 1], [], []>} : vector<10x84xbf16>, vector<84x160xbf16>, vector<10x160xf32> -> vector<10x160xf32>
    %208 = arith.addf %203, %207 : vector<10x160xf32>
    %209 = vector.extract_strided_slice %189 {offsets = [4, 0], sizes = [10, 84], strides = [1, 1]} : vector<14x84xbf16> to vector<10x84xbf16>
    %c4_179 = arith.constant 4 : index
    %c0_180 = arith.constant 0 : index
    %c0_181 = arith.constant 0 : index
    %210 = vector.load %arg6[%c4_179, %c0_180, %c0_181] : memref<5x84x160xbf16, #tpu.memory_space<vmem>>, vector<1x84x160xbf16>
    %211 = vector.shape_cast %210 : vector<1x84x160xbf16> to vector<84x160xbf16>
    %cst_182 = arith.constant dense<0.000000e+00> : vector<10x160xf32>
    %212 = tpu.matmul %209, %211, %cst_182 {dimension_numbers = #tpu.dot_dimension_numbers<[1], [0], [0], [1], [0, 0, 1, 1], [], []>} : vector<10x84xbf16>, vector<84x160xbf16>, vector<10x160xf32> -> vector<10x160xf32>
    %213 = arith.addf %208, %212 : vector<10x160xf32>
    %c0_183 = arith.constant 0 : index
    %c0_184 = arith.constant 0 : index
    %214 = vector.load %arg7[%c0_183, %c0_184] : memref<1x160xf32, #tpu.memory_space<vmem>>, vector<1x160xf32>
    %215 = vector.broadcast %214 : vector<1x160xf32> to vector<10x160xf32>
    %216 = arith.addf %213, %215 : vector<10x160xf32>
    %cst_185 = arith.constant 0.000000e+00 : f32
    %217 = vector.broadcast %cst_185 : f32 to vector<10x160xf32>
    %218 = arith.maximumf %216, %217 : vector<10x160xf32>
    %219 = arith.truncf %218 : vector<10x160xf32> to vector<10x160xbf16>
    %c0_186 = arith.constant 0 : index
    %c0_187 = arith.constant 0 : index
    %c0_188 = arith.constant 0 : index
    %220 = vector.load %arg8[%c0_186, %c0_187, %c0_188] : memref<2x5x10xbf16, #tpu.memory_space<vmem>>, vector<1x5x10xbf16>
    %221 = vector.shape_cast %220 : vector<1x5x10xbf16> to vector<5x10xbf16>
    %cst_189 = arith.constant dense<0.000000e+00> : vector<5x160xf32>
    %222 = tpu.matmul %221, %219, %cst_189 {dimension_numbers = #tpu.dot_dimension_numbers<[1], [0], [0], [1], [0, 0, 1, 1], [], []>} : vector<5x10xbf16>, vector<10x160xbf16>, vector<5x160xf32> -> vector<5x160xf32>
    %c1_190 = arith.constant 1 : index
    %c0_191 = arith.constant 0 : index
    %c0_192 = arith.constant 0 : index
    %223 = vector.load %arg8[%c1_190, %c0_191, %c0_192] : memref<2x5x10xbf16, #tpu.memory_space<vmem>>, vector<1x5x10xbf16>
    %224 = vector.shape_cast %223 : vector<1x5x10xbf16> to vector<5x10xbf16>
    %cst_193 = arith.constant dense<0.000000e+00> : vector<5x160xf32>
    %225 = tpu.matmul %224, %219, %cst_193 {dimension_numbers = #tpu.dot_dimension_numbers<[1], [0], [0], [1], [0, 0, 1, 1], [], []>} : vector<5x10xbf16>, vector<10x160xbf16>, vector<5x160xf32> -> vector<5x160xf32>
    %226 = arith.maximumf %222, %225 : vector<5x160xf32>
    %227 = arith.truncf %226 : vector<5x160xf32> to vector<5x160xbf16>
    %c0_194 = arith.constant 0 : index
    %c0_195 = arith.constant 0 : index
    %c0_196 = arith.constant 0 : index
    %228 = vector.load %arg9[%c0_194, %c0_195, %c0_196] : memref<2x160x128xbf16, #tpu.memory_space<vmem>>, vector<1x160x128xbf16>
    %229 = vector.shape_cast %228 : vector<1x160x128xbf16> to vector<160x128xbf16>
    %cst_197 = arith.constant dense<0.000000e+00> : vector<5x128xf32>
    %230 = tpu.matmul %227, %229, %cst_197 {dimension_numbers = #tpu.dot_dimension_numbers<[1], [0], [0], [1], [0, 0, 1, 1], [], []>} : vector<5x160xbf16>, vector<160x128xbf16>, vector<5x128xf32> -> vector<5x128xf32>
    %c1_198 = arith.constant 1 : index
    %c0_199 = arith.constant 0 : index
    %c0_200 = arith.constant 0 : index
    %231 = vector.load %arg9[%c1_198, %c0_199, %c0_200] : memref<2x160x128xbf16, #tpu.memory_space<vmem>>, vector<1x160x128xbf16>
    %232 = vector.shape_cast %231 : vector<1x160x128xbf16> to vector<160x128xbf16>
    %cst_201 = arith.constant dense<0.000000e+00> : vector<5x128xf32>
    %233 = tpu.matmul %227, %232, %cst_201 {dimension_numbers = #tpu.dot_dimension_numbers<[1], [0], [0], [1], [0, 0, 1, 1], [], []>} : vector<5x160xbf16>, vector<160x128xbf16>, vector<5x128xf32> -> vector<5x128xf32>
    %234 = arith.maximumf %230, %233 : vector<5x128xf32>
    %235 = arith.truncf %234 : vector<5x128xf32> to vector<5x128xbf16>
    %236 = vector.extract_strided_slice %235 {offsets = [0, 0], sizes = [1, 128], strides = [1, 1]} : vector<5x128xbf16> to vector<1x128xbf16>
    %c2_202 = arith.constant 2 : index
    %c0_203 = arith.constant 0 : index
    %237 = vector.load %arg17[%c2_202, %c0_203] : memref<8x640xbf16, #tpu.memory_space<vmem>>, vector<1x128xbf16>
    tpu.vector_store %arg17[%c2_202, %c0_203], %236 {strides = array<i32>} : memref<8x640xbf16, #tpu.memory_space<vmem>>, vector<1x128xbf16>,
    %238 = vector.extract_strided_slice %235 {offsets = [1, 0], sizes = [1, 128], strides = [1, 1]} : vector<5x128xbf16> to vector<1x128xbf16>
    %c2_204 = arith.constant 2 : index
    %c128_205 = arith.constant 128 : index
    %239 = vector.load %arg17[%c2_204, %c128_205] : memref<8x640xbf16, #tpu.memory_space<vmem>>, vector<1x128xbf16>
    tpu.vector_store %arg17[%c2_204, %c128_205], %238 {strides = array<i32>} : memref<8x640xbf16, #tpu.memory_space<vmem>>, vector<1x128xbf16>,
    %240 = vector.extract_strided_slice %235 {offsets = [2, 0], sizes = [1, 128], strides = [1, 1]} : vector<5x128xbf16> to vector<1x128xbf16>
    %c2_206 = arith.constant 2 : index
    %c256_207 = arith.constant 256 : index
    %241 = vector.load %arg17[%c2_206, %c256_207] : memref<8x640xbf16, #tpu.memory_space<vmem>>, vector<1x128xbf16>
    tpu.vector_store %arg17[%c2_206, %c256_207], %240 {strides = array<i32>} : memref<8x640xbf16, #tpu.memory_space<vmem>>, vector<1x128xbf16>,
    %242 = vector.extract_strided_slice %235 {offsets = [3, 0], sizes = [1, 128], strides = [1, 1]} : vector<5x128xbf16> to vector<1x128xbf16>
    %c2_208 = arith.constant 2 : index
    %c384_209 = arith.constant 384 : index
    %243 = vector.load %arg17[%c2_208, %c384_209] : memref<8x640xbf16, #tpu.memory_space<vmem>>, vector<1x128xbf16>
    tpu.vector_store %arg17[%c2_208, %c384_209], %242 {strides = array<i32>} : memref<8x640xbf16, #tpu.memory_space<vmem>>, vector<1x128xbf16>,
    %244 = vector.extract_strided_slice %235 {offsets = [4, 0], sizes = [1, 128], strides = [1, 1]} : vector<5x128xbf16> to vector<1x128xbf16>
    %c2_210 = arith.constant 2 : index
    %c512_211 = arith.constant 512 : index
    %245 = vector.load %arg17[%c2_210, %c512_211] : memref<8x640xbf16, #tpu.memory_space<vmem>>, vector<1x128xbf16>
    tpu.vector_store %arg17[%c2_210, %c512_211], %244 {strides = array<i32>} : memref<8x640xbf16, #tpu.memory_space<vmem>>, vector<1x128xbf16>,
    %c3_212 = arith.constant 3 : index
    %c0_213 = arith.constant 0 : index
    %c0_214 = arith.constant 0 : index
    %246 = vector.load %arg1[%c3_212, %c0_213, %c0_214] : memref<8x28x160xbf16, #tpu.memory_space<vmem>>, vector<1x28x160xbf16>
    %247 = vector.shape_cast %246 : vector<1x28x160xbf16> to vector<28x160xbf16>
    %c0_215 = arith.constant 0 : index
    %c0_216 = arith.constant 0 : index
    %248 = vector.load %arg2[%c0_215, %c0_216] : memref<160x168xbf16, #tpu.memory_space<vmem>>, vector<160x168xbf16>
    %cst_217 = arith.constant dense<0.000000e+00> : vector<28x168xf32>
    %249 = tpu.matmul %247, %248, %cst_217 {dimension_numbers = #tpu.dot_dimension_numbers<[1], [0], [0], [1], [0, 0, 1, 1], [], []>} : vector<28x160xbf16>, vector<160x168xbf16>, vector<28x168xf32> -> vector<28x168xf32>
    %c0_218 = arith.constant 0 : index
    %c0_219 = arith.constant 0 : index
    %250 = vector.load %arg3[%c0_218, %c0_219] : memref<1x168xf32, #tpu.memory_space<vmem>>, vector<1x168xf32>
    %251 = vector.broadcast %250 : vector<1x168xf32> to vector<28x168xf32>
    %252 = arith.addf %249, %251 : vector<28x168xf32>
    %cst_220 = arith.constant 0.000000e+00 : f32
    %253 = vector.broadcast %cst_220 : f32 to vector<28x168xf32>
    %254 = arith.maximumf %252, %253 : vector<28x168xf32>
    %255 = arith.truncf %254 : vector<28x168xf32> to vector<28x168xbf16>
    %c0_221 = arith.constant 0 : index
    %c0_222 = arith.constant 0 : index
    %c0_223 = arith.constant 0 : index
    %256 = vector.load %arg4[%c0_221, %c0_222, %c0_223] : memref<2x14x28xbf16, #tpu.memory_space<vmem>>, vector<1x14x28xbf16>
    %257 = vector.shape_cast %256 : vector<1x14x28xbf16> to vector<14x28xbf16>
    %cst_224 = arith.constant dense<0.000000e+00> : vector<14x168xf32>
    %258 = tpu.matmul %257, %255, %cst_224 {dimension_numbers = #tpu.dot_dimension_numbers<[1], [0], [0], [1], [0, 0, 1, 1], [], []>} : vector<14x28xbf16>, vector<28x168xbf16>, vector<14x168xf32> -> vector<14x168xf32>
    %c1_225 = arith.constant 1 : index
    %c0_226 = arith.constant 0 : index
    %c0_227 = arith.constant 0 : index
    %259 = vector.load %arg4[%c1_225, %c0_226, %c0_227] : memref<2x14x28xbf16, #tpu.memory_space<vmem>>, vector<1x14x28xbf16>
    %260 = vector.shape_cast %259 : vector<1x14x28xbf16> to vector<14x28xbf16>
    %cst_228 = arith.constant dense<0.000000e+00> : vector<14x168xf32>
    %261 = tpu.matmul %260, %255, %cst_228 {dimension_numbers = #tpu.dot_dimension_numbers<[1], [0], [0], [1], [0, 0, 1, 1], [], []>} : vector<14x28xbf16>, vector<28x168xbf16>, vector<14x168xf32> -> vector<14x168xf32>
    %262 = arith.maximumf %258, %261 : vector<14x168xf32>
    %263 = arith.truncf %262 : vector<14x168xf32> to vector<14x168xbf16>
    %c0_229 = arith.constant 0 : index
    %c0_230 = arith.constant 0 : index
    %c0_231 = arith.constant 0 : index
    %264 = vector.load %arg5[%c0_229, %c0_230, %c0_231] : memref<2x168x84xbf16, #tpu.memory_space<vmem>>, vector<1x168x84xbf16>
    %265 = vector.shape_cast %264 : vector<1x168x84xbf16> to vector<168x84xbf16>
    %cst_232 = arith.constant dense<0.000000e+00> : vector<14x84xf32>
    %266 = tpu.matmul %263, %265, %cst_232 {dimension_numbers = #tpu.dot_dimension_numbers<[1], [0], [0], [1], [0, 0, 1, 1], [], []>} : vector<14x168xbf16>, vector<168x84xbf16>, vector<14x84xf32> -> vector<14x84xf32>
    %c1_233 = arith.constant 1 : index
    %c0_234 = arith.constant 0 : index
    %c0_235 = arith.constant 0 : index
    %267 = vector.load %arg5[%c1_233, %c0_234, %c0_235] : memref<2x168x84xbf16, #tpu.memory_space<vmem>>, vector<1x168x84xbf16>
    %268 = vector.shape_cast %267 : vector<1x168x84xbf16> to vector<168x84xbf16>
    %cst_236 = arith.constant dense<0.000000e+00> : vector<14x84xf32>
    %269 = tpu.matmul %263, %268, %cst_236 {dimension_numbers = #tpu.dot_dimension_numbers<[1], [0], [0], [1], [0, 0, 1, 1], [], []>} : vector<14x168xbf16>, vector<168x84xbf16>, vector<14x84xf32> -> vector<14x84xf32>
    %270 = arith.maximumf %266, %269 : vector<14x84xf32>
    %271 = arith.truncf %270 : vector<14x84xf32> to vector<14x84xbf16>
    %272 = vector.extract_strided_slice %271 {offsets = [0, 0], sizes = [10, 84], strides = [1, 1]} : vector<14x84xbf16> to vector<10x84xbf16>
    %c0_237 = arith.constant 0 : index
    %c0_238 = arith.constant 0 : index
    %c0_239 = arith.constant 0 : index
    %273 = vector.load %arg6[%c0_237, %c0_238, %c0_239] : memref<5x84x160xbf16, #tpu.memory_space<vmem>>, vector<1x84x160xbf16>
    %274 = vector.shape_cast %273 : vector<1x84x160xbf16> to vector<84x160xbf16>
    %cst_240 = arith.constant dense<0.000000e+00> : vector<10x160xf32>
    %275 = tpu.matmul %272, %274, %cst_240 {dimension_numbers = #tpu.dot_dimension_numbers<[1], [0], [0], [1], [0, 0, 1, 1], [], []>} : vector<10x84xbf16>, vector<84x160xbf16>, vector<10x160xf32> -> vector<10x160xf32>
    %276 = vector.extract_strided_slice %271 {offsets = [1, 0], sizes = [10, 84], strides = [1, 1]} : vector<14x84xbf16> to vector<10x84xbf16>
    %c1_241 = arith.constant 1 : index
    %c0_242 = arith.constant 0 : index
    %c0_243 = arith.constant 0 : index
    %277 = vector.load %arg6[%c1_241, %c0_242, %c0_243] : memref<5x84x160xbf16, #tpu.memory_space<vmem>>, vector<1x84x160xbf16>
    %278 = vector.shape_cast %277 : vector<1x84x160xbf16> to vector<84x160xbf16>
    %cst_244 = arith.constant dense<0.000000e+00> : vector<10x160xf32>
    %279 = tpu.matmul %276, %278, %cst_244 {dimension_numbers = #tpu.dot_dimension_numbers<[1], [0], [0], [1], [0, 0, 1, 1], [], []>} : vector<10x84xbf16>, vector<84x160xbf16>, vector<10x160xf32> -> vector<10x160xf32>
    %280 = arith.addf %275, %279 : vector<10x160xf32>
    %281 = vector.extract_strided_slice %271 {offsets = [2, 0], sizes = [10, 84], strides = [1, 1]} : vector<14x84xbf16> to vector<10x84xbf16>
    %c2_245 = arith.constant 2 : index
    %c0_246 = arith.constant 0 : index
    %c0_247 = arith.constant 0 : index
    %282 = vector.load %arg6[%c2_245, %c0_246, %c0_247] : memref<5x84x160xbf16, #tpu.memory_space<vmem>>, vector<1x84x160xbf16>
    %283 = vector.shape_cast %282 : vector<1x84x160xbf16> to vector<84x160xbf16>
    %cst_248 = arith.constant dense<0.000000e+00> : vector<10x160xf32>
    %284 = tpu.matmul %281, %283, %cst_248 {dimension_numbers = #tpu.dot_dimension_numbers<[1], [0], [0], [1], [0, 0, 1, 1], [], []>} : vector<10x84xbf16>, vector<84x160xbf16>, vector<10x160xf32> -> vector<10x160xf32>
    %285 = arith.addf %280, %284 : vector<10x160xf32>
    %286 = vector.extract_strided_slice %271 {offsets = [3, 0], sizes = [10, 84], strides = [1, 1]} : vector<14x84xbf16> to vector<10x84xbf16>
    %c3_249 = arith.constant 3 : index
    %c0_250 = arith.constant 0 : index
    %c0_251 = arith.constant 0 : index
    %287 = vector.load %arg6[%c3_249, %c0_250, %c0_251] : memref<5x84x160xbf16, #tpu.memory_space<vmem>>, vector<1x84x160xbf16>
    %288 = vector.shape_cast %287 : vector<1x84x160xbf16> to vector<84x160xbf16>
    %cst_252 = arith.constant dense<0.000000e+00> : vector<10x160xf32>
    %289 = tpu.matmul %286, %288, %cst_252 {dimension_numbers = #tpu.dot_dimension_numbers<[1], [0], [0], [1], [0, 0, 1, 1], [], []>} : vector<10x84xbf16>, vector<84x160xbf16>, vector<10x160xf32> -> vector<10x160xf32>
    %290 = arith.addf %285, %289 : vector<10x160xf32>
    %291 = vector.extract_strided_slice %271 {offsets = [4, 0], sizes = [10, 84], strides = [1, 1]} : vector<14x84xbf16> to vector<10x84xbf16>
    %c4_253 = arith.constant 4 : index
    %c0_254 = arith.constant 0 : index
    %c0_255 = arith.constant 0 : index
    %292 = vector.load %arg6[%c4_253, %c0_254, %c0_255] : memref<5x84x160xbf16, #tpu.memory_space<vmem>>, vector<1x84x160xbf16>
    %293 = vector.shape_cast %292 : vector<1x84x160xbf16> to vector<84x160xbf16>
    %cst_256 = arith.constant dense<0.000000e+00> : vector<10x160xf32>
    %294 = tpu.matmul %291, %293, %cst_256 {dimension_numbers = #tpu.dot_dimension_numbers<[1], [0], [0], [1], [0, 0, 1, 1], [], []>} : vector<10x84xbf16>, vector<84x160xbf16>, vector<10x160xf32> -> vector<10x160xf32>
    %295 = arith.addf %290, %294 : vector<10x160xf32>
    %c0_257 = arith.constant 0 : index
    %c0_258 = arith.constant 0 : index
    %296 = vector.load %arg7[%c0_257, %c0_258] : memref<1x160xf32, #tpu.memory_space<vmem>>, vector<1x160xf32>
    %297 = vector.broadcast %296 : vector<1x160xf32> to vector<10x160xf32>
    %298 = arith.addf %295, %297 : vector<10x160xf32>
    %cst_259 = arith.constant 0.000000e+00 : f32
    %299 = vector.broadcast %cst_259 : f32 to vector<10x160xf32>
    %300 = arith.maximumf %298, %299 : vector<10x160xf32>
    %301 = arith.truncf %300 : vector<10x160xf32> to vector<10x160xbf16>
    %c0_260 = arith.constant 0 : index
    %c0_261 = arith.constant 0 : index
    %c0_262 = arith.constant 0 : index
    %302 = vector.load %arg8[%c0_260, %c0_261, %c0_262] : memref<2x5x10xbf16, #tpu.memory_space<vmem>>, vector<1x5x10xbf16>
    %303 = vector.shape_cast %302 : vector<1x5x10xbf16> to vector<5x10xbf16>
    %cst_263 = arith.constant dense<0.000000e+00> : vector<5x160xf32>
    %304 = tpu.matmul %303, %301, %cst_263 {dimension_numbers = #tpu.dot_dimension_numbers<[1], [0], [0], [1], [0, 0, 1, 1], [], []>} : vector<5x10xbf16>, vector<10x160xbf16>, vector<5x160xf32> -> vector<5x160xf32>
    %c1_264 = arith.constant 1 : index
    %c0_265 = arith.constant 0 : index
    %c0_266 = arith.constant 0 : index
    %305 = vector.load %arg8[%c1_264, %c0_265, %c0_266] : memref<2x5x10xbf16, #tpu.memory_space<vmem>>, vector<1x5x10xbf16>
    %306 = vector.shape_cast %305 : vector<1x5x10xbf16> to vector<5x10xbf16>
    %cst_267 = arith.constant dense<0.000000e+00> : vector<5x160xf32>
    %307 = tpu.matmul %306, %301, %cst_267 {dimension_numbers = #tpu.dot_dimension_numbers<[1], [0], [0], [1], [0, 0, 1, 1], [], []>} : vector<5x10xbf16>, vector<10x160xbf16>, vector<5x160xf32> -> vector<5x160xf32>
    %308 = arith.maximumf %304, %307 : vector<5x160xf32>
    %309 = arith.truncf %308 : vector<5x160xf32> to vector<5x160xbf16>
    %c0_268 = arith.constant 0 : index
    %c0_269 = arith.constant 0 : index
    %c0_270 = arith.constant 0 : index
    %310 = vector.load %arg9[%c0_268, %c0_269, %c0_270] : memref<2x160x128xbf16, #tpu.memory_space<vmem>>, vector<1x160x128xbf16>
    %311 = vector.shape_cast %310 : vector<1x160x128xbf16> to vector<160x128xbf16>
    %cst_271 = arith.constant dense<0.000000e+00> : vector<5x128xf32>
    %312 = tpu.matmul %309, %311, %cst_271 {dimension_numbers = #tpu.dot_dimension_numbers<[1], [0], [0], [1], [0, 0, 1, 1], [], []>} : vector<5x160xbf16>, vector<160x128xbf16>, vector<5x128xf32> -> vector<5x128xf32>
    %c1_272 = arith.constant 1 : index
    %c0_273 = arith.constant 0 : index
    %c0_274 = arith.constant 0 : index
    %313 = vector.load %arg9[%c1_272, %c0_273, %c0_274] : memref<2x160x128xbf16, #tpu.memory_space<vmem>>, vector<1x160x128xbf16>
    %314 = vector.shape_cast %313 : vector<1x160x128xbf16> to vector<160x128xbf16>
    %cst_275 = arith.constant dense<0.000000e+00> : vector<5x128xf32>
    %315 = tpu.matmul %309, %314, %cst_275 {dimension_numbers = #tpu.dot_dimension_numbers<[1], [0], [0], [1], [0, 0, 1, 1], [], []>} : vector<5x160xbf16>, vector<160x128xbf16>, vector<5x128xf32> -> vector<5x128xf32>
    %316 = arith.maximumf %312, %315 : vector<5x128xf32>
    %317 = arith.truncf %316 : vector<5x128xf32> to vector<5x128xbf16>
    %318 = vector.extract_strided_slice %317 {offsets = [0, 0], sizes = [1, 128], strides = [1, 1]} : vector<5x128xbf16> to vector<1x128xbf16>
    %c3_276 = arith.constant 3 : index
    %c0_277 = arith.constant 0 : index
    %319 = vector.load %arg17[%c3_276, %c0_277] : memref<8x640xbf16, #tpu.memory_space<vmem>>, vector<1x128xbf16>
    tpu.vector_store %arg17[%c3_276, %c0_277], %318 {strides = array<i32>} : memref<8x640xbf16, #tpu.memory_space<vmem>>, vector<1x128xbf16>,
    %320 = vector.extract_strided_slice %317 {offsets = [1, 0], sizes = [1, 128], strides = [1, 1]} : vector<5x128xbf16> to vector<1x128xbf16>
    %c3_278 = arith.constant 3 : index
    %c128_279 = arith.constant 128 : index
    %321 = vector.load %arg17[%c3_278, %c128_279] : memref<8x640xbf16, #tpu.memory_space<vmem>>, vector<1x128xbf16>
    tpu.vector_store %arg17[%c3_278, %c128_279], %320 {strides = array<i32>} : memref<8x640xbf16, #tpu.memory_space<vmem>>, vector<1x128xbf16>,
    %322 = vector.extract_strided_slice %317 {offsets = [2, 0], sizes = [1, 128], strides = [1, 1]} : vector<5x128xbf16> to vector<1x128xbf16>
    %c3_280 = arith.constant 3 : index
    %c256_281 = arith.constant 256 : index
    %323 = vector.load %arg17[%c3_280, %c256_281] : memref<8x640xbf16, #tpu.memory_space<vmem>>, vector<1x128xbf16>
    tpu.vector_store %arg17[%c3_280, %c256_281], %322 {strides = array<i32>} : memref<8x640xbf16, #tpu.memory_space<vmem>>, vector<1x128xbf16>,
    %324 = vector.extract_strided_slice %317 {offsets = [3, 0], sizes = [1, 128], strides = [1, 1]} : vector<5x128xbf16> to vector<1x128xbf16>
    %c3_282 = arith.constant 3 : index
    %c384_283 = arith.constant 384 : index
    %325 = vector.load %arg17[%c3_282, %c384_283] : memref<8x640xbf16, #tpu.memory_space<vmem>>, vector<1x128xbf16>
    tpu.vector_store %arg17[%c3_282, %c384_283], %324 {strides = array<i32>} : memref<8x640xbf16, #tpu.memory_space<vmem>>, vector<1x128xbf16>,
    %326 = vector.extract_strided_slice %317 {offsets = [4, 0], sizes = [1, 128], strides = [1, 1]} : vector<5x128xbf16> to vector<1x128xbf16>
    %c3_284 = arith.constant 3 : index
    %c512_285 = arith.constant 512 : index
    %327 = vector.load %arg17[%c3_284, %c512_285] : memref<8x640xbf16, #tpu.memory_space<vmem>>, vector<1x128xbf16>
    tpu.vector_store %arg17[%c3_284, %c512_285], %326 {strides = array<i32>} : memref<8x640xbf16, #tpu.memory_space<vmem>>, vector<1x128xbf16>,
    %c4_286 = arith.constant 4 : index
    %c0_287 = arith.constant 0 : index
    %c0_288 = arith.constant 0 : index
    %328 = vector.load %arg1[%c4_286, %c0_287, %c0_288] : memref<8x28x160xbf16, #tpu.memory_space<vmem>>, vector<1x28x160xbf16>
    %329 = vector.shape_cast %328 : vector<1x28x160xbf16> to vector<28x160xbf16>
    %c0_289 = arith.constant 0 : index
    %c0_290 = arith.constant 0 : index
    %330 = vector.load %arg2[%c0_289, %c0_290] : memref<160x168xbf16, #tpu.memory_space<vmem>>, vector<160x168xbf16>
    %cst_291 = arith.constant dense<0.000000e+00> : vector<28x168xf32>
    %331 = tpu.matmul %329, %330, %cst_291 {dimension_numbers = #tpu.dot_dimension_numbers<[1], [0], [0], [1], [0, 0, 1, 1], [], []>} : vector<28x160xbf16>, vector<160x168xbf16>, vector<28x168xf32> -> vector<28x168xf32>
    %c0_292 = arith.constant 0 : index
    %c0_293 = arith.constant 0 : index
    %332 = vector.load %arg3[%c0_292, %c0_293] : memref<1x168xf32, #tpu.memory_space<vmem>>, vector<1x168xf32>
    %333 = vector.broadcast %332 : vector<1x168xf32> to vector<28x168xf32>
    %334 = arith.addf %331, %333 : vector<28x168xf32>
    %cst_294 = arith.constant 0.000000e+00 : f32
    %335 = vector.broadcast %cst_294 : f32 to vector<28x168xf32>
    %336 = arith.maximumf %334, %335 : vector<28x168xf32>
    %337 = arith.truncf %336 : vector<28x168xf32> to vector<28x168xbf16>
    %c0_295 = arith.constant 0 : index
    %c0_296 = arith.constant 0 : index
    %c0_297 = arith.constant 0 : index
    %338 = vector.load %arg4[%c0_295, %c0_296, %c0_297] : memref<2x14x28xbf16, #tpu.memory_space<vmem>>, vector<1x14x28xbf16>
    %339 = vector.shape_cast %338 : vector<1x14x28xbf16> to vector<14x28xbf16>
    %cst_298 = arith.constant dense<0.000000e+00> : vector<14x168xf32>
    %340 = tpu.matmul %339, %337, %cst_298 {dimension_numbers = #tpu.dot_dimension_numbers<[1], [0], [0], [1], [0, 0, 1, 1], [], []>} : vector<14x28xbf16>, vector<28x168xbf16>, vector<14x168xf32> -> vector<14x168xf32>
    %c1_299 = arith.constant 1 : index
    %c0_300 = arith.constant 0 : index
    %c0_301 = arith.constant 0 : index
    %341 = vector.load %arg4[%c1_299, %c0_300, %c0_301] : memref<2x14x28xbf16, #tpu.memory_space<vmem>>, vector<1x14x28xbf16>
    %342 = vector.shape_cast %341 : vector<1x14x28xbf16> to vector<14x28xbf16>
    %cst_302 = arith.constant dense<0.000000e+00> : vector<14x168xf32>
    %343 = tpu.matmul %342, %337, %cst_302 {dimension_numbers = #tpu.dot_dimension_numbers<[1], [0], [0], [1], [0, 0, 1, 1], [], []>} : vector<14x28xbf16>, vector<28x168xbf16>, vector<14x168xf32> -> vector<14x168xf32>
    %344 = arith.maximumf %340, %343 : vector<14x168xf32>
    %345 = arith.truncf %344 : vector<14x168xf32> to vector<14x168xbf16>
    %c0_303 = arith.constant 0 : index
    %c0_304 = arith.constant 0 : index
    %c0_305 = arith.constant 0 : index
    %346 = vector.load %arg5[%c0_303, %c0_304, %c0_305] : memref<2x168x84xbf16, #tpu.memory_space<vmem>>, vector<1x168x84xbf16>
    %347 = vector.shape_cast %346 : vector<1x168x84xbf16> to vector<168x84xbf16>
    %cst_306 = arith.constant dense<0.000000e+00> : vector<14x84xf32>
    %348 = tpu.matmul %345, %347, %cst_306 {dimension_numbers = #tpu.dot_dimension_numbers<[1], [0], [0], [1], [0, 0, 1, 1], [], []>} : vector<14x168xbf16>, vector<168x84xbf16>, vector<14x84xf32> -> vector<14x84xf32>
    %c1_307 = arith.constant 1 : index
    %c0_308 = arith.constant 0 : index
    %c0_309 = arith.constant 0 : index
    %349 = vector.load %arg5[%c1_307, %c0_308, %c0_309] : memref<2x168x84xbf16, #tpu.memory_space<vmem>>, vector<1x168x84xbf16>
    %350 = vector.shape_cast %349 : vector<1x168x84xbf16> to vector<168x84xbf16>
    %cst_310 = arith.constant dense<0.000000e+00> : vector<14x84xf32>
    %351 = tpu.matmul %345, %350, %cst_310 {dimension_numbers = #tpu.dot_dimension_numbers<[1], [0], [0], [1], [0, 0, 1, 1], [], []>} : vector<14x168xbf16>, vector<168x84xbf16>, vector<14x84xf32> -> vector<14x84xf32>
    %352 = arith.maximumf %348, %351 : vector<14x84xf32>
    %353 = arith.truncf %352 : vector<14x84xf32> to vector<14x84xbf16>
    %354 = vector.extract_strided_slice %353 {offsets = [0, 0], sizes = [10, 84], strides = [1, 1]} : vector<14x84xbf16> to vector<10x84xbf16>
    %c0_311 = arith.constant 0 : index
    %c0_312 = arith.constant 0 : index
    %c0_313 = arith.constant 0 : index
    %355 = vector.load %arg6[%c0_311, %c0_312, %c0_313] : memref<5x84x160xbf16, #tpu.memory_space<vmem>>, vector<1x84x160xbf16>
    %356 = vector.shape_cast %355 : vector<1x84x160xbf16> to vector<84x160xbf16>
    %cst_314 = arith.constant dense<0.000000e+00> : vector<10x160xf32>
    %357 = tpu.matmul %354, %356, %cst_314 {dimension_numbers = #tpu.dot_dimension_numbers<[1], [0], [0], [1], [0, 0, 1, 1], [], []>} : vector<10x84xbf16>, vector<84x160xbf16>, vector<10x160xf32> -> vector<10x160xf32>
    %358 = vector.extract_strided_slice %353 {offsets = [1, 0], sizes = [10, 84], strides = [1, 1]} : vector<14x84xbf16> to vector<10x84xbf16>
    %c1_315 = arith.constant 1 : index
    %c0_316 = arith.constant 0 : index
    %c0_317 = arith.constant 0 : index
    %359 = vector.load %arg6[%c1_315, %c0_316, %c0_317] : memref<5x84x160xbf16, #tpu.memory_space<vmem>>, vector<1x84x160xbf16>
    %360 = vector.shape_cast %359 : vector<1x84x160xbf16> to vector<84x160xbf16>
    %cst_318 = arith.constant dense<0.000000e+00> : vector<10x160xf32>
    %361 = tpu.matmul %358, %360, %cst_318 {dimension_numbers = #tpu.dot_dimension_numbers<[1], [0], [0], [1], [0, 0, 1, 1], [], []>} : vector<10x84xbf16>, vector<84x160xbf16>, vector<10x160xf32> -> vector<10x160xf32>
    %362 = arith.addf %357, %361 : vector<10x160xf32>
    %363 = vector.extract_strided_slice %353 {offsets = [2, 0], sizes = [10, 84], strides = [1, 1]} : vector<14x84xbf16> to vector<10x84xbf16>
    %c2_319 = arith.constant 2 : index
    %c0_320 = arith.constant 0 : index
    %c0_321 = arith.constant 0 : index
    %364 = vector.load %arg6[%c2_319, %c0_320, %c0_321] : memref<5x84x160xbf16, #tpu.memory_space<vmem>>, vector<1x84x160xbf16>
    %365 = vector.shape_cast %364 : vector<1x84x160xbf16> to vector<84x160xbf16>
    %cst_322 = arith.constant dense<0.000000e+00> : vector<10x160xf32>
    %366 = tpu.matmul %363, %365, %cst_322 {dimension_numbers = #tpu.dot_dimension_numbers<[1], [0], [0], [1], [0, 0, 1, 1], [], []>} : vector<10x84xbf16>, vector<84x160xbf16>, vector<10x160xf32> -> vector<10x160xf32>
    %367 = arith.addf %362, %366 : vector<10x160xf32>
    %368 = vector.extract_strided_slice %353 {offsets = [3, 0], sizes = [10, 84], strides = [1, 1]} : vector<14x84xbf16> to vector<10x84xbf16>
    %c3_323 = arith.constant 3 : index
    %c0_324 = arith.constant 0 : index
    %c0_325 = arith.constant 0 : index
    %369 = vector.load %arg6[%c3_323, %c0_324, %c0_325] : memref<5x84x160xbf16, #tpu.memory_space<vmem>>, vector<1x84x160xbf16>
    %370 = vector.shape_cast %369 : vector<1x84x160xbf16> to vector<84x160xbf16>
    %cst_326 = arith.constant dense<0.000000e+00> : vector<10x160xf32>
    %371 = tpu.matmul %368, %370, %cst_326 {dimension_numbers = #tpu.dot_dimension_numbers<[1], [0], [0], [1], [0, 0, 1, 1], [], []>} : vector<10x84xbf16>, vector<84x160xbf16>, vector<10x160xf32> -> vector<10x160xf32>
    %372 = arith.addf %367, %371 : vector<10x160xf32>
    %373 = vector.extract_strided_slice %353 {offsets = [4, 0], sizes = [10, 84], strides = [1, 1]} : vector<14x84xbf16> to vector<10x84xbf16>
    %c4_327 = arith.constant 4 : index
    %c0_328 = arith.constant 0 : index
    %c0_329 = arith.constant 0 : index
    %374 = vector.load %arg6[%c4_327, %c0_328, %c0_329] : memref<5x84x160xbf16, #tpu.memory_space<vmem>>, vector<1x84x160xbf16>
    %375 = vector.shape_cast %374 : vector<1x84x160xbf16> to vector<84x160xbf16>
    %cst_330 = arith.constant dense<0.000000e+00> : vector<10x160xf32>
    %376 = tpu.matmul %373, %375, %cst_330 {dimension_numbers = #tpu.dot_dimension_numbers<[1], [0], [0], [1], [0, 0, 1, 1], [], []>} : vector<10x84xbf16>, vector<84x160xbf16>, vector<10x160xf32> -> vector<10x160xf32>
    %377 = arith.addf %372, %376 : vector<10x160xf32>
    %c0_331 = arith.constant 0 : index
    %c0_332 = arith.constant 0 : index
    %378 = vector.load %arg7[%c0_331, %c0_332] : memref<1x160xf32, #tpu.memory_space<vmem>>, vector<1x160xf32>
    %379 = vector.broadcast %378 : vector<1x160xf32> to vector<10x160xf32>
    %380 = arith.addf %377, %379 : vector<10x160xf32>
    %cst_333 = arith.constant 0.000000e+00 : f32
    %381 = vector.broadcast %cst_333 : f32 to vector<10x160xf32>
    %382 = arith.maximumf %380, %381 : vector<10x160xf32>
    %383 = arith.truncf %382 : vector<10x160xf32> to vector<10x160xbf16>
    %c0_334 = arith.constant 0 : index
    %c0_335 = arith.constant 0 : index
    %c0_336 = arith.constant 0 : index
    %384 = vector.load %arg8[%c0_334, %c0_335, %c0_336] : memref<2x5x10xbf16, #tpu.memory_space<vmem>>, vector<1x5x10xbf16>
    %385 = vector.shape_cast %384 : vector<1x5x10xbf16> to vector<5x10xbf16>
    %cst_337 = arith.constant dense<0.000000e+00> : vector<5x160xf32>
    %386 = tpu.matmul %385, %383, %cst_337 {dimension_numbers = #tpu.dot_dimension_numbers<[1], [0], [0], [1], [0, 0, 1, 1], [], []>} : vector<5x10xbf16>, vector<10x160xbf16>, vector<5x160xf32> -> vector<5x160xf32>
    %c1_338 = arith.constant 1 : index
    %c0_339 = arith.constant 0 : index
    %c0_340 = arith.constant 0 : index
    %387 = vector.load %arg8[%c1_338, %c0_339, %c0_340] : memref<2x5x10xbf16, #tpu.memory_space<vmem>>, vector<1x5x10xbf16>
    %388 = vector.shape_cast %387 : vector<1x5x10xbf16> to vector<5x10xbf16>
    %cst_341 = arith.constant dense<0.000000e+00> : vector<5x160xf32>
    %389 = tpu.matmul %388, %383, %cst_341 {dimension_numbers = #tpu.dot_dimension_numbers<[1], [0], [0], [1], [0, 0, 1, 1], [], []>} : vector<5x10xbf16>, vector<10x160xbf16>, vector<5x160xf32> -> vector<5x160xf32>
    %390 = arith.maximumf %386, %389 : vector<5x160xf32>
    %391 = arith.truncf %390 : vector<5x160xf32> to vector<5x160xbf16>
    %c0_342 = arith.constant 0 : index
    %c0_343 = arith.constant 0 : index
    %c0_344 = arith.constant 0 : index
    %392 = vector.load %arg9[%c0_342, %c0_343, %c0_344] : memref<2x160x128xbf16, #tpu.memory_space<vmem>>, vector<1x160x128xbf16>
    %393 = vector.shape_cast %392 : vector<1x160x128xbf16> to vector<160x128xbf16>
    %cst_345 = arith.constant dense<0.000000e+00> : vector<5x128xf32>
    %394 = tpu.matmul %391, %393, %cst_345 {dimension_numbers = #tpu.dot_dimension_numbers<[1], [0], [0], [1], [0, 0, 1, 1], [], []>} : vector<5x160xbf16>, vector<160x128xbf16>, vector<5x128xf32> -> vector<5x128xf32>
    %c1_346 = arith.constant 1 : index
    %c0_347 = arith.constant 0 : index
    %c0_348 = arith.constant 0 : index
    %395 = vector.load %arg9[%c1_346, %c0_347, %c0_348] : memref<2x160x128xbf16, #tpu.memory_space<vmem>>, vector<1x160x128xbf16>
    %396 = vector.shape_cast %395 : vector<1x160x128xbf16> to vector<160x128xbf16>
    %cst_349 = arith.constant dense<0.000000e+00> : vector<5x128xf32>
    %397 = tpu.matmul %391, %396, %cst_349 {dimension_numbers = #tpu.dot_dimension_numbers<[1], [0], [0], [1], [0, 0, 1, 1], [], []>} : vector<5x160xbf16>, vector<160x128xbf16>, vector<5x128xf32> -> vector<5x128xf32>
    %398 = arith.maximumf %394, %397 : vector<5x128xf32>
    %399 = arith.truncf %398 : vector<5x128xf32> to vector<5x128xbf16>
    %400 = vector.extract_strided_slice %399 {offsets = [0, 0], sizes = [1, 128], strides = [1, 1]} : vector<5x128xbf16> to vector<1x128xbf16>
    %c4_350 = arith.constant 4 : index
    %c0_351 = arith.constant 0 : index
    %401 = vector.load %arg17[%c4_350, %c0_351] : memref<8x640xbf16, #tpu.memory_space<vmem>>, vector<1x128xbf16>
    tpu.vector_store %arg17[%c4_350, %c0_351], %400 {strides = array<i32>} : memref<8x640xbf16, #tpu.memory_space<vmem>>, vector<1x128xbf16>,
    %402 = vector.extract_strided_slice %399 {offsets = [1, 0], sizes = [1, 128], strides = [1, 1]} : vector<5x128xbf16> to vector<1x128xbf16>
    %c4_352 = arith.constant 4 : index
    %c128_353 = arith.constant 128 : index
    %403 = vector.load %arg17[%c4_352, %c128_353] : memref<8x640xbf16, #tpu.memory_space<vmem>>, vector<1x128xbf16>
    tpu.vector_store %arg17[%c4_352, %c128_353], %402 {strides = array<i32>} : memref<8x640xbf16, #tpu.memory_space<vmem>>, vector<1x128xbf16>,
    %404 = vector.extract_strided_slice %399 {offsets = [2, 0], sizes = [1, 128], strides = [1, 1]} : vector<5x128xbf16> to vector<1x128xbf16>
    %c4_354 = arith.constant 4 : index
    %c256_355 = arith.constant 256 : index
    %405 = vector.load %arg17[%c4_354, %c256_355] : memref<8x640xbf16, #tpu.memory_space<vmem>>, vector<1x128xbf16>
    tpu.vector_store %arg17[%c4_354, %c256_355], %404 {strides = array<i32>} : memref<8x640xbf16, #tpu.memory_space<vmem>>, vector<1x128xbf16>,
    %406 = vector.extract_strided_slice %399 {offsets = [3, 0], sizes = [1, 128], strides = [1, 1]} : vector<5x128xbf16> to vector<1x128xbf16>
    %c4_356 = arith.constant 4 : index
    %c384_357 = arith.constant 384 : index
    %407 = vector.load %arg17[%c4_356, %c384_357] : memref<8x640xbf16, #tpu.memory_space<vmem>>, vector<1x128xbf16>
    tpu.vector_store %arg17[%c4_356, %c384_357], %406 {strides = array<i32>} : memref<8x640xbf16, #tpu.memory_space<vmem>>, vector<1x128xbf16>,
    %408 = vector.extract_strided_slice %399 {offsets = [4, 0], sizes = [1, 128], strides = [1, 1]} : vector<5x128xbf16> to vector<1x128xbf16>
    %c4_358 = arith.constant 4 : index
    %c512_359 = arith.constant 512 : index
    %409 = vector.load %arg17[%c4_358, %c512_359] : memref<8x640xbf16, #tpu.memory_space<vmem>>, vector<1x128xbf16>
    tpu.vector_store %arg17[%c4_358, %c512_359], %408 {strides = array<i32>} : memref<8x640xbf16, #tpu.memory_space<vmem>>, vector<1x128xbf16>,
    %c5 = arith.constant 5 : index
    %c0_360 = arith.constant 0 : index
    %c0_361 = arith.constant 0 : index
    %410 = vector.load %arg1[%c5, %c0_360, %c0_361] : memref<8x28x160xbf16, #tpu.memory_space<vmem>>, vector<1x28x160xbf16>
    %411 = vector.shape_cast %410 : vector<1x28x160xbf16> to vector<28x160xbf16>
    %c0_362 = arith.constant 0 : index
    %c0_363 = arith.constant 0 : index
    %412 = vector.load %arg2[%c0_362, %c0_363] : memref<160x168xbf16, #tpu.memory_space<vmem>>, vector<160x168xbf16>
    %cst_364 = arith.constant dense<0.000000e+00> : vector<28x168xf32>
    %413 = tpu.matmul %411, %412, %cst_364 {dimension_numbers = #tpu.dot_dimension_numbers<[1], [0], [0], [1], [0, 0, 1, 1], [], []>} : vector<28x160xbf16>, vector<160x168xbf16>, vector<28x168xf32> -> vector<28x168xf32>
    %c0_365 = arith.constant 0 : index
    %c0_366 = arith.constant 0 : index
    %414 = vector.load %arg3[%c0_365, %c0_366] : memref<1x168xf32, #tpu.memory_space<vmem>>, vector<1x168xf32>
    %415 = vector.broadcast %414 : vector<1x168xf32> to vector<28x168xf32>
    %416 = arith.addf %413, %415 : vector<28x168xf32>
    %cst_367 = arith.constant 0.000000e+00 : f32
    %417 = vector.broadcast %cst_367 : f32 to vector<28x168xf32>
    %418 = arith.maximumf %416, %417 : vector<28x168xf32>
    %419 = arith.truncf %418 : vector<28x168xf32> to vector<28x168xbf16>
    %c0_368 = arith.constant 0 : index
    %c0_369 = arith.constant 0 : index
    %c0_370 = arith.constant 0 : index
    %420 = vector.load %arg4[%c0_368, %c0_369, %c0_370] : memref<2x14x28xbf16, #tpu.memory_space<vmem>>, vector<1x14x28xbf16>
    %421 = vector.shape_cast %420 : vector<1x14x28xbf16> to vector<14x28xbf16>
    %cst_371 = arith.constant dense<0.000000e+00> : vector<14x168xf32>
    %422 = tpu.matmul %421, %419, %cst_371 {dimension_numbers = #tpu.dot_dimension_numbers<[1], [0], [0], [1], [0, 0, 1, 1], [], []>} : vector<14x28xbf16>, vector<28x168xbf16>, vector<14x168xf32> -> vector<14x168xf32>
    %c1_372 = arith.constant 1 : index
    %c0_373 = arith.constant 0 : index
    %c0_374 = arith.constant 0 : index
    %423 = vector.load %arg4[%c1_372, %c0_373, %c0_374] : memref<2x14x28xbf16, #tpu.memory_space<vmem>>, vector<1x14x28xbf16>
    %424 = vector.shape_cast %423 : vector<1x14x28xbf16> to vector<14x28xbf16>
    %cst_375 = arith.constant dense<0.000000e+00> : vector<14x168xf32>
    %425 = tpu.matmul %424, %419, %cst_375 {dimension_numbers = #tpu.dot_dimension_numbers<[1], [0], [0], [1], [0, 0, 1, 1], [], []>} : vector<14x28xbf16>, vector<28x168xbf16>, vector<14x168xf32> -> vector<14x168xf32>
    %426 = arith.maximumf %422, %425 : vector<14x168xf32>
    %427 = arith.truncf %426 : vector<14x168xf32> to vector<14x168xbf16>
    %c0_376 = arith.constant 0 : index
    %c0_377 = arith.constant 0 : index
    %c0_378 = arith.constant 0 : index
    %428 = vector.load %arg5[%c0_376, %c0_377, %c0_378] : memref<2x168x84xbf16, #tpu.memory_space<vmem>>, vector<1x168x84xbf16>
    %429 = vector.shape_cast %428 : vector<1x168x84xbf16> to vector<168x84xbf16>
    %cst_379 = arith.constant dense<0.000000e+00> : vector<14x84xf32>
    %430 = tpu.matmul %427, %429, %cst_379 {dimension_numbers = #tpu.dot_dimension_numbers<[1], [0], [0], [1], [0, 0, 1, 1], [], []>} : vector<14x168xbf16>, vector<168x84xbf16>, vector<14x84xf32> -> vector<14x84xf32>
    %c1_380 = arith.constant 1 : index
    %c0_381 = arith.constant 0 : index
    %c0_382 = arith.constant 0 : index
    %431 = vector.load %arg5[%c1_380, %c0_381, %c0_382] : memref<2x168x84xbf16, #tpu.memory_space<vmem>>, vector<1x168x84xbf16>
    %432 = vector.shape_cast %431 : vector<1x168x84xbf16> to vector<168x84xbf16>
    %cst_383 = arith.constant dense<0.000000e+00> : vector<14x84xf32>
    %433 = tpu.matmul %427, %432, %cst_383 {dimension_numbers = #tpu.dot_dimension_numbers<[1], [0], [0], [1], [0, 0, 1, 1], [], []>} : vector<14x168xbf16>, vector<168x84xbf16>, vector<14x84xf32> -> vector<14x84xf32>
    %434 = arith.maximumf %430, %433 : vector<14x84xf32>
    %435 = arith.truncf %434 : vector<14x84xf32> to vector<14x84xbf16>
    %436 = vector.extract_strided_slice %435 {offsets = [0, 0], sizes = [10, 84], strides = [1, 1]} : vector<14x84xbf16> to vector<10x84xbf16>
    %c0_384 = arith.constant 0 : index
    %c0_385 = arith.constant 0 : index
    %c0_386 = arith.constant 0 : index
    %437 = vector.load %arg6[%c0_384, %c0_385, %c0_386] : memref<5x84x160xbf16, #tpu.memory_space<vmem>>, vector<1x84x160xbf16>
    %438 = vector.shape_cast %437 : vector<1x84x160xbf16> to vector<84x160xbf16>
    %cst_387 = arith.constant dense<0.000000e+00> : vector<10x160xf32>
    %439 = tpu.matmul %436, %438, %cst_387 {dimension_numbers = #tpu.dot_dimension_numbers<[1], [0], [0], [1], [0, 0, 1, 1], [], []>} : vector<10x84xbf16>, vector<84x160xbf16>, vector<10x160xf32> -> vector<10x160xf32>
    %440 = vector.extract_strided_slice %435 {offsets = [1, 0], sizes = [10, 84], strides = [1, 1]} : vector<14x84xbf16> to vector<10x84xbf16>
    %c1_388 = arith.constant 1 : index
    %c0_389 = arith.constant 0 : index
    %c0_390 = arith.constant 0 : index
    %441 = vector.load %arg6[%c1_388, %c0_389, %c0_390] : memref<5x84x160xbf16, #tpu.memory_space<vmem>>, vector<1x84x160xbf16>
    %442 = vector.shape_cast %441 : vector<1x84x160xbf16> to vector<84x160xbf16>
    %cst_391 = arith.constant dense<0.000000e+00> : vector<10x160xf32>
    %443 = tpu.matmul %440, %442, %cst_391 {dimension_numbers = #tpu.dot_dimension_numbers<[1], [0], [0], [1], [0, 0, 1, 1], [], []>} : vector<10x84xbf16>, vector<84x160xbf16>, vector<10x160xf32> -> vector<10x160xf32>
    %444 = arith.addf %439, %443 : vector<10x160xf32>
    %445 = vector.extract_strided_slice %435 {offsets = [2, 0], sizes = [10, 84], strides = [1, 1]} : vector<14x84xbf16> to vector<10x84xbf16>
    %c2_392 = arith.constant 2 : index
    %c0_393 = arith.constant 0 : index
    %c0_394 = arith.constant 0 : index
    %446 = vector.load %arg6[%c2_392, %c0_393, %c0_394] : memref<5x84x160xbf16, #tpu.memory_space<vmem>>, vector<1x84x160xbf16>
    %447 = vector.shape_cast %446 : vector<1x84x160xbf16> to vector<84x160xbf16>
    %cst_395 = arith.constant dense<0.000000e+00> : vector<10x160xf32>
    %448 = tpu.matmul %445, %447, %cst_395 {dimension_numbers = #tpu.dot_dimension_numbers<[1], [0], [0], [1], [0, 0, 1, 1], [], []>} : vector<10x84xbf16>, vector<84x160xbf16>, vector<10x160xf32> -> vector<10x160xf32>
    %449 = arith.addf %444, %448 : vector<10x160xf32>
    %450 = vector.extract_strided_slice %435 {offsets = [3, 0], sizes = [10, 84], strides = [1, 1]} : vector<14x84xbf16> to vector<10x84xbf16>
    %c3_396 = arith.constant 3 : index
    %c0_397 = arith.constant 0 : index
    %c0_398 = arith.constant 0 : index
    %451 = vector.load %arg6[%c3_396, %c0_397, %c0_398] : memref<5x84x160xbf16, #tpu.memory_space<vmem>>, vector<1x84x160xbf16>
    %452 = vector.shape_cast %451 : vector<1x84x160xbf16> to vector<84x160xbf16>
    %cst_399 = arith.constant dense<0.000000e+00> : vector<10x160xf32>
    %453 = tpu.matmul %450, %452, %cst_399 {dimension_numbers = #tpu.dot_dimension_numbers<[1], [0], [0], [1], [0, 0, 1, 1], [], []>} : vector<10x84xbf16>, vector<84x160xbf16>, vector<10x160xf32> -> vector<10x160xf32>
    %454 = arith.addf %449, %453 : vector<10x160xf32>
    %455 = vector.extract_strided_slice %435 {offsets = [4, 0], sizes = [10, 84], strides = [1, 1]} : vector<14x84xbf16> to vector<10x84xbf16>
    %c4_400 = arith.constant 4 : index
    %c0_401 = arith.constant 0 : index
    %c0_402 = arith.constant 0 : index
    %456 = vector.load %arg6[%c4_400, %c0_401, %c0_402] : memref<5x84x160xbf16, #tpu.memory_space<vmem>>, vector<1x84x160xbf16>
    %457 = vector.shape_cast %456 : vector<1x84x160xbf16> to vector<84x160xbf16>
    %cst_403 = arith.constant dense<0.000000e+00> : vector<10x160xf32>
    %458 = tpu.matmul %455, %457, %cst_403 {dimension_numbers = #tpu.dot_dimension_numbers<[1], [0], [0], [1], [0, 0, 1, 1], [], []>} : vector<10x84xbf16>, vector<84x160xbf16>, vector<10x160xf32> -> vector<10x160xf32>
    %459 = arith.addf %454, %458 : vector<10x160xf32>
    %c0_404 = arith.constant 0 : index
    %c0_405 = arith.constant 0 : index
    %460 = vector.load %arg7[%c0_404, %c0_405] : memref<1x160xf32, #tpu.memory_space<vmem>>, vector<1x160xf32>
    %461 = vector.broadcast %460 : vector<1x160xf32> to vector<10x160xf32>
    %462 = arith.addf %459, %461 : vector<10x160xf32>
    %cst_406 = arith.constant 0.000000e+00 : f32
    %463 = vector.broadcast %cst_406 : f32 to vector<10x160xf32>
    %464 = arith.maximumf %462, %463 : vector<10x160xf32>
    %465 = arith.truncf %464 : vector<10x160xf32> to vector<10x160xbf16>
    %c0_407 = arith.constant 0 : index
    %c0_408 = arith.constant 0 : index
    %c0_409 = arith.constant 0 : index
    %466 = vector.load %arg8[%c0_407, %c0_408, %c0_409] : memref<2x5x10xbf16, #tpu.memory_space<vmem>>, vector<1x5x10xbf16>
    %467 = vector.shape_cast %466 : vector<1x5x10xbf16> to vector<5x10xbf16>
    %cst_410 = arith.constant dense<0.000000e+00> : vector<5x160xf32>
    %468 = tpu.matmul %467, %465, %cst_410 {dimension_numbers = #tpu.dot_dimension_numbers<[1], [0], [0], [1], [0, 0, 1, 1], [], []>} : vector<5x10xbf16>, vector<10x160xbf16>, vector<5x160xf32> -> vector<5x160xf32>
    %c1_411 = arith.constant 1 : index
    %c0_412 = arith.constant 0 : index
    %c0_413 = arith.constant 0 : index
    %469 = vector.load %arg8[%c1_411, %c0_412, %c0_413] : memref<2x5x10xbf16, #tpu.memory_space<vmem>>, vector<1x5x10xbf16>
    %470 = vector.shape_cast %469 : vector<1x5x10xbf16> to vector<5x10xbf16>
    %cst_414 = arith.constant dense<0.000000e+00> : vector<5x160xf32>
    %471 = tpu.matmul %470, %465, %cst_414 {dimension_numbers = #tpu.dot_dimension_numbers<[1], [0], [0], [1], [0, 0, 1, 1], [], []>} : vector<5x10xbf16>, vector<10x160xbf16>, vector<5x160xf32> -> vector<5x160xf32>
    %472 = arith.maximumf %468, %471 : vector<5x160xf32>
    %473 = arith.truncf %472 : vector<5x160xf32> to vector<5x160xbf16>
    %c0_415 = arith.constant 0 : index
    %c0_416 = arith.constant 0 : index
    %c0_417 = arith.constant 0 : index
    %474 = vector.load %arg9[%c0_415, %c0_416, %c0_417] : memref<2x160x128xbf16, #tpu.memory_space<vmem>>, vector<1x160x128xbf16>
    %475 = vector.shape_cast %474 : vector<1x160x128xbf16> to vector<160x128xbf16>
    %cst_418 = arith.constant dense<0.000000e+00> : vector<5x128xf32>
    %476 = tpu.matmul %473, %475, %cst_418 {dimension_numbers = #tpu.dot_dimension_numbers<[1], [0], [0], [1], [0, 0, 1, 1], [], []>} : vector<5x160xbf16>, vector<160x128xbf16>, vector<5x128xf32> -> vector<5x128xf32>
    %c1_419 = arith.constant 1 : index
    %c0_420 = arith.constant 0 : index
    %c0_421 = arith.constant 0 : index
    %477 = vector.load %arg9[%c1_419, %c0_420, %c0_421] : memref<2x160x128xbf16, #tpu.memory_space<vmem>>, vector<1x160x128xbf16>
    %478 = vector.shape_cast %477 : vector<1x160x128xbf16> to vector<160x128xbf16>
    %cst_422 = arith.constant dense<0.000000e+00> : vector<5x128xf32>
    %479 = tpu.matmul %473, %478, %cst_422 {dimension_numbers = #tpu.dot_dimension_numbers<[1], [0], [0], [1], [0, 0, 1, 1], [], []>} : vector<5x160xbf16>, vector<160x128xbf16>, vector<5x128xf32> -> vector<5x128xf32>
    %480 = arith.maximumf %476, %479 : vector<5x128xf32>
    %481 = arith.truncf %480 : vector<5x128xf32> to vector<5x128xbf16>
    %482 = vector.extract_strided_slice %481 {offsets = [0, 0], sizes = [1, 128], strides = [1, 1]} : vector<5x128xbf16> to vector<1x128xbf16>
    %c5_423 = arith.constant 5 : index
    %c0_424 = arith.constant 0 : index
    %483 = vector.load %arg17[%c5_423, %c0_424] : memref<8x640xbf16, #tpu.memory_space<vmem>>, vector<1x128xbf16>
    tpu.vector_store %arg17[%c5_423, %c0_424], %482 {strides = array<i32>} : memref<8x640xbf16, #tpu.memory_space<vmem>>, vector<1x128xbf16>,
    %484 = vector.extract_strided_slice %481 {offsets = [1, 0], sizes = [1, 128], strides = [1, 1]} : vector<5x128xbf16> to vector<1x128xbf16>
    %c5_425 = arith.constant 5 : index
    %c128_426 = arith.constant 128 : index
    %485 = vector.load %arg17[%c5_425, %c128_426] : memref<8x640xbf16, #tpu.memory_space<vmem>>, vector<1x128xbf16>
    tpu.vector_store %arg17[%c5_425, %c128_426], %484 {strides = array<i32>} : memref<8x640xbf16, #tpu.memory_space<vmem>>, vector<1x128xbf16>,
    %486 = vector.extract_strided_slice %481 {offsets = [2, 0], sizes = [1, 128], strides = [1, 1]} : vector<5x128xbf16> to vector<1x128xbf16>
    %c5_427 = arith.constant 5 : index
    %c256_428 = arith.constant 256 : index
    %487 = vector.load %arg17[%c5_427, %c256_428] : memref<8x640xbf16, #tpu.memory_space<vmem>>, vector<1x128xbf16>
    tpu.vector_store %arg17[%c5_427, %c256_428], %486 {strides = array<i32>} : memref<8x640xbf16, #tpu.memory_space<vmem>>, vector<1x128xbf16>,
    %488 = vector.extract_strided_slice %481 {offsets = [3, 0], sizes = [1, 128], strides = [1, 1]} : vector<5x128xbf16> to vector<1x128xbf16>
    %c5_429 = arith.constant 5 : index
    %c384_430 = arith.constant 384 : index
    %489 = vector.load %arg17[%c5_429, %c384_430] : memref<8x640xbf16, #tpu.memory_space<vmem>>, vector<1x128xbf16>
    tpu.vector_store %arg17[%c5_429, %c384_430], %488 {strides = array<i32>} : memref<8x640xbf16, #tpu.memory_space<vmem>>, vector<1x128xbf16>,
    %490 = vector.extract_strided_slice %481 {offsets = [4, 0], sizes = [1, 128], strides = [1, 1]} : vector<5x128xbf16> to vector<1x128xbf16>
    %c5_431 = arith.constant 5 : index
    %c512_432 = arith.constant 512 : index
    %491 = vector.load %arg17[%c5_431, %c512_432] : memref<8x640xbf16, #tpu.memory_space<vmem>>, vector<1x128xbf16>
    tpu.vector_store %arg17[%c5_431, %c512_432], %490 {strides = array<i32>} : memref<8x640xbf16, #tpu.memory_space<vmem>>, vector<1x128xbf16>,
    %c6 = arith.constant 6 : index
    %c0_433 = arith.constant 0 : index
    %c0_434 = arith.constant 0 : index
    %492 = vector.load %arg1[%c6, %c0_433, %c0_434] : memref<8x28x160xbf16, #tpu.memory_space<vmem>>, vector<1x28x160xbf16>
    %493 = vector.shape_cast %492 : vector<1x28x160xbf16> to vector<28x160xbf16>
    %c0_435 = arith.constant 0 : index
    %c0_436 = arith.constant 0 : index
    %494 = vector.load %arg2[%c0_435, %c0_436] : memref<160x168xbf16, #tpu.memory_space<vmem>>, vector<160x168xbf16>
    %cst_437 = arith.constant dense<0.000000e+00> : vector<28x168xf32>
    %495 = tpu.matmul %493, %494, %cst_437 {dimension_numbers = #tpu.dot_dimension_numbers<[1], [0], [0], [1], [0, 0, 1, 1], [], []>} : vector<28x160xbf16>, vector<160x168xbf16>, vector<28x168xf32> -> vector<28x168xf32>
    %c0_438 = arith.constant 0 : index
    %c0_439 = arith.constant 0 : index
    %496 = vector.load %arg3[%c0_438, %c0_439] : memref<1x168xf32, #tpu.memory_space<vmem>>, vector<1x168xf32>
    %497 = vector.broadcast %496 : vector<1x168xf32> to vector<28x168xf32>
    %498 = arith.addf %495, %497 : vector<28x168xf32>
    %cst_440 = arith.constant 0.000000e+00 : f32
    %499 = vector.broadcast %cst_440 : f32 to vector<28x168xf32>
    %500 = arith.maximumf %498, %499 : vector<28x168xf32>
    %501 = arith.truncf %500 : vector<28x168xf32> to vector<28x168xbf16>
    %c0_441 = arith.constant 0 : index
    %c0_442 = arith.constant 0 : index
    %c0_443 = arith.constant 0 : index
    %502 = vector.load %arg4[%c0_441, %c0_442, %c0_443] : memref<2x14x28xbf16, #tpu.memory_space<vmem>>, vector<1x14x28xbf16>
    %503 = vector.shape_cast %502 : vector<1x14x28xbf16> to vector<14x28xbf16>
    %cst_444 = arith.constant dense<0.000000e+00> : vector<14x168xf32>
    %504 = tpu.matmul %503, %501, %cst_444 {dimension_numbers = #tpu.dot_dimension_numbers<[1], [0], [0], [1], [0, 0, 1, 1], [], []>} : vector<14x28xbf16>, vector<28x168xbf16>, vector<14x168xf32> -> vector<14x168xf32>
    %c1_445 = arith.constant 1 : index
    %c0_446 = arith.constant 0 : index
    %c0_447 = arith.constant 0 : index
    %505 = vector.load %arg4[%c1_445, %c0_446, %c0_447] : memref<2x14x28xbf16, #tpu.memory_space<vmem>>, vector<1x14x28xbf16>
    %506 = vector.shape_cast %505 : vector<1x14x28xbf16> to vector<14x28xbf16>
    %cst_448 = arith.constant dense<0.000000e+00> : vector<14x168xf32>
    %507 = tpu.matmul %506, %501, %cst_448 {dimension_numbers = #tpu.dot_dimension_numbers<[1], [0], [0], [1], [0, 0, 1, 1], [], []>} : vector<14x28xbf16>, vector<28x168xbf16>, vector<14x168xf32> -> vector<14x168xf32>
    %508 = arith.maximumf %504, %507 : vector<14x168xf32>
    %509 = arith.truncf %508 : vector<14x168xf32> to vector<14x168xbf16>
    %c0_449 = arith.constant 0 : index
    %c0_450 = arith.constant 0 : index
    %c0_451 = arith.constant 0 : index
    %510 = vector.load %arg5[%c0_449, %c0_450, %c0_451] : memref<2x168x84xbf16, #tpu.memory_space<vmem>>, vector<1x168x84xbf16>
    %511 = vector.shape_cast %510 : vector<1x168x84xbf16> to vector<168x84xbf16>
    %cst_452 = arith.constant dense<0.000000e+00> : vector<14x84xf32>
    %512 = tpu.matmul %509, %511, %cst_452 {dimension_numbers = #tpu.dot_dimension_numbers<[1], [0], [0], [1], [0, 0, 1, 1], [], []>} : vector<14x168xbf16>, vector<168x84xbf16>, vector<14x84xf32> -> vector<14x84xf32>
    %c1_453 = arith.constant 1 : index
    %c0_454 = arith.constant 0 : index
    %c0_455 = arith.constant 0 : index
    %513 = vector.load %arg5[%c1_453, %c0_454, %c0_455] : memref<2x168x84xbf16, #tpu.memory_space<vmem>>, vector<1x168x84xbf16>
    %514 = vector.shape_cast %513 : vector<1x168x84xbf16> to vector<168x84xbf16>
    %cst_456 = arith.constant dense<0.000000e+00> : vector<14x84xf32>
    %515 = tpu.matmul %509, %514, %cst_456 {dimension_numbers = #tpu.dot_dimension_numbers<[1], [0], [0], [1], [0, 0, 1, 1], [], []>} : vector<14x168xbf16>, vector<168x84xbf16>, vector<14x84xf32> -> vector<14x84xf32>
    %516 = arith.maximumf %512, %515 : vector<14x84xf32>
    %517 = arith.truncf %516 : vector<14x84xf32> to vector<14x84xbf16>
    %518 = vector.extract_strided_slice %517 {offsets = [0, 0], sizes = [10, 84], strides = [1, 1]} : vector<14x84xbf16> to vector<10x84xbf16>
    %c0_457 = arith.constant 0 : index
    %c0_458 = arith.constant 0 : index
    %c0_459 = arith.constant 0 : index
    %519 = vector.load %arg6[%c0_457, %c0_458, %c0_459] : memref<5x84x160xbf16, #tpu.memory_space<vmem>>, vector<1x84x160xbf16>
    %520 = vector.shape_cast %519 : vector<1x84x160xbf16> to vector<84x160xbf16>
    %cst_460 = arith.constant dense<0.000000e+00> : vector<10x160xf32>
    %521 = tpu.matmul %518, %520, %cst_460 {dimension_numbers = #tpu.dot_dimension_numbers<[1], [0], [0], [1], [0, 0, 1, 1], [], []>} : vector<10x84xbf16>, vector<84x160xbf16>, vector<10x160xf32> -> vector<10x160xf32>
    %522 = vector.extract_strided_slice %517 {offsets = [1, 0], sizes = [10, 84], strides = [1, 1]} : vector<14x84xbf16> to vector<10x84xbf16>
    %c1_461 = arith.constant 1 : index
    %c0_462 = arith.constant 0 : index
    %c0_463 = arith.constant 0 : index
    %523 = vector.load %arg6[%c1_461, %c0_462, %c0_463] : memref<5x84x160xbf16, #tpu.memory_space<vmem>>, vector<1x84x160xbf16>
    %524 = vector.shape_cast %523 : vector<1x84x160xbf16> to vector<84x160xbf16>
    %cst_464 = arith.constant dense<0.000000e+00> : vector<10x160xf32>
    %525 = tpu.matmul %522, %524, %cst_464 {dimension_numbers = #tpu.dot_dimension_numbers<[1], [0], [0], [1], [0, 0, 1, 1], [], []>} : vector<10x84xbf16>, vector<84x160xbf16>, vector<10x160xf32> -> vector<10x160xf32>
    %526 = arith.addf %521, %525 : vector<10x160xf32>
    %527 = vector.extract_strided_slice %517 {offsets = [2, 0], sizes = [10, 84], strides = [1, 1]} : vector<14x84xbf16> to vector<10x84xbf16>
    %c2_465 = arith.constant 2 : index
    %c0_466 = arith.constant 0 : index
    %c0_467 = arith.constant 0 : index
    %528 = vector.load %arg6[%c2_465, %c0_466, %c0_467] : memref<5x84x160xbf16, #tpu.memory_space<vmem>>, vector<1x84x160xbf16>
    %529 = vector.shape_cast %528 : vector<1x84x160xbf16> to vector<84x160xbf16>
    %cst_468 = arith.constant dense<0.000000e+00> : vector<10x160xf32>
    %530 = tpu.matmul %527, %529, %cst_468 {dimension_numbers = #tpu.dot_dimension_numbers<[1], [0], [0], [1], [0, 0, 1, 1], [], []>} : vector<10x84xbf16>, vector<84x160xbf16>, vector<10x160xf32> -> vector<10x160xf32>
    %531 = arith.addf %526, %530 : vector<10x160xf32>
    %532 = vector.extract_strided_slice %517 {offsets = [3, 0], sizes = [10, 84], strides = [1, 1]} : vector<14x84xbf16> to vector<10x84xbf16>
    %c3_469 = arith.constant 3 : index
    %c0_470 = arith.constant 0 : index
    %c0_471 = arith.constant 0 : index
    %533 = vector.load %arg6[%c3_469, %c0_470, %c0_471] : memref<5x84x160xbf16, #tpu.memory_space<vmem>>, vector<1x84x160xbf16>
    %534 = vector.shape_cast %533 : vector<1x84x160xbf16> to vector<84x160xbf16>
    %cst_472 = arith.constant dense<0.000000e+00> : vector<10x160xf32>
    %535 = tpu.matmul %532, %534, %cst_472 {dimension_numbers = #tpu.dot_dimension_numbers<[1], [0], [0], [1], [0, 0, 1, 1], [], []>} : vector<10x84xbf16>, vector<84x160xbf16>, vector<10x160xf32> -> vector<10x160xf32>
    %536 = arith.addf %531, %535 : vector<10x160xf32>
    %537 = vector.extract_strided_slice %517 {offsets = [4, 0], sizes = [10, 84], strides = [1, 1]} : vector<14x84xbf16> to vector<10x84xbf16>
    %c4_473 = arith.constant 4 : index
    %c0_474 = arith.constant 0 : index
    %c0_475 = arith.constant 0 : index
    %538 = vector.load %arg6[%c4_473, %c0_474, %c0_475] : memref<5x84x160xbf16, #tpu.memory_space<vmem>>, vector<1x84x160xbf16>
    %539 = vector.shape_cast %538 : vector<1x84x160xbf16> to vector<84x160xbf16>
    %cst_476 = arith.constant dense<0.000000e+00> : vector<10x160xf32>
    %540 = tpu.matmul %537, %539, %cst_476 {dimension_numbers = #tpu.dot_dimension_numbers<[1], [0], [0], [1], [0, 0, 1, 1], [], []>} : vector<10x84xbf16>, vector<84x160xbf16>, vector<10x160xf32> -> vector<10x160xf32>
    %541 = arith.addf %536, %540 : vector<10x160xf32>
    %c0_477 = arith.constant 0 : index
    %c0_478 = arith.constant 0 : index
    %542 = vector.load %arg7[%c0_477, %c0_478] : memref<1x160xf32, #tpu.memory_space<vmem>>, vector<1x160xf32>
    %543 = vector.broadcast %542 : vector<1x160xf32> to vector<10x160xf32>
    %544 = arith.addf %541, %543 : vector<10x160xf32>
    %cst_479 = arith.constant 0.000000e+00 : f32
    %545 = vector.broadcast %cst_479 : f32 to vector<10x160xf32>
    %546 = arith.maximumf %544, %545 : vector<10x160xf32>
    %547 = arith.truncf %546 : vector<10x160xf32> to vector<10x160xbf16>
    %c0_480 = arith.constant 0 : index
    %c0_481 = arith.constant 0 : index
    %c0_482 = arith.constant 0 : index
    %548 = vector.load %arg8[%c0_480, %c0_481, %c0_482] : memref<2x5x10xbf16, #tpu.memory_space<vmem>>, vector<1x5x10xbf16>
    %549 = vector.shape_cast %548 : vector<1x5x10xbf16> to vector<5x10xbf16>
    %cst_483 = arith.constant dense<0.000000e+00> : vector<5x160xf32>
    %550 = tpu.matmul %549, %547, %cst_483 {dimension_numbers = #tpu.dot_dimension_numbers<[1], [0], [0], [1], [0, 0, 1, 1], [], []>} : vector<5x10xbf16>, vector<10x160xbf16>, vector<5x160xf32> -> vector<5x160xf32>
    %c1_484 = arith.constant 1 : index
    %c0_485 = arith.constant 0 : index
    %c0_486 = arith.constant 0 : index
    %551 = vector.load %arg8[%c1_484, %c0_485, %c0_486] : memref<2x5x10xbf16, #tpu.memory_space<vmem>>, vector<1x5x10xbf16>
    %552 = vector.shape_cast %551 : vector<1x5x10xbf16> to vector<5x10xbf16>
    %cst_487 = arith.constant dense<0.000000e+00> : vector<5x160xf32>
    %553 = tpu.matmul %552, %547, %cst_487 {dimension_numbers = #tpu.dot_dimension_numbers<[1], [0], [0], [1], [0, 0, 1, 1], [], []>} : vector<5x10xbf16>, vector<10x160xbf16>, vector<5x160xf32> -> vector<5x160xf32>
    %554 = arith.maximumf %550, %553 : vector<5x160xf32>
    %555 = arith.truncf %554 : vector<5x160xf32> to vector<5x160xbf16>
    %c0_488 = arith.constant 0 : index
    %c0_489 = arith.constant 0 : index
    %c0_490 = arith.constant 0 : index
    %556 = vector.load %arg9[%c0_488, %c0_489, %c0_490] : memref<2x160x128xbf16, #tpu.memory_space<vmem>>, vector<1x160x128xbf16>
    %557 = vector.shape_cast %556 : vector<1x160x128xbf16> to vector<160x128xbf16>
    %cst_491 = arith.constant dense<0.000000e+00> : vector<5x128xf32>
    %558 = tpu.matmul %555, %557, %cst_491 {dimension_numbers = #tpu.dot_dimension_numbers<[1], [0], [0], [1], [0, 0, 1, 1], [], []>} : vector<5x160xbf16>, vector<160x128xbf16>, vector<5x128xf32> -> vector<5x128xf32>
    %c1_492 = arith.constant 1 : index
    %c0_493 = arith.constant 0 : index
    %c0_494 = arith.constant 0 : index
    %559 = vector.load %arg9[%c1_492, %c0_493, %c0_494] : memref<2x160x128xbf16, #tpu.memory_space<vmem>>, vector<1x160x128xbf16>
    %560 = vector.shape_cast %559 : vector<1x160x128xbf16> to vector<160x128xbf16>
    %cst_495 = arith.constant dense<0.000000e+00> : vector<5x128xf32>
    %561 = tpu.matmul %555, %560, %cst_495 {dimension_numbers = #tpu.dot_dimension_numbers<[1], [0], [0], [1], [0, 0, 1, 1], [], []>} : vector<5x160xbf16>, vector<160x128xbf16>, vector<5x128xf32> -> vector<5x128xf32>
    %562 = arith.maximumf %558, %561 : vector<5x128xf32>
    %563 = arith.truncf %562 : vector<5x128xf32> to vector<5x128xbf16>
    %564 = vector.extract_strided_slice %563 {offsets = [0, 0], sizes = [1, 128], strides = [1, 1]} : vector<5x128xbf16> to vector<1x128xbf16>
    %c6_496 = arith.constant 6 : index
    %c0_497 = arith.constant 0 : index
    %565 = vector.load %arg17[%c6_496, %c0_497] : memref<8x640xbf16, #tpu.memory_space<vmem>>, vector<1x128xbf16>
    tpu.vector_store %arg17[%c6_496, %c0_497], %564 {strides = array<i32>} : memref<8x640xbf16, #tpu.memory_space<vmem>>, vector<1x128xbf16>,
    %566 = vector.extract_strided_slice %563 {offsets = [1, 0], sizes = [1, 128], strides = [1, 1]} : vector<5x128xbf16> to vector<1x128xbf16>
    %c6_498 = arith.constant 6 : index
    %c128_499 = arith.constant 128 : index
    %567 = vector.load %arg17[%c6_498, %c128_499] : memref<8x640xbf16, #tpu.memory_space<vmem>>, vector<1x128xbf16>
    tpu.vector_store %arg17[%c6_498, %c128_499], %566 {strides = array<i32>} : memref<8x640xbf16, #tpu.memory_space<vmem>>, vector<1x128xbf16>,
    %568 = vector.extract_strided_slice %563 {offsets = [2, 0], sizes = [1, 128], strides = [1, 1]} : vector<5x128xbf16> to vector<1x128xbf16>
    %c6_500 = arith.constant 6 : index
    %c256_501 = arith.constant 256 : index
    %569 = vector.load %arg17[%c6_500, %c256_501] : memref<8x640xbf16, #tpu.memory_space<vmem>>, vector<1x128xbf16>
    tpu.vector_store %arg17[%c6_500, %c256_501], %568 {strides = array<i32>} : memref<8x640xbf16, #tpu.memory_space<vmem>>, vector<1x128xbf16>,
    %570 = vector.extract_strided_slice %563 {offsets = [3, 0], sizes = [1, 128], strides = [1, 1]} : vector<5x128xbf16> to vector<1x128xbf16>
    %c6_502 = arith.constant 6 : index
    %c384_503 = arith.constant 384 : index
    %571 = vector.load %arg17[%c6_502, %c384_503] : memref<8x640xbf16, #tpu.memory_space<vmem>>, vector<1x128xbf16>
    tpu.vector_store %arg17[%c6_502, %c384_503], %570 {strides = array<i32>} : memref<8x640xbf16, #tpu.memory_space<vmem>>, vector<1x128xbf16>,
    %572 = vector.extract_strided_slice %563 {offsets = [4, 0], sizes = [1, 128], strides = [1, 1]} : vector<5x128xbf16> to vector<1x128xbf16>
    %c6_504 = arith.constant 6 : index
    %c512_505 = arith.constant 512 : index
    %573 = vector.load %arg17[%c6_504, %c512_505] : memref<8x640xbf16, #tpu.memory_space<vmem>>, vector<1x128xbf16>
    tpu.vector_store %arg17[%c6_504, %c512_505], %572 {strides = array<i32>} : memref<8x640xbf16, #tpu.memory_space<vmem>>, vector<1x128xbf16>,
    %c7 = arith.constant 7 : index
    %c0_506 = arith.constant 0 : index
    %c0_507 = arith.constant 0 : index
    %574 = vector.load %arg1[%c7, %c0_506, %c0_507] : memref<8x28x160xbf16, #tpu.memory_space<vmem>>, vector<1x28x160xbf16>
    %575 = vector.shape_cast %574 : vector<1x28x160xbf16> to vector<28x160xbf16>
    %c0_508 = arith.constant 0 : index
    %c0_509 = arith.constant 0 : index
    %576 = vector.load %arg2[%c0_508, %c0_509] : memref<160x168xbf16, #tpu.memory_space<vmem>>, vector<160x168xbf16>
    %cst_510 = arith.constant dense<0.000000e+00> : vector<28x168xf32>
    %577 = tpu.matmul %575, %576, %cst_510 {dimension_numbers = #tpu.dot_dimension_numbers<[1], [0], [0], [1], [0, 0, 1, 1], [], []>} : vector<28x160xbf16>, vector<160x168xbf16>, vector<28x168xf32> -> vector<28x168xf32>
    %c0_511 = arith.constant 0 : index
    %c0_512 = arith.constant 0 : index
    %578 = vector.load %arg3[%c0_511, %c0_512] : memref<1x168xf32, #tpu.memory_space<vmem>>, vector<1x168xf32>
    %579 = vector.broadcast %578 : vector<1x168xf32> to vector<28x168xf32>
    %580 = arith.addf %577, %579 : vector<28x168xf32>
    %cst_513 = arith.constant 0.000000e+00 : f32
    %581 = vector.broadcast %cst_513 : f32 to vector<28x168xf32>
    %582 = arith.maximumf %580, %581 : vector<28x168xf32>
    %583 = arith.truncf %582 : vector<28x168xf32> to vector<28x168xbf16>
    %c0_514 = arith.constant 0 : index
    %c0_515 = arith.constant 0 : index
    %c0_516 = arith.constant 0 : index
    %584 = vector.load %arg4[%c0_514, %c0_515, %c0_516] : memref<2x14x28xbf16, #tpu.memory_space<vmem>>, vector<1x14x28xbf16>
    %585 = vector.shape_cast %584 : vector<1x14x28xbf16> to vector<14x28xbf16>
    %cst_517 = arith.constant dense<0.000000e+00> : vector<14x168xf32>
    %586 = tpu.matmul %585, %583, %cst_517 {dimension_numbers = #tpu.dot_dimension_numbers<[1], [0], [0], [1], [0, 0, 1, 1], [], []>} : vector<14x28xbf16>, vector<28x168xbf16>, vector<14x168xf32> -> vector<14x168xf32>
    %c1_518 = arith.constant 1 : index
    %c0_519 = arith.constant 0 : index
    %c0_520 = arith.constant 0 : index
    %587 = vector.load %arg4[%c1_518, %c0_519, %c0_520] : memref<2x14x28xbf16, #tpu.memory_space<vmem>>, vector<1x14x28xbf16>
    %588 = vector.shape_cast %587 : vector<1x14x28xbf16> to vector<14x28xbf16>
    %cst_521 = arith.constant dense<0.000000e+00> : vector<14x168xf32>
    %589 = tpu.matmul %588, %583, %cst_521 {dimension_numbers = #tpu.dot_dimension_numbers<[1], [0], [0], [1], [0, 0, 1, 1], [], []>} : vector<14x28xbf16>, vector<28x168xbf16>, vector<14x168xf32> -> vector<14x168xf32>
    %590 = arith.maximumf %586, %589 : vector<14x168xf32>
    %591 = arith.truncf %590 : vector<14x168xf32> to vector<14x168xbf16>
    %c0_522 = arith.constant 0 : index
    %c0_523 = arith.constant 0 : index
    %c0_524 = arith.constant 0 : index
    %592 = vector.load %arg5[%c0_522, %c0_523, %c0_524] : memref<2x168x84xbf16, #tpu.memory_space<vmem>>, vector<1x168x84xbf16>
    %593 = vector.shape_cast %592 : vector<1x168x84xbf16> to vector<168x84xbf16>
    %cst_525 = arith.constant dense<0.000000e+00> : vector<14x84xf32>
    %594 = tpu.matmul %591, %593, %cst_525 {dimension_numbers = #tpu.dot_dimension_numbers<[1], [0], [0], [1], [0, 0, 1, 1], [], []>} : vector<14x168xbf16>, vector<168x84xbf16>, vector<14x84xf32> -> vector<14x84xf32>
    %c1_526 = arith.constant 1 : index
    %c0_527 = arith.constant 0 : index
    %c0_528 = arith.constant 0 : index
    %595 = vector.load %arg5[%c1_526, %c0_527, %c0_528] : memref<2x168x84xbf16, #tpu.memory_space<vmem>>, vector<1x168x84xbf16>
    %596 = vector.shape_cast %595 : vector<1x168x84xbf16> to vector<168x84xbf16>
    %cst_529 = arith.constant dense<0.000000e+00> : vector<14x84xf32>
    %597 = tpu.matmul %591, %596, %cst_529 {dimension_numbers = #tpu.dot_dimension_numbers<[1], [0], [0], [1], [0, 0, 1, 1], [], []>} : vector<14x168xbf16>, vector<168x84xbf16>, vector<14x84xf32> -> vector<14x84xf32>
    %598 = arith.maximumf %594, %597 : vector<14x84xf32>
    %599 = arith.truncf %598 : vector<14x84xf32> to vector<14x84xbf16>
    %600 = vector.extract_strided_slice %599 {offsets = [0, 0], sizes = [10, 84], strides = [1, 1]} : vector<14x84xbf16> to vector<10x84xbf16>
    %c0_530 = arith.constant 0 : index
    %c0_531 = arith.constant 0 : index
    %c0_532 = arith.constant 0 : index
    %601 = vector.load %arg6[%c0_530, %c0_531, %c0_532] : memref<5x84x160xbf16, #tpu.memory_space<vmem>>, vector<1x84x160xbf16>
    %602 = vector.shape_cast %601 : vector<1x84x160xbf16> to vector<84x160xbf16>
    %cst_533 = arith.constant dense<0.000000e+00> : vector<10x160xf32>
    %603 = tpu.matmul %600, %602, %cst_533 {dimension_numbers = #tpu.dot_dimension_numbers<[1], [0], [0], [1], [0, 0, 1, 1], [], []>} : vector<10x84xbf16>, vector<84x160xbf16>, vector<10x160xf32> -> vector<10x160xf32>
    %604 = vector.extract_strided_slice %599 {offsets = [1, 0], sizes = [10, 84], strides = [1, 1]} : vector<14x84xbf16> to vector<10x84xbf16>
    %c1_534 = arith.constant 1 : index
    %c0_535 = arith.constant 0 : index
    %c0_536 = arith.constant 0 : index
    %605 = vector.load %arg6[%c1_534, %c0_535, %c0_536] : memref<5x84x160xbf16, #tpu.memory_space<vmem>>, vector<1x84x160xbf16>
    %606 = vector.shape_cast %605 : vector<1x84x160xbf16> to vector<84x160xbf16>
    %cst_537 = arith.constant dense<0.000000e+00> : vector<10x160xf32>
    %607 = tpu.matmul %604, %606, %cst_537 {dimension_numbers = #tpu.dot_dimension_numbers<[1], [0], [0], [1], [0, 0, 1, 1], [], []>} : vector<10x84xbf16>, vector<84x160xbf16>, vector<10x160xf32> -> vector<10x160xf32>
    %608 = arith.addf %603, %607 : vector<10x160xf32>
    %609 = vector.extract_strided_slice %599 {offsets = [2, 0], sizes = [10, 84], strides = [1, 1]} : vector<14x84xbf16> to vector<10x84xbf16>
    %c2_538 = arith.constant 2 : index
    %c0_539 = arith.constant 0 : index
    %c0_540 = arith.constant 0 : index
    %610 = vector.load %arg6[%c2_538, %c0_539, %c0_540] : memref<5x84x160xbf16, #tpu.memory_space<vmem>>, vector<1x84x160xbf16>
    %611 = vector.shape_cast %610 : vector<1x84x160xbf16> to vector<84x160xbf16>
    %cst_541 = arith.constant dense<0.000000e+00> : vector<10x160xf32>
    %612 = tpu.matmul %609, %611, %cst_541 {dimension_numbers = #tpu.dot_dimension_numbers<[1], [0], [0], [1], [0, 0, 1, 1], [], []>} : vector<10x84xbf16>, vector<84x160xbf16>, vector<10x160xf32> -> vector<10x160xf32>
    %613 = arith.addf %608, %612 : vector<10x160xf32>
    %614 = vector.extract_strided_slice %599 {offsets = [3, 0], sizes = [10, 84], strides = [1, 1]} : vector<14x84xbf16> to vector<10x84xbf16>
    %c3_542 = arith.constant 3 : index
    %c0_543 = arith.constant 0 : index
    %c0_544 = arith.constant 0 : index
    %615 = vector.load %arg6[%c3_542, %c0_543, %c0_544] : memref<5x84x160xbf16, #tpu.memory_space<vmem>>, vector<1x84x160xbf16>
    %616 = vector.shape_cast %615 : vector<1x84x160xbf16> to vector<84x160xbf16>
    %cst_545 = arith.constant dense<0.000000e+00> : vector<10x160xf32>
    %617 = tpu.matmul %614, %616, %cst_545 {dimension_numbers = #tpu.dot_dimension_numbers<[1], [0], [0], [1], [0, 0, 1, 1], [], []>} : vector<10x84xbf16>, vector<84x160xbf16>, vector<10x160xf32> -> vector<10x160xf32>
    %618 = arith.addf %613, %617 : vector<10x160xf32>
    %619 = vector.extract_strided_slice %599 {offsets = [4, 0], sizes = [10, 84], strides = [1, 1]} : vector<14x84xbf16> to vector<10x84xbf16>
    %c4_546 = arith.constant 4 : index
    %c0_547 = arith.constant 0 : index
    %c0_548 = arith.constant 0 : index
    %620 = vector.load %arg6[%c4_546, %c0_547, %c0_548] : memref<5x84x160xbf16, #tpu.memory_space<vmem>>, vector<1x84x160xbf16>
    %621 = vector.shape_cast %620 : vector<1x84x160xbf16> to vector<84x160xbf16>
    %cst_549 = arith.constant dense<0.000000e+00> : vector<10x160xf32>
    %622 = tpu.matmul %619, %621, %cst_549 {dimension_numbers = #tpu.dot_dimension_numbers<[1], [0], [0], [1], [0, 0, 1, 1], [], []>} : vector<10x84xbf16>, vector<84x160xbf16>, vector<10x160xf32> -> vector<10x160xf32>
    %623 = arith.addf %618, %622 : vector<10x160xf32>
    %c0_550 = arith.constant 0 : index
    %c0_551 = arith.constant 0 : index
    %624 = vector.load %arg7[%c0_550, %c0_551] : memref<1x160xf32, #tpu.memory_space<vmem>>, vector<1x160xf32>
    %625 = vector.broadcast %624 : vector<1x160xf32> to vector<10x160xf32>
    %626 = arith.addf %623, %625 : vector<10x160xf32>
    %cst_552 = arith.constant 0.000000e+00 : f32
    %627 = vector.broadcast %cst_552 : f32 to vector<10x160xf32>
    %628 = arith.maximumf %626, %627 : vector<10x160xf32>
    %629 = arith.truncf %628 : vector<10x160xf32> to vector<10x160xbf16>
    %c0_553 = arith.constant 0 : index
    %c0_554 = arith.constant 0 : index
    %c0_555 = arith.constant 0 : index
    %630 = vector.load %arg8[%c0_553, %c0_554, %c0_555] : memref<2x5x10xbf16, #tpu.memory_space<vmem>>, vector<1x5x10xbf16>
    %631 = vector.shape_cast %630 : vector<1x5x10xbf16> to vector<5x10xbf16>
    %cst_556 = arith.constant dense<0.000000e+00> : vector<5x160xf32>
    %632 = tpu.matmul %631, %629, %cst_556 {dimension_numbers = #tpu.dot_dimension_numbers<[1], [0], [0], [1], [0, 0, 1, 1], [], []>} : vector<5x10xbf16>, vector<10x160xbf16>, vector<5x160xf32> -> vector<5x160xf32>
    %c1_557 = arith.constant 1 : index
    %c0_558 = arith.constant 0 : index
    %c0_559 = arith.constant 0 : index
    %633 = vector.load %arg8[%c1_557, %c0_558, %c0_559] : memref<2x5x10xbf16, #tpu.memory_space<vmem>>, vector<1x5x10xbf16>
    %634 = vector.shape_cast %633 : vector<1x5x10xbf16> to vector<5x10xbf16>
    %cst_560 = arith.constant dense<0.000000e+00> : vector<5x160xf32>
    %635 = tpu.matmul %634, %629, %cst_560 {dimension_numbers = #tpu.dot_dimension_numbers<[1], [0], [0], [1], [0, 0, 1, 1], [], []>} : vector<5x10xbf16>, vector<10x160xbf16>, vector<5x160xf32> -> vector<5x160xf32>
    %636 = arith.maximumf %632, %635 : vector<5x160xf32>
    %637 = arith.truncf %636 : vector<5x160xf32> to vector<5x160xbf16>
    %c0_561 = arith.constant 0 : index
    %c0_562 = arith.constant 0 : index
    %c0_563 = arith.constant 0 : index
    %638 = vector.load %arg9[%c0_561, %c0_562, %c0_563] : memref<2x160x128xbf16, #tpu.memory_space<vmem>>, vector<1x160x128xbf16>
    %639 = vector.shape_cast %638 : vector<1x160x128xbf16> to vector<160x128xbf16>
    %cst_564 = arith.constant dense<0.000000e+00> : vector<5x128xf32>
    %640 = tpu.matmul %637, %639, %cst_564 {dimension_numbers = #tpu.dot_dimension_numbers<[1], [0], [0], [1], [0, 0, 1, 1], [], []>} : vector<5x160xbf16>, vector<160x128xbf16>, vector<5x128xf32> -> vector<5x128xf32>
    %c1_565 = arith.constant 1 : index
    %c0_566 = arith.constant 0 : index
    %c0_567 = arith.constant 0 : index
    %641 = vector.load %arg9[%c1_565, %c0_566, %c0_567] : memref<2x160x128xbf16, #tpu.memory_space<vmem>>, vector<1x160x128xbf16>
    %642 = vector.shape_cast %641 : vector<1x160x128xbf16> to vector<160x128xbf16>
    %cst_568 = arith.constant dense<0.000000e+00> : vector<5x128xf32>
    %643 = tpu.matmul %637, %642, %cst_568 {dimension_numbers = #tpu.dot_dimension_numbers<[1], [0], [0], [1], [0, 0, 1, 1], [], []>} : vector<5x160xbf16>, vector<160x128xbf16>, vector<5x128xf32> -> vector<5x128xf32>
    %644 = arith.maximumf %640, %643 : vector<5x128xf32>
    %645 = arith.truncf %644 : vector<5x128xf32> to vector<5x128xbf16>
    %646 = vector.extract_strided_slice %645 {offsets = [0, 0], sizes = [1, 128], strides = [1, 1]} : vector<5x128xbf16> to vector<1x128xbf16>
    %c7_569 = arith.constant 7 : index
    %c0_570 = arith.constant 0 : index
    %647 = vector.load %arg17[%c7_569, %c0_570] : memref<8x640xbf16, #tpu.memory_space<vmem>>, vector<1x128xbf16>
    tpu.vector_store %arg17[%c7_569, %c0_570], %646 {strides = array<i32>} : memref<8x640xbf16, #tpu.memory_space<vmem>>, vector<1x128xbf16>,
    %648 = vector.extract_strided_slice %645 {offsets = [1, 0], sizes = [1, 128], strides = [1, 1]} : vector<5x128xbf16> to vector<1x128xbf16>
    %c7_571 = arith.constant 7 : index
    %c128_572 = arith.constant 128 : index
    %649 = vector.load %arg17[%c7_571, %c128_572] : memref<8x640xbf16, #tpu.memory_space<vmem>>, vector<1x128xbf16>
    tpu.vector_store %arg17[%c7_571, %c128_572], %648 {strides = array<i32>} : memref<8x640xbf16, #tpu.memory_space<vmem>>, vector<1x128xbf16>,
    %650 = vector.extract_strided_slice %645 {offsets = [2, 0], sizes = [1, 128], strides = [1, 1]} : vector<5x128xbf16> to vector<1x128xbf16>
    %c7_573 = arith.constant 7 : index
    %c256_574 = arith.constant 256 : index
    %651 = vector.load %arg17[%c7_573, %c256_574] : memref<8x640xbf16, #tpu.memory_space<vmem>>, vector<1x128xbf16>
    tpu.vector_store %arg17[%c7_573, %c256_574], %650 {strides = array<i32>} : memref<8x640xbf16, #tpu.memory_space<vmem>>, vector<1x128xbf16>,
    %652 = vector.extract_strided_slice %645 {offsets = [3, 0], sizes = [1, 128], strides = [1, 1]} : vector<5x128xbf16> to vector<1x128xbf16>
    %c7_575 = arith.constant 7 : index
    %c384_576 = arith.constant 384 : index
    %653 = vector.load %arg17[%c7_575, %c384_576] : memref<8x640xbf16, #tpu.memory_space<vmem>>, vector<1x128xbf16>
    tpu.vector_store %arg17[%c7_575, %c384_576], %652 {strides = array<i32>} : memref<8x640xbf16, #tpu.memory_space<vmem>>, vector<1x128xbf16>,
    %654 = vector.extract_strided_slice %645 {offsets = [4, 0], sizes = [1, 128], strides = [1, 1]} : vector<5x128xbf16> to vector<1x128xbf16>
    %c7_577 = arith.constant 7 : index
    %c512_578 = arith.constant 512 : index
    %655 = vector.load %arg17[%c7_577, %c512_578] : memref<8x640xbf16, #tpu.memory_space<vmem>>, vector<1x128xbf16>
    tpu.vector_store %arg17[%c7_577, %c512_578], %654 {strides = array<i32>} : memref<8x640xbf16, #tpu.memory_space<vmem>>, vector<1x128xbf16>,
    %c0_579 = arith.constant 0 : index
    %c0_580 = arith.constant 0 : index
    %656 = vector.load %arg17[%c0_579, %c0_580] : memref<8x640xbf16, #tpu.memory_space<vmem>>, vector<8x640xbf16>
    %c0_581 = arith.constant 0 : index
    %c0_582 = arith.constant 0 : index
    %657 = vector.load %arg10[%c0_581, %c0_582] : memref<640x128xbf16, #tpu.memory_space<vmem>>, vector<640x128xbf16>
    %cst_583 = arith.constant dense<0.000000e+00> : vector<8x128xf32>
    %658 = tpu.matmul %656, %657, %cst_583 {dimension_numbers = #tpu.dot_dimension_numbers<[1], [0], [0], [1], [0, 0, 1, 1], [], []>} : vector<8x640xbf16>, vector<640x128xbf16>, vector<8x128xf32> -> vector<8x128xf32>
    %c0_584 = arith.constant 0 : index
    %c0_585 = arith.constant 0 : index
    %659 = vector.load %arg11[%c0_584, %c0_585] : memref<1x128xf32, #tpu.memory_space<vmem>>, vector<1x128xf32>
    %660 = vector.broadcast %659 : vector<1x128xf32> to vector<8x128xf32>
    %661 = arith.addf %658, %660 : vector<8x128xf32>
    %cst_586 = arith.constant 0.000000e+00 : f32
    %662 = vector.broadcast %cst_586 : f32 to vector<8x128xf32>
    %663 = arith.maximumf %661, %662 : vector<8x128xf32>
    %664 = arith.truncf %663 : vector<8x128xf32> to vector<8x128xbf16>
    %c0_587 = arith.constant 0 : index
    %c0_588 = arith.constant 0 : index
    %665 = vector.load %arg12[%c0_587, %c0_588] : memref<128x128xbf16, #tpu.memory_space<vmem>>, vector<128x128xbf16>
    %cst_589 = arith.constant dense<0.000000e+00> : vector<8x128xf32>
    %666 = tpu.matmul %664, %665, %cst_589 {dimension_numbers = #tpu.dot_dimension_numbers<[1], [0], [0], [1], [0, 0, 1, 1], [], []>} : vector<8x128xbf16>, vector<128x128xbf16>, vector<8x128xf32> -> vector<8x128xf32>
    %c0_590 = arith.constant 0 : index
    %c0_591 = arith.constant 0 : index
    %667 = vector.load %arg13[%c0_590, %c0_591] : memref<1x128xf32, #tpu.memory_space<vmem>>, vector<1x128xf32>
    %668 = vector.broadcast %667 : vector<1x128xf32> to vector<8x128xf32>
    %669 = arith.addf %666, %668 : vector<8x128xf32>
    %cst_592 = arith.constant 0.000000e+00 : f32
    %670 = vector.broadcast %cst_592 : f32 to vector<8x128xf32>
    %671 = arith.maximumf %669, %670 : vector<8x128xf32>
    %672 = arith.truncf %671 : vector<8x128xf32> to vector<8x128xbf16>
    %c0_593 = arith.constant 0 : index
    %c0_594 = arith.constant 0 : index
    %673 = vector.load %arg14[%c0_593, %c0_594] : memref<128x128xbf16, #tpu.memory_space<vmem>>, vector<128x128xbf16>
    %cst_595 = arith.constant dense<0.000000e+00> : vector<8x128xf32>
    %674 = tpu.matmul %672, %673, %cst_595 {dimension_numbers = #tpu.dot_dimension_numbers<[1], [0], [0], [1], [0, 0, 1, 1], [], []>} : vector<8x128xbf16>, vector<128x128xbf16>, vector<8x128xf32> -> vector<8x128xf32>
    %c0_596 = arith.constant 0 : index
    %c0_597 = arith.constant 0 : index
    %675 = vector.load %arg15[%c0_596, %c0_597] : memref<1x128xf32, #tpu.memory_space<vmem>>, vector<1x128xf32>
    %676 = vector.broadcast %675 : vector<1x128xf32> to vector<8x128xf32>
    %677 = arith.addf %674, %676 : vector<8x128xf32>
    %c0_598 = arith.constant 0 : index
    %c0_599 = arith.constant 0 : index
    %678 = vector.load %arg16[%c0_598, %c0_599] : memref<8x128xf32, #tpu.memory_space<vmem>>, vector<8x128xf32>
    tpu.vector_store %arg16[%c0_598, %c0_599], %677 {strides = array<i32>} : memref<8x128xf32, #tpu.memory_space<vmem>>, vector<8x128xf32>,
    return
  }
  func.func @transform_0(%arg0: i32) -> (i32, i32, i32) {
    %c0_i32 = arith.constant 0 : i32
    %c0_i32_0 = arith.constant 0 : i32
    %c0_i32_1 = arith.constant 0 : i32
    return %arg0, %c0_i32, %c0_i32_0 : i32, i32, i32
  }
  func.func @transform_1(%arg0: i32) -> (i32, i32) {
    %c0_i32 = arith.constant 0 : i32
    %c0_i32_0 = arith.constant 0 : i32
    %c0_i32_1 = arith.constant 0 : i32
    return %c0_i32, %c0_i32_0 : i32, i32
  }
  func.func @transform_2(%arg0: i32) -> (i32, i32) {
    %c0_i32 = arith.constant 0 : i32
    %c0_i32_0 = arith.constant 0 : i32
    %c0_i32_1 = arith.constant 0 : i32
    return %c0_i32, %c0_i32_0 : i32, i32
  }
  func.func @transform_3(%arg0: i32) -> (i32, i32, i32) {
    %c0_i32 = arith.constant 0 : i32
    %c0_i32_0 = arith.constant 0 : i32
    %c0_i32_1 = arith.constant 0 : i32
    %c0_i32_2 = arith.constant 0 : i32
    return %c0_i32, %c0_i32_0, %c0_i32_1 : i32, i32, i32
  }
  func.func @transform_4(%arg0: i32) -> (i32, i32, i32) {
    %c0_i32 = arith.constant 0 : i32
    %c0_i32_0 = arith.constant 0 : i32
    %c0_i32_1 = arith.constant 0 : i32
    %c0_i32_2 = arith.constant 0 : i32
    return %c0_i32, %c0_i32_0, %c0_i32_1 : i32, i32, i32
  }
  func.func @transform_5(%arg0: i32) -> (i32, i32, i32) {
    %c0_i32 = arith.constant 0 : i32
    %c0_i32_0 = arith.constant 0 : i32
    %c0_i32_1 = arith.constant 0 : i32
    %c0_i32_2 = arith.constant 0 : i32
    return %c0_i32, %c0_i32_0, %c0_i32_1 : i32, i32, i32
  }
  func.func @transform_6(%arg0: i32) -> (i32, i32) {
    %c0_i32 = arith.constant 0 : i32
    %c0_i32_0 = arith.constant 0 : i32
    %c0_i32_1 = arith.constant 0 : i32
    return %c0_i32, %c0_i32_0 : i32, i32
  }
  func.func @transform_7(%arg0: i32) -> (i32, i32, i32) {
    %c0_i32 = arith.constant 0 : i32
    %c0_i32_0 = arith.constant 0 : i32
    %c0_i32_1 = arith.constant 0 : i32
    %c0_i32_2 = arith.constant 0 : i32
    return %c0_i32, %c0_i32_0, %c0_i32_1 : i32, i32, i32
  }
  func.func @transform_8(%arg0: i32) -> (i32, i32, i32) {
    %c0_i32 = arith.constant 0 : i32
    %c0_i32_0 = arith.constant 0 : i32
    %c0_i32_1 = arith.constant 0 : i32
    %c0_i32_2 = arith.constant 0 : i32
    return %c0_i32, %c0_i32_0, %c0_i32_1 : i32, i32, i32
  }
  func.func @transform_9(%arg0: i32) -> (i32, i32) {
    %c0_i32 = arith.constant 0 : i32
    %c0_i32_0 = arith.constant 0 : i32
    %c0_i32_1 = arith.constant 0 : i32
    return %c0_i32, %c0_i32_0 : i32, i32
  }
  func.func @transform_10(%arg0: i32) -> (i32, i32) {
    %c0_i32 = arith.constant 0 : i32
    %c0_i32_0 = arith.constant 0 : i32
    %c0_i32_1 = arith.constant 0 : i32
    return %c0_i32, %c0_i32_0 : i32, i32
  }
  func.func @transform_11(%arg0: i32) -> (i32, i32) {
    %c0_i32 = arith.constant 0 : i32
    %c0_i32_0 = arith.constant 0 : i32
    %c0_i32_1 = arith.constant 0 : i32
    return %c0_i32, %c0_i32_0 : i32, i32
  }
  func.func @transform_12(%arg0: i32) -> (i32, i32) {
    %c0_i32 = arith.constant 0 : i32
    %c0_i32_0 = arith.constant 0 : i32
    %c0_i32_1 = arith.constant 0 : i32
    return %c0_i32, %c0_i32_0 : i32, i32
  }
  func.func @transform_13(%arg0: i32) -> (i32, i32) {
    %c0_i32 = arith.constant 0 : i32
    %c0_i32_0 = arith.constant 0 : i32
    %c0_i32_1 = arith.constant 0 : i32
    return %c0_i32, %c0_i32_0 : i32, i32
  }
  func.func @transform_14(%arg0: i32) -> (i32, i32) {
    %c0_i32 = arith.constant 0 : i32
    %c0_i32_0 = arith.constant 0 : i32
    %c0_i32_1 = arith.constant 0 : i32
    return %c0_i32, %c0_i32_0 : i32, i32
  }
  func.func @transform_15(%arg0: i32) -> (i32, i32) {
    %c0_i32 = arith.constant 0 : i32
    %c0_i32_0 = arith.constant 0 : i32
    return %arg0, %c0_i32 : i32, i32
  }
}

</mosaic_0001>

<bundles_post_ra>
// kernel: _lambda_.1
= control target key start
LH: loop header
LB: loop body
LE: loop exit
PB: predicated region body
PF: predicated region fallthrough
CT: control target
= control target key end

     0   :  { %vm205_vm0 = vcmask 261120   ;;  %v17408_v24 = vmov 0   ;;  %v77_v29 = vlaneseq  ;;  %vm288_vm1 = vcmask 1045504   ;;  %s21705_s1 = inlined_call_operand.vmem [shape: bf16[160,168], index: 1, kind: input, shape index: {}]   ;;  %s21706_s0 = inlined_call_operand.vmem [shape: bf16[8,28,160], index: 0, kind: input, shape index: {}]   ;;  %s21707_s3 = inlined_call_operand.vmem [shape: bf16[2,14,28], index: 3, kind: input, shape index: {}]   ;;  %s21708_s4 = inlined_call_operand.vmem [shape: bf16[2,168,84], index: 4, kind: input, shape index: {}]   ;;  %s21709_s2 = inlined_call_operand.vmem [shape: f32[1,168], index: 2, kind: input, shape index: {}]   ;;  %s21710_s5 = inlined_call_operand.vmem [shape: bf16[5,84,160], index: 5, kind: input, shape index: {}]   ;;  %s21711_s8 = inlined_call_operand.vmem [shape: bf16[2,160,128], index: 8, kind: input, shape index: {}]   ;;  %s21712_s6 = inlined_call_operand.vmem [shape: f32[1,160], index: 6, kind: input, shape index: {}]   ;;  %s21713_s7 = inlined_call_operand.vmem [shape: bf16[2,5,10], index: 7, kind: input, shape index: {}]   ;;  %s21714_s9 = inlined_call_operand.vmem [shape: bf16[640,128], index: 9, kind: input, shape index: {}]   ;;  %s21715_s11 = inlined_call_operand.vmem [shape: bf16[128,128], index: 11, kind: input, shape index: {}]   ;;  %s21716_s13 = inlined_call_operand.vmem [shape: bf16[128,128], index: 13, kind: input, shape index: {}]   ;;  %s21717_s10 = inlined_call_operand.vmem [shape: f32[1,128], index: 10, kind: input, shape index: {}]   ;;  %s21718_s12 = inlined_call_operand.vmem [shape: f32[1,128], index: 12, kind: input, shape index: {}]   ;;  %s21719_s14 = inlined_call_operand.vmem [shape: f32[1,128], index: 14, kind: input, shape index: {}]   ;;  %s21720_s15 = inlined_call_operand.vmem [shape: f32[8,128], index: 15, kind: output, shape index: {}]  }
   0x1   :  { %v16027_v0 = vld [vmem:[%s21705_s1 + $0x4] ss:$8 sps:$4 sm:$0xff]   ;;  %v16029_v1 = vld [vmem:[%s21705_s1] ss:$8 sps:$4 sm:$0xff]   ;;  %v16030_v2 = vld [vmem:[%s21705_s1 + $0x14] ss:$8 sps:$4 sm:$0xff]   ;;  %327 = vmatprep.mubr.bf16.mxu1 %v17408_v24 }
   0x2   :  { %212 = vmatprep.subr.bf16.mxu0 %v16027_v0  ;;  %v16032_v3 = vld [vmem:[%s21705_s1 + $0x10] ss:$8 sps:$4 sm:$0xff]   ;;  %v16033_v4 = vld [vmem:[%s21705_s1 + $0x24] ss:$8 sps:$4 sm:$0xff]   ;;  %v16035_v5 = vld [vmem:[%s21705_s1 + $0x20] ss:$8 sps:$4 sm:$0xff]  }
   0x3   :  { %213 = vmatpush1.bf16.msra.mxu0 %v16029_v1  ;;  %v16036_v6 = vld [vmem:[%s21705_s1 + $0x34] ss:$8 sps:$4 sm:$0xff]   ;;  %v16038_v7 = vld [vmem:[%s21705_s1 + $0x30] ss:$8 sps:$4 sm:$0xff]   ;;  %v16039_v8 = vld [vmem:[%s21705_s1 + $0x44] ss:$8 sps:$4 sm:$0xff]  }
   0x4   :  { %214 = vmatprep.subr.bf16.mxu0 %v16030_v2  ;;  %v16059_v9 = vld [vmem:[%s21706_s0 + $0x4] ss:$8 sps:$4 sm:$0xff]   ;;  %v16041_v10 = vld [vmem:[%s21705_s1 + $0x40] ss:$8 sps:$4 sm:$0xff]   ;;  %v16042_v11 = vld [vmem:[%s21705_s1 + $0x54] ss:$8 sps:$4 sm:$0xff]  }
   0x5   :  { %13751 = vmatprep.mubr.msk.bf16.mxu0 %vm205_vm0, %v16059_v9  ;;  %v16044_v12 = vld [vmem:[%s21705_s1 + $0x50] ss:$8 sps:$4 sm:$0xff]   ;;  %v16045_v13 = vld [vmem:[%s21705_s1 + $0x64] ss:$8 sps:$4 sm:$0xff]   ;;  %v16047_v14 = vld [vmem:[%s21705_s1 + $0x60] ss:$8 sps:$4 sm:$0xff]  }
   0x6   :  { %v16048_v15 = vld [vmem:[%s21705_s1 + $0x74] ss:$8 sps:$4 sm:$0xff]   ;;  %v16050_v16 = vld [vmem:[%s21705_s1 + $0x70] ss:$8 sps:$4 sm:$0xff]   ;;  %v16051_v17 = vld [vmem:[%s21705_s1 + $0x84] ss:$8 sps:$4 sm:$0xff]  }
   0x7   :  { %215 = vmatpush1.bf16.msra.mxu0 %v16032_v3  ;;  %v16053_v18 = vld [vmem:[%s21705_s1 + $0x80] ss:$8 sps:$4 sm:$0xff]   ;;  %v16054_v19 = vld [vmem:[%s21705_s1 + $0x94] ss:$8 sps:$4 sm:$0xff]   ;;  %v16056_v20 = vld [vmem:[%s21705_s1 + $0x90] ss:$8 sps:$4 sm:$0xff]  }
   0x8   :  { %216 = vmatprep.subr.bf16.mxu0 %v16033_v4  ;;  %v16057_v21 = vld [vmem:[%s21706_s0] ss:$8 sps:$4 sm:$0xff]   ;;  %v16060_v22 = vld [vmem:[%s21706_s0 + $0x14] ss:$8 sps:$4 sm:$0x3f]   ;;  %v16072_v28 = vld [vmem:[%s21708_s4 + $0x6c] sm:$0xff]  }
   0x9   :  { %v16062_v23 = vld [vmem:[%s21706_s0 + $0x10] ss:$8 sps:$4 sm:$0x3f]   ;;  %v16068_v26 = vld [vmem:[%s21708_s4 + $0x5c] sm:$0xff]   ;;  %v16070_v27 = vld [vmem:[%s21708_s4 + $0x64] sm:$0xff]   ;;  %v78_v31 = vshrl.u32 %v77_v29, 7 }
   0xa   :  { %v16066_v25 = vld [vmem:[%s21708_s4 + $0x54] sm:$0xff]   ;;  %v16076_v32 = vld [vmem:[%s21708_s4 + $0x7c] sm:$0xff]   ;;  %v16078_v35 = vld [vmem:[%s21708_s4 + $0x84] sm:$0xff]   ;;  %vm284_vm2 = vcmask 228352   ;;  %vm486_vm3 = vcmask 1043456   ;;  %vm482_vm4 = vcmask 326656  }
   0xb   :  { %217 = vmatpush1.bf16.msra.mxu0 %v16035_v5  ;;  %v16074_v30 = vld [vmem:[%s21708_s4 + $0x74] sm:$0xff]   ;;  %v17590_v33 = vsub.s32 0, %v78_v31  ;;  %v17592_v34 = vsub.s32 1, %v78_v31  ;;  %v75_v36 = vld [vmem:[%s21709_s2] sm:$0x3]  ;;  %vm752_vm5 = vcmask 1041408  }
   0xc   :  { %218 = vmatprep.subr.bf16.mxu0 %v16036_v6  ;;  %v16063_v3 = vld [vmem:[%s21707_s3] sm:$0x7f]   ;;  %v16064_v5 = vld [vmem:[%s21707_s3 + $0x8] sm:$0x7f]   ;;  %v16071_v9 = vld [vmem:[%s21708_s4 + $0x18] sm:$0xff]   ;;  %vm748_vm6 = vcmask 687104  }
   0xd   :  { %v80_v37 = vrot.slane %v75_v36, %v17590_v33  ;;  %v84_v38 = vrot.slane %v75_v36, %v17592_v34  ;;  %v16065_v6 = vld [vmem:[%s21708_s4] sm:$0xff]   ;;  %vm1310_vm7 = vcmask 1044480   ;;  %vm1306_vm8 = vcmask 80896  }
   0xe   :  { %vm1654_vm9 = vcmask 1040384   ;;  %vm1655_vm10 = vsmask.f32 256  ;;  %vm3284_vm12 = vsmask.f32 7938  ;;  %vm4902_vm14 = vcmask 1041409  }
   0xf   :  { %219 = vmatpush1.bf16.msra.mxu0 %v16038_v7  ;;  %v16067_v7 = vld [vmem:[%s21708_s4 + $0x8] sm:$0xff]   ;;  %vm18085_vm11 = vmand %vm1654_vm9, %vm1655_vm10  ;;  %vm4903_vm15 = vsmask.f32 1280  ;;  %vm6526_vm10 = vsmask.f32 7942 }
  0x10   :  { %220 = vmatprep.subr.bf16.mxu0 %v16039_v8  ;;  %v16069_v8 = vld [vmem:[%s21708_s4 + $0x10] sm:$0xff]   ;;  %vm18585_vm13 = vmand %vm1654_vm9, %vm3284_vm12  ;;  %vm8141_vm12 = vcmask 1042434  }
  0x11   :  { %vm19085_vm9 = vmand %vm4902_vm14, %vm4903_vm15  ;;  %vm9763_vm15 = vsmask.f32 7946 }
  0x13   :  { %221 = vmatpush1.bf16.msra.mxu0 %v16041_v10  ;;  %v16073_v10 = vld [vmem:[%s21708_s4 + $0x20] sm:$0xff]  }
  0x14   :  { %222 = vmatprep.subr.bf16.mxu0 %v16042_v11  ;;  %v16075_v11 = vld [vmem:[%s21708_s4 + $0x28] sm:$0xff]  }
  0x17   :  { %223 = vmatpush1.bf16.msra.mxu0 %v16044_v12  ;;  %v16077_v12 = vld [vmem:[%s21708_s4 + $0x30] sm:$0xff]  }
  0x18   :  { %224 = vmatprep.subr.bf16.mxu0 %v16045_v13  ;;  %v16079_v13 = vld [vmem:[%s21708_s4 + $0x38] sm:$0xff]  }
  0x1b   :  { %225 = vmatpush1.bf16.msra.mxu0 %v16047_v14  ;;  %v16080_v14 = vld [vmem:[%s21708_s4 + $0x8c] sm:$0xff]  }
  0x1c   :  { %226 = vmatprep.subr.bf16.mxu0 %v16048_v15  ;;  %v16081_v15 = vld [vmem:[%s21708_s4 + $0x40] sm:$0xff]  }
  0x1f   :  { %227 = vmatpush1.bf16.msra.mxu0 %v16050_v16  ;;  %v16082_v16 = vld [vmem:[%s21708_s4 + $0x94] sm:$0xff]  }
  0x20   :  { %228 = vmatprep.subr.bf16.mxu0 %v16051_v17  ;;  %v16083_v17 = vld [vmem:[%s21708_s4 + $0x48] sm:$0xff]  }
  0x23   :  { %229 = vmatpush1.bf16.msra.mxu0 %v16053_v18  ;;  %v16084_v18 = vld [vmem:[%s21708_s4 + $0x9c] sm:$0xff]  }
  0x24   :  { %230 = vmatprep.subr.bf16.mxu0 %v16054_v19  ;;  %v16085_v19 = vld [vmem:[%s21708_s4 + $0x50] ss:$0 sps:$4 sm:$0xff]  }
  0x27   :  { %231 = vmatpush1.bf16.msra.mxu0 %v16056_v20  ;;  %v16086_v20 = vld [vmem:[%s21708_s4 + $0xa4] ss:$0 sps:$4 sm:$0xff]  }
  0x28   :  { %619 = vmatprep.subr.bf16.mxu0 %v17408_v24 }
  0x2a   :  { %245 = vmatmul.mubr.bf16.vlgmr.msra.gmra.mrb[0].mxu0 %v16057_v21  ;;  %v488_v21 = vsel %vm486_vm3, %v16085_v19, 0 }
  0x2b   :  { %13752 = vmatprep.mubr.msk.bf16.mxu0 %vm205_vm0, %v16060_v22  ;;  %620 = vmatpush1.bf16.msra.mxu0 %v16066_v25  ;;  %v617_v22 = vsel %vm486_vm3, %v16086_v20, 0 }
  0x2c   :  { %621 = vmatprep.subr.bf16.mxu0 %v17408_v24 }
  0x2f   :  { %622 = vmatpush1.bf16.msra.mxu0 %v16068_v26 }
  0x30   :  { %623 = vmatprep.subr.bf16.mxu0 %v17408_v24 }
  0x32   :  { %255 = vmatmul.mubr.bf16.gmra.mrb[4].mxu0 %v16062_v23  ;;  %v16089_v23 = vld [vmem:[%s21710_s5 + $0x5c] ss:$8 sps:$4 sm:$0xff]  }
  0x33   :  { %624 = vmatpush1.bf16.msra.mxu0 %v16070_v27 }
  0x34   :  { %625 = vmatprep.subr.bf16.mxu0 %v17408_v24 }
  0x37   :  { %626 = vmatpush1.bf16.msra.mxu0 %v16072_v28 }
  0x38   :  { %627 = vmatprep.subr.bf16.mxu0 %v17408_v24 }
  0x3b   :  { %628 = vmatpush1.bf16.msra.mxu0 %v16074_v30 }
  0x3c   :  { %629 = vmatprep.subr.bf16.mxu0 %v17408_v24 }
  0x3f   :  { %630 = vmatpush1.bf16.msra.mxu0 %v16076_v32 }
  0x40   :  { %631 = vmatprep.subr.bf16.mxu0 %v17408_v24 }
  0x43   :  { %632 = vmatpush1.bf16.msra.mxu0 %v16078_v35 }
  0x44   :  { %633 = vmatprep.subr.bf16.mxu0 %v17408_v24 }
  0x47   :  { %634 = vmatpush1.bf16.msra.mxu0 %v16080_v14  ;;  %v16115_v14 = vld [vmem:[%s21710_s5 + $0x34] ss:$8 sps:$4 sm:$0xff]  }
  0x48   :  { %635 = vmatprep.subr.bf16.mxu0 %v17408_v24 }
  0x4b   :  { %636 = vmatpush1.bf16.msra.mxu0 %v16082_v16  ;;  %v16118_v16 = vld [vmem:[%s21710_s5 + $0x44] ss:$8 sps:$4 sm:$0xff]  }
  0x4c   :  { %637 = vmatprep.subr.bf16.mxu0 %v17408_v24 }
  0x4f   :  { %638 = vmatpush1.bf16.msra.mxu0 %v16084_v18  ;;  %v16116_v18 = vld [vmem:[%s21710_s5 + $0x40] ss:$8 sps:$4 sm:$0xff]  }
  0x50   :  { %639 = vmatprep.subr.bf16.mxu0 %v17408_v24 }
  0x53   :  { %640 = vmatpush1.bf16.msra.mxu0 %v617_v22  ;;  %v16123_v22 = vld [vmem:[%s21710_s5 + $0xb4] ss:$8 sps:$4 sm:$0xff]  }
  0x54   :  { %1491 = vmatprep.subr.bf16.mxu0 %v17408_v24 }
  0xfd   :  { %v246_v39 = vpop.f32.mrb[0].mxu0 }
  0xfe   :  { %v247_v40 = vadd.f32 %v246_v39, %v80_v37  ;;  %v248_v41 = vpop.f32.mrb[1].mxu0  ;;  %v16087_v39 = vld [vmem:[%s21710_s5 + $0x58] ss:$8 sps:$4 sm:$0xff]  }
  0xff   :  { %v249_v42 = vadd.f32 %v248_v41, %v84_v38  ;;  %v250_v43 = vpop.f32.mrb[2].mxu0  ;;  %v16092_v41 = vld [vmem:[%s21710_s5 + $0x6c] ss:$8 sps:$4 sm:$0xff]  }
 0x100   :  { %v251_v44 = vadd.f32 %v250_v43, %v80_v37  ;;  %v252_v45 = vpop.f32.mrb[3].mxu0  ;;  %v265_v47 = vmax.f32 %v247_v40, 0.0  ;;  %v16090_v43 = vld [vmem:[%s21710_s5 + $0x68] ss:$8 sps:$4 sm:$0xff]  }
 0x101   :  { %v253_v46 = vadd.f32 %v252_v45, %v84_v38  ;;  %v266_v49 = vmax.f32 %v249_v42, 0.0  ;;  %v16093_v45 = vld [vmem:[%s21710_s5 + $0x78] ss:$8 sps:$4 sm:$0xff]  }
 0x102   :  { %v267_v48 = vmax.f32 %v251_v44, 0.0  ;;  %v16095_v44 = vld [vmem:[%s21710_s5 + $0x7c] ss:$8 sps:$4 sm:$0xff]  }
 0x103   :  { %v268_v50 = vmax.f32 %v253_v46, 0.0  ;;  %v16098_v46 = vld [vmem:[%s21710_s5 + $0x8c] ss:$8 sps:$4 sm:$0xff]  }
 0x104   :  { %v273_v51 = vpack.c.bf16 %v267_v48, %v265_v47  ;;  %v16096_v47 = vld [vmem:[%s21710_s5 + $0x88] ss:$8 sps:$4 sm:$0xff]   ;;  %v16101_v48 = vld [vmem:[%s21710_s5 + $0x9c] ss:$8 sps:$4 sm:$0xff]  }
 0x105   :  { %v256_v52 = vpop.f32.mrb[4].mxu0  ;;  %v274_v53 = vpack.c.bf16 %v268_v50, %v266_v49  ;;  %v16099_v49 = vld [vmem:[%s21710_s5 + $0x98] ss:$8 sps:$4 sm:$0xff]   ;;  %v13816_v50 = vld [vmem:[%s21710_s5 + $0xa8] sm:$0x33] }
 0x106   :  { %v257_v54 = vadd.f32 %v256_v52, %v80_v37  ;;  %v258_v55 = vpop.f32.mrb[5].mxu0  ;;  %v13827_v52 = vcombine.low %v13816_v50, %v13816_v50 }
 0x107   :  { %v259_v56 = vadd.f32 %v258_v55, %v84_v38  ;;  %v260_v57 = vpop.f32.mrb[6].mxu0  ;;  %295 = vmatprep.subr.bf16.mxu1 %v274_v53 }
 0x108   :  { %v261_v58 = vadd.f32 %v260_v57, %v80_v37  ;;  %v262_v59 = vpop.f32.mrb[7].mxu0  ;;  %296 = vmatpush1.bf16.msra.mxu1 %v273_v51  ;;  %v269_v61 = vmax.f32 %v257_v54, 0.0  ;;  %v754_v54 = vsel %vm752_vm5, %v13827_v52, 0 }
 0x109   :  { %v263_v60 = vadd.f32 %v262_v59, %v84_v38  ;;  %v270_v63 = vmax.f32 %v259_v56, 0.0 }
 0x10a   :  { %v271_v62 = vmax.f32 %v261_v58, 0.0 }
 0x10b   :  { %v272_v0 = vmax.f32 %v263_v60, 0.0 }
 0x10c   :  { %v275_v1 = vpack.c.bf16 %v271_v62, %v269_v61 }
 0x10d   :  { %v276_v2 = vpack.c.bf16 %v272_v0, %v270_v63 }
 0x10e   :  { %v290_v4 = vsel %vm288_vm1, %v275_v1, 0 }
 0x10f   :  { %13754 = vmatprep.subr.msk.bf16.mxu1 %vm288_vm1, %v276_v2 }
 0x110   :  { %298 = vmatpush1.bf16.msra.mxu1 %v290_v4 }
 0x111   :  { %349 = vmatprep.subr.bf16.mxu1 %v274_v53  ;;  %v16106_v53 = vld [vmem:[%s21710_s5 + $0x4] ss:$8 sps:$4 sm:$0xff]  }
 0x113   :  { %13755 = vmatmul.mubr.msk.bf16.vlgmr.msra.gmra.mrb[0].mxu1 %vm284_vm2, %v16063_v3 }
 0x114   :  { %350 = vmatpush1.bf16.msra.mxu1 %v273_v51  ;;  %381 = vmatprep.mubr.bf16.mxu1 %v17408_v24  ;;  %v13828_v51 = vcombine.high %v13816_v50, %v13816_v50  ;;  %v16150_v50 = vld [vmem:[%s21710_s5 + $0x148] ss:$8 sps:$4 sm:$0xff]  }
 0x115   :  { %13759 = vmatprep.subr.msk.bf16.mxu1 %vm288_vm1, %v276_v2 }
 0x118   :  { %352 = vmatpush1.bf16.msra.mxu1 %v290_v4 }
 0x119   :  { %490 = vmatprep.subr.bf16.mxu1 %v17408_v24 }
 0x11b   :  { %13760 = vmatmul.mubr.msk.bf16.vlgmr.msra.gmra.mrb[4].mxu1 %vm284_vm2, %v16064_v5 }
 0x11c   :  { %491 = vmatpush1.bf16.msra.mxu1 %v16065_v6 }
 0x11d   :  { %492 = vmatprep.subr.bf16.mxu1 %v17408_v24 }
 0x120   :  { %493 = vmatpush1.bf16.msra.mxu1 %v16067_v7  ;;  %v16104_v7 = vld [vmem:[%s21710_s5] ss:$8 sps:$4 sm:$0xff]  }
 0x121   :  { %494 = vmatprep.subr.bf16.mxu1 %v17408_v24 }
 0x124   :  { %495 = vmatpush1.bf16.msra.mxu1 %v16069_v8 }
 0x125   :  { %496 = vmatprep.subr.bf16.mxu1 %v17408_v24 }
 0x128   :  { %497 = vmatpush1.bf16.msra.mxu1 %v16071_v9  ;;  %v16109_v9 = vld [vmem:[%s21710_s5 + $0x14] ss:$8 sps:$4 sm:$0xff]  }
 0x129   :  { %498 = vmatprep.subr.bf16.mxu1 %v17408_v24 }
 0x12c   :  { %499 = vmatpush1.bf16.msra.mxu1 %v16073_v10 }
 0x12d   :  { %500 = vmatprep.subr.bf16.mxu1 %v17408_v24 }
 0x130   :  { %501 = vmatpush1.bf16.msra.mxu1 %v16075_v11  ;;  %v16107_v11 = vld [vmem:[%s21710_s5 + $0x10] ss:$8 sps:$4 sm:$0xff]  }
 0x131   :  { %502 = vmatprep.subr.bf16.mxu1 %v17408_v24 }
 0x134   :  { %503 = vmatpush1.bf16.msra.mxu1 %v16077_v12  ;;  %v16112_v12 = vld [vmem:[%s21710_s5 + $0x24] ss:$8 sps:$4 sm:$0xff]  }
 0x135   :  { %504 = vmatprep.subr.bf16.mxu1 %v17408_v24 }
 0x138   :  { %505 = vmatpush1.bf16.msra.mxu1 %v16079_v13  ;;  %v16110_v13 = vld [vmem:[%s21710_s5 + $0x20] ss:$8 sps:$4 sm:$0xff]  }
 0x139   :  { %506 = vmatprep.subr.bf16.mxu1 %v17408_v24 }
 0x13c   :  { %507 = vmatpush1.bf16.msra.mxu1 %v16081_v15  ;;  %v16113_v15 = vld [vmem:[%s21710_s5 + $0x30] ss:$8 sps:$4 sm:$0xff]  }
 0x13d   :  { %508 = vmatprep.subr.bf16.mxu1 %v17408_v24 }
 0x140   :  { %509 = vmatpush1.bf16.msra.mxu1 %v16083_v17  ;;  %v673_v17 = vld [vmem:[%s21710_s5 + $0x50] sm:$0x33] }
 0x141   :  { %510 = vmatprep.subr.bf16.mxu1 %v17408_v24  ;;  %v13842_v19 = vcombine.high %v673_v17, %v673_v17  ;;  %v13841_v20 = vcombine.low %v673_v17, %v673_v17 }
 0x144   :  { %511 = vmatpush1.bf16.msra.mxu1 %v488_v21  ;;  %v860_v21 = vsel %vm752_vm5, %v13841_v20, 0 }
 0x145   :  { %759 = vmatprep.subr.bf16.mxu1 %v16089_v23  ;;  %v16121_v23 = vld [vmem:[%s21710_s5 + $0xb0] ss:$8 sps:$4 sm:$0xff]  }
 0x1e6   :  { %v329_v25 = vpop.f32.mrb[0].mxu1 }
 0x1e7   :  { %v331_v26 = vpop.f32.mrb[1].mxu1 }
 0x1e8   :  { %v333_v27 = vpop.f32.mrb[2].mxu1 }
 0x1e9   :  { %v335_v28 = vpop.f32.mrb[3].mxu1 }
 0x1ee   :  { %v383_v29 = vpop.f32.mrb[4].mxu1 }
 0x1ef   :  { %v392_v30 = vmax.f32 %v329_v25, %v383_v29  ;;  %v385_v31 = vpop.f32.mrb[5].mxu1  ;;  %v16126_v25 = vld [vmem:[%s21710_s5 + $0xc4] ss:$8 sps:$4 sm:$0xff]  }
 0x1f0   :  { %v393_v32 = vmax.f32 %v331_v26, %v385_v31  ;;  %v387_v35 = vpop.f32.mrb[6].mxu1  ;;  %v16124_v26 = vld [vmem:[%s21710_s5 + $0xc0] ss:$8 sps:$4 sm:$0xff]   ;;  %v16132_v29 = vld [vmem:[%s21710_s5 + $0xe4] ss:$8 sps:$4 sm:$0xff]  }
 0x1f1   :  { %v394_v36 = vmax.f32 %v333_v27, %v387_v35  ;;  %v389_v37 = vpop.f32.mrb[7].mxu1  ;;  %v16129_v27 = vld [vmem:[%s21710_s5 + $0xd4] ss:$8 sps:$4 sm:$0xff]   ;;  %v16133_v35 = vld [vmem:[%s21710_s5 + $0xf0] ss:$8 sps:$4 sm:$0xff]  }
 0x1f2   :  { %v395_v38 = vmax.f32 %v335_v28, %v389_v37  ;;  %v16127_v28 = vld [vmem:[%s21710_s5 + $0xd0] ss:$8 sps:$4 sm:$0xff]   ;;  %v16135_v31 = vld [vmem:[%s21710_s5 + $0xf4] ss:$8 sps:$4 sm:$0xff]  }
 0x1f3   :  { %v396_v40 = vpack.c.bf16 %v394_v36, %v392_v30  ;;  %v16130_v30 = vld [vmem:[%s21710_s5 + $0xe0] ss:$8 sps:$4 sm:$0xff]  }
 0x1f4   :  { %v397_v42 = vpack.c.bf16 %v395_v38, %v393_v32  ;;  %v13855_v32 = vld [vmem:[%s21710_s5 + $0x100] sm:$0x33] }
 0x1f5   :  { %v13867_v36 = vcombine.high %v13855_v32, %v13855_v32  ;;  %v13866_v37 = vcombine.low %v13855_v32, %v13855_v32  ;;  %v13922_v32 = vld [vmem:[%s21713_s7 + $0x4] sm:$0x7] }
 0x1f6   :  { %13772 = vmatprep.mubr.msk.bf16.mxu1 %vm482_vm4, %v397_v42  ;;  %13805 = vmatprep.mubr.msk.bf16.mxu0 %vm482_vm4, %v397_v42  ;;  %v16143_v42 = vld [vmem:[%s21710_s5 + $0x11c] ss:$8 sps:$4 sm:$0xff]  }
 0x1f7   :  { %523 = vmatmul.mubr.bf16.vlgmr.msra.gmra.mrb[8].mxu1 %v396_v40  ;;  %652 = vmatmul.mubr.bf16.vlgmr.msra.gmra.mrb[8].mxu0 %v396_v40  ;;  %v981_v38 = vsel %vm752_vm5, %v13866_v37, 0  ;;  %v16138_v40 = vld [vmem:[%s21710_s5 + $0x108] ss:$8 sps:$4 sm:$0xff]  }
 0x1f8   :  { %760 = vmatpush1.bf16.msra.mxu1 %v16087_v39  ;;  %791 = vmatprep.mubr.bf16.mxu1 %v17408_v24  ;;  %v16140_v39 = vld [vmem:[%s21710_s5 + $0x10c] ss:$8 sps:$4 sm:$0xff]  }
 0x1f9   :  { %761 = vmatprep.subr.bf16.mxu1 %v16092_v41  ;;  %v16181_v37 = vld [vmem:[%s21711_s8 + $0x48] sm:$0xff]  }
 0x1fc   :  { %762 = vmatpush1.bf16.msra.mxu1 %v16090_v43  ;;  %v16141_v43 = vld [vmem:[%s21710_s5 + $0x118] ss:$8 sps:$4 sm:$0xff]  }
 0x1fd   :  { %763 = vmatprep.subr.bf16.mxu1 %v16095_v44  ;;  %v16146_v44 = vld [vmem:[%s21710_s5 + $0x12c] ss:$8 sps:$4 sm:$0xff]  }
 0x200   :  { %764 = vmatpush1.bf16.msra.mxu1 %v16093_v45  ;;  %v16144_v45 = vld [vmem:[%s21710_s5 + $0x128] ss:$8 sps:$4 sm:$0xff]  }
 0x201   :  { %765 = vmatprep.subr.bf16.mxu1 %v16098_v46  ;;  %v16149_v46 = vld [vmem:[%s21710_s5 + $0x13c] ss:$8 sps:$4 sm:$0xff]  }
 0x204   :  { %766 = vmatpush1.bf16.msra.mxu1 %v16096_v47  ;;  %v16147_v47 = vld [vmem:[%s21710_s5 + $0x138] ss:$8 sps:$4 sm:$0xff]  }
 0x205   :  { %767 = vmatprep.subr.bf16.mxu1 %v16101_v48  ;;  %v16152_v48 = vld [vmem:[%s21710_s5 + $0x14c] ss:$8 sps:$4 sm:$0xff]  }
 0x208   :  { %768 = vmatpush1.bf16.msra.mxu1 %v16099_v49  ;;  %v13880_v49 = vld [vmem:[%s21710_s5 + $0x158] sm:$0x33] }
 0x209   :  { %13829 = vmatprep.subr.msk.bf16.mxu1 %vm752_vm5, %v13828_v51  ;;  %v13892_v51 = vcombine.high %v13880_v49, %v13880_v49  ;;  %v13891_v52 = vcombine.low %v13880_v49, %v13880_v49  ;;  %v16182_v49 = vld [vmem:[%s21711_s8 + $0x50] sm:$0xff]  }
 0x20c   :  { %770 = vmatpush1.bf16.msra.mxu1 %v754_v54  ;;  %v16157_v54 = vld [vmem:[%s21710_s5 + $0x164] ss:$8 sps:$4 sm:$0xff]  }
 0x20d   :  { %865 = vmatprep.subr.bf16.mxu1 %v16106_v53  ;;  %v1107_v53 = vsel %vm752_vm5, %v13891_v52, 0  ;;  %v16184_v52 = vld [vmem:[%s21711_s8 + $0x60] sm:$0xff]  }
 0x2ca   :  { %v524_v55 = vpop.f32.mrb[8].mxu1  ;;  %v653_v56 = vpop.f32.mrb[8].mxu0 }
 0x2cb   :  { %v660_v57 = vmax.f32 %v524_v55, %v653_v56  ;;  %v526_v58 = vpop.f32.mrb[9].mxu1  ;;  %v655_v59 = vpop.f32.mrb[9].mxu0  ;;  %v16155_v55 = vld [vmem:[%s21710_s5 + $0x160] ss:$8 sps:$4 sm:$0xff]   ;;  %v16160_v56 = vld [vmem:[%s21710_s5 + $0x174] ss:$8 sps:$4 sm:$0xff]  }
 0x2cc   :  { %v527_v60 = vpop.f32.mrb[10].mxu1  ;;  %v656_v61 = vpop.f32.mrb[10].mxu0  ;;  %v16163_v58 = vld [vmem:[%s21710_s5 + $0x184] ss:$8 sps:$4 sm:$0xff]   ;;  %v16161_v59 = vld [vmem:[%s21710_s5 + $0x180] ss:$8 sps:$4 sm:$0xff]  }
 0x2cd   :  { %v661_v62 = vmax.f32 %v527_v60, %v656_v61  ;;  %v529_v63 = vpop.f32.mrb[11].mxu1  ;;  %v658_v0 = vpop.f32.mrb[11].mxu0  ;;  %v16166_v60 = vld [vmem:[%s21710_s5 + $0x194] ss:$8 sps:$4 sm:$0xff]   ;;  %v16164_v61 = vld [vmem:[%s21710_s5 + $0x190] ss:$8 sps:$4 sm:$0xff]  }
 0x2ce   :  { %v13905_v63 = vld [vmem:[%s21710_s5 + $0x1b0] sm:$0x33]  ;;  %v16167_v0 = vld [vmem:[%s21710_s5 + $0x1a0] ss:$8 sps:$4 sm:$0xff]  }
 0x2cf   :  { %v17719_v1 = vpack.c.bf16 %v661_v62, %v660_v57  ;;  %v16158_v57 = vld [vmem:[%s21710_s5 + $0x170] ss:$8 sps:$4 sm:$0xff]   ;;  %v16169_v62 = vld [vmem:[%s21710_s5 + $0x1a4] ss:$8 sps:$4 sm:$0xff]  }
 0x2d1   :  { %v689_v2 = vshll.u32 %v17719_v1, 16  ;;  %v687_v3 = vshrl.u32 %v17719_v1, 16  ;;  %v921_v41 = vrot.slane %v17719_v1, 1 }
 0x2d3   :  { %v691_v4 = vrot.slane %v689_v2, 1  ;;  %v17723_v5 = vrot.slane %v687_v3, 1  ;;  %v17725_v6 = vrot.slane %v689_v2, 2  ;;  %v13917_v2 = vcombine.high %v13905_v63, %v13905_v63 }
 0x2d5   :  { %v692_v8 = vor.u32 %v691_v4, %v687_v3  ;;  %v1047_v10 = vor.u32 %v17725_v6, %v17723_v5  ;;  %v13916_v3 = vcombine.low %v13905_v63, %v13905_v63  ;;  %v1171_v5 = vrot.slane %v17719_v1, 2  ;;  %v16172_v6 = vld [vmem:[%s21711_s8] sm:$0xff]   ;;  %v16197_v63 = vld [vmem:[%s21705_s1 + $0x14] ss:$8 sps:$4 sm:$0xff]  }
 0x2d6   :  { %1492 = vmatpush1.bf16.msra.mxu0 %v16172_v6  ;;  %v16206_v6 = vld [vmem:[%s21705_s1 + $0x44] ss:$8 sps:$4 sm:$0xff]  }
 0x2d7   :  { %13830 = vmatmul.mubr.msk.bf16.vlgmr.msra.gmra.mrb[12].mxu1 %vm748_vm6, %v692_v8  ;;  %v1231_v4 = vsel %vm752_vm5, %v13916_v3, 0  ;;  %1493 = vmatprep.subr.bf16.mxu0 %v17408_v24  ;;  %v16175_v8 = vld [vmem:[%s21711_s8 + $0x18] sm:$0xff]   ;;  %v16198_v3 = vld [vmem:[%s21705_s1 + $0x20] ss:$8 sps:$4 sm:$0xff]  }
 0x2d8   :  { %866 = vmatpush1.bf16.msra.mxu1 %v16104_v7  ;;  %897 = vmatprep.mubr.bf16.mxu1 %v17408_v24  ;;  %v16173_v7 = vld [vmem:[%s21711_s8 + $0x8] sm:$0xff]  }
 0x2d9   :  { %867 = vmatprep.subr.bf16.mxu1 %v16109_v9  ;;  %v16176_v9 = vld [vmem:[%s21711_s8 + $0x20] sm:$0xff]  }
 0x2da   :  { %1494 = vmatpush1.bf16.msra.mxu0 %v16173_v7  ;;  %v16204_v7 = vld [vmem:[%s21705_s1 + $0x40] ss:$8 sps:$4 sm:$0xff]  }
 0x2db   :  { %1495 = vmatprep.subr.bf16.mxu0 %v17408_v24 }
 0x2dc   :  { %868 = vmatpush1.bf16.msra.mxu1 %v16107_v11  ;;  %v16178_v11 = vld [vmem:[%s21711_s8 + $0x30] sm:$0xff]  }
 0x2dd   :  { %869 = vmatprep.subr.bf16.mxu1 %v16112_v12  ;;  %v1283_v12 = vld [vmem:[%s21712_s6] sm:$0x3] }
 0x2e0   :  { %870 = vmatpush1.bf16.msra.mxu1 %v16110_v13  ;;  %v1288_v13 = vrot.slane %v1283_v12, %v17590_v33 }
 0x2e1   :  { %871 = vmatprep.subr.bf16.mxu1 %v16115_v14  ;;  %v1292_v14 = vrot.slane %v1283_v12, %v17592_v34  ;;  %v16213_v12 = vld [vmem:[%s21705_s1 + $0x70] ss:$8 sps:$4 sm:$0xff]  }
 0x2e4   :  { %872 = vmatpush1.bf16.msra.mxu1 %v16113_v15 }
 0x2e5   :  { %873 = vmatprep.subr.bf16.mxu1 %v16118_v16 }
 0x2e8   :  { %874 = vmatpush1.bf16.msra.mxu1 %v16116_v18 }
 0x2e9   :  { %13843 = vmatprep.subr.msk.bf16.mxu1 %vm752_vm5, %v13842_v19 }
 0x2ec   :  { %876 = vmatpush1.bf16.msra.mxu1 %v860_v21 }
 0x2ed   :  { %986 = vmatprep.subr.bf16.mxu1 %v16123_v22 }
 0x2ef   :  { %13844 = vmatmul.mubr.msk.bf16.vlgmr.msra.gmra.mrb[12].mxu1 %vm748_vm6, %v17719_v1  ;;  %v16174_v1 = vld [vmem:[%s21711_s8 + $0x10] sm:$0xff]  }
 0x2f0   :  { %987 = vmatpush1.bf16.msra.mxu1 %v16121_v23  ;;  %1018 = vmatprep.mubr.bf16.mxu1 %v17408_v24 }
 0x2f1   :  { %988 = vmatprep.subr.bf16.mxu1 %v16126_v25  ;;  %1496 = vmatpush1.bf16.msra.mxu0 %v16174_v1  ;;  %v16209_v1 = vld [vmem:[%s21705_s1 + $0x54] ss:$8 sps:$4 sm:$0xff]  }
 0x2f2   :  { %1497 = vmatprep.subr.bf16.mxu0 %v17408_v24 }
 0x2f4   :  { %989 = vmatpush1.bf16.msra.mxu1 %v16124_v26 }
 0x2f5   :  { %990 = vmatprep.subr.bf16.mxu1 %v16129_v27  ;;  %1498 = vmatpush1.bf16.msra.mxu0 %v16175_v8  ;;  %v16207_v8 = vld [vmem:[%s21705_s1 + $0x50] ss:$8 sps:$4 sm:$0xff]  }
 0x2f6   :  { %1499 = vmatprep.subr.bf16.mxu0 %v17408_v24 }
 0x2f8   :  { %991 = vmatpush1.bf16.msra.mxu1 %v16127_v28 }
 0x2f9   :  { %992 = vmatprep.subr.bf16.mxu1 %v16132_v29  ;;  %1500 = vmatpush1.bf16.msra.mxu0 %v16176_v9  ;;  %v16212_v9 = vld [vmem:[%s21705_s1 + $0x64] ss:$8 sps:$4 sm:$0xff]  }
 0x2fa   :  { %1501 = vmatprep.subr.bf16.mxu0 %v17408_v24 }
 0x2fc   :  { %993 = vmatpush1.bf16.msra.mxu1 %v16130_v30 }
 0x2fd   :  { %994 = vmatprep.subr.bf16.mxu1 %v16135_v31  ;;  %v1305_v31 = vld [vmem:[%s21713_s7] sm:$0x7] }
 0x300   :  { %995 = vmatpush1.bf16.msra.mxu1 %v16133_v35  ;;  %v16179_v35 = vld [vmem:[%s21711_s8 + $0x38] sm:$0xff]  }
 0x301   :  { %13868 = vmatprep.subr.msk.bf16.mxu1 %vm752_vm5, %v13867_v36  ;;  %v16180_v36 = vld [vmem:[%s21711_s8 + $0x40] sm:$0xff]  }
 0x304   :  { %997 = vmatpush1.bf16.msra.mxu1 %v981_v38 }
 0x305   :  { %1112 = vmatprep.subr.bf16.mxu1 %v16140_v39 }
 0x307   :  { %13869 = vmatmul.mubr.msk.bf16.vlgmr.msra.gmra.mrb[12].mxu1 %vm748_vm6, %v921_v41 }
 0x308   :  { %1113 = vmatpush1.bf16.msra.mxu1 %v16138_v40  ;;  %1144 = vmatprep.mubr.bf16.mxu1 %v17408_v24 }
 0x309   :  { %1114 = vmatprep.subr.bf16.mxu1 %v16143_v42 }
 0x30c   :  { %1115 = vmatpush1.bf16.msra.mxu1 %v16141_v43 }
 0x30d   :  { %1116 = vmatprep.subr.bf16.mxu1 %v16146_v44 }
 0x310   :  { %1117 = vmatpush1.bf16.msra.mxu1 %v16144_v45 }
 0x311   :  { %1118 = vmatprep.subr.bf16.mxu1 %v16149_v46 }
 0x314   :  { %1119 = vmatpush1.bf16.msra.mxu1 %v16147_v47 }
 0x315   :  { %1120 = vmatprep.subr.bf16.mxu1 %v16152_v48 }
 0x318   :  { %1121 = vmatpush1.bf16.msra.mxu1 %v16150_v50 }
 0x319   :  { %13893 = vmatprep.subr.msk.bf16.mxu1 %vm752_vm5, %v13892_v51  ;;  %v16183_v51 = vld [vmem:[%s21711_s8 + $0x58] sm:$0xff]  }
 0x31c   :  { %1123 = vmatpush1.bf16.msra.mxu1 %v1107_v53  ;;  %v16185_v53 = vld [vmem:[%s21711_s8 + $0x68] sm:$0xff]  }
 0x31d   :  { %1236 = vmatprep.subr.bf16.mxu1 %v16157_v54  ;;  %v16186_v54 = vld [vmem:[%s21711_s8 + $0x70] sm:$0xff]  }
 0x31f   :  { %13894 = vmatmul.mubr.msk.bf16.vlgmr.msra.gmra.mrb[12].mxu1 %vm748_vm6, %v1047_v10  ;;  %v16177_v10 = vld [vmem:[%s21711_s8 + $0x28] sm:$0xff]  }
 0x320   :  { %1237 = vmatpush1.bf16.msra.mxu1 %v16155_v55  ;;  %1268 = vmatprep.mubr.bf16.mxu1 %v17408_v24  ;;  %v16187_v55 = vld [vmem:[%s21711_s8 + $0x78] sm:$0xff]  }
 0x321   :  { %1238 = vmatprep.subr.bf16.mxu1 %v16160_v56  ;;  %1502 = vmatpush1.bf16.msra.mxu0 %v16177_v10  ;;  %v16188_v56 = vld [vmem:[%s21711_s8 + $0x80] sm:$0xff]  }
 0x322   :  { %1503 = vmatprep.subr.bf16.mxu0 %v17408_v24  ;;  %v16210_v10 = vld [vmem:[%s21705_s1 + $0x60] ss:$8 sps:$4 sm:$0xff]  }
 0x324   :  { %1239 = vmatpush1.bf16.msra.mxu1 %v16158_v57  ;;  %v16189_v57 = vld [vmem:[%s21711_s8 + $0x88] sm:$0xff]  }
 0x325   :  { %1240 = vmatprep.subr.bf16.mxu1 %v16163_v58  ;;  %1504 = vmatpush1.bf16.msra.mxu0 %v16178_v11  ;;  %v16190_v58 = vld [vmem:[%s21711_s8 + $0x90] sm:$0xff]  }
 0x326   :  { %1505 = vmatprep.subr.bf16.mxu0 %v17408_v24  ;;  %v16215_v11 = vld [vmem:[%s21705_s1 + $0x74] ss:$8 sps:$4 sm:$0xff]  }
 0x328   :  { %1241 = vmatpush1.bf16.msra.mxu1 %v16161_v59  ;;  %v16191_v59 = vld [vmem:[%s21711_s8 + $0x98] sm:$0xff]  }
 0x329   :  { %1242 = vmatprep.subr.bf16.mxu1 %v16166_v60  ;;  %1506 = vmatpush1.bf16.msra.mxu0 %v16179_v35  ;;  %v16194_v60 = vld [vmem:[%s21705_s1 + $0x4] ss:$8 sps:$4 sm:$0xff]  }
 0x32a   :  { %1507 = vmatprep.subr.bf16.mxu0 %v17408_v24 }
 0x32c   :  { %1243 = vmatpush1.bf16.msra.mxu1 %v16164_v61  ;;  %v16192_v61 = vld [vmem:[%s21705_s1] ss:$8 sps:$4 sm:$0xff]  }
 0x32d   :  { %1244 = vmatprep.subr.bf16.mxu1 %v16169_v62  ;;  %1508 = vmatpush1.bf16.msra.mxu0 %v16180_v36  ;;  %v16222_v62 = vld [vmem:[%s21706_s0 + $0x24] ss:$8 sps:$4 sm:$0xff]  }
 0x32e   :  { %1509 = vmatprep.subr.bf16.mxu0 %v17408_v24 }
 0x330   :  { %1245 = vmatpush1.bf16.msra.mxu1 %v16167_v0  ;;  %v16195_v0 = vld [vmem:[%s21705_s1 + $0x10] ss:$8 sps:$4 sm:$0xff]  }
 0x331   :  { %13918 = vmatprep.subr.msk.bf16.mxu1 %vm752_vm5, %v13917_v2  ;;  %1510 = vmatpush1.bf16.msra.mxu0 %v16181_v37  ;;  %v16200_v2 = vld [vmem:[%s21705_s1 + $0x24] ss:$8 sps:$4 sm:$0xff]  }
 0x332   :  { %1612 = vmatprep.subr.bf16.mxu0 %v17408_v24  ;;  %v16246_v37 = vld [vmem:[%s21708_s4 + $0x40] sm:$0xff]  }
 0x334   :  { %1247 = vmatpush1.bf16.msra.mxu1 %v1231_v4  ;;  %v16203_v4 = vld [vmem:[%s21705_s1 + $0x34] ss:$8 sps:$4 sm:$0xff]  }
 0x337   :  { %13919 = vmatmul.mubr.msk.bf16.vlgmr.msra.gmra.mrb[12].mxu1 %vm748_vm6, %v1171_v5  ;;  %v16201_v5 = vld [vmem:[%s21705_s1 + $0x30] ss:$8 sps:$4 sm:$0xff]  }
 0x338   :  { %1349 = vmatprep.mubr.bf16.mxu1 %v17408_v24 }
 0x40a   :  { %v1270_v15 = vpop.f32.mrb[12].mxu1 }
 0x40b   :  { %v1295_v16 = vadd.f32 %v1288_v13, %v1270_v15  ;;  %v1272_v17 = vpop.f32.mrb[13].mxu1  ;;  %v16221_v15 = vld [vmem:[%s21705_s1 + $0x94] ss:$8 sps:$4 sm:$0xff]  }
 0x40c   :  { %v1296_v18 = vadd.f32 %v1292_v14, %v1272_v17  ;;  %v1274_v19 = vpop.f32.mrb[14].mxu1  ;;  %v16224_v17 = vld [vmem:[%s21706_s0 + $0x20] ss:$8 sps:$4 sm:$0xff]  }
 0x40d   :  { %v1297_v20 = vadd.f32 %v1288_v13, %v1274_v19  ;;  %v1276_v21 = vpop.f32.mrb[15].mxu1  ;;  %v1299_v23 = vmax.f32 %v1295_v16, 0.0  ;;  %v16218_v13 = vld [vmem:[%s21705_s1 + $0x84] ss:$8 sps:$4 sm:$0xff]   ;;  %v16219_v16 = vld [vmem:[%s21705_s1 + $0x90] ss:$8 sps:$4 sm:$0xff]  }
 0x40e   :  { %v1298_v22 = vadd.f32 %v1292_v14, %v1276_v21  ;;  %v1300_v26 = vmax.f32 %v1296_v18, 0.0  ;;  %v16216_v14 = vld [vmem:[%s21705_s1 + $0x80] ss:$8 sps:$4 sm:$0xff]   ;;  %v16225_v18 = vld [vmem:[%s21706_s0 + $0x34] ss:$8 sps:$4 sm:$0x3f]  }
 0x40f   :  { %v1301_v25 = vmax.f32 %v1297_v20, 0.0  ;;  %v16227_v19 = vld [vmem:[%s21706_s0 + $0x30] ss:$8 sps:$4 sm:$0x3f]   ;;  %v16233_v21 = vld [vmem:[%s21708_s4 + $0x5c] sm:$0xff]  }
 0x410   :  { %v1302_v27 = vmax.f32 %v1298_v22, 0.0  ;;  %v16231_v20 = vld [vmem:[%s21708_s4 + $0x54] sm:$0xff]   ;;  %v16235_v22 = vld [vmem:[%s21708_s4 + $0x64] sm:$0xff]  }
 0x411   :  { %v1303_v28 = vpack.c.bf16 %v1301_v25, %v1299_v23  ;;  %v16237_v23 = vld [vmem:[%s21708_s4 + $0x6c] sm:$0xff]   ;;  %v16239_v25 = vld [vmem:[%s21708_s4 + $0x74] sm:$0xff]  }
 0x412   :  { %v1304_v29 = vpack.c.bf16 %v1302_v27, %v1300_v26 }
 0x413   :  { %v1312_v30 = vsel %vm1310_vm7, %v1303_v28, 0 }
 0x414   :  { %13920 = vmatprep.subr.msk.bf16.mxu1 %vm1310_vm7, %v1304_v29 }
 0x415   :  { %1318 = vmatpush1.bf16.msra.mxu1 %v1312_v30 }
 0x416   :  { %13923 = vmatprep.subr.msk.bf16.mxu1 %vm1310_vm7, %v1304_v29 }
 0x418   :  { %13921 = vmatmul.mubr.msk.bf16.vlgmr.msra.gmra.mrb[16].mxu1 %vm1306_vm8, %v1305_v31  ;;  %v16243_v31 = vld [vmem:[%s21708_s4 + $0x84] sm:$0xff]  }
 0x419   :  { %1364 = vmatpush1.bf16.msra.mxu1 %v1312_v30  ;;  %1395 = vmatprep.mubr.bf16.mxu1 %v17408_v24  ;;  %v16241_v30 = vld [vmem:[%s21708_s4 + $0x7c] sm:$0xff]  }
 0x420   :  { %13924 = vmatmul.mubr.msk.bf16.vlgmr.msra.gmra.mrb[20].mxu1 %vm1306_vm8, %v13922_v32 }
 0x421   :  { %1964 = vmatprep.mubr.bf16.mxu1 %v17408_v24 }
 0x4eb   :  { %v1351_v38 = vpop.f32.mrb[16].mxu1 }
 0x4ec   :  { %v1353_v39 = vpop.f32.mrb[17].mxu1 }
 0x4ed   :  { %v1355_v40 = vpop.f32.mrb[18].mxu1 }
 0x4ee   :  { %v1356_v41 = vpop.f32.mrb[19].mxu1 }
 0x4f3   :  { %v1397_v42 = vpop.f32.mrb[20].mxu1 }
 0x4f4   :  { %v1404_v43 = vmax.f32 %v1351_v38, %v1397_v42  ;;  %v1399_v44 = vpop.f32.mrb[21].mxu1  ;;  %v1657_v38 = vld [vmem:[#allocation2] sm:$0x1]  ;;  %v1669_v42 = vld [vmem:[#allocation2 + $0x4] sm:$0x1] }
 0x4f5   :  { %v1405_v45 = vmax.f32 %v1353_v39, %v1399_v44  ;;  %v1401_v46 = vpop.f32.mrb[22].mxu1  ;;  %v1687_v44 = vld [vmem:[#allocation2 + $0x10] sm:$0x1] }
 0x4f6   :  { %v1402_v47 = vpop.f32.mrb[23].mxu1  ;;  %v1406_v50 = vpack.c.bf16 %v1404_v43, %v1404_v43  ;;  %v1675_v43 = vld [vmem:[#allocation2 + $0x8] sm:$0x1] }
 0x4f7   :  { %v1407_v48 = vpack.c.bf16 %v1405_v45, %v1405_v45 }
 0x4f9   :  { %13935 = vmatprep.mubr.msk.bf16.mxu0 %vm205_vm0, %v1407_v48 }
 0x4fa   :  { %1524 = vmatmul.mubr.bf16.vlgmr.msra.gmra.mrb[12].mxu0 %v1406_v50 }
 0x4fb   :  { %1613 = vmatpush1.bf16.msra.mxu0 %v16182_v49  ;;  %13966 = vmatprep.mubr.msk.bf16.mxu0 %vm205_vm0, %v1407_v48  ;;  %v1681_v49 = vld [vmem:[#allocation2 + $0xc] sm:$0x1] }
 0x4fc   :  { %1614 = vmatprep.subr.bf16.mxu0 %v17408_v24 }
 0x4ff   :  { %1615 = vmatpush1.bf16.msra.mxu0 %v16183_v51 }
 0x500   :  { %1616 = vmatprep.subr.bf16.mxu0 %v17408_v24 }
 0x503   :  { %1617 = vmatpush1.bf16.msra.mxu0 %v16184_v52 }
 0x504   :  { %1618 = vmatprep.subr.bf16.mxu0 %v17408_v24 }
 0x507   :  { %1619 = vmatpush1.bf16.msra.mxu0 %v16185_v53 }
 0x508   :  { %1620 = vmatprep.subr.bf16.mxu0 %v17408_v24 }
 0x50b   :  { %1621 = vmatpush1.bf16.msra.mxu0 %v16186_v54 }
 0x50c   :  { %1622 = vmatprep.subr.bf16.mxu0 %v17408_v24 }
 0x50f   :  { %1623 = vmatpush1.bf16.msra.mxu0 %v16187_v55  ;;  %v1715_v55 = vld [vmem:[%s21709_s2] sm:$0x3] }
 0x510   :  { %1624 = vmatprep.subr.bf16.mxu0 %v17408_v24 }
 0x513   :  { %1625 = vmatpush1.bf16.msra.mxu0 %v16188_v56  ;;  %v1720_v56 = vrot.slane %v1715_v55, %v17590_v33 }
 0x514   :  { %1626 = vmatprep.subr.bf16.mxu0 %v17408_v24 }
 0x517   :  { %1627 = vmatpush1.bf16.msra.mxu0 %v16189_v57  ;;  %v1724_v57 = vrot.slane %v1715_v55, %v17592_v34 }
 0x518   :  { %1628 = vmatprep.subr.bf16.mxu0 %v17408_v24 }
 0x51b   :  { %1629 = vmatpush1.bf16.msra.mxu0 %v16190_v58 }
 0x51c   :  { %1630 = vmatprep.subr.bf16.mxu0 %v17408_v24 }
 0x51f   :  { %1631 = vmatpush1.bf16.msra.mxu0 %v16191_v59 }
 0x520   :  { %1851 = vmatprep.subr.bf16.mxu0 %v16194_v60 }
 0x522   :  { %1645 = vmatmul.mubr.bf16.vlgmr.msra.gmra.mrb[16].mxu0 %v1406_v50 }
 0x523   :  { %1852 = vmatpush1.bf16.msra.mxu0 %v16192_v61  ;;  %14000 = vmatprep.mubr.msk.bf16.mxu0 %vm205_vm0, %v16222_v62 }
 0x524   :  { %1853 = vmatprep.subr.bf16.mxu0 %v16197_v63 }
 0x527   :  { %1854 = vmatpush1.bf16.msra.mxu0 %v16195_v0 }
 0x528   :  { %1855 = vmatprep.subr.bf16.mxu0 %v16200_v2 }
 0x52b   :  { %1856 = vmatpush1.bf16.msra.mxu0 %v16198_v3 }
 0x52c   :  { %1857 = vmatprep.subr.bf16.mxu0 %v16203_v4 }
 0x52f   :  { %1858 = vmatpush1.bf16.msra.mxu0 %v16201_v5 }
 0x530   :  { %1859 = vmatprep.subr.bf16.mxu0 %v16206_v6 }
 0x533   :  { %1860 = vmatpush1.bf16.msra.mxu0 %v16204_v7 }
 0x534   :  { %1861 = vmatprep.subr.bf16.mxu0 %v16209_v1 }
 0x537   :  { %1862 = vmatpush1.bf16.msra.mxu0 %v16207_v8 }
 0x538   :  { %1863 = vmatprep.subr.bf16.mxu0 %v16212_v9 }
 0x53b   :  { %1864 = vmatpush1.bf16.msra.mxu0 %v16210_v10 }
 0x53c   :  { %1865 = vmatprep.subr.bf16.mxu0 %v16215_v11 }
 0x53f   :  { %1866 = vmatpush1.bf16.msra.mxu0 %v16213_v12 }
 0x540   :  { %1867 = vmatprep.subr.bf16.mxu0 %v16218_v13 }
 0x543   :  { %1868 = vmatpush1.bf16.msra.mxu0 %v16216_v14 }
 0x544   :  { %1869 = vmatprep.subr.bf16.mxu0 %v16221_v15 }
 0x547   :  { %1870 = vmatpush1.bf16.msra.mxu0 %v16219_v16 }
 0x548   :  { %2252 = vmatprep.subr.bf16.mxu0 %v17408_v24 }
 0x54a   :  { %1884 = vmatmul.mubr.bf16.vlgmr.msra.gmra.mrb[20].mxu0 %v16224_v17 }
 0x54b   :  { %14001 = vmatprep.mubr.msk.bf16.mxu0 %vm205_vm0, %v16225_v18  ;;  %2253 = vmatpush1.bf16.msra.mxu0 %v16231_v20 }
 0x54c   :  { %2254 = vmatprep.subr.bf16.mxu0 %v17408_v24 }
 0x54f   :  { %2255 = vmatpush1.bf16.msra.mxu0 %v16233_v21 }
 0x550   :  { %2256 = vmatprep.subr.bf16.mxu0 %v17408_v24 }
 0x552   :  { %1894 = vmatmul.mubr.bf16.gmra.mrb[24].mxu0 %v16227_v19 }
 0x553   :  { %2257 = vmatpush1.bf16.msra.mxu0 %v16235_v22 }
 0x554   :  { %2258 = vmatprep.subr.bf16.mxu0 %v17408_v24 }
 0x557   :  { %2259 = vmatpush1.bf16.msra.mxu0 %v16237_v23  ;;  %v16228_v23 = vld [vmem:[%s21707_s3] sm:$0x7f]  }
 0x558   :  { %2260 = vmatprep.subr.bf16.mxu0 %v17408_v24 }
 0x55b   :  { %2261 = vmatpush1.bf16.msra.mxu0 %v16239_v25  ;;  %v16229_v25 = vld [vmem:[%s21707_s3 + $0x8] sm:$0x7f]  }
 0x55c   :  { %2262 = vmatprep.subr.bf16.mxu0 %v17408_v24 }
 0x55f   :  { %2263 = vmatpush1.bf16.msra.mxu0 %v16241_v30  ;;  %v16238_v30 = vld [vmem:[%s21708_s4 + $0x20] sm:$0xff]  }
 0x560   :  { %2264 = vmatprep.subr.bf16.mxu0 %v17408_v24 }
 0x563   :  { %2265 = vmatpush1.bf16.msra.mxu0 %v16243_v31  ;;  %v16240_v31 = vld [vmem:[%s21708_s4 + $0x28] sm:$0xff]  }
 0x564   :  { %2266 = vmatprep.subr.bf16.mxu0 %v17408_v24 }
 0x5cd   :  { %v1525_v26 = vpop.f32.mrb[12].mxu0 }
 0x5ce   :  { %v1527_v27 = vpop.f32.mrb[13].mxu0 }
 0x5cf   :  { %v1528_v28 = vpop.f32.mrb[14].mxu0  ;;  %v16232_v27 = vld [vmem:[%s21708_s4 + $0x8] sm:$0xff]  }
 0x5d0   :  { %v1529_v29 = vpop.f32.mrb[15].mxu0  ;;  %v16234_v28 = vld [vmem:[%s21708_s4 + $0x10] sm:$0xff]  }
 0x5d1   :  { %v16236_v29 = vld [vmem:[%s21708_s4 + $0x18] sm:$0xff]  }
 0x5f5   :  { %v1646_v32 = vpop.f32.mrb[16].mxu0 }
 0x5f6   :  { %v1652_v35 = vmax.f32 %v1525_v26, %v1646_v32  ;;  %v1648_v36 = vpop.f32.mrb[17].mxu0  ;;  %v16230_v26 = vld [vmem:[%s21708_s4] sm:$0xff]   ;;  %v16242_v32 = vld [vmem:[%s21708_s4 + $0x30] sm:$0xff]  }
 0x5f7   :  { %v1649_v39 = vpop.f32.mrb[18].mxu0  ;;  %v16245_v36 = vld [vmem:[%s21708_s4 + $0x8c] sm:$0xff]  }
 0x5f8   :  { %v1653_v40 = vpack.c.bf16 %v1652_v35, %v1652_v35  ;;  %v1650_v41 = vpop.f32.mrb[19].mxu0  ;;  %v16244_v35 = vld [vmem:[%s21708_s4 + $0x38] sm:$0xff]   ;;  %2267 = vmatpush1.bf16.msra.mxu0 %v16245_v36  ;;  %v16248_v39 = vld [vmem:[%s21708_s4 + $0x48] sm:$0xff]  }
 0x5f9   :  { %2268 = vmatprep.subr.bf16.mxu0 %v17408_v24  ;;  %v16250_v41 = vld [vmem:[%s21708_s4 + $0x50] ss:$0 sps:$4 sm:$0xff]   ;;  %v16280_v36 = vld [vmem:[%s21710_s5 + $0x34] ss:$8 sps:$4 sm:$0xff]  }
 0x5fa   :  { %v1658_v45 = vsel %vm18085_vm11, %v1653_v40, %v1657_v38  ;;  %v1664_v46 = vshrl.u32 %v1653_v40, 16  ;;  %v13969_v47 = vrot.slane %v1653_v40, 9  ;;  %v13971_v48 = vrot.slane %v1653_v40, 10  ;;  %v16247_v38 = vld [vmem:[%s21708_s4 + $0x94] sm:$0xff]   ;;  %v16249_v40 = vld [vmem:[%s21708_s4 + $0x9c] sm:$0xff]  }
 0x5fb   :  { %1659 = vst [vmem:[#allocation2] sm:$0x1] %v1658_v45  ;;  %v16254_v45 = vld [vmem:[%s21710_s5 + $0x5c] ss:$8 sps:$4 sm:$0xff]  }
 0x5fc   :  { %v1670_v50 = vsel %vm18085_vm11, %v1664_v46, %v1669_v42  ;;  %v1676_v51 = vsel %vm18085_vm11, %v13969_v47, %v1675_v43  ;;  %v13970_v52 = vrot.slane %v1664_v46, 9  ;;  %v1688_v53 = vsel %vm18085_vm11, %v13971_v48, %v1687_v44  ;;  %2269 = vmatpush1.bf16.msra.mxu0 %v16247_v38  ;;  %v16251_v42 = vld [vmem:[%s21708_s4 + $0xa4] ss:$0 sps:$4 sm:$0xff]  }
 0x5fd   :  { %1677 = vst [vmem:[#allocation2 + $0x8] sm:$0x1] %v1676_v51  ;;  %1689 = vst [vmem:[#allocation2 + $0x10] sm:$0x1] %v1688_v53  ;;  %2270 = vmatprep.subr.bf16.mxu0 %v17408_v24  ;;  %v2122_v43 = vsel %vm486_vm3, %v16250_v41, 0  ;;  %v2250_v44 = vsel %vm486_vm3, %v16251_v42, 0 }
 0x5fe   :  { %1671 = vst [vmem:[#allocation2 + $0x4] sm:$0x1] %v1670_v50  ;;  %v1682_v54 = vsel %vm18085_vm11, %v13970_v52, %v1681_v49  ;;  %v16283_v38 = vld [vmem:[%s21710_s5 + $0x44] ss:$8 sps:$4 sm:$0xff]   ;;  %vm19585_vm11 = vmand %vm4902_vm14, %vm6526_vm10  ;;  %vm11379_vm10 = vcmask 1043459  }
 0x5ff   :  { %1683 = vst [vmem:[#allocation2 + $0xc] sm:$0x1] %v1682_v54 }
 0x600   :  { %2271 = vmatpush1.bf16.msra.mxu0 %v16249_v40  ;;  %v16281_v40 = vld [vmem:[%s21710_s5 + $0x40] ss:$8 sps:$4 sm:$0xff]  }
 0x601   :  { %2272 = vmatprep.subr.bf16.mxu0 %v17408_v24 }
 0x604   :  { %2273 = vmatpush1.bf16.msra.mxu0 %v2250_v44  ;;  %v16288_v44 = vld [vmem:[%s21710_s5 + $0xb4] ss:$8 sps:$4 sm:$0xff]  }
 0x61d   :  { %v1885_v58 = vpop.f32.mrb[20].mxu0 }
 0x61e   :  { %v1886_v59 = vadd.f32 %v1885_v58, %v1720_v56  ;;  %v1887_v60 = vpop.f32.mrb[21].mxu0 }
 0x61f   :  { %v1888_v61 = vadd.f32 %v1887_v60, %v1724_v57  ;;  %v1889_v62 = vpop.f32.mrb[22].mxu0  ;;  %v16252_v60 = vld [vmem:[%s21710_s5 + $0x58] ss:$8 sps:$4 sm:$0xff]  }
 0x620   :  { %v1890_v63 = vadd.f32 %v1889_v62, %v1720_v56  ;;  %v1891_v0 = vpop.f32.mrb[23].mxu0  ;;  %v1904_v3 = vmax.f32 %v1886_v59, 0.0  ;;  %v16255_v62 = vld [vmem:[%s21710_s5 + $0x68] ss:$8 sps:$4 sm:$0xff]  }
 0x621   :  { %v1892_v2 = vadd.f32 %v1891_v0, %v1724_v57  ;;  %v1905_v5 = vmax.f32 %v1888_v61, 0.0  ;;  %v16257_v61 = vld [vmem:[%s21710_s5 + $0x6c] ss:$8 sps:$4 sm:$0xff]   ;;  %v16258_v0 = vld [vmem:[%s21710_s5 + $0x78] ss:$8 sps:$4 sm:$0xff]  }
 0x622   :  { %v1906_v4 = vmax.f32 %v1890_v63, 0.0  ;;  %v16260_v63 = vld [vmem:[%s21710_s5 + $0x7c] ss:$8 sps:$4 sm:$0xff]  }
 0x623   :  { %v1907_v6 = vmax.f32 %v1892_v2, 0.0  ;;  %v16263_v2 = vld [vmem:[%s21710_s5 + $0x8c] ss:$8 sps:$4 sm:$0xff]  }
 0x624   :  { %v1912_v7 = vpack.c.bf16 %v1906_v4, %v1904_v3  ;;  %v16261_v3 = vld [vmem:[%s21710_s5 + $0x88] ss:$8 sps:$4 sm:$0xff]   ;;  %v16266_v4 = vld [vmem:[%s21710_s5 + $0x9c] ss:$8 sps:$4 sm:$0xff]  }
 0x625   :  { %v1913_v1 = vpack.c.bf16 %v1907_v6, %v1905_v5  ;;  %v1895_v8 = vpop.f32.mrb[24].mxu0  ;;  %v16264_v5 = vld [vmem:[%s21710_s5 + $0x98] ss:$8 sps:$4 sm:$0xff]   ;;  %v14065_v6 = vld [vmem:[%s21710_s5 + $0xa8] sm:$0x33] }
 0x626   :  { %v1896_v9 = vadd.f32 %v1895_v8, %v1720_v56  ;;  %v1897_v10 = vpop.f32.mrb[25].mxu0  ;;  %v16271_v8 = vld [vmem:[%s21710_s5 + $0x4] ss:$8 sps:$4 sm:$0xff]  }
 0x627   :  { %v1898_v11 = vadd.f32 %v1897_v10, %v1724_v57  ;;  %v1899_v12 = vpop.f32.mrb[26].mxu0  ;;  %1932 = vmatprep.subr.bf16.mxu1 %v1913_v1 }
 0x628   :  { %v1900_v13 = vadd.f32 %v1899_v12, %v1720_v56  ;;  %v1901_v14 = vpop.f32.mrb[27].mxu0  ;;  %1933 = vmatpush1.bf16.msra.mxu1 %v1912_v7  ;;  %v1908_v16 = vmax.f32 %v1896_v9, 0.0 }
 0x629   :  { %v1902_v15 = vadd.f32 %v1901_v14, %v1724_v57  ;;  %v1909_v18 = vmax.f32 %v1898_v11, 0.0 }
 0x62a   :  { %v1910_v17 = vmax.f32 %v1900_v13, 0.0 }
 0x62b   :  { %v1911_v19 = vmax.f32 %v1902_v15, 0.0 }
 0x62c   :  { %v1914_v20 = vpack.c.bf16 %v1910_v17, %v1908_v16 }
 0x62d   :  { %v1915_v21 = vpack.c.bf16 %v1911_v19, %v1909_v18 }
 0x62e   :  { %v1927_v22 = vsel %vm288_vm1, %v1914_v20, 0 }
 0x62f   :  { %14003 = vmatprep.subr.msk.bf16.mxu1 %vm288_vm1, %v1915_v21 }
 0x630   :  { %1935 = vmatpush1.bf16.msra.mxu1 %v1927_v22 }
 0x631   :  { %1985 = vmatprep.subr.bf16.mxu1 %v1913_v1  ;;  %v14076_v1 = vcombine.low %v14065_v6, %v14065_v6 }
 0x633   :  { %14004 = vmatmul.mubr.msk.bf16.vlgmr.msra.gmra.mrb[24].mxu1 %vm284_vm2, %v16228_v23  ;;  %v2384_v9 = vsel %vm752_vm5, %v14076_v1, 0 }
 0x634   :  { %1986 = vmatpush1.bf16.msra.mxu1 %v1912_v7  ;;  %2017 = vmatprep.mubr.bf16.mxu1 %v17408_v24  ;;  %v14077_v7 = vcombine.high %v14065_v6, %v14065_v6  ;;  %v16315_v6 = vld [vmem:[%s21710_s5 + $0x148] ss:$8 sps:$4 sm:$0xff]  }
 0x635   :  { %14008 = vmatprep.subr.msk.bf16.mxu1 %vm288_vm1, %v1915_v21 }
 0x638   :  { %1988 = vmatpush1.bf16.msra.mxu1 %v1927_v22 }
 0x639   :  { %2124 = vmatprep.subr.bf16.mxu1 %v17408_v24 }
 0x63b   :  { %14009 = vmatmul.mubr.msk.bf16.vlgmr.msra.gmra.mrb[28].mxu1 %vm284_vm2, %v16229_v25 }
 0x63c   :  { %2125 = vmatpush1.bf16.msra.mxu1 %v16230_v26 }
 0x63d   :  { %2126 = vmatprep.subr.bf16.mxu1 %v17408_v24 }
 0x640   :  { %2127 = vmatpush1.bf16.msra.mxu1 %v16232_v27  ;;  %v16269_v27 = vld [vmem:[%s21710_s5] ss:$8 sps:$4 sm:$0xff]  }
 0x641   :  { %2128 = vmatprep.subr.bf16.mxu1 %v17408_v24 }
 0x644   :  { %2129 = vmatpush1.bf16.msra.mxu1 %v16234_v28 }
 0x645   :  { %2130 = vmatprep.subr.bf16.mxu1 %v17408_v24 }
 0x648   :  { %2131 = vmatpush1.bf16.msra.mxu1 %v16236_v29  ;;  %v16274_v29 = vld [vmem:[%s21710_s5 + $0x14] ss:$8 sps:$4 sm:$0xff]  }
 0x649   :  { %2132 = vmatprep.subr.bf16.mxu1 %v17408_v24 }
 0x64c   :  { %2133 = vmatpush1.bf16.msra.mxu1 %v16238_v30 }
 0x64d   :  { %2134 = vmatprep.subr.bf16.mxu1 %v17408_v24 }
 0x650   :  { %2135 = vmatpush1.bf16.msra.mxu1 %v16240_v31  ;;  %v16272_v31 = vld [vmem:[%s21710_s5 + $0x10] ss:$8 sps:$4 sm:$0xff]  }
 0x651   :  { %2136 = vmatprep.subr.bf16.mxu1 %v17408_v24 }
 0x654   :  { %2137 = vmatpush1.bf16.msra.mxu1 %v16242_v32  ;;  %v16277_v32 = vld [vmem:[%s21710_s5 + $0x24] ss:$8 sps:$4 sm:$0xff]  }
 0x655   :  { %2138 = vmatprep.subr.bf16.mxu1 %v17408_v24 }
 0x658   :  { %2139 = vmatpush1.bf16.msra.mxu1 %v16244_v35  ;;  %v16275_v35 = vld [vmem:[%s21710_s5 + $0x20] ss:$8 sps:$4 sm:$0xff]  }
 0x659   :  { %2140 = vmatprep.subr.bf16.mxu1 %v17408_v24 }
 0x65c   :  { %2141 = vmatpush1.bf16.msra.mxu1 %v16246_v37  ;;  %v16278_v37 = vld [vmem:[%s21710_s5 + $0x30] ss:$8 sps:$4 sm:$0xff]  }
 0x65d   :  { %2142 = vmatprep.subr.bf16.mxu1 %v17408_v24 }
 0x660   :  { %2143 = vmatpush1.bf16.msra.mxu1 %v16248_v39  ;;  %v2306_v39 = vld [vmem:[%s21710_s5 + $0x50] sm:$0x33] }
 0x661   :  { %2144 = vmatprep.subr.bf16.mxu1 %v17408_v24  ;;  %v14091_v41 = vcombine.high %v2306_v39, %v2306_v39  ;;  %v14090_v42 = vcombine.low %v2306_v39, %v2306_v39 }
 0x664   :  { %2145 = vmatpush1.bf16.msra.mxu1 %v2122_v43  ;;  %v2490_v43 = vsel %vm752_vm5, %v14090_v42, 0 }
 0x665   :  { %2389 = vmatprep.subr.bf16.mxu1 %v16254_v45  ;;  %v16286_v45 = vld [vmem:[%s21710_s5 + $0xb0] ss:$8 sps:$4 sm:$0xff]  }
 0x706   :  { %v1966_v46 = vpop.f32.mrb[24].mxu1 }
 0x707   :  { %v1968_v47 = vpop.f32.mrb[25].mxu1 }
 0x708   :  { %v1970_v48 = vpop.f32.mrb[26].mxu1 }
 0x709   :  { %v1972_v49 = vpop.f32.mrb[27].mxu1 }
 0x70e   :  { %v2019_v50 = vpop.f32.mrb[28].mxu1 }
 0x70f   :  { %v2028_v51 = vmax.f32 %v1966_v46, %v2019_v50  ;;  %v2021_v52 = vpop.f32.mrb[29].mxu1  ;;  %v16291_v46 = vld [vmem:[%s21710_s5 + $0xc4] ss:$8 sps:$4 sm:$0xff]  }
 0x710   :  { %v2029_v53 = vmax.f32 %v1968_v47, %v2021_v52  ;;  %v2023_v54 = vpop.f32.mrb[30].mxu1  ;;  %v16289_v47 = vld [vmem:[%s21710_s5 + $0xc0] ss:$8 sps:$4 sm:$0xff]   ;;  %v16297_v50 = vld [vmem:[%s21710_s5 + $0xe4] ss:$8 sps:$4 sm:$0xff]  }
 0x711   :  { %v2030_v55 = vmax.f32 %v1970_v48, %v2023_v54  ;;  %v2025_v56 = vpop.f32.mrb[31].mxu1  ;;  %v16294_v48 = vld [vmem:[%s21710_s5 + $0xd4] ss:$8 sps:$4 sm:$0xff]   ;;  %v16298_v54 = vld [vmem:[%s21710_s5 + $0xf0] ss:$8 sps:$4 sm:$0xff]  }
 0x712   :  { %v2031_v57 = vmax.f32 %v1972_v49, %v2025_v56  ;;  %v16292_v49 = vld [vmem:[%s21710_s5 + $0xd0] ss:$8 sps:$4 sm:$0xff]   ;;  %v16300_v52 = vld [vmem:[%s21710_s5 + $0xf4] ss:$8 sps:$4 sm:$0xff]  }
 0x713   :  { %v2032_v58 = vpack.c.bf16 %v2030_v55, %v2028_v51  ;;  %v16295_v51 = vld [vmem:[%s21710_s5 + $0xe0] ss:$8 sps:$4 sm:$0xff]  }
 0x714   :  { %v2033_v59 = vpack.c.bf16 %v2031_v57, %v2029_v53  ;;  %v14104_v53 = vld [vmem:[%s21710_s5 + $0x100] sm:$0x33] }
 0x715   :  { %v14116_v55 = vcombine.high %v14104_v53, %v14104_v53  ;;  %v14115_v56 = vcombine.low %v14104_v53, %v14104_v53  ;;  %v16343_v53 = vld [vmem:[%s21711_s8 + $0x30] sm:$0xff]  }
 0x716   :  { %14021 = vmatprep.mubr.msk.bf16.mxu1 %vm482_vm4, %v2033_v59  ;;  %14054 = vmatprep.mubr.msk.bf16.mxu0 %vm482_vm4, %v2033_v59  ;;  %v16303_v59 = vld [vmem:[%s21710_s5 + $0x108] ss:$8 sps:$4 sm:$0xff]  }
 0x717   :  { %2157 = vmatmul.mubr.bf16.vlgmr.msra.gmra.mrb[32].mxu1 %v2032_v58  ;;  %2285 = vmatmul.mubr.bf16.vlgmr.msra.gmra.mrb[28].mxu0 %v2032_v58  ;;  %v2610_v57 = vsel %vm752_vm5, %v14115_v56, 0  ;;  %v16305_v58 = vld [vmem:[%s21710_s5 + $0x10c] ss:$8 sps:$4 sm:$0xff]  }
 0x718   :  { %2390 = vmatpush1.bf16.msra.mxu1 %v16252_v60  ;;  %2421 = vmatprep.mubr.bf16.mxu1 %v17408_v24  ;;  %v16346_v56 = vld [vmem:[%s21711_s8 + $0x48] sm:$0xff]  }
 0x719   :  { %2391 = vmatprep.subr.bf16.mxu1 %v16257_v61  ;;  %2974 = vmatprep.mubr.bf16.mxu0 %v17408_v24  ;;  %v16308_v61 = vld [vmem:[%s21710_s5 + $0x11c] ss:$8 sps:$4 sm:$0xff]  }
 0x71c   :  { %2392 = vmatpush1.bf16.msra.mxu1 %v16255_v62  ;;  %v16306_v62 = vld [vmem:[%s21710_s5 + $0x118] ss:$8 sps:$4 sm:$0xff]  }
 0x71d   :  { %2393 = vmatprep.subr.bf16.mxu1 %v16260_v63  ;;  %v16311_v63 = vld [vmem:[%s21710_s5 + $0x12c] ss:$8 sps:$4 sm:$0xff]  }
 0x720   :  { %2394 = vmatpush1.bf16.msra.mxu1 %v16258_v0  ;;  %v16309_v0 = vld [vmem:[%s21710_s5 + $0x128] ss:$8 sps:$4 sm:$0xff]  }
 0x721   :  { %2395 = vmatprep.subr.bf16.mxu1 %v16263_v2  ;;  %v16314_v2 = vld [vmem:[%s21710_s5 + $0x13c] ss:$8 sps:$4 sm:$0xff]  }
 0x724   :  { %2396 = vmatpush1.bf16.msra.mxu1 %v16261_v3  ;;  %v16312_v3 = vld [vmem:[%s21710_s5 + $0x138] ss:$8 sps:$4 sm:$0xff]  }
 0x725   :  { %2397 = vmatprep.subr.bf16.mxu1 %v16266_v4  ;;  %v16317_v4 = vld [vmem:[%s21710_s5 + $0x14c] ss:$8 sps:$4 sm:$0xff]  }
 0x728   :  { %2398 = vmatpush1.bf16.msra.mxu1 %v16264_v5  ;;  %v14129_v5 = vld [vmem:[%s21710_s5 + $0x158] sm:$0x33] }
 0x729   :  { %14078 = vmatprep.subr.msk.bf16.mxu1 %vm752_vm5, %v14077_v7  ;;  %v14141_v7 = vcombine.high %v14129_v5, %v14129_v5  ;;  %v14140_v1 = vcombine.low %v14129_v5, %v14129_v5  ;;  %v16347_v5 = vld [vmem:[%s21711_s8 + $0x50] sm:$0xff]  }
 0x72c   :  { %2400 = vmatpush1.bf16.msra.mxu1 %v2384_v9  ;;  %v16322_v9 = vld [vmem:[%s21710_s5 + $0x164] ss:$8 sps:$4 sm:$0xff]  }
 0x72d   :  { %2495 = vmatprep.subr.bf16.mxu1 %v16271_v8  ;;  %v2735_v8 = vsel %vm752_vm5, %v14140_v1, 0  ;;  %v16349_v1 = vld [vmem:[%s21711_s8 + $0x60] sm:$0xff]  }
 0x7ea   :  { %v2158_v10 = vpop.f32.mrb[32].mxu1  ;;  %v2286_v11 = vpop.f32.mrb[28].mxu0 }
 0x7eb   :  { %v2293_v12 = vmax.f32 %v2158_v10, %v2286_v11  ;;  %v2160_v13 = vpop.f32.mrb[33].mxu1  ;;  %v2288_v14 = vpop.f32.mrb[29].mxu0  ;;  %v16320_v10 = vld [vmem:[%s21710_s5 + $0x160] ss:$8 sps:$4 sm:$0xff]   ;;  %v16325_v11 = vld [vmem:[%s21710_s5 + $0x174] ss:$8 sps:$4 sm:$0xff]  }
 0x7ec   :  { %v2161_v15 = vpop.f32.mrb[34].mxu1  ;;  %v2289_v16 = vpop.f32.mrb[30].mxu0  ;;  %v16328_v13 = vld [vmem:[%s21710_s5 + $0x184] ss:$8 sps:$4 sm:$0xff]   ;;  %v16326_v14 = vld [vmem:[%s21710_s5 + $0x180] ss:$8 sps:$4 sm:$0xff]  }
 0x7ed   :  { %v2294_v17 = vmax.f32 %v2161_v15, %v2289_v16  ;;  %v2163_v18 = vpop.f32.mrb[35].mxu1  ;;  %v2291_v19 = vpop.f32.mrb[31].mxu0  ;;  %v16331_v15 = vld [vmem:[%s21710_s5 + $0x194] ss:$8 sps:$4 sm:$0xff]   ;;  %v16329_v16 = vld [vmem:[%s21710_s5 + $0x190] ss:$8 sps:$4 sm:$0xff]  }
 0x7ee   :  { %v14154_v18 = vld [vmem:[%s21710_s5 + $0x1b0] sm:$0x33]  ;;  %v16332_v19 = vld [vmem:[%s21710_s5 + $0x1a0] ss:$8 sps:$4 sm:$0xff]  }
 0x7ef   :  { %v18219_v20 = vpack.c.bf16 %v2294_v17, %v2293_v12  ;;  %v16323_v12 = vld [vmem:[%s21710_s5 + $0x170] ss:$8 sps:$4 sm:$0xff]   ;;  %v16334_v17 = vld [vmem:[%s21710_s5 + $0x1a4] ss:$8 sps:$4 sm:$0xff]  }
 0x7f1   :  { %v2321_v21 = vshll.u32 %v18219_v20, 16  ;;  %v2319_v22 = vshrl.u32 %v18219_v20, 16  ;;  %v2550_v60 = vrot.slane %v18219_v20, 1 }
 0x7f3   :  { %v2323_v23 = vrot.slane %v2321_v21, 1  ;;  %v18223_v25 = vrot.slane %v2319_v22, 1  ;;  %v18225_v26 = vrot.slane %v2321_v21, 2  ;;  %v14166_v21 = vcombine.high %v14154_v18, %v14154_v18 }
 0x7f5   :  { %v2324_v28 = vor.u32 %v2323_v23, %v2319_v22  ;;  %v2675_v30 = vor.u32 %v18225_v26, %v18223_v25  ;;  %v14165_v22 = vcombine.low %v14154_v18, %v14154_v18  ;;  %v2798_v25 = vrot.slane %v18219_v20, 2  ;;  %v2910_v26 = vld [vmem:[%s21712_s6] sm:$0x3]  ;;  %v16362_v18 = vld [vmem:[%s21705_s1 + $0x14] ss:$8 sps:$4 sm:$0xff]  }
 0x7f7   :  { %14079 = vmatmul.mubr.msk.bf16.vlgmr.msra.gmra.mrb[36].mxu1 %vm748_vm6, %v2324_v28  ;;  %v2858_v23 = vsel %vm752_vm5, %v14165_v22, 0  ;;  %v2919_v28 = vrot.slane %v2910_v26, %v17592_v34  ;;  %v16363_v22 = vld [vmem:[%s21705_s1 + $0x20] ss:$8 sps:$4 sm:$0xff]  }
 0x7f8   :  { %2496 = vmatpush1.bf16.msra.mxu1 %v16269_v27  ;;  %2527 = vmatprep.mubr.bf16.mxu1 %v17408_v24  ;;  %v2915_v27 = vrot.slane %v2910_v26, %v17590_v33  ;;  %v16371_v26 = vld [vmem:[%s21705_s1 + $0x44] ss:$8 sps:$4 sm:$0xff]  }
 0x7f9   :  { %2497 = vmatprep.subr.bf16.mxu1 %v16274_v29 }
 0x7fc   :  { %2498 = vmatpush1.bf16.msra.mxu1 %v16272_v31 }
 0x7fd   :  { %2499 = vmatprep.subr.bf16.mxu1 %v16277_v32 }
 0x800   :  { %2500 = vmatpush1.bf16.msra.mxu1 %v16275_v35 }
 0x801   :  { %2501 = vmatprep.subr.bf16.mxu1 %v16280_v36 }
 0x804   :  { %2502 = vmatpush1.bf16.msra.mxu1 %v16278_v37 }
 0x805   :  { %2503 = vmatprep.subr.bf16.mxu1 %v16283_v38 }
 0x808   :  { %2504 = vmatpush1.bf16.msra.mxu1 %v16281_v40 }
 0x809   :  { %14092 = vmatprep.subr.msk.bf16.mxu1 %vm752_vm5, %v14091_v41 }
 0x80c   :  { %2506 = vmatpush1.bf16.msra.mxu1 %v2490_v43 }
 0x80d   :  { %2615 = vmatprep.subr.bf16.mxu1 %v16288_v44 }
 0x80f   :  { %14093 = vmatmul.mubr.msk.bf16.vlgmr.msra.gmra.mrb[36].mxu1 %vm748_vm6, %v18219_v20 }
 0x810   :  { %2616 = vmatpush1.bf16.msra.mxu1 %v16286_v45  ;;  %2647 = vmatprep.mubr.bf16.mxu1 %v17408_v24  ;;  %v2932_v45 = vld [vmem:[%s21713_s7] sm:$0x7] }
 0x811   :  { %2617 = vmatprep.subr.bf16.mxu1 %v16291_v46  ;;  %v14171_v46 = vld [vmem:[%s21713_s7 + $0x4] sm:$0x7] }
 0x814   :  { %2618 = vmatpush1.bf16.msra.mxu1 %v16289_v47  ;;  %v16337_v47 = vld [vmem:[%s21711_s8] sm:$0xff]  }
 0x815   :  { %2619 = vmatprep.subr.bf16.mxu1 %v16294_v48  ;;  %v16338_v48 = vld [vmem:[%s21711_s8 + $0x8] sm:$0xff]  }
 0x818   :  { %2620 = vmatpush1.bf16.msra.mxu1 %v16292_v49  ;;  %v16339_v49 = vld [vmem:[%s21711_s8 + $0x10] sm:$0xff]  }
 0x819   :  { %2621 = vmatprep.subr.bf16.mxu1 %v16297_v50  ;;  %v16340_v50 = vld [vmem:[%s21711_s8 + $0x18] sm:$0xff]  }
 0x81c   :  { %2622 = vmatpush1.bf16.msra.mxu1 %v16295_v51  ;;  %v16341_v51 = vld [vmem:[%s21711_s8 + $0x20] sm:$0xff]  }
 0x81d   :  { %2623 = vmatprep.subr.bf16.mxu1 %v16300_v52  ;;  %v16342_v52 = vld [vmem:[%s21711_s8 + $0x28] sm:$0xff]  }
 0x820   :  { %2624 = vmatpush1.bf16.msra.mxu1 %v16298_v54  ;;  %v16344_v54 = vld [vmem:[%s21711_s8 + $0x38] sm:$0xff]  }
 0x821   :  { %14117 = vmatprep.subr.msk.bf16.mxu1 %vm752_vm5, %v14116_v55  ;;  %v16345_v55 = vld [vmem:[%s21711_s8 + $0x40] sm:$0xff]  }
 0x824   :  { %2626 = vmatpush1.bf16.msra.mxu1 %v2610_v57 }
 0x825   :  { %2740 = vmatprep.subr.bf16.mxu1 %v16305_v58 }
 0x827   :  { %14118 = vmatmul.mubr.msk.bf16.vlgmr.msra.gmra.mrb[36].mxu1 %vm748_vm6, %v2550_v60 }
 0x828   :  { %2741 = vmatpush1.bf16.msra.mxu1 %v16303_v59  ;;  %2772 = vmatprep.mubr.bf16.mxu1 %v17408_v24 }
 0x829   :  { %2742 = vmatprep.subr.bf16.mxu1 %v16308_v61 }
 0x82c   :  { %2743 = vmatpush1.bf16.msra.mxu1 %v16306_v62 }
 0x82d   :  { %2744 = vmatprep.subr.bf16.mxu1 %v16311_v63 }
 0x830   :  { %2745 = vmatpush1.bf16.msra.mxu1 %v16309_v0 }
 0x831   :  { %2746 = vmatprep.subr.bf16.mxu1 %v16314_v2 }
 0x834   :  { %2747 = vmatpush1.bf16.msra.mxu1 %v16312_v3 }
 0x835   :  { %2748 = vmatprep.subr.bf16.mxu1 %v16317_v4 }
 0x838   :  { %2749 = vmatpush1.bf16.msra.mxu1 %v16315_v6 }
 0x839   :  { %14142 = vmatprep.subr.msk.bf16.mxu1 %vm752_vm5, %v14141_v7  ;;  %v16348_v7 = vld [vmem:[%s21711_s8 + $0x58] sm:$0xff]  }
 0x83c   :  { %2751 = vmatpush1.bf16.msra.mxu1 %v2735_v8  ;;  %v16350_v8 = vld [vmem:[%s21711_s8 + $0x68] sm:$0xff]  }
 0x83d   :  { %2863 = vmatprep.subr.bf16.mxu1 %v16322_v9  ;;  %v16351_v9 = vld [vmem:[%s21711_s8 + $0x70] sm:$0xff]  }
 0x83f   :  { %14143 = vmatmul.mubr.msk.bf16.vlgmr.msra.gmra.mrb[36].mxu1 %vm748_vm6, %v2675_v30 }
 0x840   :  { %2864 = vmatpush1.bf16.msra.mxu1 %v16320_v10  ;;  %2895 = vmatprep.mubr.bf16.mxu1 %v17408_v24  ;;  %v16352_v10 = vld [vmem:[%s21711_s8 + $0x78] sm:$0xff]  }
 0x841   :  { %2865 = vmatprep.subr.bf16.mxu1 %v16325_v11  ;;  %v16353_v11 = vld [vmem:[%s21711_s8 + $0x80] sm:$0xff]  }
 0x844   :  { %2866 = vmatpush1.bf16.msra.mxu1 %v16323_v12  ;;  %v16354_v12 = vld [vmem:[%s21711_s8 + $0x88] sm:$0xff]  }
 0x845   :  { %2867 = vmatprep.subr.bf16.mxu1 %v16328_v13  ;;  %v16355_v13 = vld [vmem:[%s21711_s8 + $0x90] sm:$0xff]  }
 0x848   :  { %2868 = vmatpush1.bf16.msra.mxu1 %v16326_v14  ;;  %v16356_v14 = vld [vmem:[%s21711_s8 + $0x98] sm:$0xff]  }
 0x849   :  { %2869 = vmatprep.subr.bf16.mxu1 %v16331_v15  ;;  %v16359_v15 = vld [vmem:[%s21705_s1 + $0x4] ss:$8 sps:$4 sm:$0xff]  }
 0x84c   :  { %2870 = vmatpush1.bf16.msra.mxu1 %v16329_v16  ;;  %v16357_v16 = vld [vmem:[%s21705_s1] ss:$8 sps:$4 sm:$0xff]  }
 0x84d   :  { %2871 = vmatprep.subr.bf16.mxu1 %v16334_v17  ;;  %v16387_v17 = vld [vmem:[%s21706_s0 + $0x44] ss:$8 sps:$4 sm:$0xff]  }
 0x850   :  { %2872 = vmatpush1.bf16.msra.mxu1 %v16332_v19  ;;  %v16360_v19 = vld [vmem:[%s21705_s1 + $0x10] ss:$8 sps:$4 sm:$0xff]  }
 0x851   :  { %14167 = vmatprep.subr.msk.bf16.mxu1 %vm752_vm5, %v14166_v21  ;;  %v16365_v21 = vld [vmem:[%s21705_s1 + $0x24] ss:$8 sps:$4 sm:$0xff]  }
 0x854   :  { %2874 = vmatpush1.bf16.msra.mxu1 %v2858_v23  ;;  %v16368_v23 = vld [vmem:[%s21705_s1 + $0x34] ss:$8 sps:$4 sm:$0xff]  }
 0x857   :  { %14168 = vmatmul.mubr.msk.bf16.vlgmr.msra.gmra.mrb[36].mxu1 %vm748_vm6, %v2798_v25  ;;  %v16366_v25 = vld [vmem:[%s21705_s1 + $0x30] ss:$8 sps:$4 sm:$0xff]  }
 0x858   :  { %3584 = vmatprep.mubr.bf16.mxu1 %v17408_v24 }
 0x92a   :  { %v2897_v29 = vpop.f32.mrb[36].mxu1 }
 0x92b   :  { %v2922_v30 = vadd.f32 %v2915_v27, %v2897_v29  ;;  %v2899_v31 = vpop.f32.mrb[37].mxu1  ;;  %v16372_v29 = vld [vmem:[%s21705_s1 + $0x50] ss:$8 sps:$4 sm:$0xff]  }
 0x92c   :  { %v2923_v32 = vadd.f32 %v2919_v28, %v2899_v31  ;;  %v2901_v35 = vpop.f32.mrb[38].mxu1  ;;  %v16375_v31 = vld [vmem:[%s21705_s1 + $0x60] ss:$8 sps:$4 sm:$0xff]  }
 0x92d   :  { %v2924_v36 = vadd.f32 %v2915_v27, %v2901_v35  ;;  %v2903_v37 = vpop.f32.mrb[39].mxu1  ;;  %v2926_v38 = vmax.f32 %v2922_v30, 0.0  ;;  %v16369_v27 = vld [vmem:[%s21705_s1 + $0x40] ss:$8 sps:$4 sm:$0xff]   ;;  %v16377_v30 = vld [vmem:[%s21705_s1 + $0x64] ss:$8 sps:$4 sm:$0xff]  }
 0x92e   :  { %v2925_v20 = vadd.f32 %v2919_v28, %v2903_v37  ;;  %v2927_v40 = vmax.f32 %v2923_v32, 0.0  ;;  %v16374_v28 = vld [vmem:[%s21705_s1 + $0x54] ss:$8 sps:$4 sm:$0xff]   ;;  %v16378_v35 = vld [vmem:[%s21705_s1 + $0x70] ss:$8 sps:$4 sm:$0xff]  }
 0x92f   :  { %v2928_v39 = vmax.f32 %v2924_v36, 0.0  ;;  %v16380_v32 = vld [vmem:[%s21705_s1 + $0x74] ss:$8 sps:$4 sm:$0xff]   ;;  %v16383_v36 = vld [vmem:[%s21705_s1 + $0x84] ss:$8 sps:$4 sm:$0xff]  }
 0x930   :  { %v2929_v41 = vmax.f32 %v2925_v20, 0.0  ;;  %v16381_v37 = vld [vmem:[%s21705_s1 + $0x80] ss:$8 sps:$4 sm:$0xff]   ;;  %v16386_v20 = vld [vmem:[%s21705_s1 + $0x94] ss:$8 sps:$4 sm:$0xff]  }
 0x931   :  { %v2930_v42 = vpack.c.bf16 %v2928_v39, %v2926_v38  ;;  %v16384_v38 = vld [vmem:[%s21705_s1 + $0x90] ss:$8 sps:$4 sm:$0xff]   ;;  %v16389_v39 = vld [vmem:[%s21706_s0 + $0x40] ss:$8 sps:$4 sm:$0xff]  }
 0x932   :  { %v2931_v43 = vpack.c.bf16 %v2929_v41, %v2927_v40  ;;  %v16390_v40 = vld [vmem:[%s21706_s0 + $0x54] ss:$8 sps:$4 sm:$0x3f]   ;;  %v16392_v41 = vld [vmem:[%s21706_s0 + $0x50] ss:$8 sps:$4 sm:$0x3f]  }
 0x933   :  { %v2937_v44 = vsel %vm1310_vm7, %v2930_v42, 0  ;;  %v16396_v42 = vld [vmem:[%s21708_s4 + $0x54] sm:$0xff]  }
 0x934   :  { %14169 = vmatprep.subr.msk.bf16.mxu0 %vm1310_vm7, %v2931_v43 }
 0x935   :  { %2943 = vmatpush1.bf16.msra.mxu0 %v2937_v44 }
 0x936   :  { %14172 = vmatprep.subr.msk.bf16.mxu0 %vm1310_vm7, %v2931_v43  ;;  %v16398_v43 = vld [vmem:[%s21708_s4 + $0x5c] sm:$0xff]  }
 0x938   :  { %14170 = vmatmul.mubr.msk.bf16.vlgmr.msra.gmra.mrb[32].mxu0 %vm1306_vm8, %v2932_v45  ;;  %v16402_v45 = vld [vmem:[%s21708_s4 + $0x6c] sm:$0xff]  }
 0x939   :  { %2988 = vmatpush1.bf16.msra.mxu0 %v2937_v44  ;;  %3019 = vmatprep.mubr.bf16.mxu0 %v17408_v24  ;;  %v16400_v44 = vld [vmem:[%s21708_s4 + $0x64] sm:$0xff]  }
 0x93a   :  { %3115 = vmatprep.subr.bf16.mxu0 %v17408_v24 }
 0x940   :  { %14173 = vmatmul.mubr.msk.bf16.vlgmr.msra.gmra.mrb[36].mxu0 %vm1306_vm8, %v14171_v46  ;;  %v16404_v46 = vld [vmem:[%s21708_s4 + $0x74] sm:$0xff]  }
 0x941   :  { %3116 = vmatpush1.bf16.msra.mxu0 %v16337_v47 }
 0x942   :  { %3117 = vmatprep.subr.bf16.mxu0 %v17408_v24 }
 0x945   :  { %3118 = vmatpush1.bf16.msra.mxu0 %v16338_v48 }
 0x946   :  { %3119 = vmatprep.subr.bf16.mxu0 %v17408_v24 }
 0x949   :  { %3120 = vmatpush1.bf16.msra.mxu0 %v16339_v49 }
 0x94a   :  { %3121 = vmatprep.subr.bf16.mxu0 %v17408_v24 }
 0x94d   :  { %3122 = vmatpush1.bf16.msra.mxu0 %v16340_v50 }
 0x94e   :  { %3123 = vmatprep.subr.bf16.mxu0 %v17408_v24 }
 0x951   :  { %3124 = vmatpush1.bf16.msra.mxu0 %v16341_v51  ;;  %v16406_v51 = vld [vmem:[%s21708_s4 + $0x7c] sm:$0xff]  }
 0x952   :  { %3125 = vmatprep.subr.bf16.mxu0 %v17408_v24 }
 0x955   :  { %3126 = vmatpush1.bf16.msra.mxu0 %v16342_v52  ;;  %v16408_v52 = vld [vmem:[%s21708_s4 + $0x84] sm:$0xff]  }
 0x956   :  { %3127 = vmatprep.subr.bf16.mxu0 %v17408_v24 }
 0x959   :  { %3128 = vmatpush1.bf16.msra.mxu0 %v16343_v53 }
 0x95a   :  { %3129 = vmatprep.subr.bf16.mxu0 %v17408_v24 }
 0x95d   :  { %3130 = vmatpush1.bf16.msra.mxu0 %v16344_v54 }
 0x95e   :  { %3131 = vmatprep.subr.bf16.mxu0 %v17408_v24 }
 0x961   :  { %3132 = vmatpush1.bf16.msra.mxu0 %v16345_v55 }
 0x962   :  { %3133 = vmatprep.subr.bf16.mxu0 %v17408_v24 }
 0x965   :  { %3134 = vmatpush1.bf16.msra.mxu0 %v16346_v56  ;;  %v16411_v56 = vld [vmem:[%s21708_s4 + $0x40] sm:$0xff]  }
 0x966   :  { %3235 = vmatprep.subr.bf16.mxu0 %v17408_v24 }
 0xa0b   :  { %v2976_v57 = vpop.f32.mrb[32].mxu0 }
 0xa0c   :  { %v2978_v58 = vpop.f32.mrb[33].mxu0 }
 0xa0d   :  { %v2980_v59 = vpop.f32.mrb[34].mxu0 }
 0xa0e   :  { %v2981_v60 = vpop.f32.mrb[35].mxu0 }
 0xa0f   :  { %v3289_v60 = vld [vmem:[#allocation2 + $0x4] sm:$0x1] }
 0xa13   :  { %v3021_v61 = vpop.f32.mrb[36].mxu0 }
 0xa14   :  { %v3028_v62 = vmax.f32 %v2976_v57, %v3021_v61  ;;  %v3023_v63 = vpop.f32.mrb[37].mxu0 }
 0xa15   :  { %v3029_v0 = vmax.f32 %v2978_v58, %v3023_v63  ;;  %v3025_v2 = vpop.f32.mrb[38].mxu0 }
 0xa16   :  { %v3026_v3 = vpop.f32.mrb[39].mxu0  ;;  %v3030_v6 = vpack.c.bf16 %v3028_v62, %v3028_v62  ;;  %v3301_v2 = vld [vmem:[#allocation2 + $0xc] sm:$0x1] }
 0xa17   :  { %v3031_v4 = vpack.c.bf16 %v3029_v0, %v3029_v0  ;;  %v3286_v0 = vld [vmem:[#allocation2] sm:$0x1] }
 0xa19   :  { %14184 = vmatprep.mubr.msk.bf16.mxu0 %vm205_vm0, %v3031_v4 }
 0xa1a   :  { %3148 = vmatmul.mubr.bf16.vlgmr.msra.gmra.mrb[40].mxu0 %v3030_v6 }
 0xa1b   :  { %3236 = vmatpush1.bf16.msra.mxu0 %v16347_v5  ;;  %14215 = vmatprep.mubr.msk.bf16.mxu0 %vm205_vm0, %v3031_v4 }
 0xa1c   :  { %3237 = vmatprep.subr.bf16.mxu0 %v17408_v24 }
 0xa1f   :  { %3238 = vmatpush1.bf16.msra.mxu0 %v16348_v7  ;;  %v3295_v7 = vld [vmem:[#allocation2 + $0x8] sm:$0x1] }
 0xa20   :  { %3239 = vmatprep.subr.bf16.mxu0 %v17408_v24 }
 0xa23   :  { %3240 = vmatpush1.bf16.msra.mxu0 %v16349_v1  ;;  %v3307_v1 = vld [vmem:[#allocation2 + $0x10] sm:$0x1] }
 0xa24   :  { %3241 = vmatprep.subr.bf16.mxu0 %v17408_v24 }
 0xa27   :  { %3242 = vmatpush1.bf16.msra.mxu0 %v16350_v8 }
 0xa28   :  { %3243 = vmatprep.subr.bf16.mxu0 %v17408_v24 }
 0xa2b   :  { %3244 = vmatpush1.bf16.msra.mxu0 %v16351_v9 }
 0xa2c   :  { %3245 = vmatprep.subr.bf16.mxu0 %v17408_v24 }
 0xa2f   :  { %3246 = vmatpush1.bf16.msra.mxu0 %v16352_v10  ;;  %v3335_v10 = vld [vmem:[%s21709_s2] sm:$0x3] }
 0xa30   :  { %3247 = vmatprep.subr.bf16.mxu0 %v17408_v24 }
 0xa33   :  { %3248 = vmatpush1.bf16.msra.mxu0 %v16353_v11  ;;  %v3340_v11 = vrot.slane %v3335_v10, %v17590_v33 }
 0xa34   :  { %3249 = vmatprep.subr.bf16.mxu0 %v17408_v24 }
 0xa37   :  { %3250 = vmatpush1.bf16.msra.mxu0 %v16354_v12  ;;  %v3344_v12 = vrot.slane %v3335_v10, %v17592_v34 }
 0xa38   :  { %3251 = vmatprep.subr.bf16.mxu0 %v17408_v24 }
 0xa3b   :  { %3252 = vmatpush1.bf16.msra.mxu0 %v16355_v13 }
 0xa3c   :  { %3253 = vmatprep.subr.bf16.mxu0 %v17408_v24 }
 0xa3f   :  { %3254 = vmatpush1.bf16.msra.mxu0 %v16356_v14 }
 0xa40   :  { %3471 = vmatprep.subr.bf16.mxu0 %v16359_v15 }
 0xa42   :  { %3268 = vmatmul.mubr.bf16.vlgmr.msra.gmra.mrb[44].mxu0 %v3030_v6 }
 0xa43   :  { %3472 = vmatpush1.bf16.msra.mxu0 %v16357_v16  ;;  %14248 = vmatprep.mubr.msk.bf16.mxu0 %vm205_vm0, %v16387_v17 }
 0xa44   :  { %3473 = vmatprep.subr.bf16.mxu0 %v16362_v18 }
 0xa47   :  { %3474 = vmatpush1.bf16.msra.mxu0 %v16360_v19 }
 0xa48   :  { %3475 = vmatprep.subr.bf16.mxu0 %v16365_v21 }
 0xa4b   :  { %3476 = vmatpush1.bf16.msra.mxu0 %v16363_v22 }
 0xa4c   :  { %3477 = vmatprep.subr.bf16.mxu0 %v16368_v23 }
 0xa4f   :  { %3478 = vmatpush1.bf16.msra.mxu0 %v16366_v25 }
 0xa50   :  { %3479 = vmatprep.subr.bf16.mxu0 %v16371_v26 }
 0xa53   :  { %3480 = vmatpush1.bf16.msra.mxu0 %v16369_v27 }
 0xa54   :  { %3481 = vmatprep.subr.bf16.mxu0 %v16374_v28 }
 0xa57   :  { %3482 = vmatpush1.bf16.msra.mxu0 %v16372_v29 }
 0xa58   :  { %3483 = vmatprep.subr.bf16.mxu0 %v16377_v30 }
 0xa5b   :  { %3484 = vmatpush1.bf16.msra.mxu0 %v16375_v31 }
 0xa5c   :  { %3485 = vmatprep.subr.bf16.mxu0 %v16380_v32 }
 0xa5f   :  { %3486 = vmatpush1.bf16.msra.mxu0 %v16378_v35 }
 0xa60   :  { %3487 = vmatprep.subr.bf16.mxu0 %v16383_v36 }
 0xa63   :  { %3488 = vmatpush1.bf16.msra.mxu0 %v16381_v37 }
 0xa64   :  { %3489 = vmatprep.subr.bf16.mxu0 %v16386_v20 }
 0xa67   :  { %3490 = vmatpush1.bf16.msra.mxu0 %v16384_v38 }
 0xa68   :  { %3872 = vmatprep.subr.bf16.mxu0 %v17408_v24 }
 0xa6a   :  { %3504 = vmatmul.mubr.bf16.vlgmr.msra.gmra.mrb[48].mxu0 %v16389_v39 }
 0xa6b   :  { %14249 = vmatprep.mubr.msk.bf16.mxu0 %vm205_vm0, %v16390_v40  ;;  %3873 = vmatpush1.bf16.msra.mxu0 %v16396_v42 }
 0xa6c   :  { %3874 = vmatprep.subr.bf16.mxu0 %v17408_v24 }
 0xa6f   :  { %3875 = vmatpush1.bf16.msra.mxu0 %v16398_v43 }
 0xa70   :  { %3876 = vmatprep.subr.bf16.mxu0 %v17408_v24 }
 0xa72   :  { %3514 = vmatmul.mubr.bf16.gmra.mrb[52].mxu0 %v16392_v41 }
 0xa73   :  { %3877 = vmatpush1.bf16.msra.mxu0 %v16400_v44 }
 0xa74   :  { %3878 = vmatprep.subr.bf16.mxu0 %v17408_v24 }
 0xa77   :  { %3879 = vmatpush1.bf16.msra.mxu0 %v16402_v45  ;;  %v16393_v45 = vld [vmem:[%s21707_s3] sm:$0x7f]  }
 0xa78   :  { %3880 = vmatprep.subr.bf16.mxu0 %v17408_v24 }
 0xa7b   :  { %3881 = vmatpush1.bf16.msra.mxu0 %v16404_v46  ;;  %v16394_v46 = vld [vmem:[%s21707_s3 + $0x8] sm:$0x7f]  }
 0xa7c   :  { %3882 = vmatprep.subr.bf16.mxu0 %v17408_v24 }
 0xa7f   :  { %3883 = vmatpush1.bf16.msra.mxu0 %v16406_v51  ;;  %v16403_v51 = vld [vmem:[%s21708_s4 + $0x20] sm:$0xff]  }
 0xa80   :  { %3884 = vmatprep.subr.bf16.mxu0 %v17408_v24 }
 0xa83   :  { %3885 = vmatpush1.bf16.msra.mxu0 %v16408_v52  ;;  %v16405_v52 = vld [vmem:[%s21708_s4 + $0x28] sm:$0xff]  }
 0xa84   :  { %3886 = vmatprep.subr.bf16.mxu0 %v17408_v24 }
 0xaed   :  { %v3149_v47 = vpop.f32.mrb[40].mxu0 }
 0xaee   :  { %v3151_v48 = vpop.f32.mrb[41].mxu0 }
 0xaef   :  { %v3152_v49 = vpop.f32.mrb[42].mxu0  ;;  %v16397_v48 = vld [vmem:[%s21708_s4 + $0x8] sm:$0xff]  }
 0xaf0   :  { %v3153_v50 = vpop.f32.mrb[43].mxu0  ;;  %v16399_v49 = vld [vmem:[%s21708_s4 + $0x10] sm:$0xff]  }
 0xaf1   :  { %v16401_v50 = vld [vmem:[%s21708_s4 + $0x18] sm:$0xff]  }
 0xb15   :  { %v3269_v53 = vpop.f32.mrb[44].mxu0 }
 0xb16   :  { %v3275_v54 = vmax.f32 %v3149_v47, %v3269_v53  ;;  %v3271_v55 = vpop.f32.mrb[45].mxu0  ;;  %v16395_v47 = vld [vmem:[%s21708_s4] sm:$0xff]   ;;  %v16407_v53 = vld [vmem:[%s21708_s4 + $0x30] sm:$0xff]  }
 0xb17   :  { %v3272_v57 = vpop.f32.mrb[46].mxu0  ;;  %v16410_v55 = vld [vmem:[%s21708_s4 + $0x8c] sm:$0xff]  }
 0xb18   :  { %v3276_v58 = vpack.c.bf16 %v3275_v54, %v3275_v54  ;;  %v3273_v59 = vpop.f32.mrb[47].mxu0  ;;  %v16409_v54 = vld [vmem:[%s21708_s4 + $0x38] sm:$0xff]   ;;  %3887 = vmatpush1.bf16.msra.mxu0 %v16410_v55 }
 0xb19   :  { %3888 = vmatprep.subr.bf16.mxu0 %v17408_v24  ;;  %v16412_v57 = vld [vmem:[%s21708_s4 + $0x94] sm:$0xff]   ;;  %v16414_v59 = vld [vmem:[%s21708_s4 + $0x9c] sm:$0xff]  }
 0xb1a   :  { %v3281_v61 = vshll.u32 %v3276_v58, 16  ;;  %v3290_v62 = vsel %vm18585_vm13, %v3276_v58, %v3289_v60  ;;  %v14218_v63 = vrot.slane %v3276_v58, 9  ;;  %v16413_v58 = vld [vmem:[%s21708_s4 + $0x48] sm:$0xff]   ;;  %v16415_v60 = vld [vmem:[%s21708_s4 + $0x50] ss:$0 sps:$4 sm:$0xff]  }
 0xb1b   :  { %3291 = vst [vmem:[#allocation2 + $0x4] sm:$0x1] %v3290_v62  ;;  %v3742_v62 = vsel %vm486_vm3, %v16415_v60, 0  ;;  %v16445_v55 = vld [vmem:[%s21710_s5 + $0x34] ss:$8 sps:$4 sm:$0xff]  }
 0xb1c   :  { %v3287_v3 = vsel %vm18585_vm13, %v3281_v61, %v3286_v0  ;;  %v14217_v4 = vrot.slane %v3281_v61, 9  ;;  %v3302_v5 = vsel %vm18585_vm13, %v14218_v63, %v3301_v2  ;;  %v14219_v6 = vrot.slane %v3281_v61, 10  ;;  %3889 = vmatpush1.bf16.msra.mxu0 %v16412_v57  ;;  %v16416_v61 = vld [vmem:[%s21708_s4 + $0xa4] ss:$0 sps:$4 sm:$0xff]  }
 0xb1d   :  { %3288 = vst [vmem:[#allocation2] sm:$0x1] %v3287_v3  ;;  %3303 = vst [vmem:[#allocation2 + $0xc] sm:$0x1] %v3302_v5  ;;  %3890 = vmatprep.subr.bf16.mxu0 %v17408_v24  ;;  %v3870_v63 = vsel %vm486_vm3, %v16416_v61, 0 }
 0xb1e   :  { %v3296_v8 = vsel %vm18585_vm13, %v14217_v4, %v3295_v7  ;;  %v3308_v9 = vsel %vm18585_vm13, %v14219_v6, %v3307_v1  ;;  %v16419_v0 = vld [vmem:[%s21710_s5 + $0x5c] ss:$8 sps:$4 sm:$0xff]   ;;  %vm8142_vm13 = vsmask.f32 2304 }
 0xb1f   :  { %3297 = vst [vmem:[#allocation2 + $0x8] sm:$0x1] %v3296_v8  ;;  %3309 = vst [vmem:[#allocation2 + $0x10] sm:$0x1] %v3308_v9  ;;  %v16448_v57 = vld [vmem:[%s21710_s5 + $0x44] ss:$8 sps:$4 sm:$0xff]  }
 0xb20   :  { %3891 = vmatpush1.bf16.msra.mxu0 %v16414_v59  ;;  %v16446_v59 = vld [vmem:[%s21710_s5 + $0x40] ss:$8 sps:$4 sm:$0xff]   ;;  %vm20085_vm14 = vmand %vm8141_vm12, %vm8142_vm13 }
 0xb21   :  { %3892 = vmatprep.subr.bf16.mxu0 %v17408_v24 }
 0xb24   :  { %3893 = vmatpush1.bf16.msra.mxu0 %v3870_v63  ;;  %v16453_v63 = vld [vmem:[%s21710_s5 + $0xb4] ss:$8 sps:$4 sm:$0xff]  }
 0xb3d   :  { %v3505_v13 = vpop.f32.mrb[48].mxu0 }
 0xb3e   :  { %v3506_v14 = vadd.f32 %v3505_v13, %v3340_v11  ;;  %v3507_v15 = vpop.f32.mrb[49].mxu0 }
 0xb3f   :  { %v3508_v16 = vadd.f32 %v3507_v15, %v3344_v12  ;;  %v3509_v17 = vpop.f32.mrb[50].mxu0  ;;  %v16417_v15 = vld [vmem:[%s21710_s5 + $0x58] ss:$8 sps:$4 sm:$0xff]  }
 0xb40   :  { %v3510_v18 = vadd.f32 %v3509_v17, %v3340_v11  ;;  %v3511_v19 = vpop.f32.mrb[51].mxu0  ;;  %v3524_v22 = vmax.f32 %v3506_v14, 0.0  ;;  %v16420_v17 = vld [vmem:[%s21710_s5 + $0x68] ss:$8 sps:$4 sm:$0xff]  }
 0xb41   :  { %v3512_v21 = vadd.f32 %v3511_v19, %v3344_v12  ;;  %v3525_v25 = vmax.f32 %v3508_v16, 0.0  ;;  %v16422_v16 = vld [vmem:[%s21710_s5 + $0x6c] ss:$8 sps:$4 sm:$0xff]   ;;  %v16423_v19 = vld [vmem:[%s21710_s5 + $0x78] ss:$8 sps:$4 sm:$0xff]  }
 0xb42   :  { %v3526_v23 = vmax.f32 %v3510_v18, 0.0  ;;  %v16425_v18 = vld [vmem:[%s21710_s5 + $0x7c] ss:$8 sps:$4 sm:$0xff]  }
 0xb43   :  { %v3527_v26 = vmax.f32 %v3512_v21, 0.0  ;;  %v16428_v21 = vld [vmem:[%s21710_s5 + $0x8c] ss:$8 sps:$4 sm:$0xff]  }
 0xb44   :  { %v3532_v27 = vpack.c.bf16 %v3526_v23, %v3524_v22  ;;  %v16426_v22 = vld [vmem:[%s21710_s5 + $0x88] ss:$8 sps:$4 sm:$0xff]   ;;  %v16431_v23 = vld [vmem:[%s21710_s5 + $0x9c] ss:$8 sps:$4 sm:$0xff]  }
 0xb45   :  { %v3533_v28 = vpack.c.bf16 %v3527_v26, %v3525_v25  ;;  %v3515_v29 = vpop.f32.mrb[52].mxu0  ;;  %v16429_v25 = vld [vmem:[%s21710_s5 + $0x98] ss:$8 sps:$4 sm:$0xff]   ;;  %v14313_v26 = vld [vmem:[%s21710_s5 + $0xa8] sm:$0x33] }
 0xb46   :  { %v3516_v30 = vadd.f32 %v3515_v29, %v3340_v11  ;;  %v3517_v31 = vpop.f32.mrb[53].mxu0  ;;  %v16436_v29 = vld [vmem:[%s21710_s5 + $0x4] ss:$8 sps:$4 sm:$0xff]  }
 0xb47   :  { %v3518_v32 = vadd.f32 %v3517_v31, %v3344_v12  ;;  %v3519_v35 = vpop.f32.mrb[54].mxu0  ;;  %3552 = vmatprep.subr.bf16.mxu1 %v3533_v28 }
 0xb48   :  { %v3520_v36 = vadd.f32 %v3519_v35, %v3340_v11  ;;  %v3521_v37 = vpop.f32.mrb[55].mxu0  ;;  %3553 = vmatpush1.bf16.msra.mxu1 %v3532_v27  ;;  %v3528_v38 = vmax.f32 %v3516_v30, 0.0 }
 0xb49   :  { %v3522_v20 = vadd.f32 %v3521_v37, %v3344_v12  ;;  %v3529_v40 = vmax.f32 %v3518_v32, 0.0 }
 0xb4a   :  { %v3530_v39 = vmax.f32 %v3520_v36, 0.0 }
 0xb4b   :  { %v3531_v41 = vmax.f32 %v3522_v20, 0.0 }
 0xb4c   :  { %v3534_v42 = vpack.c.bf16 %v3530_v39, %v3528_v38 }
 0xb4d   :  { %v3535_v43 = vpack.c.bf16 %v3531_v41, %v3529_v40 }
 0xb4e   :  { %v3547_v44 = vsel %vm288_vm1, %v3534_v42, 0 }
 0xb4f   :  { %14251 = vmatprep.subr.msk.bf16.mxu1 %vm288_vm1, %v3535_v43 }
 0xb50   :  { %3555 = vmatpush1.bf16.msra.mxu1 %v3547_v44 }
 0xb51   :  { %3605 = vmatprep.subr.bf16.mxu1 %v3533_v28  ;;  %v14324_v28 = vcombine.low %v14313_v26, %v14313_v26 }
 0xb53   :  { %14252 = vmatmul.mubr.msk.bf16.vlgmr.msra.gmra.mrb[40].mxu1 %vm284_vm2, %v16393_v45  ;;  %v4004_v30 = vsel %vm752_vm5, %v14324_v28, 0 }
 0xb54   :  { %3606 = vmatpush1.bf16.msra.mxu1 %v3532_v27  ;;  %3637 = vmatprep.mubr.bf16.mxu1 %v17408_v24  ;;  %v14325_v27 = vcombine.high %v14313_v26, %v14313_v26  ;;  %v16480_v26 = vld [vmem:[%s21710_s5 + $0x148] ss:$8 sps:$4 sm:$0xff]  }
 0xb55   :  { %14256 = vmatprep.subr.msk.bf16.mxu1 %vm288_vm1, %v3535_v43 }
 0xb58   :  { %3608 = vmatpush1.bf16.msra.mxu1 %v3547_v44 }
 0xb59   :  { %3744 = vmatprep.subr.bf16.mxu1 %v17408_v24 }
 0xb5b   :  { %14257 = vmatmul.mubr.msk.bf16.vlgmr.msra.gmra.mrb[44].mxu1 %vm284_vm2, %v16394_v46 }
 0xb5c   :  { %3745 = vmatpush1.bf16.msra.mxu1 %v16395_v47 }
 0xb5d   :  { %3746 = vmatprep.subr.bf16.mxu1 %v17408_v24 }
 0xb60   :  { %3747 = vmatpush1.bf16.msra.mxu1 %v16397_v48  ;;  %v16434_v48 = vld [vmem:[%s21710_s5] ss:$8 sps:$4 sm:$0xff]  }
 0xb61   :  { %3748 = vmatprep.subr.bf16.mxu1 %v17408_v24 }
 0xb64   :  { %3749 = vmatpush1.bf16.msra.mxu1 %v16399_v49 }
 0xb65   :  { %3750 = vmatprep.subr.bf16.mxu1 %v17408_v24 }
 0xb68   :  { %3751 = vmatpush1.bf16.msra.mxu1 %v16401_v50  ;;  %v16439_v50 = vld [vmem:[%s21710_s5 + $0x14] ss:$8 sps:$4 sm:$0xff]  }
 0xb69   :  { %3752 = vmatprep.subr.bf16.mxu1 %v17408_v24 }
 0xb6c   :  { %3753 = vmatpush1.bf16.msra.mxu1 %v16403_v51 }
 0xb6d   :  { %3754 = vmatprep.subr.bf16.mxu1 %v17408_v24 }
 0xb70   :  { %3755 = vmatpush1.bf16.msra.mxu1 %v16405_v52  ;;  %v16437_v52 = vld [vmem:[%s21710_s5 + $0x10] ss:$8 sps:$4 sm:$0xff]  }
 0xb71   :  { %3756 = vmatprep.subr.bf16.mxu1 %v17408_v24 }
 0xb74   :  { %3757 = vmatpush1.bf16.msra.mxu1 %v16407_v53  ;;  %v16442_v53 = vld [vmem:[%s21710_s5 + $0x24] ss:$8 sps:$4 sm:$0xff]  }
 0xb75   :  { %3758 = vmatprep.subr.bf16.mxu1 %v17408_v24 }
 0xb78   :  { %3759 = vmatpush1.bf16.msra.mxu1 %v16409_v54  ;;  %v16440_v54 = vld [vmem:[%s21710_s5 + $0x20] ss:$8 sps:$4 sm:$0xff]  }
 0xb79   :  { %3760 = vmatprep.subr.bf16.mxu1 %v17408_v24 }
 0xb7c   :  { %3761 = vmatpush1.bf16.msra.mxu1 %v16411_v56  ;;  %v16443_v56 = vld [vmem:[%s21710_s5 + $0x30] ss:$8 sps:$4 sm:$0xff]  }
 0xb7d   :  { %3762 = vmatprep.subr.bf16.mxu1 %v17408_v24 }
 0xb80   :  { %3763 = vmatpush1.bf16.msra.mxu1 %v16413_v58  ;;  %v3926_v58 = vld [vmem:[%s21710_s5 + $0x50] sm:$0x33] }
 0xb81   :  { %3764 = vmatprep.subr.bf16.mxu1 %v17408_v24  ;;  %v14339_v60 = vcombine.high %v3926_v58, %v3926_v58  ;;  %v14338_v61 = vcombine.low %v3926_v58, %v3926_v58 }
 0xb84   :  { %3765 = vmatpush1.bf16.msra.mxu1 %v3742_v62  ;;  %v4110_v62 = vsel %vm752_vm5, %v14338_v61, 0 }
 0xb85   :  { %4009 = vmatprep.subr.bf16.mxu1 %v16419_v0  ;;  %v16451_v0 = vld [vmem:[%s21710_s5 + $0xb0] ss:$8 sps:$4 sm:$0xff]  }
 0xc26   :  { %v3586_v2 = vpop.f32.mrb[40].mxu1 }
 0xc27   :  { %v3588_v3 = vpop.f32.mrb[41].mxu1 }
 0xc28   :  { %v3590_v4 = vpop.f32.mrb[42].mxu1 }
 0xc29   :  { %v3592_v5 = vpop.f32.mrb[43].mxu1 }
 0xc2e   :  { %v3639_v6 = vpop.f32.mrb[44].mxu1 }
 0xc2f   :  { %v3648_v7 = vmax.f32 %v3586_v2, %v3639_v6  ;;  %v3641_v1 = vpop.f32.mrb[45].mxu1  ;;  %v16456_v2 = vld [vmem:[%s21710_s5 + $0xc4] ss:$8 sps:$4 sm:$0xff]  }
 0xc30   :  { %v3649_v8 = vmax.f32 %v3588_v3, %v3641_v1  ;;  %v3643_v9 = vpop.f32.mrb[46].mxu1  ;;  %v16454_v3 = vld [vmem:[%s21710_s5 + $0xc0] ss:$8 sps:$4 sm:$0xff]   ;;  %v16462_v6 = vld [vmem:[%s21710_s5 + $0xe4] ss:$8 sps:$4 sm:$0xff]  }
 0xc31   :  { %v3650_v10 = vmax.f32 %v3590_v4, %v3643_v9  ;;  %v3645_v11 = vpop.f32.mrb[47].mxu1  ;;  %v16459_v4 = vld [vmem:[%s21710_s5 + $0xd4] ss:$8 sps:$4 sm:$0xff]   ;;  %v16463_v9 = vld [vmem:[%s21710_s5 + $0xf0] ss:$8 sps:$4 sm:$0xff]  }
 0xc32   :  { %v3651_v12 = vmax.f32 %v3592_v5, %v3645_v11  ;;  %v16457_v5 = vld [vmem:[%s21710_s5 + $0xd0] ss:$8 sps:$4 sm:$0xff]   ;;  %v16465_v1 = vld [vmem:[%s21710_s5 + $0xf4] ss:$8 sps:$4 sm:$0xff]  }
 0xc33   :  { %v3652_v13 = vpack.c.bf16 %v3650_v10, %v3648_v7  ;;  %v16460_v7 = vld [vmem:[%s21710_s5 + $0xe0] ss:$8 sps:$4 sm:$0xff]  }
 0xc34   :  { %v3653_v14 = vpack.c.bf16 %v3651_v12, %v3649_v8  ;;  %v14352_v8 = vld [vmem:[%s21710_s5 + $0x100] sm:$0x33] }
 0xc35   :  { %v14364_v10 = vcombine.high %v14352_v8, %v14352_v8  ;;  %v14363_v11 = vcombine.low %v14352_v8, %v14352_v8  ;;  %v16508_v8 = vld [vmem:[%s21711_s8 + $0x30] sm:$0xff]  }
 0xc36   :  { %14269 = vmatprep.mubr.msk.bf16.mxu1 %vm482_vm4, %v3653_v14  ;;  %14302 = vmatprep.mubr.msk.bf16.mxu0 %vm482_vm4, %v3653_v14  ;;  %v16468_v14 = vld [vmem:[%s21710_s5 + $0x108] ss:$8 sps:$4 sm:$0xff]  }
 0xc37   :  { %3777 = vmatmul.mubr.bf16.vlgmr.msra.gmra.mrb[48].mxu1 %v3652_v13  ;;  %3905 = vmatmul.mubr.bf16.vlgmr.msra.gmra.mrb[56].mxu0 %v3652_v13  ;;  %v4230_v12 = vsel %vm752_vm5, %v14363_v11, 0  ;;  %v16470_v13 = vld [vmem:[%s21710_s5 + $0x10c] ss:$8 sps:$4 sm:$0xff]  }
 0xc38   :  { %4010 = vmatpush1.bf16.msra.mxu1 %v16417_v15  ;;  %4041 = vmatprep.mubr.bf16.mxu1 %v17408_v24  ;;  %v16511_v11 = vld [vmem:[%s21711_s8 + $0x48] sm:$0xff]  }
 0xc39   :  { %4011 = vmatprep.subr.bf16.mxu1 %v16422_v16  ;;  %4594 = vmatprep.mubr.bf16.mxu0 %v17408_v24  ;;  %v16473_v16 = vld [vmem:[%s21710_s5 + $0x11c] ss:$8 sps:$4 sm:$0xff]  }
 0xc3c   :  { %4012 = vmatpush1.bf16.msra.mxu1 %v16420_v17  ;;  %v16471_v17 = vld [vmem:[%s21710_s5 + $0x118] ss:$8 sps:$4 sm:$0xff]  }
 0xc3d   :  { %4013 = vmatprep.subr.bf16.mxu1 %v16425_v18  ;;  %v16476_v18 = vld [vmem:[%s21710_s5 + $0x12c] ss:$8 sps:$4 sm:$0xff]  }
 0xc40   :  { %4014 = vmatpush1.bf16.msra.mxu1 %v16423_v19  ;;  %v16474_v19 = vld [vmem:[%s21710_s5 + $0x128] ss:$8 sps:$4 sm:$0xff]  }
 0xc41   :  { %4015 = vmatprep.subr.bf16.mxu1 %v16428_v21  ;;  %v16479_v21 = vld [vmem:[%s21710_s5 + $0x13c] ss:$8 sps:$4 sm:$0xff]  }
 0xc44   :  { %4016 = vmatpush1.bf16.msra.mxu1 %v16426_v22  ;;  %v16477_v22 = vld [vmem:[%s21710_s5 + $0x138] ss:$8 sps:$4 sm:$0xff]  }
 0xc45   :  { %4017 = vmatprep.subr.bf16.mxu1 %v16431_v23  ;;  %v16482_v23 = vld [vmem:[%s21710_s5 + $0x14c] ss:$8 sps:$4 sm:$0xff]  }
 0xc48   :  { %4018 = vmatpush1.bf16.msra.mxu1 %v16429_v25  ;;  %v14377_v25 = vld [vmem:[%s21710_s5 + $0x158] sm:$0x33] }
 0xc49   :  { %14326 = vmatprep.subr.msk.bf16.mxu1 %vm752_vm5, %v14325_v27  ;;  %v14389_v27 = vcombine.high %v14377_v25, %v14377_v25  ;;  %v14388_v28 = vcombine.low %v14377_v25, %v14377_v25  ;;  %v16512_v25 = vld [vmem:[%s21711_s8 + $0x50] sm:$0xff]  }
 0xc4c   :  { %4020 = vmatpush1.bf16.msra.mxu1 %v4004_v30  ;;  %v16487_v30 = vld [vmem:[%s21710_s5 + $0x164] ss:$8 sps:$4 sm:$0xff]  }
 0xc4d   :  { %4115 = vmatprep.subr.bf16.mxu1 %v16436_v29  ;;  %v4355_v29 = vsel %vm752_vm5, %v14388_v28, 0  ;;  %v16514_v28 = vld [vmem:[%s21711_s8 + $0x60] sm:$0xff]  }
 0xd0a   :  { %v3778_v31 = vpop.f32.mrb[48].mxu1  ;;  %v3906_v32 = vpop.f32.mrb[56].mxu0 }
 0xd0b   :  { %v3913_v35 = vmax.f32 %v3778_v31, %v3906_v32  ;;  %v3780_v36 = vpop.f32.mrb[49].mxu1  ;;  %v3908_v37 = vpop.f32.mrb[57].mxu0  ;;  %v16485_v31 = vld [vmem:[%s21710_s5 + $0x160] ss:$8 sps:$4 sm:$0xff]   ;;  %v16490_v32 = vld [vmem:[%s21710_s5 + $0x174] ss:$8 sps:$4 sm:$0xff]  }
 0xd0c   :  { %v3781_v20 = vpop.f32.mrb[50].mxu1  ;;  %v3909_v38 = vpop.f32.mrb[58].mxu0  ;;  %v16493_v36 = vld [vmem:[%s21710_s5 + $0x184] ss:$8 sps:$4 sm:$0xff]   ;;  %v16491_v37 = vld [vmem:[%s21710_s5 + $0x180] ss:$8 sps:$4 sm:$0xff]  }
 0xd0d   :  { %v3914_v39 = vmax.f32 %v3781_v20, %v3909_v38  ;;  %v3783_v40 = vpop.f32.mrb[51].mxu1  ;;  %v3911_v41 = vpop.f32.mrb[59].mxu0  ;;  %v16496_v20 = vld [vmem:[%s21710_s5 + $0x194] ss:$8 sps:$4 sm:$0xff]   ;;  %v16494_v38 = vld [vmem:[%s21710_s5 + $0x190] ss:$8 sps:$4 sm:$0xff]  }
 0xd0e   :  { %v14402_v40 = vld [vmem:[%s21710_s5 + $0x1b0] sm:$0x33]  ;;  %v16497_v41 = vld [vmem:[%s21710_s5 + $0x1a0] ss:$8 sps:$4 sm:$0xff]  }
 0xd0f   :  { %v18719_v42 = vpack.c.bf16 %v3914_v39, %v3913_v35  ;;  %v16488_v35 = vld [vmem:[%s21710_s5 + $0x170] ss:$8 sps:$4 sm:$0xff]   ;;  %v16499_v39 = vld [vmem:[%s21710_s5 + $0x1a4] ss:$8 sps:$4 sm:$0xff]  }
 0xd11   :  { %v3941_v43 = vshll.u32 %v18719_v42, 16  ;;  %v3939_v44 = vshrl.u32 %v18719_v42, 16  ;;  %v4170_v15 = vrot.slane %v18719_v42, 1 }
 0xd13   :  { %v3943_v45 = vrot.slane %v3941_v43, 1  ;;  %v18723_v46 = vrot.slane %v3939_v44, 1  ;;  %v18725_v47 = vrot.slane %v3941_v43, 2  ;;  %v14414_v43 = vcombine.high %v14402_v40, %v14402_v40 }
 0xd15   :  { %v3944_v49 = vor.u32 %v3943_v45, %v3939_v44  ;;  %v4295_v51 = vor.u32 %v18725_v47, %v18723_v46  ;;  %v14413_v44 = vcombine.low %v14402_v40, %v14402_v40  ;;  %v4418_v46 = vrot.slane %v18719_v42, 2  ;;  %v4530_v47 = vld [vmem:[%s21712_s6] sm:$0x3]  ;;  %v16527_v40 = vld [vmem:[%s21705_s1 + $0x14] ss:$8 sps:$4 sm:$0xff]  }
 0xd17   :  { %14327 = vmatmul.mubr.msk.bf16.vlgmr.msra.gmra.mrb[52].mxu1 %vm748_vm6, %v3944_v49  ;;  %v4478_v45 = vsel %vm752_vm5, %v14413_v44, 0  ;;  %v4539_v49 = vrot.slane %v4530_v47, %v17592_v34  ;;  %v16528_v44 = vld [vmem:[%s21705_s1 + $0x20] ss:$8 sps:$4 sm:$0xff]  }
 0xd18   :  { %4116 = vmatpush1.bf16.msra.mxu1 %v16434_v48  ;;  %4147 = vmatprep.mubr.bf16.mxu1 %v17408_v24  ;;  %v4535_v48 = vrot.slane %v4530_v47, %v17590_v33  ;;  %v16536_v47 = vld [vmem:[%s21705_s1 + $0x44] ss:$8 sps:$4 sm:$0xff]  }
 0xd19   :  { %4117 = vmatprep.subr.bf16.mxu1 %v16439_v50 }
 0xd1c   :  { %4118 = vmatpush1.bf16.msra.mxu1 %v16437_v52 }
 0xd1d   :  { %4119 = vmatprep.subr.bf16.mxu1 %v16442_v53 }
 0xd20   :  { %4120 = vmatpush1.bf16.msra.mxu1 %v16440_v54 }
 0xd21   :  { %4121 = vmatprep.subr.bf16.mxu1 %v16445_v55 }
 0xd24   :  { %4122 = vmatpush1.bf16.msra.mxu1 %v16443_v56 }
 0xd25   :  { %4123 = vmatprep.subr.bf16.mxu1 %v16448_v57 }
 0xd28   :  { %4124 = vmatpush1.bf16.msra.mxu1 %v16446_v59 }
 0xd29   :  { %14340 = vmatprep.subr.msk.bf16.mxu1 %vm752_vm5, %v14339_v60 }
 0xd2c   :  { %4126 = vmatpush1.bf16.msra.mxu1 %v4110_v62 }
 0xd2d   :  { %4235 = vmatprep.subr.bf16.mxu1 %v16453_v63 }
 0xd2f   :  { %14341 = vmatmul.mubr.msk.bf16.vlgmr.msra.gmra.mrb[52].mxu1 %vm748_vm6, %v18719_v42 }
 0xd30   :  { %4236 = vmatpush1.bf16.msra.mxu1 %v16451_v0  ;;  %4267 = vmatprep.mubr.bf16.mxu1 %v17408_v24  ;;  %v4552_v0 = vld [vmem:[%s21713_s7] sm:$0x7] }
 0xd31   :  { %4237 = vmatprep.subr.bf16.mxu1 %v16456_v2  ;;  %v14419_v2 = vld [vmem:[%s21713_s7 + $0x4] sm:$0x7] }
 0xd34   :  { %4238 = vmatpush1.bf16.msra.mxu1 %v16454_v3  ;;  %v16502_v3 = vld [vmem:[%s21711_s8] sm:$0xff]  }
 0xd35   :  { %4239 = vmatprep.subr.bf16.mxu1 %v16459_v4  ;;  %v16503_v4 = vld [vmem:[%s21711_s8 + $0x8] sm:$0xff]  }
 0xd38   :  { %4240 = vmatpush1.bf16.msra.mxu1 %v16457_v5  ;;  %v16504_v5 = vld [vmem:[%s21711_s8 + $0x10] sm:$0xff]  }
 0xd39   :  { %4241 = vmatprep.subr.bf16.mxu1 %v16462_v6  ;;  %v16505_v6 = vld [vmem:[%s21711_s8 + $0x18] sm:$0xff]  }
 0xd3c   :  { %4242 = vmatpush1.bf16.msra.mxu1 %v16460_v7  ;;  %v16506_v7 = vld [vmem:[%s21711_s8 + $0x20] sm:$0xff]  }
 0xd3d   :  { %4243 = vmatprep.subr.bf16.mxu1 %v16465_v1  ;;  %v16507_v1 = vld [vmem:[%s21711_s8 + $0x28] sm:$0xff]  }
 0xd40   :  { %4244 = vmatpush1.bf16.msra.mxu1 %v16463_v9  ;;  %v16509_v9 = vld [vmem:[%s21711_s8 + $0x38] sm:$0xff]  }
 0xd41   :  { %14365 = vmatprep.subr.msk.bf16.mxu1 %vm752_vm5, %v14364_v10  ;;  %v16510_v10 = vld [vmem:[%s21711_s8 + $0x40] sm:$0xff]  }
 0xd44   :  { %4246 = vmatpush1.bf16.msra.mxu1 %v4230_v12 }
 0xd45   :  { %4360 = vmatprep.subr.bf16.mxu1 %v16470_v13 }
 0xd47   :  { %14366 = vmatmul.mubr.msk.bf16.vlgmr.msra.gmra.mrb[52].mxu1 %vm748_vm6, %v4170_v15 }
 0xd48   :  { %4361 = vmatpush1.bf16.msra.mxu1 %v16468_v14  ;;  %4392 = vmatprep.mubr.bf16.mxu1 %v17408_v24 }
 0xd49   :  { %4362 = vmatprep.subr.bf16.mxu1 %v16473_v16 }
 0xd4c   :  { %4363 = vmatpush1.bf16.msra.mxu1 %v16471_v17 }
 0xd4d   :  { %4364 = vmatprep.subr.bf16.mxu1 %v16476_v18 }
 0xd50   :  { %4365 = vmatpush1.bf16.msra.mxu1 %v16474_v19 }
 0xd51   :  { %4366 = vmatprep.subr.bf16.mxu1 %v16479_v21 }
 0xd54   :  { %4367 = vmatpush1.bf16.msra.mxu1 %v16477_v22 }
 0xd55   :  { %4368 = vmatprep.subr.bf16.mxu1 %v16482_v23 }
 0xd58   :  { %4369 = vmatpush1.bf16.msra.mxu1 %v16480_v26 }
 0xd59   :  { %14390 = vmatprep.subr.msk.bf16.mxu1 %vm752_vm5, %v14389_v27  ;;  %v16513_v27 = vld [vmem:[%s21711_s8 + $0x58] sm:$0xff]  }
 0xd5c   :  { %4371 = vmatpush1.bf16.msra.mxu1 %v4355_v29  ;;  %v16515_v29 = vld [vmem:[%s21711_s8 + $0x68] sm:$0xff]  }
 0xd5d   :  { %4483 = vmatprep.subr.bf16.mxu1 %v16487_v30  ;;  %v16516_v30 = vld [vmem:[%s21711_s8 + $0x70] sm:$0xff]  }
 0xd5f   :  { %14391 = vmatmul.mubr.msk.bf16.vlgmr.msra.gmra.mrb[52].mxu1 %vm748_vm6, %v4295_v51 }
 0xd60   :  { %4484 = vmatpush1.bf16.msra.mxu1 %v16485_v31  ;;  %4515 = vmatprep.mubr.bf16.mxu1 %v17408_v24  ;;  %v16517_v31 = vld [vmem:[%s21711_s8 + $0x78] sm:$0xff]  }
 0xd61   :  { %4485 = vmatprep.subr.bf16.mxu1 %v16490_v32  ;;  %v16518_v32 = vld [vmem:[%s21711_s8 + $0x80] sm:$0xff]  }
 0xd64   :  { %4486 = vmatpush1.bf16.msra.mxu1 %v16488_v35  ;;  %v16519_v35 = vld [vmem:[%s21711_s8 + $0x88] sm:$0xff]  }
 0xd65   :  { %4487 = vmatprep.subr.bf16.mxu1 %v16493_v36  ;;  %v16520_v36 = vld [vmem:[%s21711_s8 + $0x90] sm:$0xff]  }
 0xd68   :  { %4488 = vmatpush1.bf16.msra.mxu1 %v16491_v37  ;;  %v16521_v37 = vld [vmem:[%s21711_s8 + $0x98] sm:$0xff]  }
 0xd69   :  { %4489 = vmatprep.subr.bf16.mxu1 %v16496_v20  ;;  %v16524_v20 = vld [vmem:[%s21705_s1 + $0x4] ss:$8 sps:$4 sm:$0xff]  }
 0xd6c   :  { %4490 = vmatpush1.bf16.msra.mxu1 %v16494_v38  ;;  %v16522_v38 = vld [vmem:[%s21705_s1] ss:$8 sps:$4 sm:$0xff]  }
 0xd6d   :  { %4491 = vmatprep.subr.bf16.mxu1 %v16499_v39  ;;  %v16552_v39 = vld [vmem:[%s21706_s0 + $0x64] ss:$8 sps:$4 sm:$0xff]  }
 0xd70   :  { %4492 = vmatpush1.bf16.msra.mxu1 %v16497_v41  ;;  %v16525_v41 = vld [vmem:[%s21705_s1 + $0x10] ss:$8 sps:$4 sm:$0xff]  }
 0xd71   :  { %14415 = vmatprep.subr.msk.bf16.mxu1 %vm752_vm5, %v14414_v43  ;;  %v16530_v43 = vld [vmem:[%s21705_s1 + $0x24] ss:$8 sps:$4 sm:$0xff]  }
 0xd74   :  { %4494 = vmatpush1.bf16.msra.mxu1 %v4478_v45  ;;  %v16533_v45 = vld [vmem:[%s21705_s1 + $0x34] ss:$8 sps:$4 sm:$0xff]  }
 0xd77   :  { %14416 = vmatmul.mubr.msk.bf16.vlgmr.msra.gmra.mrb[52].mxu1 %vm748_vm6, %v4418_v46  ;;  %v16531_v46 = vld [vmem:[%s21705_s1 + $0x30] ss:$8 sps:$4 sm:$0xff]  }
 0xd78   :  { %5205 = vmatprep.mubr.bf16.mxu1 %v17408_v24 }
 0xe4a   :  { %v4517_v50 = vpop.f32.mrb[52].mxu1 }
 0xe4b   :  { %v4542_v51 = vadd.f32 %v4535_v48, %v4517_v50  ;;  %v4519_v52 = vpop.f32.mrb[53].mxu1  ;;  %v16537_v50 = vld [vmem:[%s21705_s1 + $0x50] ss:$8 sps:$4 sm:$0xff]  }
 0xe4c   :  { %v4543_v53 = vadd.f32 %v4539_v49, %v4519_v52  ;;  %v4521_v54 = vpop.f32.mrb[54].mxu1  ;;  %v16540_v52 = vld [vmem:[%s21705_s1 + $0x60] ss:$8 sps:$4 sm:$0xff]  }
 0xe4d   :  { %v4544_v55 = vadd.f32 %v4535_v48, %v4521_v54  ;;  %v4523_v56 = vpop.f32.mrb[55].mxu1  ;;  %v4546_v57 = vmax.f32 %v4542_v51, 0.0  ;;  %v16534_v48 = vld [vmem:[%s21705_s1 + $0x40] ss:$8 sps:$4 sm:$0xff]   ;;  %v16542_v51 = vld [vmem:[%s21705_s1 + $0x64] ss:$8 sps:$4 sm:$0xff]  }
 0xe4e   :  { %v4545_v42 = vadd.f32 %v4539_v49, %v4523_v56  ;;  %v4547_v59 = vmax.f32 %v4543_v53, 0.0  ;;  %v16539_v49 = vld [vmem:[%s21705_s1 + $0x54] ss:$8 sps:$4 sm:$0xff]   ;;  %v16543_v54 = vld [vmem:[%s21705_s1 + $0x70] ss:$8 sps:$4 sm:$0xff]  }
 0xe4f   :  { %v4548_v58 = vmax.f32 %v4544_v55, 0.0  ;;  %v16545_v53 = vld [vmem:[%s21705_s1 + $0x74] ss:$8 sps:$4 sm:$0xff]   ;;  %v16548_v55 = vld [vmem:[%s21705_s1 + $0x84] ss:$8 sps:$4 sm:$0xff]  }
 0xe50   :  { %v4549_v60 = vmax.f32 %v4545_v42, 0.0  ;;  %v16546_v56 = vld [vmem:[%s21705_s1 + $0x80] ss:$8 sps:$4 sm:$0xff]   ;;  %v16551_v42 = vld [vmem:[%s21705_s1 + $0x94] ss:$8 sps:$4 sm:$0xff]  }
 0xe51   :  { %v4550_v61 = vpack.c.bf16 %v4548_v58, %v4546_v57  ;;  %v16549_v57 = vld [vmem:[%s21705_s1 + $0x90] ss:$8 sps:$4 sm:$0xff]   ;;  %v16554_v58 = vld [vmem:[%s21706_s0 + $0x60] ss:$8 sps:$4 sm:$0xff]  }
 0xe52   :  { %v4551_v62 = vpack.c.bf16 %v4549_v60, %v4547_v59  ;;  %v16555_v59 = vld [vmem:[%s21706_s0 + $0x74] ss:$8 sps:$4 sm:$0x3f]   ;;  %v16557_v60 = vld [vmem:[%s21706_s0 + $0x70] ss:$8 sps:$4 sm:$0x3f]  }
 0xe53   :  { %v4557_v63 = vsel %vm1310_vm7, %v4550_v61, 0  ;;  %v16561_v61 = vld [vmem:[%s21708_s4 + $0x54] sm:$0xff]  }
 0xe54   :  { %14417 = vmatprep.subr.msk.bf16.mxu0 %vm1310_vm7, %v4551_v62 }
 0xe55   :  { %4563 = vmatpush1.bf16.msra.mxu0 %v4557_v63 }
 0xe56   :  { %14420 = vmatprep.subr.msk.bf16.mxu0 %vm1310_vm7, %v4551_v62  ;;  %v16563_v62 = vld [vmem:[%s21708_s4 + $0x5c] sm:$0xff]  }
 0xe58   :  { %14418 = vmatmul.mubr.msk.bf16.vlgmr.msra.gmra.mrb[60].mxu0 %vm1306_vm8, %v4552_v0  ;;  %v16567_v0 = vld [vmem:[%s21708_s4 + $0x6c] sm:$0xff]  }
 0xe59   :  { %4608 = vmatpush1.bf16.msra.mxu0 %v4557_v63  ;;  %4639 = vmatprep.mubr.bf16.mxu0 %v17408_v24  ;;  %v16565_v63 = vld [vmem:[%s21708_s4 + $0x64] sm:$0xff]  }
 0xe5a   :  { %4735 = vmatprep.subr.bf16.mxu0 %v17408_v24 }
 0xe60   :  { %14421 = vmatmul.mubr.msk.bf16.vlgmr.msra.gmra.mrb[64].mxu0 %vm1306_vm8, %v14419_v2  ;;  %v16569_v2 = vld [vmem:[%s21708_s4 + $0x74] sm:$0xff]  }
 0xe61   :  { %4736 = vmatpush1.bf16.msra.mxu0 %v16502_v3 }
 0xe62   :  { %4737 = vmatprep.subr.bf16.mxu0 %v17408_v24 }
 0xe65   :  { %4738 = vmatpush1.bf16.msra.mxu0 %v16503_v4 }
 0xe66   :  { %4739 = vmatprep.subr.bf16.mxu0 %v17408_v24 }
 0xe69   :  { %4740 = vmatpush1.bf16.msra.mxu0 %v16504_v5 }
 0xe6a   :  { %4741 = vmatprep.subr.bf16.mxu0 %v17408_v24 }
 0xe6d   :  { %4742 = vmatpush1.bf16.msra.mxu0 %v16505_v6 }
 0xe6e   :  { %4743 = vmatprep.subr.bf16.mxu0 %v17408_v24 }
 0xe71   :  { %4744 = vmatpush1.bf16.msra.mxu0 %v16506_v7  ;;  %v16571_v7 = vld [vmem:[%s21708_s4 + $0x7c] sm:$0xff]  }
 0xe72   :  { %4745 = vmatprep.subr.bf16.mxu0 %v17408_v24 }
 0xe75   :  { %4746 = vmatpush1.bf16.msra.mxu0 %v16507_v1  ;;  %v16573_v1 = vld [vmem:[%s21708_s4 + $0x84] sm:$0xff]  }
 0xe76   :  { %4747 = vmatprep.subr.bf16.mxu0 %v17408_v24 }
 0xe79   :  { %4748 = vmatpush1.bf16.msra.mxu0 %v16508_v8 }
 0xe7a   :  { %4749 = vmatprep.subr.bf16.mxu0 %v17408_v24 }
 0xe7d   :  { %4750 = vmatpush1.bf16.msra.mxu0 %v16509_v9 }
 0xe7e   :  { %4751 = vmatprep.subr.bf16.mxu0 %v17408_v24 }
 0xe81   :  { %4752 = vmatpush1.bf16.msra.mxu0 %v16510_v10 }
 0xe82   :  { %4753 = vmatprep.subr.bf16.mxu0 %v17408_v24 }
 0xe85   :  { %4754 = vmatpush1.bf16.msra.mxu0 %v16511_v11  ;;  %v16576_v11 = vld [vmem:[%s21708_s4 + $0x40] sm:$0xff]  }
 0xe86   :  { %4855 = vmatprep.subr.bf16.mxu0 %v17408_v24 }
 0xf2b   :  { %v4596_v12 = vpop.f32.mrb[60].mxu0 }
 0xf2c   :  { %v4598_v13 = vpop.f32.mrb[61].mxu0 }
 0xf2d   :  { %v4600_v14 = vpop.f32.mrb[62].mxu0 }
 0xf2e   :  { %v4601_v15 = vpop.f32.mrb[63].mxu0 }
 0xf33   :  { %v4641_v16 = vpop.f32.mrb[64].mxu0 }
 0xf34   :  { %v4648_v17 = vmax.f32 %v4596_v12, %v4641_v16  ;;  %v4643_v18 = vpop.f32.mrb[65].mxu0  ;;  %v4916_v12 = vld [vmem:[#allocation2 + $0x8] sm:$0x2]  ;;  %v4905_v16 = vld [vmem:[#allocation2] sm:$0x2] }
 0xf35   :  { %v4649_v19 = vmax.f32 %v4598_v13, %v4643_v18  ;;  %v4645_v21 = vpop.f32.mrb[66].mxu0  ;;  %v4928_v18 = vld [vmem:[#allocation2 + $0x10] sm:$0x2] }
 0xf36   :  { %v4646_v22 = vpop.f32.mrb[67].mxu0  ;;  %v4650_v26 = vpack.c.bf16 %v4648_v17, %v4648_v17  ;;  %v4922_v17 = vld [vmem:[#allocation2 + $0xc] sm:$0x2] }
 0xf37   :  { %v4651_v23 = vpack.c.bf16 %v4649_v19, %v4649_v19 }
 0xf39   :  { %14432 = vmatprep.mubr.msk.bf16.mxu0 %vm205_vm0, %v4651_v23 }
 0xf3a   :  { %4768 = vmatmul.mubr.bf16.vlgmr.msra.gmra.mrb[68].mxu0 %v4650_v26 }
 0xf3b   :  { %4856 = vmatpush1.bf16.msra.mxu0 %v16512_v25  ;;  %14463 = vmatprep.mubr.msk.bf16.mxu0 %vm205_vm0, %v4651_v23  ;;  %v4913_v25 = vld [vmem:[#allocation2 + $0x4] sm:$0x2] }
 0xf3c   :  { %4857 = vmatprep.subr.bf16.mxu0 %v17408_v24 }
 0xf3f   :  { %4858 = vmatpush1.bf16.msra.mxu0 %v16513_v27 }
 0xf40   :  { %4859 = vmatprep.subr.bf16.mxu0 %v17408_v24 }
 0xf43   :  { %4860 = vmatpush1.bf16.msra.mxu0 %v16514_v28 }
 0xf44   :  { %4861 = vmatprep.subr.bf16.mxu0 %v17408_v24 }
 0xf47   :  { %4862 = vmatpush1.bf16.msra.mxu0 %v16515_v29 }
 0xf48   :  { %4863 = vmatprep.subr.bf16.mxu0 %v17408_v24 }
 0xf4b   :  { %4864 = vmatpush1.bf16.msra.mxu0 %v16516_v30 }
 0xf4c   :  { %4865 = vmatprep.subr.bf16.mxu0 %v17408_v24 }
 0xf4f   :  { %4866 = vmatpush1.bf16.msra.mxu0 %v16517_v31  ;;  %v4956_v31 = vld [vmem:[%s21709_s2] sm:$0x3] }
 0xf50   :  { %4867 = vmatprep.subr.bf16.mxu0 %v17408_v24 }
 0xf53   :  { %4868 = vmatpush1.bf16.msra.mxu0 %v16518_v32  ;;  %v4961_v32 = vrot.slane %v4956_v31, %v17590_v33 }
 0xf54   :  { %4869 = vmatprep.subr.bf16.mxu0 %v17408_v24 }
 0xf57   :  { %4870 = vmatpush1.bf16.msra.mxu0 %v16519_v35  ;;  %v4965_v35 = vrot.slane %v4956_v31, %v17592_v34 }
 0xf58   :  { %4871 = vmatprep.subr.bf16.mxu0 %v17408_v24 }
 0xf5b   :  { %4872 = vmatpush1.bf16.msra.mxu0 %v16520_v36 }
 0xf5c   :  { %4873 = vmatprep.subr.bf16.mxu0 %v17408_v24 }
 0xf5f   :  { %4874 = vmatpush1.bf16.msra.mxu0 %v16521_v37 }
 0xf60   :  { %5092 = vmatprep.subr.bf16.mxu0 %v16524_v20 }
 0xf62   :  { %4888 = vmatmul.mubr.bf16.vlgmr.msra.gmra.mrb[72].mxu0 %v4650_v26 }
 0xf63   :  { %5093 = vmatpush1.bf16.msra.mxu0 %v16522_v38  ;;  %14495 = vmatprep.mubr.msk.bf16.mxu0 %vm205_vm0, %v16552_v39 }
 0xf64   :  { %5094 = vmatprep.subr.bf16.mxu0 %v16527_v40 }
 0xf67   :  { %5095 = vmatpush1.bf16.msra.mxu0 %v16525_v41 }
 0xf68   :  { %5096 = vmatprep.subr.bf16.mxu0 %v16530_v43 }
 0xf6b   :  { %5097 = vmatpush1.bf16.msra.mxu0 %v16528_v44 }
 0xf6c   :  { %5098 = vmatprep.subr.bf16.mxu0 %v16533_v45 }
 0xf6f   :  { %5099 = vmatpush1.bf16.msra.mxu0 %v16531_v46 }
 0xf70   :  { %5100 = vmatprep.subr.bf16.mxu0 %v16536_v47 }
 0xf73   :  { %5101 = vmatpush1.bf16.msra.mxu0 %v16534_v48 }
 0xf74   :  { %5102 = vmatprep.subr.bf16.mxu0 %v16539_v49 }
 0xf77   :  { %5103 = vmatpush1.bf16.msra.mxu0 %v16537_v50 }
 0xf78   :  { %5104 = vmatprep.subr.bf16.mxu0 %v16542_v51 }
 0xf7b   :  { %5105 = vmatpush1.bf16.msra.mxu0 %v16540_v52 }
 0xf7c   :  { %5106 = vmatprep.subr.bf16.mxu0 %v16545_v53 }
 0xf7f   :  { %5107 = vmatpush1.bf16.msra.mxu0 %v16543_v54 }
 0xf80   :  { %5108 = vmatprep.subr.bf16.mxu0 %v16548_v55 }
 0xf83   :  { %5109 = vmatpush1.bf16.msra.mxu0 %v16546_v56 }
 0xf84   :  { %5110 = vmatprep.subr.bf16.mxu0 %v16551_v42 }
 0xf87   :  { %5111 = vmatpush1.bf16.msra.mxu0 %v16549_v57 }
 0xf88   :  { %5493 = vmatprep.subr.bf16.mxu0 %v17408_v24 }
 0xf8a   :  { %5125 = vmatmul.mubr.bf16.vlgmr.msra.gmra.mrb[76].mxu0 %v16554_v58 }
 0xf8b   :  { %14496 = vmatprep.mubr.msk.bf16.mxu0 %vm205_vm0, %v16555_v59  ;;  %5494 = vmatpush1.bf16.msra.mxu0 %v16561_v61 }
 0xf8c   :  { %5495 = vmatprep.subr.bf16.mxu0 %v17408_v24 }
 0xf8f   :  { %5496 = vmatpush1.bf16.msra.mxu0 %v16563_v62 }
 0xf90   :  { %5497 = vmatprep.subr.bf16.mxu0 %v17408_v24 }
 0xf92   :  { %5135 = vmatmul.mubr.bf16.gmra.mrb[80].mxu0 %v16557_v60 }
 0xf93   :  { %5498 = vmatpush1.bf16.msra.mxu0 %v16565_v63 }
 0xf94   :  { %5499 = vmatprep.subr.bf16.mxu0 %v17408_v24 }
 0xf97   :  { %5500 = vmatpush1.bf16.msra.mxu0 %v16567_v0  ;;  %v16558_v0 = vld [vmem:[%s21707_s3] sm:$0x7f]  }
 0xf98   :  { %5501 = vmatprep.subr.bf16.mxu0 %v17408_v24 }
 0xf9b   :  { %5502 = vmatpush1.bf16.msra.mxu0 %v16569_v2  ;;  %v16559_v2 = vld [vmem:[%s21707_s3 + $0x8] sm:$0x7f]  }
 0xf9c   :  { %5503 = vmatprep.subr.bf16.mxu0 %v17408_v24 }
 0xf9f   :  { %5504 = vmatpush1.bf16.msra.mxu0 %v16571_v7  ;;  %v16568_v7 = vld [vmem:[%s21708_s4 + $0x20] sm:$0xff]  }
 0xfa0   :  { %5505 = vmatprep.subr.bf16.mxu0 %v17408_v24 }
 0xfa3   :  { %5506 = vmatpush1.bf16.msra.mxu0 %v16573_v1  ;;  %v16570_v1 = vld [vmem:[%s21708_s4 + $0x28] sm:$0xff]  }
 0xfa4   :  { %5507 = vmatprep.subr.bf16.mxu0 %v17408_v24 }
0x100d   :  { %v4769_v3 = vpop.f32.mrb[68].mxu0 }
0x100e   :  { %v4771_v4 = vpop.f32.mrb[69].mxu0 }
0x100f   :  { %v4772_v5 = vpop.f32.mrb[70].mxu0  ;;  %v16562_v4 = vld [vmem:[%s21708_s4 + $0x8] sm:$0xff]  }
0x1010   :  { %v4773_v6 = vpop.f32.mrb[71].mxu0  ;;  %v16564_v5 = vld [vmem:[%s21708_s4 + $0x10] sm:$0xff]  }
0x1011   :  { %v16566_v6 = vld [vmem:[%s21708_s4 + $0x18] sm:$0xff]  }
0x1035   :  { %v4889_v8 = vpop.f32.mrb[72].mxu0 }
0x1036   :  { %v4895_v9 = vmax.f32 %v4769_v3, %v4889_v8  ;;  %v4891_v10 = vpop.f32.mrb[73].mxu0  ;;  %v16560_v3 = vld [vmem:[%s21708_s4] sm:$0xff]   ;;  %v16572_v8 = vld [vmem:[%s21708_s4 + $0x30] sm:$0xff]  }
0x1037   :  { %v4892_v13 = vpop.f32.mrb[74].mxu0  ;;  %v16575_v10 = vld [vmem:[%s21708_s4 + $0x8c] sm:$0xff]  }
0x1038   :  { %v4896_v14 = vpack.c.bf16 %v4895_v9, %v4895_v9  ;;  %v4893_v15 = vpop.f32.mrb[75].mxu0  ;;  %v16574_v9 = vld [vmem:[%s21708_s4 + $0x38] sm:$0xff]   ;;  %5508 = vmatpush1.bf16.msra.mxu0 %v16575_v10  ;;  %v16578_v13 = vld [vmem:[%s21708_s4 + $0x48] sm:$0xff]  }
0x1039   :  { %5509 = vmatprep.subr.bf16.mxu0 %v17408_v24  ;;  %v16580_v15 = vld [vmem:[%s21708_s4 + $0x50] ss:$0 sps:$4 sm:$0xff]   ;;  %v16610_v10 = vld [vmem:[%s21710_s5 + $0x34] ss:$8 sps:$4 sm:$0xff]  }
0x103a   :  { %v4900_v19 = vrot.slane %v4896_v14, 7  ;;  %v4909_v21 = vshrl.u32 %v4896_v14, 16  ;;  %v4917_v22 = vsel %vm19085_vm9, %v4896_v14, %v4916_v12  ;;  %v14466_v23 = vrot.slane %v4896_v14, 9  ;;  %v16577_v12 = vld [vmem:[%s21708_s4 + $0x94] sm:$0xff]   ;;  %v16579_v14 = vld [vmem:[%s21708_s4 + $0x9c] sm:$0xff]  }
0x103b   :  { %4918 = vst [vmem:[#allocation2 + $0x8] sm:$0x2] %v4917_v22 }
0x103c   :  { %v4906_v26 = vsel %vm19085_vm9, %v4900_v19, %v4905_v16  ;;  %v4911_v27 = vrot.slane %v4909_v21, 7  ;;  %v4923_v28 = vsel %vm19085_vm9, %v4909_v21, %v4922_v17  ;;  %v4929_v29 = vsel %vm19085_vm9, %v14466_v23, %v4928_v18  ;;  %5510 = vmatpush1.bf16.msra.mxu0 %v16577_v12  ;;  %v16581_v16 = vld [vmem:[%s21708_s4 + $0xa4] ss:$0 sps:$4 sm:$0xff]  }
0x103d   :  { %4907 = vst [vmem:[#allocation2] sm:$0x2] %v4906_v26  ;;  %4930 = vst [vmem:[#allocation2 + $0x10] sm:$0x2] %v4929_v29  ;;  %5511 = vmatprep.subr.bf16.mxu0 %v17408_v24  ;;  %v5363_v17 = vsel %vm486_vm3, %v16580_v15, 0  ;;  %v5491_v18 = vsel %vm486_vm3, %v16581_v16, 0 }
0x103e   :  { %4924 = vst [vmem:[#allocation2 + $0xc] sm:$0x2] %v4923_v28  ;;  %v4914_v30 = vsel %vm19085_vm9, %v4911_v27, %v4913_v25  ;;  %v16584_v19 = vld [vmem:[%s21710_s5 + $0x5c] ss:$8 sps:$4 sm:$0xff]   ;;  %vm20585_vm9 = vmand %vm8141_vm12, %vm9763_vm15 }
0x103f   :  { %4915 = vst [vmem:[#allocation2 + $0x4] sm:$0x2] %v4914_v30  ;;  %v16613_v12 = vld [vmem:[%s21710_s5 + $0x44] ss:$8 sps:$4 sm:$0xff]  }
0x1040   :  { %5512 = vmatpush1.bf16.msra.mxu0 %v16579_v14  ;;  %v16611_v14 = vld [vmem:[%s21710_s5 + $0x40] ss:$8 sps:$4 sm:$0xff]  }
0x1041   :  { %5513 = vmatprep.subr.bf16.mxu0 %v17408_v24 }
0x1044   :  { %5514 = vmatpush1.bf16.msra.mxu0 %v5491_v18  ;;  %v16618_v18 = vld [vmem:[%s21710_s5 + $0xb4] ss:$8 sps:$4 sm:$0xff]  }
0x105d   :  { %v5126_v36 = vpop.f32.mrb[76].mxu0 }
0x105e   :  { %v5127_v37 = vadd.f32 %v5126_v36, %v4961_v32  ;;  %v5128_v20 = vpop.f32.mrb[77].mxu0 }
0x105f   :  { %v5129_v38 = vadd.f32 %v5128_v20, %v4965_v35  ;;  %v5130_v39 = vpop.f32.mrb[78].mxu0  ;;  %v16582_v20 = vld [vmem:[%s21710_s5 + $0x58] ss:$8 sps:$4 sm:$0xff]  }
0x1060   :  { %v5131_v40 = vadd.f32 %v5130_v39, %v4961_v32  ;;  %v5132_v41 = vpop.f32.mrb[79].mxu0  ;;  %v5145_v44 = vmax.f32 %v5127_v37, 0.0  ;;  %v16585_v39 = vld [vmem:[%s21710_s5 + $0x68] ss:$8 sps:$4 sm:$0xff]  }
0x1061   :  { %v5133_v43 = vadd.f32 %v5132_v41, %v4965_v35  ;;  %v5146_v46 = vmax.f32 %v5129_v38, 0.0  ;;  %v16587_v38 = vld [vmem:[%s21710_s5 + $0x6c] ss:$8 sps:$4 sm:$0xff]   ;;  %v16588_v41 = vld [vmem:[%s21710_s5 + $0x78] ss:$8 sps:$4 sm:$0xff]  }
0x1062   :  { %v5147_v45 = vmax.f32 %v5131_v40, 0.0  ;;  %v16590_v40 = vld [vmem:[%s21710_s5 + $0x7c] ss:$8 sps:$4 sm:$0xff]  }
0x1063   :  { %v5148_v47 = vmax.f32 %v5133_v43, 0.0  ;;  %v16593_v43 = vld [vmem:[%s21710_s5 + $0x8c] ss:$8 sps:$4 sm:$0xff]  }
0x1064   :  { %v5153_v48 = vpack.c.bf16 %v5147_v45, %v5145_v44  ;;  %v16591_v44 = vld [vmem:[%s21710_s5 + $0x88] ss:$8 sps:$4 sm:$0xff]   ;;  %v16596_v45 = vld [vmem:[%s21710_s5 + $0x9c] ss:$8 sps:$4 sm:$0xff]  }
0x1065   :  { %v5154_v49 = vpack.c.bf16 %v5148_v47, %v5146_v46  ;;  %v5136_v50 = vpop.f32.mrb[80].mxu0  ;;  %v16594_v46 = vld [vmem:[%s21710_s5 + $0x98] ss:$8 sps:$4 sm:$0xff]   ;;  %v14560_v47 = vld [vmem:[%s21710_s5 + $0xa8] sm:$0x33] }
0x1066   :  { %v5137_v51 = vadd.f32 %v5136_v50, %v4961_v32  ;;  %v5138_v52 = vpop.f32.mrb[81].mxu0  ;;  %v16601_v50 = vld [vmem:[%s21710_s5 + $0x4] ss:$8 sps:$4 sm:$0xff]  }
0x1067   :  { %v5139_v53 = vadd.f32 %v5138_v52, %v4965_v35  ;;  %v5140_v54 = vpop.f32.mrb[82].mxu0  ;;  %5173 = vmatprep.subr.bf16.mxu1 %v5154_v49 }
0x1068   :  { %v5141_v55 = vadd.f32 %v5140_v54, %v4961_v32  ;;  %v5142_v56 = vpop.f32.mrb[83].mxu0  ;;  %5174 = vmatpush1.bf16.msra.mxu1 %v5153_v48  ;;  %v5149_v57 = vmax.f32 %v5137_v51, 0.0 }
0x1069   :  { %v5143_v42 = vadd.f32 %v5142_v56, %v4965_v35  ;;  %v5150_v59 = vmax.f32 %v5139_v53, 0.0 }
0x106a   :  { %v5151_v58 = vmax.f32 %v5141_v55, 0.0 }
0x106b   :  { %v5152_v60 = vmax.f32 %v5143_v42, 0.0 }
0x106c   :  { %v5155_v61 = vpack.c.bf16 %v5151_v58, %v5149_v57 }
0x106d   :  { %v5156_v62 = vpack.c.bf16 %v5152_v60, %v5150_v59 }
0x106e   :  { %v5168_v63 = vsel %vm288_vm1, %v5155_v61, 0 }
0x106f   :  { %14498 = vmatprep.subr.msk.bf16.mxu1 %vm288_vm1, %v5156_v62 }
0x1070   :  { %5176 = vmatpush1.bf16.msra.mxu1 %v5168_v63 }
0x1071   :  { %5226 = vmatprep.subr.bf16.mxu1 %v5154_v49  ;;  %v14571_v49 = vcombine.low %v14560_v47, %v14560_v47 }
0x1073   :  { %14499 = vmatmul.mubr.msk.bf16.vlgmr.msra.gmra.mrb[56].mxu1 %vm284_vm2, %v16558_v0  ;;  %v5625_v51 = vsel %vm752_vm5, %v14571_v49, 0 }
0x1074   :  { %5227 = vmatpush1.bf16.msra.mxu1 %v5153_v48  ;;  %5258 = vmatprep.mubr.bf16.mxu1 %v17408_v24  ;;  %v14572_v48 = vcombine.high %v14560_v47, %v14560_v47  ;;  %v16645_v47 = vld [vmem:[%s21710_s5 + $0x148] ss:$8 sps:$4 sm:$0xff]  }
0x1075   :  { %14503 = vmatprep.subr.msk.bf16.mxu1 %vm288_vm1, %v5156_v62 }
0x1078   :  { %5229 = vmatpush1.bf16.msra.mxu1 %v5168_v63 }
0x1079   :  { %5365 = vmatprep.subr.bf16.mxu1 %v17408_v24 }
0x107b   :  { %14504 = vmatmul.mubr.msk.bf16.vlgmr.msra.gmra.mrb[60].mxu1 %vm284_vm2, %v16559_v2 }
0x107c   :  { %5366 = vmatpush1.bf16.msra.mxu1 %v16560_v3 }
0x107d   :  { %5367 = vmatprep.subr.bf16.mxu1 %v17408_v24 }
0x1080   :  { %5368 = vmatpush1.bf16.msra.mxu1 %v16562_v4  ;;  %v16599_v4 = vld [vmem:[%s21710_s5] ss:$8 sps:$4 sm:$0xff]  }
0x1081   :  { %5369 = vmatprep.subr.bf16.mxu1 %v17408_v24 }
0x1084   :  { %5370 = vmatpush1.bf16.msra.mxu1 %v16564_v5 }
0x1085   :  { %5371 = vmatprep.subr.bf16.mxu1 %v17408_v24 }
0x1088   :  { %5372 = vmatpush1.bf16.msra.mxu1 %v16566_v6  ;;  %v16604_v6 = vld [vmem:[%s21710_s5 + $0x14] ss:$8 sps:$4 sm:$0xff]  }
0x1089   :  { %5373 = vmatprep.subr.bf16.mxu1 %v17408_v24 }
0x108c   :  { %5374 = vmatpush1.bf16.msra.mxu1 %v16568_v7 }
0x108d   :  { %5375 = vmatprep.subr.bf16.mxu1 %v17408_v24 }
0x1090   :  { %5376 = vmatpush1.bf16.msra.mxu1 %v16570_v1  ;;  %v16602_v1 = vld [vmem:[%s21710_s5 + $0x10] ss:$8 sps:$4 sm:$0xff]  }
0x1091   :  { %5377 = vmatprep.subr.bf16.mxu1 %v17408_v24 }
0x1094   :  { %5378 = vmatpush1.bf16.msra.mxu1 %v16572_v8  ;;  %v16607_v8 = vld [vmem:[%s21710_s5 + $0x24] ss:$8 sps:$4 sm:$0xff]  }
0x1095   :  { %5379 = vmatprep.subr.bf16.mxu1 %v17408_v24 }
0x1098   :  { %5380 = vmatpush1.bf16.msra.mxu1 %v16574_v9  ;;  %v16605_v9 = vld [vmem:[%s21710_s5 + $0x20] ss:$8 sps:$4 sm:$0xff]  }
0x1099   :  { %5381 = vmatprep.subr.bf16.mxu1 %v17408_v24 }
0x109c   :  { %5382 = vmatpush1.bf16.msra.mxu1 %v16576_v11  ;;  %v16608_v11 = vld [vmem:[%s21710_s5 + $0x30] ss:$8 sps:$4 sm:$0xff]  }
0x109d   :  { %5383 = vmatprep.subr.bf16.mxu1 %v17408_v24 }
0x10a0   :  { %5384 = vmatpush1.bf16.msra.mxu1 %v16578_v13  ;;  %v5547_v13 = vld [vmem:[%s21710_s5 + $0x50] sm:$0x33] }
0x10a1   :  { %5385 = vmatprep.subr.bf16.mxu1 %v17408_v24  ;;  %v14586_v15 = vcombine.high %v5547_v13, %v5547_v13  ;;  %v14585_v16 = vcombine.low %v5547_v13, %v5547_v13 }
0x10a4   :  { %5386 = vmatpush1.bf16.msra.mxu1 %v5363_v17  ;;  %v5731_v17 = vsel %vm752_vm5, %v14585_v16, 0 }
0x10a5   :  { %5630 = vmatprep.subr.bf16.mxu1 %v16584_v19  ;;  %v16616_v19 = vld [vmem:[%s21710_s5 + $0xb0] ss:$8 sps:$4 sm:$0xff]  }
0x1146   :  { %v5207_v21 = vpop.f32.mrb[56].mxu1 }
0x1147   :  { %v5209_v22 = vpop.f32.mrb[57].mxu1 }
0x1148   :  { %v5211_v23 = vpop.f32.mrb[58].mxu1 }
0x1149   :  { %v5213_v25 = vpop.f32.mrb[59].mxu1 }
0x114e   :  { %v5260_v26 = vpop.f32.mrb[60].mxu1 }
0x114f   :  { %v5269_v27 = vmax.f32 %v5207_v21, %v5260_v26  ;;  %v5262_v28 = vpop.f32.mrb[61].mxu1  ;;  %v16621_v21 = vld [vmem:[%s21710_s5 + $0xc4] ss:$8 sps:$4 sm:$0xff]  }
0x1150   :  { %v5270_v29 = vmax.f32 %v5209_v22, %v5262_v28  ;;  %v5264_v30 = vpop.f32.mrb[62].mxu1  ;;  %v16619_v22 = vld [vmem:[%s21710_s5 + $0xc0] ss:$8 sps:$4 sm:$0xff]   ;;  %v16627_v26 = vld [vmem:[%s21710_s5 + $0xe4] ss:$8 sps:$4 sm:$0xff]  }
0x1151   :  { %v5271_v31 = vmax.f32 %v5211_v23, %v5264_v30  ;;  %v5266_v32 = vpop.f32.mrb[63].mxu1  ;;  %v16624_v23 = vld [vmem:[%s21710_s5 + $0xd4] ss:$8 sps:$4 sm:$0xff]   ;;  %v16628_v30 = vld [vmem:[%s21710_s5 + $0xf0] ss:$8 sps:$4 sm:$0xff]  }
0x1152   :  { %v5272_v35 = vmax.f32 %v5213_v25, %v5266_v32  ;;  %v16622_v25 = vld [vmem:[%s21710_s5 + $0xd0] ss:$8 sps:$4 sm:$0xff]   ;;  %v16630_v28 = vld [vmem:[%s21710_s5 + $0xf4] ss:$8 sps:$4 sm:$0xff]  }
0x1153   :  { %v5273_v36 = vpack.c.bf16 %v5271_v31, %v5269_v27  ;;  %v16625_v27 = vld [vmem:[%s21710_s5 + $0xe0] ss:$8 sps:$4 sm:$0xff]  }
0x1154   :  { %v5274_v37 = vpack.c.bf16 %v5272_v35, %v5270_v29  ;;  %v14599_v29 = vld [vmem:[%s21710_s5 + $0x100] sm:$0x33] }
0x1155   :  { %v14611_v31 = vcombine.high %v14599_v29, %v14599_v29  ;;  %v14610_v32 = vcombine.low %v14599_v29, %v14599_v29  ;;  %v16673_v29 = vld [vmem:[%s21711_s8 + $0x30] sm:$0xff]  }
0x1156   :  { %14516 = vmatprep.mubr.msk.bf16.mxu1 %vm482_vm4, %v5274_v37  ;;  %14549 = vmatprep.mubr.msk.bf16.mxu0 %vm482_vm4, %v5274_v37  ;;  %v16633_v37 = vld [vmem:[%s21710_s5 + $0x108] ss:$8 sps:$4 sm:$0xff]  }
0x1157   :  { %5398 = vmatmul.mubr.bf16.vlgmr.msra.gmra.mrb[64].mxu1 %v5273_v36  ;;  %5526 = vmatmul.mubr.bf16.vlgmr.msra.gmra.mrb[84].mxu0 %v5273_v36  ;;  %v5851_v35 = vsel %vm752_vm5, %v14610_v32, 0  ;;  %v16635_v36 = vld [vmem:[%s21710_s5 + $0x10c] ss:$8 sps:$4 sm:$0xff]  }
0x1158   :  { %5631 = vmatpush1.bf16.msra.mxu1 %v16582_v20  ;;  %5662 = vmatprep.mubr.bf16.mxu1 %v17408_v24  ;;  %v16676_v32 = vld [vmem:[%s21711_s8 + $0x48] sm:$0xff]  }
0x1159   :  { %5632 = vmatprep.subr.bf16.mxu1 %v16587_v38  ;;  %6215 = vmatprep.mubr.bf16.mxu0 %v17408_v24  ;;  %v16638_v38 = vld [vmem:[%s21710_s5 + $0x11c] ss:$8 sps:$4 sm:$0xff]  }
0x115c   :  { %5633 = vmatpush1.bf16.msra.mxu1 %v16585_v39  ;;  %v16636_v39 = vld [vmem:[%s21710_s5 + $0x118] ss:$8 sps:$4 sm:$0xff]  }
0x115d   :  { %5634 = vmatprep.subr.bf16.mxu1 %v16590_v40  ;;  %v16641_v40 = vld [vmem:[%s21710_s5 + $0x12c] ss:$8 sps:$4 sm:$0xff]  }
0x1160   :  { %5635 = vmatpush1.bf16.msra.mxu1 %v16588_v41  ;;  %v16639_v41 = vld [vmem:[%s21710_s5 + $0x128] ss:$8 sps:$4 sm:$0xff]  }
0x1161   :  { %5636 = vmatprep.subr.bf16.mxu1 %v16593_v43  ;;  %v16644_v43 = vld [vmem:[%s21710_s5 + $0x13c] ss:$8 sps:$4 sm:$0xff]  }
0x1164   :  { %5637 = vmatpush1.bf16.msra.mxu1 %v16591_v44  ;;  %v16642_v44 = vld [vmem:[%s21710_s5 + $0x138] ss:$8 sps:$4 sm:$0xff]  }
0x1165   :  { %5638 = vmatprep.subr.bf16.mxu1 %v16596_v45  ;;  %v16647_v45 = vld [vmem:[%s21710_s5 + $0x14c] ss:$8 sps:$4 sm:$0xff]  }
0x1168   :  { %5639 = vmatpush1.bf16.msra.mxu1 %v16594_v46  ;;  %v14624_v46 = vld [vmem:[%s21710_s5 + $0x158] sm:$0x33] }
0x1169   :  { %14573 = vmatprep.subr.msk.bf16.mxu1 %vm752_vm5, %v14572_v48  ;;  %v14636_v48 = vcombine.high %v14624_v46, %v14624_v46  ;;  %v14635_v49 = vcombine.low %v14624_v46, %v14624_v46  ;;  %v16677_v46 = vld [vmem:[%s21711_s8 + $0x50] sm:$0xff]  }
0x116c   :  { %5641 = vmatpush1.bf16.msra.mxu1 %v5625_v51  ;;  %v16652_v51 = vld [vmem:[%s21710_s5 + $0x164] ss:$8 sps:$4 sm:$0xff]  }
0x116d   :  { %5736 = vmatprep.subr.bf16.mxu1 %v16601_v50  ;;  %v5976_v50 = vsel %vm752_vm5, %v14635_v49, 0  ;;  %v16679_v49 = vld [vmem:[%s21711_s8 + $0x60] sm:$0xff]  }
0x122a   :  { %v5399_v52 = vpop.f32.mrb[64].mxu1  ;;  %v5527_v53 = vpop.f32.mrb[84].mxu0 }
0x122b   :  { %v5534_v54 = vmax.f32 %v5399_v52, %v5527_v53  ;;  %v5401_v55 = vpop.f32.mrb[65].mxu1  ;;  %v5529_v56 = vpop.f32.mrb[85].mxu0  ;;  %v16650_v52 = vld [vmem:[%s21710_s5 + $0x160] ss:$8 sps:$4 sm:$0xff]   ;;  %v16655_v53 = vld [vmem:[%s21710_s5 + $0x174] ss:$8 sps:$4 sm:$0xff]  }
0x122c   :  { %v5402_v42 = vpop.f32.mrb[66].mxu1  ;;  %v5530_v57 = vpop.f32.mrb[86].mxu0  ;;  %v16658_v55 = vld [vmem:[%s21710_s5 + $0x184] ss:$8 sps:$4 sm:$0xff]   ;;  %v16656_v56 = vld [vmem:[%s21710_s5 + $0x180] ss:$8 sps:$4 sm:$0xff]  }
0x122d   :  { %v5535_v58 = vmax.f32 %v5402_v42, %v5530_v57  ;;  %v5404_v59 = vpop.f32.mrb[67].mxu1  ;;  %v5532_v60 = vpop.f32.mrb[87].mxu0  ;;  %v16661_v42 = vld [vmem:[%s21710_s5 + $0x194] ss:$8 sps:$4 sm:$0xff]   ;;  %v16659_v57 = vld [vmem:[%s21710_s5 + $0x190] ss:$8 sps:$4 sm:$0xff]  }
0x122e   :  { %v14649_v59 = vld [vmem:[%s21710_s5 + $0x1b0] sm:$0x33]  ;;  %v16662_v60 = vld [vmem:[%s21710_s5 + $0x1a0] ss:$8 sps:$4 sm:$0xff]  }
0x122f   :  { %v19219_v61 = vpack.c.bf16 %v5535_v58, %v5534_v54  ;;  %v16653_v54 = vld [vmem:[%s21710_s5 + $0x170] ss:$8 sps:$4 sm:$0xff]   ;;  %v16664_v58 = vld [vmem:[%s21710_s5 + $0x1a4] ss:$8 sps:$4 sm:$0xff]  }
0x1231   :  { %v5562_v62 = vshll.u32 %v19219_v61, 16  ;;  %v5560_v63 = vshrl.u32 %v19219_v61, 16  ;;  %v5791_v20 = vrot.slane %v19219_v61, 1 }
0x1233   :  { %v5564_v0 = vrot.slane %v5562_v62, 1  ;;  %v19223_v2 = vrot.slane %v5560_v63, 1  ;;  %v19225_v3 = vrot.slane %v5562_v62, 2  ;;  %v14661_v62 = vcombine.high %v14649_v59, %v14649_v59 }
0x1235   :  { %v5565_v5 = vor.u32 %v5564_v0, %v5560_v63  ;;  %v5916_v7 = vor.u32 %v19225_v3, %v19223_v2  ;;  %v14660_v63 = vcombine.low %v14649_v59, %v14649_v59  ;;  %v6039_v2 = vrot.slane %v19219_v61, 2  ;;  %v6151_v3 = vld [vmem:[%s21712_s6] sm:$0x3]  ;;  %v16692_v59 = vld [vmem:[%s21705_s1 + $0x14] ss:$8 sps:$4 sm:$0xff]  }
0x1237   :  { %14574 = vmatmul.mubr.msk.bf16.vlgmr.msra.gmra.mrb[68].mxu1 %vm748_vm6, %v5565_v5  ;;  %v6099_v0 = vsel %vm752_vm5, %v14660_v63, 0  ;;  %v6160_v5 = vrot.slane %v6151_v3, %v17592_v34  ;;  %v16693_v63 = vld [vmem:[%s21705_s1 + $0x20] ss:$8 sps:$4 sm:$0xff]  }
0x1238   :  { %5737 = vmatpush1.bf16.msra.mxu1 %v16599_v4  ;;  %5768 = vmatprep.mubr.bf16.mxu1 %v17408_v24  ;;  %v6156_v4 = vrot.slane %v6151_v3, %v17590_v33  ;;  %v16701_v3 = vld [vmem:[%s21705_s1 + $0x44] ss:$8 sps:$4 sm:$0xff]  }
0x1239   :  { %5738 = vmatprep.subr.bf16.mxu1 %v16604_v6 }
0x123c   :  { %5739 = vmatpush1.bf16.msra.mxu1 %v16602_v1 }
0x123d   :  { %5740 = vmatprep.subr.bf16.mxu1 %v16607_v8 }
0x1240   :  { %5741 = vmatpush1.bf16.msra.mxu1 %v16605_v9 }
0x1241   :  { %5742 = vmatprep.subr.bf16.mxu1 %v16610_v10 }
0x1244   :  { %5743 = vmatpush1.bf16.msra.mxu1 %v16608_v11 }
0x1245   :  { %5744 = vmatprep.subr.bf16.mxu1 %v16613_v12 }
0x1248   :  { %5745 = vmatpush1.bf16.msra.mxu1 %v16611_v14 }
0x1249   :  { %14587 = vmatprep.subr.msk.bf16.mxu1 %vm752_vm5, %v14586_v15 }
0x124c   :  { %5747 = vmatpush1.bf16.msra.mxu1 %v5731_v17 }
0x124d   :  { %5856 = vmatprep.subr.bf16.mxu1 %v16618_v18 }
0x124f   :  { %14588 = vmatmul.mubr.msk.bf16.vlgmr.msra.gmra.mrb[68].mxu1 %vm748_vm6, %v19219_v61 }
0x1250   :  { %5857 = vmatpush1.bf16.msra.mxu1 %v16616_v19  ;;  %5888 = vmatprep.mubr.bf16.mxu1 %v17408_v24  ;;  %v6173_v19 = vld [vmem:[%s21713_s7] sm:$0x7] }
0x1251   :  { %5858 = vmatprep.subr.bf16.mxu1 %v16621_v21  ;;  %v14666_v21 = vld [vmem:[%s21713_s7 + $0x4] sm:$0x7] }
0x1254   :  { %5859 = vmatpush1.bf16.msra.mxu1 %v16619_v22  ;;  %v16667_v22 = vld [vmem:[%s21711_s8] sm:$0xff]  }
0x1255   :  { %5860 = vmatprep.subr.bf16.mxu1 %v16624_v23  ;;  %v16668_v23 = vld [vmem:[%s21711_s8 + $0x8] sm:$0xff]  }
0x1258   :  { %5861 = vmatpush1.bf16.msra.mxu1 %v16622_v25  ;;  %v16669_v25 = vld [vmem:[%s21711_s8 + $0x10] sm:$0xff]  }
0x1259   :  { %5862 = vmatprep.subr.bf16.mxu1 %v16627_v26  ;;  %v16670_v26 = vld [vmem:[%s21711_s8 + $0x18] sm:$0xff]  }
0x125c   :  { %5863 = vmatpush1.bf16.msra.mxu1 %v16625_v27  ;;  %v16671_v27 = vld [vmem:[%s21711_s8 + $0x20] sm:$0xff]  }
0x125d   :  { %5864 = vmatprep.subr.bf16.mxu1 %v16630_v28  ;;  %v16672_v28 = vld [vmem:[%s21711_s8 + $0x28] sm:$0xff]  }
0x1260   :  { %5865 = vmatpush1.bf16.msra.mxu1 %v16628_v30  ;;  %v16674_v30 = vld [vmem:[%s21711_s8 + $0x38] sm:$0xff]  }
0x1261   :  { %14612 = vmatprep.subr.msk.bf16.mxu1 %vm752_vm5, %v14611_v31  ;;  %v16675_v31 = vld [vmem:[%s21711_s8 + $0x40] sm:$0xff]  }
0x1264   :  { %5867 = vmatpush1.bf16.msra.mxu1 %v5851_v35 }
0x1265   :  { %5981 = vmatprep.subr.bf16.mxu1 %v16635_v36 }
0x1267   :  { %14613 = vmatmul.mubr.msk.bf16.vlgmr.msra.gmra.mrb[68].mxu1 %vm748_vm6, %v5791_v20 }
0x1268   :  { %5982 = vmatpush1.bf16.msra.mxu1 %v16633_v37  ;;  %6013 = vmatprep.mubr.bf16.mxu1 %v17408_v24 }
0x1269   :  { %5983 = vmatprep.subr.bf16.mxu1 %v16638_v38 }
0x126c   :  { %5984 = vmatpush1.bf16.msra.mxu1 %v16636_v39 }
0x126d   :  { %5985 = vmatprep.subr.bf16.mxu1 %v16641_v40 }
0x1270   :  { %5986 = vmatpush1.bf16.msra.mxu1 %v16639_v41 }
0x1271   :  { %5987 = vmatprep.subr.bf16.mxu1 %v16644_v43 }
0x1274   :  { %5988 = vmatpush1.bf16.msra.mxu1 %v16642_v44 }
0x1275   :  { %5989 = vmatprep.subr.bf16.mxu1 %v16647_v45 }
0x1278   :  { %5990 = vmatpush1.bf16.msra.mxu1 %v16645_v47 }
0x1279   :  { %14637 = vmatprep.subr.msk.bf16.mxu1 %vm752_vm5, %v14636_v48  ;;  %v16678_v48 = vld [vmem:[%s21711_s8 + $0x58] sm:$0xff]  }
0x127c   :  { %5992 = vmatpush1.bf16.msra.mxu1 %v5976_v50  ;;  %v16680_v50 = vld [vmem:[%s21711_s8 + $0x68] sm:$0xff]  }
0x127d   :  { %6104 = vmatprep.subr.bf16.mxu1 %v16652_v51  ;;  %v16681_v51 = vld [vmem:[%s21711_s8 + $0x70] sm:$0xff]  }
0x127f   :  { %14638 = vmatmul.mubr.msk.bf16.vlgmr.msra.gmra.mrb[68].mxu1 %vm748_vm6, %v5916_v7 }
0x1280   :  { %6105 = vmatpush1.bf16.msra.mxu1 %v16650_v52  ;;  %6136 = vmatprep.mubr.bf16.mxu1 %v17408_v24  ;;  %v16682_v52 = vld [vmem:[%s21711_s8 + $0x78] sm:$0xff]  }
0x1281   :  { %6106 = vmatprep.subr.bf16.mxu1 %v16655_v53  ;;  %v16683_v53 = vld [vmem:[%s21711_s8 + $0x80] sm:$0xff]  }
0x1284   :  { %6107 = vmatpush1.bf16.msra.mxu1 %v16653_v54  ;;  %v16684_v54 = vld [vmem:[%s21711_s8 + $0x88] sm:$0xff]  }
0x1285   :  { %6108 = vmatprep.subr.bf16.mxu1 %v16658_v55  ;;  %v16685_v55 = vld [vmem:[%s21711_s8 + $0x90] sm:$0xff]  }
0x1288   :  { %6109 = vmatpush1.bf16.msra.mxu1 %v16656_v56  ;;  %v16686_v56 = vld [vmem:[%s21711_s8 + $0x98] sm:$0xff]  }
0x1289   :  { %6110 = vmatprep.subr.bf16.mxu1 %v16661_v42  ;;  %v16689_v42 = vld [vmem:[%s21705_s1 + $0x4] ss:$8 sps:$4 sm:$0xff]  }
0x128c   :  { %6111 = vmatpush1.bf16.msra.mxu1 %v16659_v57  ;;  %v16687_v57 = vld [vmem:[%s21705_s1] ss:$8 sps:$4 sm:$0xff]  }
0x128d   :  { %6112 = vmatprep.subr.bf16.mxu1 %v16664_v58  ;;  %v16717_v58 = vld [vmem:[%s21706_s0 + $0x84] ss:$8 sps:$4 sm:$0xff]  }
0x1290   :  { %6113 = vmatpush1.bf16.msra.mxu1 %v16662_v60  ;;  %v16690_v60 = vld [vmem:[%s21705_s1 + $0x10] ss:$8 sps:$4 sm:$0xff]  }
0x1291   :  { %14662 = vmatprep.subr.msk.bf16.mxu1 %vm752_vm5, %v14661_v62  ;;  %v16695_v62 = vld [vmem:[%s21705_s1 + $0x24] ss:$8 sps:$4 sm:$0xff]  }
0x1294   :  { %6115 = vmatpush1.bf16.msra.mxu1 %v6099_v0  ;;  %v16698_v0 = vld [vmem:[%s21705_s1 + $0x34] ss:$8 sps:$4 sm:$0xff]  }
0x1297   :  { %14663 = vmatmul.mubr.msk.bf16.vlgmr.msra.gmra.mrb[68].mxu1 %vm748_vm6, %v6039_v2  ;;  %v16696_v2 = vld [vmem:[%s21705_s1 + $0x30] ss:$8 sps:$4 sm:$0xff]  }
0x1298   :  { %6823 = vmatprep.mubr.bf16.mxu1 %v17408_v24 }
0x136a   :  { %v6138_v6 = vpop.f32.mrb[68].mxu1 }
0x136b   :  { %v6163_v7 = vadd.f32 %v6156_v4, %v6138_v6  ;;  %v6140_v1 = vpop.f32.mrb[69].mxu1  ;;  %v16702_v6 = vld [vmem:[%s21705_s1 + $0x50] ss:$8 sps:$4 sm:$0xff]  }
0x136c   :  { %v6164_v8 = vadd.f32 %v6160_v5, %v6140_v1  ;;  %v6142_v9 = vpop.f32.mrb[70].mxu1  ;;  %v16705_v1 = vld [vmem:[%s21705_s1 + $0x60] ss:$8 sps:$4 sm:$0xff]  }
0x136d   :  { %v6165_v10 = vadd.f32 %v6156_v4, %v6142_v9  ;;  %v6144_v11 = vpop.f32.mrb[71].mxu1  ;;  %v6167_v12 = vmax.f32 %v6163_v7, 0.0  ;;  %v16699_v4 = vld [vmem:[%s21705_s1 + $0x40] ss:$8 sps:$4 sm:$0xff]   ;;  %v16707_v7 = vld [vmem:[%s21705_s1 + $0x64] ss:$8 sps:$4 sm:$0xff]  }
0x136e   :  { %v6166_v61 = vadd.f32 %v6160_v5, %v6144_v11  ;;  %v6168_v14 = vmax.f32 %v6164_v8, 0.0  ;;  %v16704_v5 = vld [vmem:[%s21705_s1 + $0x54] ss:$8 sps:$4 sm:$0xff]   ;;  %v16708_v9 = vld [vmem:[%s21705_s1 + $0x70] ss:$8 sps:$4 sm:$0xff]  }
0x136f   :  { %v6169_v13 = vmax.f32 %v6165_v10, 0.0  ;;  %v16710_v8 = vld [vmem:[%s21705_s1 + $0x74] ss:$8 sps:$4 sm:$0xff]   ;;  %v16713_v10 = vld [vmem:[%s21705_s1 + $0x84] ss:$8 sps:$4 sm:$0xff]  }
0x1370   :  { %v6170_v15 = vmax.f32 %v6166_v61, 0.0  ;;  %v16711_v11 = vld [vmem:[%s21705_s1 + $0x80] ss:$8 sps:$4 sm:$0xff]   ;;  %v16716_v61 = vld [vmem:[%s21705_s1 + $0x94] ss:$8 sps:$4 sm:$0xff]  }
0x1371   :  { %v6171_v16 = vpack.c.bf16 %v6169_v13, %v6167_v12  ;;  %v16714_v12 = vld [vmem:[%s21705_s1 + $0x90] ss:$8 sps:$4 sm:$0xff]   ;;  %v16719_v13 = vld [vmem:[%s21706_s0 + $0x80] ss:$8 sps:$4 sm:$0xff]  }
0x1372   :  { %v6172_v17 = vpack.c.bf16 %v6170_v15, %v6168_v14  ;;  %v16720_v14 = vld [vmem:[%s21706_s0 + $0x94] ss:$8 sps:$4 sm:$0x3f]   ;;  %v16722_v15 = vld [vmem:[%s21706_s0 + $0x90] ss:$8 sps:$4 sm:$0x3f]  }
0x1373   :  { %v6178_v18 = vsel %vm1310_vm7, %v6171_v16, 0  ;;  %v16726_v16 = vld [vmem:[%s21708_s4 + $0x54] sm:$0xff]  }
0x1374   :  { %14664 = vmatprep.subr.msk.bf16.mxu0 %vm1310_vm7, %v6172_v17 }
0x1375   :  { %6184 = vmatpush1.bf16.msra.mxu0 %v6178_v18 }
0x1376   :  { %14667 = vmatprep.subr.msk.bf16.mxu0 %vm1310_vm7, %v6172_v17  ;;  %v16728_v17 = vld [vmem:[%s21708_s4 + $0x5c] sm:$0xff]  }
0x1378   :  { %14665 = vmatmul.mubr.msk.bf16.vlgmr.msra.gmra.mrb[88].mxu0 %vm1306_vm8, %v6173_v19  ;;  %v16732_v19 = vld [vmem:[%s21708_s4 + $0x6c] sm:$0xff]  }
0x1379   :  { %6229 = vmatpush1.bf16.msra.mxu0 %v6178_v18  ;;  %6260 = vmatprep.mubr.bf16.mxu0 %v17408_v24  ;;  %v16730_v18 = vld [vmem:[%s21708_s4 + $0x64] sm:$0xff]  }
0x137a   :  { %6356 = vmatprep.subr.bf16.mxu0 %v17408_v24 }
0x1380   :  { %14668 = vmatmul.mubr.msk.bf16.vlgmr.msra.gmra.mrb[92].mxu0 %vm1306_vm8, %v14666_v21  ;;  %v16734_v21 = vld [vmem:[%s21708_s4 + $0x74] sm:$0xff]  }
0x1381   :  { %6357 = vmatpush1.bf16.msra.mxu0 %v16667_v22 }
0x1382   :  { %6358 = vmatprep.subr.bf16.mxu0 %v17408_v24 }
0x1385   :  { %6359 = vmatpush1.bf16.msra.mxu0 %v16668_v23 }
0x1386   :  { %6360 = vmatprep.subr.bf16.mxu0 %v17408_v24 }
0x1389   :  { %6361 = vmatpush1.bf16.msra.mxu0 %v16669_v25 }
0x138a   :  { %6362 = vmatprep.subr.bf16.mxu0 %v17408_v24 }
0x138d   :  { %6363 = vmatpush1.bf16.msra.mxu0 %v16670_v26 }
0x138e   :  { %6364 = vmatprep.subr.bf16.mxu0 %v17408_v24 }
0x1391   :  { %6365 = vmatpush1.bf16.msra.mxu0 %v16671_v27  ;;  %v16736_v27 = vld [vmem:[%s21708_s4 + $0x7c] sm:$0xff]  }
0x1392   :  { %6366 = vmatprep.subr.bf16.mxu0 %v17408_v24 }
0x1395   :  { %6367 = vmatpush1.bf16.msra.mxu0 %v16672_v28  ;;  %v16738_v28 = vld [vmem:[%s21708_s4 + $0x84] sm:$0xff]  }
0x1396   :  { %6368 = vmatprep.subr.bf16.mxu0 %v17408_v24 }
0x1399   :  { %6369 = vmatpush1.bf16.msra.mxu0 %v16673_v29 }
0x139a   :  { %6370 = vmatprep.subr.bf16.mxu0 %v17408_v24 }
0x139d   :  { %6371 = vmatpush1.bf16.msra.mxu0 %v16674_v30 }
0x139e   :  { %6372 = vmatprep.subr.bf16.mxu0 %v17408_v24 }
0x13a1   :  { %6373 = vmatpush1.bf16.msra.mxu0 %v16675_v31 }
0x13a2   :  { %6374 = vmatprep.subr.bf16.mxu0 %v17408_v24 }
0x13a5   :  { %6375 = vmatpush1.bf16.msra.mxu0 %v16676_v32  ;;  %v16741_v32 = vld [vmem:[%s21708_s4 + $0x40] sm:$0xff]  }
0x13a6   :  { %6476 = vmatprep.subr.bf16.mxu0 %v17408_v24 }
0x144b   :  { %v6217_v35 = vpop.f32.mrb[88].mxu0 }
0x144c   :  { %v6219_v36 = vpop.f32.mrb[89].mxu0 }
0x144d   :  { %v6221_v37 = vpop.f32.mrb[90].mxu0 }
0x144e   :  { %v6222_v20 = vpop.f32.mrb[91].mxu0 }
0x144f   :  { %v6540_v20 = vld [vmem:[#allocation2 + $0xc] sm:$0x2] }
0x1453   :  { %v6262_v38 = vpop.f32.mrb[92].mxu0 }
0x1454   :  { %v6269_v39 = vmax.f32 %v6217_v35, %v6262_v38  ;;  %v6264_v40 = vpop.f32.mrb[93].mxu0 }
0x1455   :  { %v6270_v41 = vmax.f32 %v6219_v36, %v6264_v40  ;;  %v6266_v43 = vpop.f32.mrb[94].mxu0 }
0x1456   :  { %v6267_v44 = vpop.f32.mrb[95].mxu0  ;;  %v6271_v47 = vpack.c.bf16 %v6269_v39, %v6269_v39  ;;  %v6537_v43 = vld [vmem:[#allocation2 + $0x8] sm:$0x2] }
0x1457   :  { %v6272_v45 = vpack.c.bf16 %v6270_v41, %v6270_v41  ;;  %v6533_v41 = vld [vmem:[#allocation2 + $0x4] sm:$0x2] }
0x1459   :  { %14679 = vmatprep.mubr.msk.bf16.mxu0 %vm205_vm0, %v6272_v45 }
0x145a   :  { %6389 = vmatmul.mubr.bf16.vlgmr.msra.gmra.mrb[96].mxu0 %v6271_v47 }
0x145b   :  { %6477 = vmatpush1.bf16.msra.mxu0 %v16677_v46  ;;  %14710 = vmatprep.mubr.msk.bf16.mxu0 %vm205_vm0, %v6272_v45 }
0x145c   :  { %6478 = vmatprep.subr.bf16.mxu0 %v17408_v24 }
0x145f   :  { %6479 = vmatpush1.bf16.msra.mxu0 %v16678_v48  ;;  %v6528_v48 = vld [vmem:[#allocation2] sm:$0x2] }
0x1460   :  { %6480 = vmatprep.subr.bf16.mxu0 %v17408_v24 }
0x1463   :  { %6481 = vmatpush1.bf16.msra.mxu0 %v16679_v49  ;;  %v6546_v49 = vld [vmem:[#allocation2 + $0x10] sm:$0x2] }
0x1464   :  { %6482 = vmatprep.subr.bf16.mxu0 %v17408_v24 }
0x1467   :  { %6483 = vmatpush1.bf16.msra.mxu0 %v16680_v50 }
0x1468   :  { %6484 = vmatprep.subr.bf16.mxu0 %v17408_v24 }
0x146b   :  { %6485 = vmatpush1.bf16.msra.mxu0 %v16681_v51 }
0x146c   :  { %6486 = vmatprep.subr.bf16.mxu0 %v17408_v24 }
0x146f   :  { %6487 = vmatpush1.bf16.msra.mxu0 %v16682_v52  ;;  %v6574_v52 = vld [vmem:[%s21709_s2] sm:$0x3] }
0x1470   :  { %6488 = vmatprep.subr.bf16.mxu0 %v17408_v24 }
0x1473   :  { %6489 = vmatpush1.bf16.msra.mxu0 %v16683_v53  ;;  %v6579_v53 = vrot.slane %v6574_v52, %v17590_v33 }
0x1474   :  { %6490 = vmatprep.subr.bf16.mxu0 %v17408_v24 }
0x1477   :  { %6491 = vmatpush1.bf16.msra.mxu0 %v16684_v54  ;;  %v6583_v54 = vrot.slane %v6574_v52, %v17592_v34 }
0x1478   :  { %6492 = vmatprep.subr.bf16.mxu0 %v17408_v24 }
0x147b   :  { %6493 = vmatpush1.bf16.msra.mxu0 %v16685_v55 }
0x147c   :  { %6494 = vmatprep.subr.bf16.mxu0 %v17408_v24 }
0x147f   :  { %6495 = vmatpush1.bf16.msra.mxu0 %v16686_v56 }
0x1480   :  { %6710 = vmatprep.subr.bf16.mxu0 %v16689_v42 }
0x1482   :  { %6509 = vmatmul.mubr.bf16.vlgmr.msra.gmra.mrb[100].mxu0 %v6271_v47 }
0x1483   :  { %6711 = vmatpush1.bf16.msra.mxu0 %v16687_v57  ;;  %14741 = vmatprep.mubr.msk.bf16.mxu0 %vm205_vm0, %v16717_v58 }
0x1484   :  { %6712 = vmatprep.subr.bf16.mxu0 %v16692_v59 }
0x1487   :  { %6713 = vmatpush1.bf16.msra.mxu0 %v16690_v60 }
0x1488   :  { %6714 = vmatprep.subr.bf16.mxu0 %v16695_v62 }
0x148b   :  { %6715 = vmatpush1.bf16.msra.mxu0 %v16693_v63 }
0x148c   :  { %6716 = vmatprep.subr.bf16.mxu0 %v16698_v0 }
0x148f   :  { %6717 = vmatpush1.bf16.msra.mxu0 %v16696_v2 }
0x1490   :  { %6718 = vmatprep.subr.bf16.mxu0 %v16701_v3 }
0x1493   :  { %6719 = vmatpush1.bf16.msra.mxu0 %v16699_v4 }
0x1494   :  { %6720 = vmatprep.subr.bf16.mxu0 %v16704_v5 }
0x1497   :  { %6721 = vmatpush1.bf16.msra.mxu0 %v16702_v6 }
0x1498   :  { %6722 = vmatprep.subr.bf16.mxu0 %v16707_v7 }
0x149b   :  { %6723 = vmatpush1.bf16.msra.mxu0 %v16705_v1 }
0x149c   :  { %6724 = vmatprep.subr.bf16.mxu0 %v16710_v8 }
0x149f   :  { %6725 = vmatpush1.bf16.msra.mxu0 %v16708_v9 }
0x14a0   :  { %6726 = vmatprep.subr.bf16.mxu0 %v16713_v10 }
0x14a3   :  { %6727 = vmatpush1.bf16.msra.mxu0 %v16711_v11 }
0x14a4   :  { %6728 = vmatprep.subr.bf16.mxu0 %v16716_v61 }
0x14a7   :  { %6729 = vmatpush1.bf16.msra.mxu0 %v16714_v12 }
0x14a8   :  { %7111 = vmatprep.subr.bf16.mxu0 %v17408_v24 }
0x14aa   :  { %6743 = vmatmul.mubr.bf16.vlgmr.msra.gmra.mrb[104].mxu0 %v16719_v13 }
0x14ab   :  { %14742 = vmatprep.mubr.msk.bf16.mxu0 %vm205_vm0, %v16720_v14  ;;  %7112 = vmatpush1.bf16.msra.mxu0 %v16726_v16 }
0x14ac   :  { %7113 = vmatprep.subr.bf16.mxu0 %v17408_v24 }
0x14af   :  { %7114 = vmatpush1.bf16.msra.mxu0 %v16728_v17 }
0x14b0   :  { %7115 = vmatprep.subr.bf16.mxu0 %v17408_v24 }
0x14b2   :  { %6753 = vmatmul.mubr.bf16.gmra.mrb[108].mxu0 %v16722_v15 }
0x14b3   :  { %7116 = vmatpush1.bf16.msra.mxu0 %v16730_v18 }
0x14b4   :  { %7117 = vmatprep.subr.bf16.mxu0 %v17408_v24 }
0x14b7   :  { %7118 = vmatpush1.bf16.msra.mxu0 %v16732_v19  ;;  %v16723_v19 = vld [vmem:[%s21707_s3] sm:$0x7f]  }
0x14b8   :  { %7119 = vmatprep.subr.bf16.mxu0 %v17408_v24 }
0x14bb   :  { %7120 = vmatpush1.bf16.msra.mxu0 %v16734_v21  ;;  %v16724_v21 = vld [vmem:[%s21707_s3 + $0x8] sm:$0x7f]  }
0x14bc   :  { %7121 = vmatprep.subr.bf16.mxu0 %v17408_v24 }
0x14bf   :  { %7122 = vmatpush1.bf16.msra.mxu0 %v16736_v27  ;;  %v16733_v27 = vld [vmem:[%s21708_s4 + $0x20] sm:$0xff]  }
0x14c0   :  { %7123 = vmatprep.subr.bf16.mxu0 %v17408_v24 }
0x14c3   :  { %7124 = vmatpush1.bf16.msra.mxu0 %v16738_v28  ;;  %v16735_v28 = vld [vmem:[%s21708_s4 + $0x28] sm:$0xff]  }
0x14c4   :  { %7125 = vmatprep.subr.bf16.mxu0 %v17408_v24 }
0x152d   :  { %v6390_v22 = vpop.f32.mrb[96].mxu0 }
0x152e   :  { %v6392_v23 = vpop.f32.mrb[97].mxu0 }
0x152f   :  { %v6393_v25 = vpop.f32.mrb[98].mxu0  ;;  %v16727_v23 = vld [vmem:[%s21708_s4 + $0x8] sm:$0xff]  }
0x1530   :  { %v6394_v26 = vpop.f32.mrb[99].mxu0  ;;  %v16729_v25 = vld [vmem:[%s21708_s4 + $0x10] sm:$0xff]  }
0x1531   :  { %v16731_v26 = vld [vmem:[%s21708_s4 + $0x18] sm:$0xff]  }
0x1555   :  { %v6510_v29 = vpop.f32.mrb[100].mxu0 }
0x1556   :  { %v6516_v30 = vmax.f32 %v6390_v22, %v6510_v29  ;;  %v6512_v31 = vpop.f32.mrb[101].mxu0  ;;  %v16725_v22 = vld [vmem:[%s21708_s4] sm:$0xff]   ;;  %v16737_v29 = vld [vmem:[%s21708_s4 + $0x30] sm:$0xff]  }
0x1557   :  { %v6513_v35 = vpop.f32.mrb[102].mxu0  ;;  %v16740_v31 = vld [vmem:[%s21708_s4 + $0x8c] sm:$0xff]  }
0x1558   :  { %v6517_v36 = vpack.c.bf16 %v6516_v30, %v6516_v30  ;;  %v6514_v37 = vpop.f32.mrb[103].mxu0  ;;  %v16739_v30 = vld [vmem:[%s21708_s4 + $0x38] sm:$0xff]   ;;  %7126 = vmatpush1.bf16.msra.mxu0 %v16740_v31 }
0x1559   :  { %7127 = vmatprep.subr.bf16.mxu0 %v17408_v24  ;;  %v16742_v35 = vld [vmem:[%s21708_s4 + $0x94] sm:$0xff]   ;;  %v16744_v37 = vld [vmem:[%s21708_s4 + $0x9c] sm:$0xff]  }
0x155a   :  { %v6522_v38 = vshll.u32 %v6517_v36, 16  ;;  %v6531_v39 = vrot.slane %v6517_v36, 7  ;;  %v6541_v40 = vsel %vm19585_vm11, %v6517_v36, %v6540_v20  ;;  %v16743_v36 = vld [vmem:[%s21708_s4 + $0x48] sm:$0xff]   ;;  %v16745_v20 = vld [vmem:[%s21708_s4 + $0x50] ss:$0 sps:$4 sm:$0xff]  }
0x155b   :  { %6542 = vst [vmem:[#allocation2 + $0xc] sm:$0x2] %v6541_v40  ;;  %v16775_v31 = vld [vmem:[%s21710_s5 + $0x34] ss:$8 sps:$4 sm:$0xff]  }
0x155c   :  { %v6524_v44 = vrot.slane %v6522_v38, 7  ;;  %v6534_v45 = vsel %vm19585_vm11, %v6531_v39, %v6533_v41  ;;  %v6538_v46 = vsel %vm19585_vm11, %v6522_v38, %v6537_v43  ;;  %v14712_v47 = vrot.slane %v6522_v38, 9  ;;  %7128 = vmatpush1.bf16.msra.mxu0 %v16742_v35  ;;  %v16746_v38 = vld [vmem:[%s21708_s4 + $0xa4] ss:$0 sps:$4 sm:$0xff]  }
0x155d   :  { %6535 = vst [vmem:[#allocation2 + $0x4] sm:$0x2] %v6534_v45  ;;  %6539 = vst [vmem:[#allocation2 + $0x8] sm:$0x2] %v6538_v46  ;;  %7129 = vmatprep.subr.bf16.mxu0 %v17408_v24  ;;  %v6981_v39 = vsel %vm486_vm3, %v16745_v20, 0  ;;  %v7109_v40 = vsel %vm486_vm3, %v16746_v38, 0 }
0x155e   :  { %v6529_v50 = vsel %vm19585_vm11, %v6524_v44, %v6528_v48  ;;  %v6547_v51 = vsel %vm19585_vm11, %v14712_v47, %v6546_v49  ;;  %v16749_v41 = vld [vmem:[%s21710_s5 + $0x5c] ss:$8 sps:$4 sm:$0xff]   ;;  %vm11380_vm11 = vsmask.f32 3328 }
0x155f   :  { %6530 = vst [vmem:[#allocation2] sm:$0x2] %v6529_v50  ;;  %6548 = vst [vmem:[#allocation2 + $0x10] sm:$0x2] %v6547_v51  ;;  %v16778_v35 = vld [vmem:[%s21710_s5 + $0x44] ss:$8 sps:$4 sm:$0xff]  }
0x1560   :  { %7130 = vmatpush1.bf16.msra.mxu0 %v16744_v37  ;;  %v16776_v37 = vld [vmem:[%s21710_s5 + $0x40] ss:$8 sps:$4 sm:$0xff]   ;;  %vm21085_vm12 = vmand %vm11379_vm10, %vm11380_vm11 }
0x1561   :  { %7131 = vmatprep.subr.bf16.mxu0 %v17408_v24 }
0x1564   :  { %7132 = vmatpush1.bf16.msra.mxu0 %v7109_v40  ;;  %v16783_v40 = vld [vmem:[%s21710_s5 + $0xb4] ss:$8 sps:$4 sm:$0xff]  }
0x157d   :  { %v6744_v55 = vpop.f32.mrb[104].mxu0 }
0x157e   :  { %v6745_v56 = vadd.f32 %v6744_v55, %v6579_v53  ;;  %v6746_v42 = vpop.f32.mrb[105].mxu0 }
0x157f   :  { %v6747_v57 = vadd.f32 %v6746_v42, %v6583_v54  ;;  %v6748_v58 = vpop.f32.mrb[106].mxu0  ;;  %v16747_v42 = vld [vmem:[%s21710_s5 + $0x58] ss:$8 sps:$4 sm:$0xff]  }
0x1580   :  { %v6749_v59 = vadd.f32 %v6748_v58, %v6579_v53  ;;  %v6750_v60 = vpop.f32.mrb[107].mxu0  ;;  %v6763_v63 = vmax.f32 %v6745_v56, 0.0  ;;  %v16750_v58 = vld [vmem:[%s21710_s5 + $0x68] ss:$8 sps:$4 sm:$0xff]  }
0x1581   :  { %v6751_v62 = vadd.f32 %v6750_v60, %v6583_v54  ;;  %v6764_v2 = vmax.f32 %v6747_v57, 0.0  ;;  %v16752_v57 = vld [vmem:[%s21710_s5 + $0x6c] ss:$8 sps:$4 sm:$0xff]   ;;  %v16753_v60 = vld [vmem:[%s21710_s5 + $0x78] ss:$8 sps:$4 sm:$0xff]  }
0x1582   :  { %v6765_v0 = vmax.f32 %v6749_v59, 0.0  ;;  %v16755_v59 = vld [vmem:[%s21710_s5 + $0x7c] ss:$8 sps:$4 sm:$0xff]  }
0x1583   :  { %v6766_v3 = vmax.f32 %v6751_v62, 0.0  ;;  %v16758_v62 = vld [vmem:[%s21710_s5 + $0x8c] ss:$8 sps:$4 sm:$0xff]  }
0x1584   :  { %v6771_v4 = vpack.c.bf16 %v6765_v0, %v6763_v63  ;;  %v16756_v63 = vld [vmem:[%s21710_s5 + $0x88] ss:$8 sps:$4 sm:$0xff]   ;;  %v16761_v0 = vld [vmem:[%s21710_s5 + $0x9c] ss:$8 sps:$4 sm:$0xff]  }
0x1585   :  { %v6772_v5 = vpack.c.bf16 %v6766_v3, %v6764_v2  ;;  %v6754_v6 = vpop.f32.mrb[108].mxu0  ;;  %v16759_v2 = vld [vmem:[%s21710_s5 + $0x98] ss:$8 sps:$4 sm:$0xff]   ;;  %v14806_v3 = vld [vmem:[%s21710_s5 + $0xa8] sm:$0x33] }
0x1586   :  { %v6755_v7 = vadd.f32 %v6754_v6, %v6579_v53  ;;  %v6756_v1 = vpop.f32.mrb[109].mxu0  ;;  %v16766_v6 = vld [vmem:[%s21710_s5 + $0x4] ss:$8 sps:$4 sm:$0xff]  }
0x1587   :  { %v6757_v8 = vadd.f32 %v6756_v1, %v6583_v54  ;;  %v6758_v9 = vpop.f32.mrb[110].mxu0  ;;  %6791 = vmatprep.subr.bf16.mxu1 %v6772_v5 }
0x1588   :  { %v6759_v10 = vadd.f32 %v6758_v9, %v6579_v53  ;;  %v6760_v11 = vpop.f32.mrb[111].mxu0  ;;  %6792 = vmatpush1.bf16.msra.mxu1 %v6771_v4  ;;  %v6767_v12 = vmax.f32 %v6755_v7, 0.0 }
0x1589   :  { %v6761_v61 = vadd.f32 %v6760_v11, %v6583_v54  ;;  %v6768_v14 = vmax.f32 %v6757_v8, 0.0 }
0x158a   :  { %v6769_v13 = vmax.f32 %v6759_v10, 0.0 }
0x158b   :  { %v6770_v15 = vmax.f32 %v6761_v61, 0.0 }
0x158c   :  { %v6773_v16 = vpack.c.bf16 %v6769_v13, %v6767_v12 }
0x158d   :  { %v6774_v17 = vpack.c.bf16 %v6770_v15, %v6768_v14 }
0x158e   :  { %v6786_v18 = vsel %vm288_vm1, %v6773_v16, 0 }
0x158f   :  { %14744 = vmatprep.subr.msk.bf16.mxu1 %vm288_vm1, %v6774_v17 }
0x1590   :  { %6794 = vmatpush1.bf16.msra.mxu1 %v6786_v18 }
0x1591   :  { %6844 = vmatprep.subr.bf16.mxu1 %v6772_v5  ;;  %v14817_v5 = vcombine.low %v14806_v3, %v14806_v3 }
0x1593   :  { %14745 = vmatmul.mubr.msk.bf16.vlgmr.msra.gmra.mrb[72].mxu1 %vm284_vm2, %v16723_v19  ;;  %v7243_v7 = vsel %vm752_vm5, %v14817_v5, 0 }
0x1594   :  { %6845 = vmatpush1.bf16.msra.mxu1 %v6771_v4  ;;  %6876 = vmatprep.mubr.bf16.mxu1 %v17408_v24  ;;  %v14818_v4 = vcombine.high %v14806_v3, %v14806_v3  ;;  %v16810_v3 = vld [vmem:[%s21710_s5 + $0x148] ss:$8 sps:$4 sm:$0xff]  }
0x1595   :  { %14749 = vmatprep.subr.msk.bf16.mxu1 %vm288_vm1, %v6774_v17 }
0x1598   :  { %6847 = vmatpush1.bf16.msra.mxu1 %v6786_v18 }
0x1599   :  { %6983 = vmatprep.subr.bf16.mxu1 %v17408_v24 }
0x159b   :  { %14750 = vmatmul.mubr.msk.bf16.vlgmr.msra.gmra.mrb[76].mxu1 %vm284_vm2, %v16724_v21 }
0x159c   :  { %6984 = vmatpush1.bf16.msra.mxu1 %v16725_v22 }
0x159d   :  { %6985 = vmatprep.subr.bf16.mxu1 %v17408_v24 }
0x15a0   :  { %6986 = vmatpush1.bf16.msra.mxu1 %v16727_v23  ;;  %v16764_v23 = vld [vmem:[%s21710_s5] ss:$8 sps:$4 sm:$0xff]  }
0x15a1   :  { %6987 = vmatprep.subr.bf16.mxu1 %v17408_v24 }
0x15a4   :  { %6988 = vmatpush1.bf16.msra.mxu1 %v16729_v25 }
0x15a5   :  { %6989 = vmatprep.subr.bf16.mxu1 %v17408_v24 }
0x15a8   :  { %6990 = vmatpush1.bf16.msra.mxu1 %v16731_v26  ;;  %v16769_v26 = vld [vmem:[%s21710_s5 + $0x14] ss:$8 sps:$4 sm:$0xff]  }
0x15a9   :  { %6991 = vmatprep.subr.bf16.mxu1 %v17408_v24 }
0x15ac   :  { %6992 = vmatpush1.bf16.msra.mxu1 %v16733_v27 }
0x15ad   :  { %6993 = vmatprep.subr.bf16.mxu1 %v17408_v24 }
0x15b0   :  { %6994 = vmatpush1.bf16.msra.mxu1 %v16735_v28  ;;  %v16767_v28 = vld [vmem:[%s21710_s5 + $0x10] ss:$8 sps:$4 sm:$0xff]  }
0x15b1   :  { %6995 = vmatprep.subr.bf16.mxu1 %v17408_v24 }
0x15b4   :  { %6996 = vmatpush1.bf16.msra.mxu1 %v16737_v29  ;;  %v16772_v29 = vld [vmem:[%s21710_s5 + $0x24] ss:$8 sps:$4 sm:$0xff]  }
0x15b5   :  { %6997 = vmatprep.subr.bf16.mxu1 %v17408_v24 }
0x15b8   :  { %6998 = vmatpush1.bf16.msra.mxu1 %v16739_v30  ;;  %v16770_v30 = vld [vmem:[%s21710_s5 + $0x20] ss:$8 sps:$4 sm:$0xff]  }
0x15b9   :  { %6999 = vmatprep.subr.bf16.mxu1 %v17408_v24 }
0x15bc   :  { %7000 = vmatpush1.bf16.msra.mxu1 %v16741_v32  ;;  %v16773_v32 = vld [vmem:[%s21710_s5 + $0x30] ss:$8 sps:$4 sm:$0xff]  }
0x15bd   :  { %7001 = vmatprep.subr.bf16.mxu1 %v17408_v24 }
0x15c0   :  { %7002 = vmatpush1.bf16.msra.mxu1 %v16743_v36  ;;  %v7165_v36 = vld [vmem:[%s21710_s5 + $0x50] sm:$0x33] }
0x15c1   :  { %7003 = vmatprep.subr.bf16.mxu1 %v17408_v24  ;;  %v14832_v20 = vcombine.high %v7165_v36, %v7165_v36  ;;  %v14831_v38 = vcombine.low %v7165_v36, %v7165_v36 }
0x15c4   :  { %7004 = vmatpush1.bf16.msra.mxu1 %v6981_v39  ;;  %v7349_v39 = vsel %vm752_vm5, %v14831_v38, 0 }
0x15c5   :  { %7248 = vmatprep.subr.bf16.mxu1 %v16749_v41  ;;  %v16781_v41 = vld [vmem:[%s21710_s5 + $0xb0] ss:$8 sps:$4 sm:$0xff]  }
0x1666   :  { %v6825_v43 = vpop.f32.mrb[72].mxu1 }
0x1667   :  { %v6827_v44 = vpop.f32.mrb[73].mxu1 }
0x1668   :  { %v6829_v45 = vpop.f32.mrb[74].mxu1 }
0x1669   :  { %v6831_v46 = vpop.f32.mrb[75].mxu1 }
0x166e   :  { %v6878_v47 = vpop.f32.mrb[76].mxu1 }
0x166f   :  { %v6887_v48 = vmax.f32 %v6825_v43, %v6878_v47  ;;  %v6880_v49 = vpop.f32.mrb[77].mxu1  ;;  %v16786_v43 = vld [vmem:[%s21710_s5 + $0xc4] ss:$8 sps:$4 sm:$0xff]  }
0x1670   :  { %v6888_v50 = vmax.f32 %v6827_v44, %v6880_v49  ;;  %v6882_v51 = vpop.f32.mrb[78].mxu1  ;;  %v16784_v44 = vld [vmem:[%s21710_s5 + $0xc0] ss:$8 sps:$4 sm:$0xff]   ;;  %v16792_v47 = vld [vmem:[%s21710_s5 + $0xe4] ss:$8 sps:$4 sm:$0xff]  }
0x1671   :  { %v6889_v52 = vmax.f32 %v6829_v45, %v6882_v51  ;;  %v6884_v53 = vpop.f32.mrb[79].mxu1  ;;  %v16789_v45 = vld [vmem:[%s21710_s5 + $0xd4] ss:$8 sps:$4 sm:$0xff]   ;;  %v16793_v51 = vld [vmem:[%s21710_s5 + $0xf0] ss:$8 sps:$4 sm:$0xff]  }
0x1672   :  { %v6890_v54 = vmax.f32 %v6831_v46, %v6884_v53  ;;  %v16787_v46 = vld [vmem:[%s21710_s5 + $0xd0] ss:$8 sps:$4 sm:$0xff]   ;;  %v16795_v49 = vld [vmem:[%s21710_s5 + $0xf4] ss:$8 sps:$4 sm:$0xff]  }
0x1673   :  { %v6891_v55 = vpack.c.bf16 %v6889_v52, %v6887_v48  ;;  %v16790_v48 = vld [vmem:[%s21710_s5 + $0xe0] ss:$8 sps:$4 sm:$0xff]  }
0x1674   :  { %v6892_v56 = vpack.c.bf16 %v6890_v54, %v6888_v50  ;;  %v14845_v50 = vld [vmem:[%s21710_s5 + $0x100] sm:$0x33] }
0x1675   :  { %v14857_v52 = vcombine.high %v14845_v50, %v14845_v50  ;;  %v14856_v53 = vcombine.low %v14845_v50, %v14845_v50  ;;  %v16838_v50 = vld [vmem:[%s21711_s8 + $0x30] sm:$0xff]  }
0x1676   :  { %14762 = vmatprep.mubr.msk.bf16.mxu1 %vm482_vm4, %v6892_v56  ;;  %14795 = vmatprep.mubr.msk.bf16.mxu0 %vm482_vm4, %v6892_v56  ;;  %v16798_v56 = vld [vmem:[%s21710_s5 + $0x108] ss:$8 sps:$4 sm:$0xff]  }
0x1677   :  { %7016 = vmatmul.mubr.bf16.vlgmr.msra.gmra.mrb[80].mxu1 %v6891_v55  ;;  %7144 = vmatmul.mubr.bf16.vlgmr.msra.gmra.mrb[112].mxu0 %v6891_v55  ;;  %v7469_v54 = vsel %vm752_vm5, %v14856_v53, 0  ;;  %v16800_v55 = vld [vmem:[%s21710_s5 + $0x10c] ss:$8 sps:$4 sm:$0xff]  }
0x1678   :  { %7249 = vmatpush1.bf16.msra.mxu1 %v16747_v42  ;;  %7280 = vmatprep.mubr.bf16.mxu1 %v17408_v24  ;;  %v16841_v53 = vld [vmem:[%s21711_s8 + $0x48] sm:$0xff]  }
0x1679   :  { %7250 = vmatprep.subr.bf16.mxu1 %v16752_v57  ;;  %7833 = vmatprep.mubr.bf16.mxu0 %v17408_v24  ;;  %v16803_v57 = vld [vmem:[%s21710_s5 + $0x11c] ss:$8 sps:$4 sm:$0xff]  }
0x167c   :  { %7251 = vmatpush1.bf16.msra.mxu1 %v16750_v58  ;;  %v16801_v58 = vld [vmem:[%s21710_s5 + $0x118] ss:$8 sps:$4 sm:$0xff]  }
0x167d   :  { %7252 = vmatprep.subr.bf16.mxu1 %v16755_v59  ;;  %v16806_v59 = vld [vmem:[%s21710_s5 + $0x12c] ss:$8 sps:$4 sm:$0xff]  }
0x1680   :  { %7253 = vmatpush1.bf16.msra.mxu1 %v16753_v60  ;;  %v16804_v60 = vld [vmem:[%s21710_s5 + $0x128] ss:$8 sps:$4 sm:$0xff]  }
0x1681   :  { %7254 = vmatprep.subr.bf16.mxu1 %v16758_v62  ;;  %v16809_v62 = vld [vmem:[%s21710_s5 + $0x13c] ss:$8 sps:$4 sm:$0xff]  }
0x1684   :  { %7255 = vmatpush1.bf16.msra.mxu1 %v16756_v63  ;;  %v16807_v63 = vld [vmem:[%s21710_s5 + $0x138] ss:$8 sps:$4 sm:$0xff]  }
0x1685   :  { %7256 = vmatprep.subr.bf16.mxu1 %v16761_v0  ;;  %v16812_v0 = vld [vmem:[%s21710_s5 + $0x14c] ss:$8 sps:$4 sm:$0xff]  }
0x1688   :  { %7257 = vmatpush1.bf16.msra.mxu1 %v16759_v2  ;;  %v14870_v2 = vld [vmem:[%s21710_s5 + $0x158] sm:$0x33] }
0x1689   :  { %14819 = vmatprep.subr.msk.bf16.mxu1 %vm752_vm5, %v14818_v4  ;;  %v14882_v4 = vcombine.high %v14870_v2, %v14870_v2  ;;  %v14881_v5 = vcombine.low %v14870_v2, %v14870_v2  ;;  %v16842_v2 = vld [vmem:[%s21711_s8 + $0x50] sm:$0xff]  }
0x168c   :  { %7259 = vmatpush1.bf16.msra.mxu1 %v7243_v7  ;;  %v16817_v7 = vld [vmem:[%s21710_s5 + $0x164] ss:$8 sps:$4 sm:$0xff]  }
0x168d   :  { %7354 = vmatprep.subr.bf16.mxu1 %v16766_v6  ;;  %v7594_v6 = vsel %vm752_vm5, %v14881_v5, 0  ;;  %v16844_v5 = vld [vmem:[%s21711_s8 + $0x60] sm:$0xff]  }
0x174a   :  { %v7017_v1 = vpop.f32.mrb[80].mxu1  ;;  %v7145_v8 = vpop.f32.mrb[112].mxu0 }
0x174b   :  { %v7152_v9 = vmax.f32 %v7017_v1, %v7145_v8  ;;  %v7019_v10 = vpop.f32.mrb[81].mxu1  ;;  %v7147_v11 = vpop.f32.mrb[113].mxu0  ;;  %v16815_v1 = vld [vmem:[%s21710_s5 + $0x160] ss:$8 sps:$4 sm:$0xff]   ;;  %v16820_v8 = vld [vmem:[%s21710_s5 + $0x174] ss:$8 sps:$4 sm:$0xff]  }
0x174c   :  { %v7020_v61 = vpop.f32.mrb[82].mxu1  ;;  %v7148_v12 = vpop.f32.mrb[114].mxu0  ;;  %v16823_v10 = vld [vmem:[%s21710_s5 + $0x184] ss:$8 sps:$4 sm:$0xff]   ;;  %v16821_v11 = vld [vmem:[%s21710_s5 + $0x180] ss:$8 sps:$4 sm:$0xff]  }
0x174d   :  { %v7153_v13 = vmax.f32 %v7020_v61, %v7148_v12  ;;  %v7022_v14 = vpop.f32.mrb[83].mxu1  ;;  %v7150_v15 = vpop.f32.mrb[115].mxu0  ;;  %v16826_v61 = vld [vmem:[%s21710_s5 + $0x194] ss:$8 sps:$4 sm:$0xff]   ;;  %v16824_v12 = vld [vmem:[%s21710_s5 + $0x190] ss:$8 sps:$4 sm:$0xff]  }
0x174e   :  { %v14895_v14 = vld [vmem:[%s21710_s5 + $0x1b0] sm:$0x33]  ;;  %v16827_v15 = vld [vmem:[%s21710_s5 + $0x1a0] ss:$8 sps:$4 sm:$0xff]  }
0x174f   :  { %v19719_v16 = vpack.c.bf16 %v7153_v13, %v7152_v9  ;;  %v16818_v9 = vld [vmem:[%s21710_s5 + $0x170] ss:$8 sps:$4 sm:$0xff]   ;;  %v16829_v13 = vld [vmem:[%s21710_s5 + $0x1a4] ss:$8 sps:$4 sm:$0xff]  }
0x1751   :  { %v7180_v17 = vshll.u32 %v19719_v16, 16  ;;  %v7178_v18 = vshrl.u32 %v19719_v16, 16  ;;  %v7409_v42 = vrot.slane %v19719_v16, 1 }
0x1753   :  { %v7182_v19 = vrot.slane %v7180_v17, 1  ;;  %v19723_v21 = vrot.slane %v7178_v18, 1  ;;  %v19725_v22 = vrot.slane %v7180_v17, 2  ;;  %v14907_v17 = vcombine.high %v14895_v14, %v14895_v14 }
0x1755   :  { %v7183_v25 = vor.u32 %v7182_v19, %v7178_v18  ;;  %v7534_v27 = vor.u32 %v19725_v22, %v19723_v21  ;;  %v14906_v18 = vcombine.low %v14895_v14, %v14895_v14  ;;  %v7657_v21 = vrot.slane %v19719_v16, 2  ;;  %v7769_v22 = vld [vmem:[%s21712_s6] sm:$0x3]  ;;  %v16857_v14 = vld [vmem:[%s21705_s1 + $0x14] ss:$8 sps:$4 sm:$0xff]  }
0x1757   :  { %14820 = vmatmul.mubr.msk.bf16.vlgmr.msra.gmra.mrb[84].mxu1 %vm748_vm6, %v7183_v25  ;;  %v7717_v19 = vsel %vm752_vm5, %v14906_v18, 0  ;;  %v7778_v25 = vrot.slane %v7769_v22, %v17592_v34  ;;  %v16858_v18 = vld [vmem:[%s21705_s1 + $0x20] ss:$8 sps:$4 sm:$0xff]  }
0x1758   :  { %7355 = vmatpush1.bf16.msra.mxu1 %v16764_v23  ;;  %7386 = vmatprep.mubr.bf16.mxu1 %v17408_v24  ;;  %v7774_v23 = vrot.slane %v7769_v22, %v17590_v33  ;;  %v16866_v22 = vld [vmem:[%s21705_s1 + $0x44] ss:$8 sps:$4 sm:$0xff]  }
0x1759   :  { %7356 = vmatprep.subr.bf16.mxu1 %v16769_v26 }
0x175c   :  { %7357 = vmatpush1.bf16.msra.mxu1 %v16767_v28 }
0x175d   :  { %7358 = vmatprep.subr.bf16.mxu1 %v16772_v29 }
0x1760   :  { %7359 = vmatpush1.bf16.msra.mxu1 %v16770_v30 }
0x1761   :  { %7360 = vmatprep.subr.bf16.mxu1 %v16775_v31 }
0x1764   :  { %7361 = vmatpush1.bf16.msra.mxu1 %v16773_v32 }
0x1765   :  { %7362 = vmatprep.subr.bf16.mxu1 %v16778_v35 }
0x1768   :  { %7363 = vmatpush1.bf16.msra.mxu1 %v16776_v37 }
0x1769   :  { %14833 = vmatprep.subr.msk.bf16.mxu1 %vm752_vm5, %v14832_v20 }
0x176c   :  { %7365 = vmatpush1.bf16.msra.mxu1 %v7349_v39 }
0x176d   :  { %7474 = vmatprep.subr.bf16.mxu1 %v16783_v40 }
0x176f   :  { %14834 = vmatmul.mubr.msk.bf16.vlgmr.msra.gmra.mrb[84].mxu1 %vm748_vm6, %v19719_v16 }
0x1770   :  { %7475 = vmatpush1.bf16.msra.mxu1 %v16781_v41  ;;  %7506 = vmatprep.mubr.bf16.mxu1 %v17408_v24  ;;  %v7791_v41 = vld [vmem:[%s21713_s7] sm:$0x7] }
0x1771   :  { %7476 = vmatprep.subr.bf16.mxu1 %v16786_v43  ;;  %v14912_v43 = vld [vmem:[%s21713_s7 + $0x4] sm:$0x7] }
0x1774   :  { %7477 = vmatpush1.bf16.msra.mxu1 %v16784_v44  ;;  %v16832_v44 = vld [vmem:[%s21711_s8] sm:$0xff]  }
0x1775   :  { %7478 = vmatprep.subr.bf16.mxu1 %v16789_v45  ;;  %v16833_v45 = vld [vmem:[%s21711_s8 + $0x8] sm:$0xff]  }
0x1778   :  { %7479 = vmatpush1.bf16.msra.mxu1 %v16787_v46  ;;  %v16834_v46 = vld [vmem:[%s21711_s8 + $0x10] sm:$0xff]  }
0x1779   :  { %7480 = vmatprep.subr.bf16.mxu1 %v16792_v47  ;;  %v16835_v47 = vld [vmem:[%s21711_s8 + $0x18] sm:$0xff]  }
0x177c   :  { %7481 = vmatpush1.bf16.msra.mxu1 %v16790_v48  ;;  %v16836_v48 = vld [vmem:[%s21711_s8 + $0x20] sm:$0xff]  }
0x177d   :  { %7482 = vmatprep.subr.bf16.mxu1 %v16795_v49  ;;  %v16837_v49 = vld [vmem:[%s21711_s8 + $0x28] sm:$0xff]  }
0x1780   :  { %7483 = vmatpush1.bf16.msra.mxu1 %v16793_v51  ;;  %v16839_v51 = vld [vmem:[%s21711_s8 + $0x38] sm:$0xff]  }
0x1781   :  { %14858 = vmatprep.subr.msk.bf16.mxu1 %vm752_vm5, %v14857_v52  ;;  %v16840_v52 = vld [vmem:[%s21711_s8 + $0x40] sm:$0xff]  }
0x1784   :  { %7485 = vmatpush1.bf16.msra.mxu1 %v7469_v54 }
0x1785   :  { %7599 = vmatprep.subr.bf16.mxu1 %v16800_v55 }
0x1787   :  { %14859 = vmatmul.mubr.msk.bf16.vlgmr.msra.gmra.mrb[84].mxu1 %vm748_vm6, %v7409_v42 }
0x1788   :  { %7600 = vmatpush1.bf16.msra.mxu1 %v16798_v56  ;;  %7631 = vmatprep.mubr.bf16.mxu1 %v17408_v24 }
0x1789   :  { %7601 = vmatprep.subr.bf16.mxu1 %v16803_v57 }
0x178c   :  { %7602 = vmatpush1.bf16.msra.mxu1 %v16801_v58 }
0x178d   :  { %7603 = vmatprep.subr.bf16.mxu1 %v16806_v59 }
0x1790   :  { %7604 = vmatpush1.bf16.msra.mxu1 %v16804_v60 }
0x1791   :  { %7605 = vmatprep.subr.bf16.mxu1 %v16809_v62 }
0x1794   :  { %7606 = vmatpush1.bf16.msra.mxu1 %v16807_v63 }
0x1795   :  { %7607 = vmatprep.subr.bf16.mxu1 %v16812_v0 }
0x1798   :  { %7608 = vmatpush1.bf16.msra.mxu1 %v16810_v3 }
0x1799   :  { %14883 = vmatprep.subr.msk.bf16.mxu1 %vm752_vm5, %v14882_v4  ;;  %v16843_v4 = vld [vmem:[%s21711_s8 + $0x58] sm:$0xff]  }
0x179c   :  { %7610 = vmatpush1.bf16.msra.mxu1 %v7594_v6  ;;  %v16845_v6 = vld [vmem:[%s21711_s8 + $0x68] sm:$0xff]  }
0x179d   :  { %7722 = vmatprep.subr.bf16.mxu1 %v16817_v7  ;;  %v16846_v7 = vld [vmem:[%s21711_s8 + $0x70] sm:$0xff]  }
0x179f   :  { %14884 = vmatmul.mubr.msk.bf16.vlgmr.msra.gmra.mrb[84].mxu1 %vm748_vm6, %v7534_v27 }
0x17a0   :  { %7723 = vmatpush1.bf16.msra.mxu1 %v16815_v1  ;;  %7754 = vmatprep.mubr.bf16.mxu1 %v17408_v24  ;;  %v16847_v1 = vld [vmem:[%s21711_s8 + $0x78] sm:$0xff]  }
0x17a1   :  { %7724 = vmatprep.subr.bf16.mxu1 %v16820_v8  ;;  %v16848_v8 = vld [vmem:[%s21711_s8 + $0x80] sm:$0xff]  }
0x17a4   :  { %7725 = vmatpush1.bf16.msra.mxu1 %v16818_v9  ;;  %v16849_v9 = vld [vmem:[%s21711_s8 + $0x88] sm:$0xff]  }
0x17a5   :  { %7726 = vmatprep.subr.bf16.mxu1 %v16823_v10  ;;  %v16850_v10 = vld [vmem:[%s21711_s8 + $0x90] sm:$0xff]  }
0x17a8   :  { %7727 = vmatpush1.bf16.msra.mxu1 %v16821_v11  ;;  %v16851_v11 = vld [vmem:[%s21711_s8 + $0x98] sm:$0xff]  }
0x17a9   :  { %7728 = vmatprep.subr.bf16.mxu1 %v16826_v61  ;;  %v16854_v61 = vld [vmem:[%s21705_s1 + $0x4] ss:$8 sps:$4 sm:$0xff]  }
0x17ac   :  { %7729 = vmatpush1.bf16.msra.mxu1 %v16824_v12  ;;  %v16852_v12 = vld [vmem:[%s21705_s1] ss:$8 sps:$4 sm:$0xff]  }
0x17ad   :  { %7730 = vmatprep.subr.bf16.mxu1 %v16829_v13  ;;  %v16882_v13 = vld [vmem:[%s21706_s0 + $0xa4] ss:$8 sps:$4 sm:$0xff]  }
0x17b0   :  { %7731 = vmatpush1.bf16.msra.mxu1 %v16827_v15  ;;  %v16855_v15 = vld [vmem:[%s21705_s1 + $0x10] ss:$8 sps:$4 sm:$0xff]  }
0x17b1   :  { %14908 = vmatprep.subr.msk.bf16.mxu1 %vm752_vm5, %v14907_v17  ;;  %v16860_v17 = vld [vmem:[%s21705_s1 + $0x24] ss:$8 sps:$4 sm:$0xff]  }
0x17b4   :  { %7733 = vmatpush1.bf16.msra.mxu1 %v7717_v19  ;;  %v16863_v19 = vld [vmem:[%s21705_s1 + $0x34] ss:$8 sps:$4 sm:$0xff]  }
0x17b7   :  { %14909 = vmatmul.mubr.msk.bf16.vlgmr.msra.gmra.mrb[84].mxu1 %vm748_vm6, %v7657_v21  ;;  %v16861_v21 = vld [vmem:[%s21705_s1 + $0x30] ss:$8 sps:$4 sm:$0xff]  }
0x17b8   :  { %8442 = vmatprep.mubr.bf16.mxu1 %v17408_v24 }
0x188a   :  { %v7756_v26 = vpop.f32.mrb[84].mxu1 }
0x188b   :  { %v7781_v27 = vadd.f32 %v7774_v23, %v7756_v26  ;;  %v7758_v28 = vpop.f32.mrb[85].mxu1  ;;  %v16867_v26 = vld [vmem:[%s21705_s1 + $0x50] ss:$8 sps:$4 sm:$0xff]  }
0x188c   :  { %v7782_v29 = vadd.f32 %v7778_v25, %v7758_v28  ;;  %v7760_v30 = vpop.f32.mrb[86].mxu1  ;;  %v16870_v28 = vld [vmem:[%s21705_s1 + $0x60] ss:$8 sps:$4 sm:$0xff]  }
0x188d   :  { %v7783_v31 = vadd.f32 %v7774_v23, %v7760_v30  ;;  %v7762_v32 = vpop.f32.mrb[87].mxu1  ;;  %v7785_v35 = vmax.f32 %v7781_v27, 0.0  ;;  %v16864_v23 = vld [vmem:[%s21705_s1 + $0x40] ss:$8 sps:$4 sm:$0xff]   ;;  %v16872_v27 = vld [vmem:[%s21705_s1 + $0x64] ss:$8 sps:$4 sm:$0xff]  }
0x188e   :  { %v7784_v16 = vadd.f32 %v7778_v25, %v7762_v32  ;;  %v7786_v37 = vmax.f32 %v7782_v29, 0.0  ;;  %v16869_v25 = vld [vmem:[%s21705_s1 + $0x54] ss:$8 sps:$4 sm:$0xff]   ;;  %v16873_v30 = vld [vmem:[%s21705_s1 + $0x70] ss:$8 sps:$4 sm:$0xff]  }
0x188f   :  { %v7787_v36 = vmax.f32 %v7783_v31, 0.0  ;;  %v16875_v29 = vld [vmem:[%s21705_s1 + $0x74] ss:$8 sps:$4 sm:$0xff]   ;;  %v16878_v31 = vld [vmem:[%s21705_s1 + $0x84] ss:$8 sps:$4 sm:$0xff]  }
0x1890   :  { %v7788_v20 = vmax.f32 %v7784_v16, 0.0  ;;  %v16876_v32 = vld [vmem:[%s21705_s1 + $0x80] ss:$8 sps:$4 sm:$0xff]   ;;  %v16881_v16 = vld [vmem:[%s21705_s1 + $0x94] ss:$8 sps:$4 sm:$0xff]  }
0x1891   :  { %v7789_v38 = vpack.c.bf16 %v7787_v36, %v7785_v35  ;;  %v16879_v35 = vld [vmem:[%s21705_s1 + $0x90] ss:$8 sps:$4 sm:$0xff]   ;;  %v16884_v36 = vld [vmem:[%s21706_s0 + $0xa0] ss:$8 sps:$4 sm:$0xff]  }
0x1892   :  { %v7790_v39 = vpack.c.bf16 %v7788_v20, %v7786_v37  ;;  %v16885_v37 = vld [vmem:[%s21706_s0 + $0xb4] ss:$8 sps:$4 sm:$0x3f]   ;;  %v16887_v20 = vld [vmem:[%s21706_s0 + $0xb0] ss:$8 sps:$4 sm:$0x3f]  }
0x1893   :  { %v7796_v40 = vsel %vm1310_vm7, %v7789_v38, 0  ;;  %v16891_v38 = vld [vmem:[%s21708_s4 + $0x54] sm:$0xff]  }
0x1894   :  { %14910 = vmatprep.subr.msk.bf16.mxu0 %vm1310_vm7, %v7790_v39 }
0x1895   :  { %7802 = vmatpush1.bf16.msra.mxu0 %v7796_v40 }
0x1896   :  { %14913 = vmatprep.subr.msk.bf16.mxu0 %vm1310_vm7, %v7790_v39  ;;  %v16893_v39 = vld [vmem:[%s21708_s4 + $0x5c] sm:$0xff]  }
0x1898   :  { %14911 = vmatmul.mubr.msk.bf16.vlgmr.msra.gmra.mrb[116].mxu0 %vm1306_vm8, %v7791_v41  ;;  %v16897_v41 = vld [vmem:[%s21708_s4 + $0x6c] sm:$0xff]  }
0x1899   :  { %7847 = vmatpush1.bf16.msra.mxu0 %v7796_v40  ;;  %7878 = vmatprep.mubr.bf16.mxu0 %v17408_v24  ;;  %v16895_v40 = vld [vmem:[%s21708_s4 + $0x64] sm:$0xff]  }
0x189a   :  { %7974 = vmatprep.subr.bf16.mxu0 %v17408_v24 }
0x18a0   :  { %14914 = vmatmul.mubr.msk.bf16.vlgmr.msra.gmra.mrb[120].mxu0 %vm1306_vm8, %v14912_v43  ;;  %v16899_v43 = vld [vmem:[%s21708_s4 + $0x74] sm:$0xff]  }
0x18a1   :  { %7975 = vmatpush1.bf16.msra.mxu0 %v16832_v44 }
0x18a2   :  { %7976 = vmatprep.subr.bf16.mxu0 %v17408_v24 }
0x18a5   :  { %7977 = vmatpush1.bf16.msra.mxu0 %v16833_v45 }
0x18a6   :  { %7978 = vmatprep.subr.bf16.mxu0 %v17408_v24 }
0x18a9   :  { %7979 = vmatpush1.bf16.msra.mxu0 %v16834_v46 }
0x18aa   :  { %7980 = vmatprep.subr.bf16.mxu0 %v17408_v24 }
0x18ad   :  { %7981 = vmatpush1.bf16.msra.mxu0 %v16835_v47 }
0x18ae   :  { %7982 = vmatprep.subr.bf16.mxu0 %v17408_v24 }
0x18b1   :  { %7983 = vmatpush1.bf16.msra.mxu0 %v16836_v48  ;;  %v16901_v48 = vld [vmem:[%s21708_s4 + $0x7c] sm:$0xff]  }
0x18b2   :  { %7984 = vmatprep.subr.bf16.mxu0 %v17408_v24 }
0x18b5   :  { %7985 = vmatpush1.bf16.msra.mxu0 %v16837_v49  ;;  %v16903_v49 = vld [vmem:[%s21708_s4 + $0x84] sm:$0xff]  }
0x18b6   :  { %7986 = vmatprep.subr.bf16.mxu0 %v17408_v24 }
0x18b9   :  { %7987 = vmatpush1.bf16.msra.mxu0 %v16838_v50 }
0x18ba   :  { %7988 = vmatprep.subr.bf16.mxu0 %v17408_v24 }
0x18bd   :  { %7989 = vmatpush1.bf16.msra.mxu0 %v16839_v51 }
0x18be   :  { %7990 = vmatprep.subr.bf16.mxu0 %v17408_v24 }
0x18c1   :  { %7991 = vmatpush1.bf16.msra.mxu0 %v16840_v52 }
0x18c2   :  { %7992 = vmatprep.subr.bf16.mxu0 %v17408_v24 }
0x18c5   :  { %7993 = vmatpush1.bf16.msra.mxu0 %v16841_v53  ;;  %v16905_v53 = vld [vmem:[%s21708_s4 + $0x8c] sm:$0xff]  }
0x18c6   :  { %8094 = vmatprep.subr.bf16.mxu0 %v17408_v24 }
0x196b   :  { %v7835_v54 = vpop.f32.mrb[116].mxu0 }
0x196c   :  { %v7837_v55 = vpop.f32.mrb[117].mxu0 }
0x196d   :  { %v7839_v56 = vpop.f32.mrb[118].mxu0 }
0x196e   :  { %v7840_v42 = vpop.f32.mrb[119].mxu0 }
0x1973   :  { %v7880_v57 = vpop.f32.mrb[120].mxu0 }
0x1974   :  { %v7887_v58 = vmax.f32 %v7835_v54, %v7880_v57  ;;  %v7882_v59 = vpop.f32.mrb[121].mxu0  ;;  %v8165_v54 = vld [vmem:[#allocation2 + $0x10] sm:$0x4]  ;;  %v8144_v57 = vld [vmem:[#allocation2] sm:$0x4] }
0x1975   :  { %v7888_v60 = vmax.f32 %v7837_v55, %v7882_v59  ;;  %v7884_v62 = vpop.f32.mrb[122].mxu0 }
0x1976   :  { %v7885_v63 = vpop.f32.mrb[123].mxu0  ;;  %v7889_v3 = vpack.c.bf16 %v7887_v58, %v7887_v58  ;;  %v8157_v58 = vld [vmem:[#allocation2 + $0x8] sm:$0x4] }
0x1977   :  { %v7890_v0 = vpack.c.bf16 %v7888_v60, %v7888_v60 }
0x1979   :  { %14925 = vmatprep.mubr.msk.bf16.mxu0 %vm205_vm0, %v7890_v0 }
0x197a   :  { %8007 = vmatmul.mubr.bf16.vlgmr.msra.gmra.mrb[124].mxu0 %v7889_v3 }
0x197b   :  { %8095 = vmatpush1.bf16.msra.mxu0 %v16842_v2  ;;  %14956 = vmatprep.mubr.msk.bf16.mxu0 %vm205_vm0, %v7890_v0  ;;  %v8152_v0 = vld [vmem:[#allocation2 + $0x4] sm:$0x4]  ;;  %v8162_v2 = vld [vmem:[#allocation2 + $0xc] sm:$0x4] }
0x197c   :  { %8096 = vmatprep.subr.bf16.mxu0 %v17408_v24 }
0x197f   :  { %8097 = vmatpush1.bf16.msra.mxu0 %v16843_v4 }
0x1980   :  { %8098 = vmatprep.subr.bf16.mxu0 %v17408_v24 }
0x1983   :  { %8099 = vmatpush1.bf16.msra.mxu0 %v16844_v5 }
0x1984   :  { %8100 = vmatprep.subr.bf16.mxu0 %v17408_v24 }
0x1987   :  { %8101 = vmatpush1.bf16.msra.mxu0 %v16845_v6 }
0x1988   :  { %8102 = vmatprep.subr.bf16.mxu0 %v17408_v24 }
0x198b   :  { %8103 = vmatpush1.bf16.msra.mxu0 %v16846_v7 }
0x198c   :  { %8104 = vmatprep.subr.bf16.mxu0 %v17408_v24 }
0x198f   :  { %8105 = vmatpush1.bf16.msra.mxu0 %v16847_v1 }
0x1990   :  { %8106 = vmatprep.subr.bf16.mxu0 %v17408_v24 }
0x1993   :  { %8107 = vmatpush1.bf16.msra.mxu0 %v16848_v8  ;;  %v8193_v8 = vld [vmem:[%s21709_s2] sm:$0x3] }
0x1994   :  { %8108 = vmatprep.subr.bf16.mxu0 %v17408_v24 }
0x1997   :  { %8109 = vmatpush1.bf16.msra.mxu0 %v16849_v9  ;;  %v8198_v9 = vrot.slane %v8193_v8, %v17590_v33 }
0x1998   :  { %8110 = vmatprep.subr.bf16.mxu0 %v17408_v24 }
0x199b   :  { %8111 = vmatpush1.bf16.msra.mxu0 %v16850_v10  ;;  %v8202_v10 = vrot.slane %v8193_v8, %v17592_v34 }
0x199c   :  { %8112 = vmatprep.subr.bf16.mxu0 %v17408_v24 }
0x199f   :  { %8113 = vmatpush1.bf16.msra.mxu0 %v16851_v11 }
0x19a0   :  { %8329 = vmatprep.subr.bf16.mxu0 %v16854_v61 }
0x19a2   :  { %8127 = vmatmul.mubr.bf16.vlgmr.msra.gmra.mrb[128].mxu0 %v7889_v3 }
0x19a3   :  { %8330 = vmatpush1.bf16.msra.mxu0 %v16852_v12  ;;  %14986 = vmatprep.mubr.msk.bf16.mxu0 %vm205_vm0, %v16882_v13 }
0x19a4   :  { %8331 = vmatprep.subr.bf16.mxu0 %v16857_v14 }
0x19a7   :  { %8332 = vmatpush1.bf16.msra.mxu0 %v16855_v15 }
0x19a8   :  { %8333 = vmatprep.subr.bf16.mxu0 %v16860_v17 }
0x19ab   :  { %8334 = vmatpush1.bf16.msra.mxu0 %v16858_v18 }
0x19ac   :  { %8335 = vmatprep.subr.bf16.mxu0 %v16863_v19 }
0x19af   :  { %8336 = vmatpush1.bf16.msra.mxu0 %v16861_v21 }
0x19b0   :  { %8337 = vmatprep.subr.bf16.mxu0 %v16866_v22 }
0x19b3   :  { %8338 = vmatpush1.bf16.msra.mxu0 %v16864_v23 }
0x19b4   :  { %8339 = vmatprep.subr.bf16.mxu0 %v16869_v25 }
0x19b7   :  { %8340 = vmatpush1.bf16.msra.mxu0 %v16867_v26 }
0x19b8   :  { %8341 = vmatprep.subr.bf16.mxu0 %v16872_v27 }
0x19bb   :  { %8342 = vmatpush1.bf16.msra.mxu0 %v16870_v28 }
0x19bc   :  { %8343 = vmatprep.subr.bf16.mxu0 %v16875_v29 }
0x19bf   :  { %8344 = vmatpush1.bf16.msra.mxu0 %v16873_v30 }
0x19c0   :  { %8345 = vmatprep.subr.bf16.mxu0 %v16878_v31 }
0x19c3   :  { %8346 = vmatpush1.bf16.msra.mxu0 %v16876_v32 }
0x19c4   :  { %8347 = vmatprep.subr.bf16.mxu0 %v16881_v16 }
0x19c7   :  { %8348 = vmatpush1.bf16.msra.mxu0 %v16879_v35 }
0x19c8   :  { %8730 = vmatprep.subr.bf16.mxu0 %v17408_v24 }
0x19ca   :  { %8362 = vmatmul.mubr.bf16.vlgmr.msra.gmra.mrb[132].mxu0 %v16884_v36 }
0x19cb   :  { %14987 = vmatprep.mubr.msk.bf16.mxu0 %vm205_vm0, %v16885_v37  ;;  %8731 = vmatpush1.bf16.msra.mxu0 %v16891_v38 }
0x19cc   :  { %8732 = vmatprep.subr.bf16.mxu0 %v17408_v24 }
0x19cf   :  { %8733 = vmatpush1.bf16.msra.mxu0 %v16893_v39 }
0x19d0   :  { %8734 = vmatprep.subr.bf16.mxu0 %v17408_v24 }
0x19d2   :  { %8372 = vmatmul.mubr.bf16.gmra.mrb[136].mxu0 %v16887_v20 }
0x19d3   :  { %8735 = vmatpush1.bf16.msra.mxu0 %v16895_v40 }
0x19d4   :  { %8736 = vmatprep.subr.bf16.mxu0 %v17408_v24 }
0x19d7   :  { %8737 = vmatpush1.bf16.msra.mxu0 %v16897_v41 }
0x19d8   :  { %8738 = vmatprep.subr.bf16.mxu0 %v17408_v24 }
0x19db   :  { %8739 = vmatpush1.bf16.msra.mxu0 %v16899_v43  ;;  %v16888_v43 = vld [vmem:[%s21707_s3] sm:$0x7f]  }
0x19dc   :  { %8740 = vmatprep.subr.bf16.mxu0 %v17408_v24 }
0x19df   :  { %8741 = vmatpush1.bf16.msra.mxu0 %v16901_v48  ;;  %v16896_v48 = vld [vmem:[%s21708_s4 + $0x18] sm:$0xff]  }
0x19e0   :  { %8742 = vmatprep.subr.bf16.mxu0 %v17408_v24 }
0x19e3   :  { %8743 = vmatpush1.bf16.msra.mxu0 %v16903_v49  ;;  %v16898_v49 = vld [vmem:[%s21708_s4 + $0x20] sm:$0xff]  }
0x19e4   :  { %8744 = vmatprep.subr.bf16.mxu0 %v17408_v24 }
0x19e7   :  { %8745 = vmatpush1.bf16.msra.mxu0 %v16905_v53  ;;  %v16940_v53 = vld [vmem:[%s21710_s5 + $0x34] ss:$8 sps:$4 sm:$0xff]  }
0x19e8   :  { %8746 = vmatprep.subr.bf16.mxu0 %v17408_v24 }
0x1a4d   :  { %v8008_v44 = vpop.f32.mrb[124].mxu0 }
0x1a4e   :  { %v8010_v45 = vpop.f32.mrb[125].mxu0 }
0x1a4f   :  { %v8011_v46 = vpop.f32.mrb[126].mxu0  ;;  %v16890_v45 = vld [vmem:[%s21708_s4] sm:$0xff]  }
0x1a50   :  { %v8012_v47 = vpop.f32.mrb[127].mxu0  ;;  %v16892_v46 = vld [vmem:[%s21708_s4 + $0x8] sm:$0xff]  }
0x1a51   :  { %v16894_v47 = vld [vmem:[%s21708_s4 + $0x10] sm:$0xff]  }
0x1a75   :  { %v8128_v50 = vpop.f32.mrb[128].mxu0 }
0x1a76   :  { %v8134_v51 = vmax.f32 %v8008_v44, %v8128_v50  ;;  %v8130_v52 = vpop.f32.mrb[129].mxu0  ;;  %v16889_v44 = vld [vmem:[%s21707_s3 + $0x8] sm:$0x7f]  }
0x1a77   :  { %v8131_v55 = vpop.f32.mrb[130].mxu0  ;;  %v16900_v50 = vld [vmem:[%s21708_s4 + $0x28] sm:$0xff]   ;;  %v16904_v52 = vld [vmem:[%s21708_s4 + $0x38] sm:$0xff]  }
0x1a78   :  { %v8135_v56 = vpack.c.bf16 %v8134_v51, %v8134_v51  ;;  %v8132_v42 = vpop.f32.mrb[131].mxu0  ;;  %v16902_v51 = vld [vmem:[%s21708_s4 + $0x30] sm:$0xff]  }
0x1a79   :  { %v16907_v55 = vld [vmem:[%s21708_s4 + $0x94] sm:$0xff]   ;;  %v16909_v42 = vld [vmem:[%s21708_s4 + $0x9c] sm:$0xff]  }
0x1a7a   :  { %v8139_v59 = vrot.slane %v8135_v56, 6  ;;  %v8148_v60 = vshrl.u32 %v8135_v56, 16  ;;  %v8155_v62 = vrot.slane %v8135_v56, 7  ;;  %v8166_v63 = vsel %vm20085_vm14, %v8135_v56, %v8165_v54  ;;  %v16906_v54 = vld [vmem:[%s21708_s4 + $0x40] sm:$0xff]   ;;  %8747 = vmatpush1.bf16.msra.mxu0 %v16907_v55  ;;  %v16908_v56 = vld [vmem:[%s21708_s4 + $0x48] sm:$0xff]  }
0x1a7b   :  { %8167 = vst [vmem:[#allocation2 + $0x10] sm:$0x4] %v8166_v63  ;;  %8748 = vmatprep.subr.bf16.mxu0 %v17408_v24  ;;  %v16943_v55 = vld [vmem:[%s21710_s5 + $0x44] ss:$8 sps:$4 sm:$0xff]  }
0x1a7c   :  { %v8145_v3 = vsel %vm20085_vm14, %v8139_v59, %v8144_v57  ;;  %v8150_v4 = vrot.slane %v8148_v60, 6  ;;  %v8158_v5 = vsel %vm20085_vm14, %v8155_v62, %v8157_v58  ;;  %v8160_v6 = vrot.slane %v8148_v60, 7  ;;  %v16910_v57 = vld [vmem:[%s21708_s4 + $0x50] ss:$0 sps:$4 sm:$0xff]   ;;  %v16911_v58 = vld [vmem:[%s21708_s4 + $0xa4] ss:$0 sps:$4 sm:$0xff]  }
0x1a7d   :  { %8146 = vst [vmem:[#allocation2] sm:$0x4] %v8145_v3  ;;  %8159 = vst [vmem:[#allocation2 + $0x8] sm:$0x4] %v8158_v5  ;;  %v8600_v59 = vsel %vm486_vm3, %v16910_v57, 0  ;;  %v8728_v60 = vsel %vm486_vm3, %v16911_v58, 0 }
0x1a7e   :  { %v8153_v7 = vsel %vm20085_vm14, %v8150_v4, %v8152_v0  ;;  %v8163_v1 = vsel %vm20085_vm14, %v8160_v6, %v8162_v2  ;;  %8749 = vmatpush1.bf16.msra.mxu0 %v16909_v42  ;;  %v16914_v62 = vld [vmem:[%s21710_s5 + $0x5c] ss:$8 sps:$4 sm:$0xff]   ;;  %v16941_v42 = vld [vmem:[%s21710_s5 + $0x40] ss:$8 sps:$4 sm:$0xff]  }
0x1a7f   :  { %8154 = vst [vmem:[#allocation2 + $0x4] sm:$0x4] %v8153_v7  ;;  %8164 = vst [vmem:[#allocation2 + $0xc] sm:$0x4] %v8163_v1  ;;  %8750 = vmatprep.subr.bf16.mxu0 %v17408_v24 }
0x1a82   :  { %8751 = vmatpush1.bf16.msra.mxu0 %v8728_v60  ;;  %v16948_v60 = vld [vmem:[%s21710_s5 + $0xb4] ss:$8 sps:$4 sm:$0xff]  }
0x1a9d   :  { %v8363_v11 = vpop.f32.mrb[132].mxu0 }
0x1a9e   :  { %v8364_v61 = vadd.f32 %v8363_v11, %v8198_v9  ;;  %v8365_v12 = vpop.f32.mrb[133].mxu0 }
0x1a9f   :  { %v8366_v13 = vadd.f32 %v8365_v12, %v8202_v10  ;;  %v8367_v14 = vpop.f32.mrb[134].mxu0  ;;  %v16912_v12 = vld [vmem:[%s21710_s5 + $0x58] ss:$8 sps:$4 sm:$0xff]  }
0x1aa0   :  { %v8368_v15 = vadd.f32 %v8367_v14, %v8198_v9  ;;  %v8369_v17 = vpop.f32.mrb[135].mxu0  ;;  %v8382_v19 = vmax.f32 %v8364_v61, 0.0  ;;  %v16915_v14 = vld [vmem:[%s21710_s5 + $0x68] ss:$8 sps:$4 sm:$0xff]  }
0x1aa1   :  { %v8370_v18 = vadd.f32 %v8369_v17, %v8202_v10  ;;  %v8383_v22 = vmax.f32 %v8366_v13, 0.0  ;;  %v16917_v13 = vld [vmem:[%s21710_s5 + $0x6c] ss:$8 sps:$4 sm:$0xff]   ;;  %v16918_v17 = vld [vmem:[%s21710_s5 + $0x78] ss:$8 sps:$4 sm:$0xff]  }
0x1aa2   :  { %v8384_v21 = vmax.f32 %v8368_v15, 0.0  ;;  %v16920_v15 = vld [vmem:[%s21710_s5 + $0x7c] ss:$8 sps:$4 sm:$0xff]  }
0x1aa3   :  { %v8385_v23 = vmax.f32 %v8370_v18, 0.0  ;;  %v16923_v18 = vld [vmem:[%s21710_s5 + $0x8c] ss:$8 sps:$4 sm:$0xff]  }
0x1aa4   :  { %v8390_v25 = vpack.c.bf16 %v8384_v21, %v8382_v19  ;;  %v16921_v19 = vld [vmem:[%s21710_s5 + $0x88] ss:$8 sps:$4 sm:$0xff]   ;;  %v16926_v21 = vld [vmem:[%s21710_s5 + $0x9c] ss:$8 sps:$4 sm:$0xff]  }
0x1aa5   :  { %v8391_v26 = vpack.c.bf16 %v8385_v23, %v8383_v22  ;;  %v8373_v27 = vpop.f32.mrb[136].mxu0  ;;  %v16924_v22 = vld [vmem:[%s21710_s5 + $0x98] ss:$8 sps:$4 sm:$0xff]   ;;  %v15051_v23 = vld [vmem:[%s21710_s5 + $0xa8] sm:$0x33] }
0x1aa6   :  { %v8374_v28 = vadd.f32 %v8373_v27, %v8198_v9  ;;  %v8375_v29 = vpop.f32.mrb[137].mxu0  ;;  %v16931_v27 = vld [vmem:[%s21710_s5 + $0x4] ss:$8 sps:$4 sm:$0xff]  }
0x1aa7   :  { %v8376_v30 = vadd.f32 %v8375_v29, %v8202_v10  ;;  %v8377_v31 = vpop.f32.mrb[138].mxu0  ;;  %8410 = vmatprep.subr.bf16.mxu1 %v8391_v26 }
0x1aa8   :  { %v8378_v32 = vadd.f32 %v8377_v31, %v8198_v9  ;;  %v8379_v16 = vpop.f32.mrb[139].mxu0  ;;  %8411 = vmatpush1.bf16.msra.mxu1 %v8390_v25  ;;  %v8386_v36 = vmax.f32 %v8374_v28, 0.0 }
0x1aa9   :  { %v8380_v35 = vadd.f32 %v8379_v16, %v8202_v10  ;;  %v8387_v20 = vmax.f32 %v8376_v30, 0.0 }
0x1aaa   :  { %v8388_v37 = vmax.f32 %v8378_v32, 0.0 }
0x1aab   :  { %v8389_v38 = vmax.f32 %v8380_v35, 0.0 }
0x1aac   :  { %v8392_v39 = vpack.c.bf16 %v8388_v37, %v8386_v36 }
0x1aad   :  { %v8393_v40 = vpack.c.bf16 %v8389_v38, %v8387_v20 }
0x1aae   :  { %v8405_v41 = vsel %vm288_vm1, %v8392_v39, 0 }
0x1aaf   :  { %14989 = vmatprep.subr.msk.bf16.mxu1 %vm288_vm1, %v8393_v40 }
0x1ab0   :  { %8413 = vmatpush1.bf16.msra.mxu1 %v8405_v41 }
0x1ab1   :  { %8463 = vmatprep.subr.bf16.mxu1 %v8391_v26  ;;  %v15062_v26 = vcombine.low %v15051_v23, %v15051_v23 }
0x1ab3   :  { %14990 = vmatmul.mubr.msk.bf16.vlgmr.msra.gmra.mrb[88].mxu1 %vm284_vm2, %v16888_v43  ;;  %v8862_v28 = vsel %vm752_vm5, %v15062_v26, 0 }
0x1ab4   :  { %8464 = vmatpush1.bf16.msra.mxu1 %v8390_v25  ;;  %8495 = vmatprep.mubr.bf16.mxu1 %v17408_v24  ;;  %v15063_v25 = vcombine.high %v15051_v23, %v15051_v23  ;;  %v16975_v23 = vld [vmem:[%s21710_s5 + $0x148] ss:$8 sps:$4 sm:$0xff]  }
0x1ab5   :  { %14994 = vmatprep.subr.msk.bf16.mxu1 %vm288_vm1, %v8393_v40 }
0x1ab8   :  { %8466 = vmatpush1.bf16.msra.mxu1 %v8405_v41 }
0x1ab9   :  { %8602 = vmatprep.subr.bf16.mxu1 %v17408_v24 }
0x1abb   :  { %14995 = vmatmul.mubr.msk.bf16.vlgmr.msra.gmra.mrb[92].mxu1 %vm284_vm2, %v16889_v44 }
0x1abc   :  { %8603 = vmatpush1.bf16.msra.mxu1 %v16890_v45 }
0x1abd   :  { %8604 = vmatprep.subr.bf16.mxu1 %v17408_v24 }
0x1ac0   :  { %8605 = vmatpush1.bf16.msra.mxu1 %v16892_v46  ;;  %v16929_v46 = vld [vmem:[%s21710_s5] ss:$8 sps:$4 sm:$0xff]  }
0x1ac1   :  { %8606 = vmatprep.subr.bf16.mxu1 %v17408_v24 }
0x1ac4   :  { %8607 = vmatpush1.bf16.msra.mxu1 %v16894_v47 }
0x1ac5   :  { %8608 = vmatprep.subr.bf16.mxu1 %v17408_v24 }
0x1ac8   :  { %8609 = vmatpush1.bf16.msra.mxu1 %v16896_v48  ;;  %v16934_v48 = vld [vmem:[%s21710_s5 + $0x14] ss:$8 sps:$4 sm:$0xff]  }
0x1ac9   :  { %8610 = vmatprep.subr.bf16.mxu1 %v17408_v24 }
0x1acc   :  { %8611 = vmatpush1.bf16.msra.mxu1 %v16898_v49 }
0x1acd   :  { %8612 = vmatprep.subr.bf16.mxu1 %v17408_v24 }
0x1ad0   :  { %8613 = vmatpush1.bf16.msra.mxu1 %v16900_v50  ;;  %v16932_v50 = vld [vmem:[%s21710_s5 + $0x10] ss:$8 sps:$4 sm:$0xff]  }
0x1ad1   :  { %8614 = vmatprep.subr.bf16.mxu1 %v17408_v24 }
0x1ad4   :  { %8615 = vmatpush1.bf16.msra.mxu1 %v16902_v51  ;;  %v16937_v51 = vld [vmem:[%s21710_s5 + $0x24] ss:$8 sps:$4 sm:$0xff]  }
0x1ad5   :  { %8616 = vmatprep.subr.bf16.mxu1 %v17408_v24 }
0x1ad8   :  { %8617 = vmatpush1.bf16.msra.mxu1 %v16904_v52  ;;  %v16935_v52 = vld [vmem:[%s21710_s5 + $0x20] ss:$8 sps:$4 sm:$0xff]  }
0x1ad9   :  { %8618 = vmatprep.subr.bf16.mxu1 %v17408_v24 }
0x1adc   :  { %8619 = vmatpush1.bf16.msra.mxu1 %v16906_v54  ;;  %v16938_v54 = vld [vmem:[%s21710_s5 + $0x30] ss:$8 sps:$4 sm:$0xff]  }
0x1add   :  { %8620 = vmatprep.subr.bf16.mxu1 %v17408_v24 }
0x1ae0   :  { %8621 = vmatpush1.bf16.msra.mxu1 %v16908_v56  ;;  %v8784_v56 = vld [vmem:[%s21710_s5 + $0x50] sm:$0x33] }
0x1ae1   :  { %8622 = vmatprep.subr.bf16.mxu1 %v17408_v24  ;;  %v15077_v57 = vcombine.high %v8784_v56, %v8784_v56  ;;  %v15076_v58 = vcombine.low %v8784_v56, %v8784_v56 }
0x1ae4   :  { %8623 = vmatpush1.bf16.msra.mxu1 %v8600_v59  ;;  %v8968_v59 = vsel %vm752_vm5, %v15076_v58, 0 }
0x1ae5   :  { %8867 = vmatprep.subr.bf16.mxu1 %v16914_v62  ;;  %v16946_v62 = vld [vmem:[%s21710_s5 + $0xb0] ss:$8 sps:$4 sm:$0xff]  }
0x1b86   :  { %v8444_v63 = vpop.f32.mrb[88].mxu1 }
0x1b87   :  { %v8446_v0 = vpop.f32.mrb[89].mxu1 }
0x1b88   :  { %v8448_v2 = vpop.f32.mrb[90].mxu1 }
0x1b89   :  { %v8450_v3 = vpop.f32.mrb[91].mxu1 }
0x1b8e   :  { %v8497_v4 = vpop.f32.mrb[92].mxu1 }
0x1b8f   :  { %v8506_v5 = vmax.f32 %v8444_v63, %v8497_v4  ;;  %v8499_v6 = vpop.f32.mrb[93].mxu1  ;;  %v16951_v63 = vld [vmem:[%s21710_s5 + $0xc4] ss:$8 sps:$4 sm:$0xff]  }
0x1b90   :  { %v8507_v7 = vmax.f32 %v8446_v0, %v8499_v6  ;;  %v8501_v1 = vpop.f32.mrb[94].mxu1  ;;  %v16949_v0 = vld [vmem:[%s21710_s5 + $0xc0] ss:$8 sps:$4 sm:$0xff]   ;;  %v16957_v4 = vld [vmem:[%s21710_s5 + $0xe4] ss:$8 sps:$4 sm:$0xff]  }
0x1b91   :  { %v8508_v8 = vmax.f32 %v8448_v2, %v8501_v1  ;;  %v8503_v9 = vpop.f32.mrb[95].mxu1  ;;  %v16954_v2 = vld [vmem:[%s21710_s5 + $0xd4] ss:$8 sps:$4 sm:$0xff]   ;;  %v16958_v1 = vld [vmem:[%s21710_s5 + $0xf0] ss:$8 sps:$4 sm:$0xff]  }
0x1b92   :  { %v8509_v10 = vmax.f32 %v8450_v3, %v8503_v9  ;;  %v16952_v3 = vld [vmem:[%s21710_s5 + $0xd0] ss:$8 sps:$4 sm:$0xff]   ;;  %v16960_v6 = vld [vmem:[%s21710_s5 + $0xf4] ss:$8 sps:$4 sm:$0xff]  }
0x1b93   :  { %v8510_v11 = vpack.c.bf16 %v8508_v8, %v8506_v5  ;;  %v16955_v5 = vld [vmem:[%s21710_s5 + $0xe0] ss:$8 sps:$4 sm:$0xff]  }
0x1b94   :  { %v8511_v61 = vpack.c.bf16 %v8509_v10, %v8507_v7  ;;  %v15090_v7 = vld [vmem:[%s21710_s5 + $0x100] sm:$0x33] }
0x1b95   :  { %v15102_v8 = vcombine.high %v15090_v7, %v15090_v7  ;;  %v15101_v9 = vcombine.low %v15090_v7, %v15090_v7  ;;  %v17003_v7 = vld [vmem:[%s21711_s8 + $0x30] sm:$0xff]  }
0x1b96   :  { %15007 = vmatprep.mubr.msk.bf16.mxu1 %vm482_vm4, %v8511_v61  ;;  %15040 = vmatprep.mubr.msk.bf16.mxu0 %vm482_vm4, %v8511_v61  ;;  %v16963_v61 = vld [vmem:[%s21710_s5 + $0x108] ss:$8 sps:$4 sm:$0xff]  }
0x1b97   :  { %8635 = vmatmul.mubr.bf16.vlgmr.msra.gmra.mrb[96].mxu1 %v8510_v11  ;;  %8763 = vmatmul.mubr.bf16.vlgmr.msra.gmra.mrb[140].mxu0 %v8510_v11  ;;  %v9088_v10 = vsel %vm752_vm5, %v15101_v9, 0  ;;  %v16965_v11 = vld [vmem:[%s21710_s5 + $0x10c] ss:$8 sps:$4 sm:$0xff]  }
0x1b98   :  { %8868 = vmatpush1.bf16.msra.mxu1 %v16912_v12  ;;  %8899 = vmatprep.mubr.bf16.mxu1 %v17408_v24  ;;  %v17006_v9 = vld [vmem:[%s21711_s8 + $0x48] sm:$0xff]  }
0x1b99   :  { %8869 = vmatprep.subr.bf16.mxu1 %v16917_v13  ;;  %9452 = vmatprep.mubr.bf16.mxu0 %v17408_v24  ;;  %v16968_v13 = vld [vmem:[%s21710_s5 + $0x11c] ss:$8 sps:$4 sm:$0xff]  }
0x1b9c   :  { %8870 = vmatpush1.bf16.msra.mxu1 %v16915_v14  ;;  %v16966_v14 = vld [vmem:[%s21710_s5 + $0x118] ss:$8 sps:$4 sm:$0xff]  }
0x1b9d   :  { %8871 = vmatprep.subr.bf16.mxu1 %v16920_v15  ;;  %v16971_v15 = vld [vmem:[%s21710_s5 + $0x12c] ss:$8 sps:$4 sm:$0xff]  }
0x1ba0   :  { %8872 = vmatpush1.bf16.msra.mxu1 %v16918_v17  ;;  %v16969_v17 = vld [vmem:[%s21710_s5 + $0x128] ss:$8 sps:$4 sm:$0xff]  }
0x1ba1   :  { %8873 = vmatprep.subr.bf16.mxu1 %v16923_v18  ;;  %v16974_v18 = vld [vmem:[%s21710_s5 + $0x13c] ss:$8 sps:$4 sm:$0xff]  }
0x1ba4   :  { %8874 = vmatpush1.bf16.msra.mxu1 %v16921_v19  ;;  %v16972_v19 = vld [vmem:[%s21710_s5 + $0x138] ss:$8 sps:$4 sm:$0xff]  }
0x1ba5   :  { %8875 = vmatprep.subr.bf16.mxu1 %v16926_v21  ;;  %v16977_v21 = vld [vmem:[%s21710_s5 + $0x14c] ss:$8 sps:$4 sm:$0xff]  }
0x1ba8   :  { %8876 = vmatpush1.bf16.msra.mxu1 %v16924_v22  ;;  %v15115_v22 = vld [vmem:[%s21710_s5 + $0x158] sm:$0x33] }
0x1ba9   :  { %15064 = vmatprep.subr.msk.bf16.mxu1 %vm752_vm5, %v15063_v25  ;;  %v15127_v25 = vcombine.high %v15115_v22, %v15115_v22  ;;  %v15126_v26 = vcombine.low %v15115_v22, %v15115_v22  ;;  %v17007_v22 = vld [vmem:[%s21711_s8 + $0x50] sm:$0xff]  }
0x1bac   :  { %8878 = vmatpush1.bf16.msra.mxu1 %v8862_v28  ;;  %v16982_v28 = vld [vmem:[%s21710_s5 + $0x164] ss:$8 sps:$4 sm:$0xff]  }
0x1bad   :  { %8973 = vmatprep.subr.bf16.mxu1 %v16931_v27  ;;  %v9213_v27 = vsel %vm752_vm5, %v15126_v26, 0  ;;  %v17009_v26 = vld [vmem:[%s21711_s8 + $0x60] sm:$0xff]  }
0x1c6a   :  { %v8636_v29 = vpop.f32.mrb[96].mxu1  ;;  %v8764_v30 = vpop.f32.mrb[140].mxu0 }
0x1c6b   :  { %v8771_v31 = vmax.f32 %v8636_v29, %v8764_v30  ;;  %v8638_v32 = vpop.f32.mrb[97].mxu1  ;;  %v8766_v16 = vpop.f32.mrb[141].mxu0  ;;  %v16980_v29 = vld [vmem:[%s21710_s5 + $0x160] ss:$8 sps:$4 sm:$0xff]   ;;  %v16985_v30 = vld [vmem:[%s21710_s5 + $0x174] ss:$8 sps:$4 sm:$0xff]  }
0x1c6c   :  { %v8639_v35 = vpop.f32.mrb[98].mxu1  ;;  %v8767_v36 = vpop.f32.mrb[142].mxu0  ;;  %v16988_v32 = vld [vmem:[%s21710_s5 + $0x184] ss:$8 sps:$4 sm:$0xff]   ;;  %v16986_v16 = vld [vmem:[%s21710_s5 + $0x180] ss:$8 sps:$4 sm:$0xff]  }
0x1c6d   :  { %v8772_v37 = vmax.f32 %v8639_v35, %v8767_v36  ;;  %v8641_v20 = vpop.f32.mrb[99].mxu1  ;;  %v8769_v38 = vpop.f32.mrb[143].mxu0  ;;  %v16991_v35 = vld [vmem:[%s21710_s5 + $0x194] ss:$8 sps:$4 sm:$0xff]   ;;  %v16989_v36 = vld [vmem:[%s21710_s5 + $0x190] ss:$8 sps:$4 sm:$0xff]  }
0x1c6e   :  { %v15140_v20 = vld [vmem:[%s21710_s5 + $0x1b0] sm:$0x33]  ;;  %v16992_v38 = vld [vmem:[%s21710_s5 + $0x1a0] ss:$8 sps:$4 sm:$0xff]  }
0x1c6f   :  { %v20219_v39 = vpack.c.bf16 %v8772_v37, %v8771_v31  ;;  %v16983_v31 = vld [vmem:[%s21710_s5 + $0x170] ss:$8 sps:$4 sm:$0xff]   ;;  %v16994_v37 = vld [vmem:[%s21710_s5 + $0x1a4] ss:$8 sps:$4 sm:$0xff]  }
0x1c71   :  { %v8799_v40 = vshll.u32 %v20219_v39, 16  ;;  %v8797_v41 = vshrl.u32 %v20219_v39, 16  ;;  %v9028_v12 = vrot.slane %v20219_v39, 1 }
0x1c73   :  { %v8801_v43 = vrot.slane %v8799_v40, 1  ;;  %v20223_v44 = vrot.slane %v8797_v41, 1  ;;  %v20225_v45 = vrot.slane %v8799_v40, 2  ;;  %v15152_v40 = vcombine.high %v15140_v20, %v15140_v20 }
0x1c75   :  { %v8802_v47 = vor.u32 %v8801_v43, %v8797_v41  ;;  %v9153_v49 = vor.u32 %v20225_v45, %v20223_v44  ;;  %v15151_v41 = vcombine.low %v15140_v20, %v15140_v20  ;;  %v9276_v44 = vrot.slane %v20219_v39, 2  ;;  %v9388_v45 = vld [vmem:[%s21712_s6] sm:$0x3]  ;;  %v17022_v20 = vld [vmem:[%s21705_s1 + $0x14] ss:$8 sps:$4 sm:$0xff]  }
0x1c77   :  { %15065 = vmatmul.mubr.msk.bf16.vlgmr.msra.gmra.mrb[100].mxu1 %vm748_vm6, %v8802_v47  ;;  %v9336_v43 = vsel %vm752_vm5, %v15151_v41, 0  ;;  %v9397_v47 = vrot.slane %v9388_v45, %v17592_v34  ;;  %v17023_v41 = vld [vmem:[%s21705_s1 + $0x20] ss:$8 sps:$4 sm:$0xff]  }
0x1c78   :  { %8974 = vmatpush1.bf16.msra.mxu1 %v16929_v46  ;;  %9005 = vmatprep.mubr.bf16.mxu1 %v17408_v24  ;;  %v9393_v46 = vrot.slane %v9388_v45, %v17590_v33  ;;  %v17031_v45 = vld [vmem:[%s21705_s1 + $0x44] ss:$8 sps:$4 sm:$0xff]  }
0x1c79   :  { %8975 = vmatprep.subr.bf16.mxu1 %v16934_v48 }
0x1c7c   :  { %8976 = vmatpush1.bf16.msra.mxu1 %v16932_v50 }
0x1c7d   :  { %8977 = vmatprep.subr.bf16.mxu1 %v16937_v51 }
0x1c80   :  { %8978 = vmatpush1.bf16.msra.mxu1 %v16935_v52 }
0x1c81   :  { %8979 = vmatprep.subr.bf16.mxu1 %v16940_v53 }
0x1c84   :  { %8980 = vmatpush1.bf16.msra.mxu1 %v16938_v54 }
0x1c85   :  { %8981 = vmatprep.subr.bf16.mxu1 %v16943_v55 }
0x1c88   :  { %8982 = vmatpush1.bf16.msra.mxu1 %v16941_v42 }
0x1c89   :  { %15078 = vmatprep.subr.msk.bf16.mxu1 %vm752_vm5, %v15077_v57 }
0x1c8c   :  { %8984 = vmatpush1.bf16.msra.mxu1 %v8968_v59 }
0x1c8d   :  { %9093 = vmatprep.subr.bf16.mxu1 %v16948_v60 }
0x1c8f   :  { %15079 = vmatmul.mubr.msk.bf16.vlgmr.msra.gmra.mrb[100].mxu1 %vm748_vm6, %v20219_v39 }
0x1c90   :  { %9094 = vmatpush1.bf16.msra.mxu1 %v16946_v62  ;;  %9125 = vmatprep.mubr.bf16.mxu1 %v17408_v24  ;;  %v9410_v62 = vld [vmem:[%s21713_s7] sm:$0x7] }
0x1c91   :  { %9095 = vmatprep.subr.bf16.mxu1 %v16951_v63  ;;  %v15157_v63 = vld [vmem:[%s21713_s7 + $0x4] sm:$0x7] }
0x1c94   :  { %9096 = vmatpush1.bf16.msra.mxu1 %v16949_v0  ;;  %v16997_v0 = vld [vmem:[%s21711_s8] sm:$0xff]  }
0x1c95   :  { %9097 = vmatprep.subr.bf16.mxu1 %v16954_v2  ;;  %v16998_v2 = vld [vmem:[%s21711_s8 + $0x8] sm:$0xff]  }
0x1c98   :  { %9098 = vmatpush1.bf16.msra.mxu1 %v16952_v3  ;;  %v16999_v3 = vld [vmem:[%s21711_s8 + $0x10] sm:$0xff]  }
0x1c99   :  { %9099 = vmatprep.subr.bf16.mxu1 %v16957_v4  ;;  %v17000_v4 = vld [vmem:[%s21711_s8 + $0x18] sm:$0xff]  }
0x1c9c   :  { %9100 = vmatpush1.bf16.msra.mxu1 %v16955_v5  ;;  %v17001_v5 = vld [vmem:[%s21711_s8 + $0x20] sm:$0xff]  }
0x1c9d   :  { %9101 = vmatprep.subr.bf16.mxu1 %v16960_v6  ;;  %v17002_v6 = vld [vmem:[%s21711_s8 + $0x28] sm:$0xff]  }
0x1ca0   :  { %9102 = vmatpush1.bf16.msra.mxu1 %v16958_v1  ;;  %v17004_v1 = vld [vmem:[%s21711_s8 + $0x38] sm:$0xff]  }
0x1ca1   :  { %15103 = vmatprep.subr.msk.bf16.mxu1 %vm752_vm5, %v15102_v8  ;;  %v17005_v8 = vld [vmem:[%s21711_s8 + $0x40] sm:$0xff]  }
0x1ca4   :  { %9104 = vmatpush1.bf16.msra.mxu1 %v9088_v10 }
0x1ca5   :  { %9218 = vmatprep.subr.bf16.mxu1 %v16965_v11 }
0x1ca7   :  { %15104 = vmatmul.mubr.msk.bf16.vlgmr.msra.gmra.mrb[100].mxu1 %vm748_vm6, %v9028_v12 }
0x1ca8   :  { %9219 = vmatpush1.bf16.msra.mxu1 %v16963_v61  ;;  %9250 = vmatprep.mubr.bf16.mxu1 %v17408_v24 }
0x1ca9   :  { %9220 = vmatprep.subr.bf16.mxu1 %v16968_v13 }
0x1cac   :  { %9221 = vmatpush1.bf16.msra.mxu1 %v16966_v14 }
0x1cad   :  { %9222 = vmatprep.subr.bf16.mxu1 %v16971_v15 }
0x1cb0   :  { %9223 = vmatpush1.bf16.msra.mxu1 %v16969_v17 }
0x1cb1   :  { %9224 = vmatprep.subr.bf16.mxu1 %v16974_v18 }
0x1cb4   :  { %9225 = vmatpush1.bf16.msra.mxu1 %v16972_v19 }
0x1cb5   :  { %9226 = vmatprep.subr.bf16.mxu1 %v16977_v21 }
0x1cb8   :  { %9227 = vmatpush1.bf16.msra.mxu1 %v16975_v23 }
0x1cb9   :  { %15128 = vmatprep.subr.msk.bf16.mxu1 %vm752_vm5, %v15127_v25  ;;  %v17008_v25 = vld [vmem:[%s21711_s8 + $0x58] sm:$0xff]  }
0x1cbc   :  { %9229 = vmatpush1.bf16.msra.mxu1 %v9213_v27  ;;  %v17010_v27 = vld [vmem:[%s21711_s8 + $0x68] sm:$0xff]  }
0x1cbd   :  { %9341 = vmatprep.subr.bf16.mxu1 %v16982_v28  ;;  %v17011_v28 = vld [vmem:[%s21711_s8 + $0x70] sm:$0xff]  }
0x1cbf   :  { %15129 = vmatmul.mubr.msk.bf16.vlgmr.msra.gmra.mrb[100].mxu1 %vm748_vm6, %v9153_v49 }
0x1cc0   :  { %9342 = vmatpush1.bf16.msra.mxu1 %v16980_v29  ;;  %9373 = vmatprep.mubr.bf16.mxu1 %v17408_v24  ;;  %v17012_v29 = vld [vmem:[%s21711_s8 + $0x78] sm:$0xff]  }
0x1cc1   :  { %9343 = vmatprep.subr.bf16.mxu1 %v16985_v30  ;;  %v17013_v30 = vld [vmem:[%s21711_s8 + $0x80] sm:$0xff]  }
0x1cc4   :  { %9344 = vmatpush1.bf16.msra.mxu1 %v16983_v31  ;;  %v17014_v31 = vld [vmem:[%s21711_s8 + $0x88] sm:$0xff]  }
0x1cc5   :  { %9345 = vmatprep.subr.bf16.mxu1 %v16988_v32  ;;  %v17015_v32 = vld [vmem:[%s21711_s8 + $0x90] sm:$0xff]  }
0x1cc8   :  { %9346 = vmatpush1.bf16.msra.mxu1 %v16986_v16  ;;  %v17016_v16 = vld [vmem:[%s21711_s8 + $0x98] sm:$0xff]  }
0x1cc9   :  { %9347 = vmatprep.subr.bf16.mxu1 %v16991_v35  ;;  %v17019_v35 = vld [vmem:[%s21705_s1 + $0x4] ss:$8 sps:$4 sm:$0xff]  }
0x1ccc   :  { %9348 = vmatpush1.bf16.msra.mxu1 %v16989_v36  ;;  %v17017_v36 = vld [vmem:[%s21705_s1] ss:$8 sps:$4 sm:$0xff]  }
0x1ccd   :  { %9349 = vmatprep.subr.bf16.mxu1 %v16994_v37  ;;  %v17047_v37 = vld [vmem:[%s21706_s0 + $0xc4] ss:$8 sps:$4 sm:$0xff]  }
0x1cd0   :  { %9350 = vmatpush1.bf16.msra.mxu1 %v16992_v38  ;;  %v17020_v38 = vld [vmem:[%s21705_s1 + $0x10] ss:$8 sps:$4 sm:$0xff]  }
0x1cd1   :  { %15153 = vmatprep.subr.msk.bf16.mxu1 %vm752_vm5, %v15152_v40  ;;  %v17025_v40 = vld [vmem:[%s21705_s1 + $0x24] ss:$8 sps:$4 sm:$0xff]  }
0x1cd4   :  { %9352 = vmatpush1.bf16.msra.mxu1 %v9336_v43  ;;  %v17028_v43 = vld [vmem:[%s21705_s1 + $0x34] ss:$8 sps:$4 sm:$0xff]  }
0x1cd7   :  { %15154 = vmatmul.mubr.msk.bf16.vlgmr.msra.gmra.mrb[100].mxu1 %vm748_vm6, %v9276_v44  ;;  %v17026_v44 = vld [vmem:[%s21705_s1 + $0x30] ss:$8 sps:$4 sm:$0xff]  }
0x1cd8   :  { %10061 = vmatprep.mubr.bf16.mxu1 %v17408_v24 }
0x1daa   :  { %v9375_v48 = vpop.f32.mrb[100].mxu1 }
0x1dab   :  { %v9400_v49 = vadd.f32 %v9393_v46, %v9375_v48  ;;  %v9377_v50 = vpop.f32.mrb[101].mxu1  ;;  %v17032_v48 = vld [vmem:[%s21705_s1 + $0x50] ss:$8 sps:$4 sm:$0xff]  }
0x1dac   :  { %v9401_v51 = vadd.f32 %v9397_v47, %v9377_v50  ;;  %v9379_v52 = vpop.f32.mrb[102].mxu1  ;;  %v17035_v50 = vld [vmem:[%s21705_s1 + $0x60] ss:$8 sps:$4 sm:$0xff]  }
0x1dad   :  { %v9402_v53 = vadd.f32 %v9393_v46, %v9379_v52  ;;  %v9381_v54 = vpop.f32.mrb[103].mxu1  ;;  %v9404_v55 = vmax.f32 %v9400_v49, 0.0  ;;  %v17029_v46 = vld [vmem:[%s21705_s1 + $0x40] ss:$8 sps:$4 sm:$0xff]   ;;  %v17037_v49 = vld [vmem:[%s21705_s1 + $0x64] ss:$8 sps:$4 sm:$0xff]  }
0x1dae   :  { %v9403_v39 = vadd.f32 %v9397_v47, %v9381_v54  ;;  %v9405_v42 = vmax.f32 %v9401_v51, 0.0  ;;  %v17034_v47 = vld [vmem:[%s21705_s1 + $0x54] ss:$8 sps:$4 sm:$0xff]   ;;  %v17038_v52 = vld [vmem:[%s21705_s1 + $0x70] ss:$8 sps:$4 sm:$0xff]  }
0x1daf   :  { %v9406_v56 = vmax.f32 %v9402_v53, 0.0  ;;  %v17040_v51 = vld [vmem:[%s21705_s1 + $0x74] ss:$8 sps:$4 sm:$0xff]   ;;  %v17043_v53 = vld [vmem:[%s21705_s1 + $0x84] ss:$8 sps:$4 sm:$0xff]  }
0x1db0   :  { %v9407_v57 = vmax.f32 %v9403_v39, 0.0  ;;  %v17041_v54 = vld [vmem:[%s21705_s1 + $0x80] ss:$8 sps:$4 sm:$0xff]   ;;  %v17046_v39 = vld [vmem:[%s21705_s1 + $0x94] ss:$8 sps:$4 sm:$0xff]  }
0x1db1   :  { %v9408_v58 = vpack.c.bf16 %v9406_v56, %v9404_v55  ;;  %v17044_v55 = vld [vmem:[%s21705_s1 + $0x90] ss:$8 sps:$4 sm:$0xff]   ;;  %v17049_v56 = vld [vmem:[%s21706_s0 + $0xc0] ss:$8 sps:$4 sm:$0xff]  }
0x1db2   :  { %v9409_v59 = vpack.c.bf16 %v9407_v57, %v9405_v42  ;;  %v17050_v42 = vld [vmem:[%s21706_s0 + $0xd4] ss:$8 sps:$4 sm:$0x3f]   ;;  %v17052_v57 = vld [vmem:[%s21706_s0 + $0xd0] ss:$8 sps:$4 sm:$0x3f]  }
0x1db3   :  { %v9415_v60 = vsel %vm1310_vm7, %v9408_v58, 0  ;;  %v17056_v58 = vld [vmem:[%s21708_s4 + $0x54] sm:$0xff]  }
0x1db4   :  { %15155 = vmatprep.subr.msk.bf16.mxu0 %vm1310_vm7, %v9409_v59 }
0x1db5   :  { %9421 = vmatpush1.bf16.msra.mxu0 %v9415_v60 }
0x1db6   :  { %15158 = vmatprep.subr.msk.bf16.mxu0 %vm1310_vm7, %v9409_v59  ;;  %v17058_v59 = vld [vmem:[%s21708_s4 + $0x5c] sm:$0xff]  }
0x1db8   :  { %15156 = vmatmul.mubr.msk.bf16.vlgmr.msra.gmra.mrb[144].mxu0 %vm1306_vm8, %v9410_v62  ;;  %v17062_v62 = vld [vmem:[%s21708_s4 + $0x6c] sm:$0xff]  }
0x1db9   :  { %9466 = vmatpush1.bf16.msra.mxu0 %v9415_v60  ;;  %9497 = vmatprep.mubr.bf16.mxu0 %v17408_v24  ;;  %v17060_v60 = vld [vmem:[%s21708_s4 + $0x64] sm:$0xff]  }
0x1dba   :  { %9593 = vmatprep.subr.bf16.mxu0 %v17408_v24 }
0x1dc0   :  { %15159 = vmatmul.mubr.msk.bf16.vlgmr.msra.gmra.mrb[148].mxu0 %vm1306_vm8, %v15157_v63  ;;  %v17064_v63 = vld [vmem:[%s21708_s4 + $0x74] sm:$0xff]  }
0x1dc1   :  { %9594 = vmatpush1.bf16.msra.mxu0 %v16997_v0 }
0x1dc2   :  { %9595 = vmatprep.subr.bf16.mxu0 %v17408_v24 }
0x1dc5   :  { %9596 = vmatpush1.bf16.msra.mxu0 %v16998_v2 }
0x1dc6   :  { %9597 = vmatprep.subr.bf16.mxu0 %v17408_v24 }
0x1dc9   :  { %9598 = vmatpush1.bf16.msra.mxu0 %v16999_v3 }
0x1dca   :  { %9599 = vmatprep.subr.bf16.mxu0 %v17408_v24 }
0x1dcd   :  { %9600 = vmatpush1.bf16.msra.mxu0 %v17000_v4 }
0x1dce   :  { %9601 = vmatprep.subr.bf16.mxu0 %v17408_v24 }
0x1dd1   :  { %9602 = vmatpush1.bf16.msra.mxu0 %v17001_v5  ;;  %v17066_v5 = vld [vmem:[%s21708_s4 + $0x7c] sm:$0xff]  }
0x1dd2   :  { %9603 = vmatprep.subr.bf16.mxu0 %v17408_v24 }
0x1dd5   :  { %9604 = vmatpush1.bf16.msra.mxu0 %v17002_v6  ;;  %v17068_v6 = vld [vmem:[%s21708_s4 + $0x84] sm:$0xff]  }
0x1dd6   :  { %9605 = vmatprep.subr.bf16.mxu0 %v17408_v24 }
0x1dd9   :  { %9606 = vmatpush1.bf16.msra.mxu0 %v17003_v7 }
0x1dda   :  { %9607 = vmatprep.subr.bf16.mxu0 %v17408_v24 }
0x1ddd   :  { %9608 = vmatpush1.bf16.msra.mxu0 %v17004_v1 }
0x1dde   :  { %9609 = vmatprep.subr.bf16.mxu0 %v17408_v24 }
0x1de1   :  { %9610 = vmatpush1.bf16.msra.mxu0 %v17005_v8 }
0x1de2   :  { %9611 = vmatprep.subr.bf16.mxu0 %v17408_v24 }
0x1de5   :  { %9612 = vmatpush1.bf16.msra.mxu0 %v17006_v9 }
0x1de6   :  { %9713 = vmatprep.subr.bf16.mxu0 %v17408_v24 }
0x1e8b   :  { %v9454_v10 = vpop.f32.mrb[144].mxu0 }
0x1e8c   :  { %v9456_v11 = vpop.f32.mrb[145].mxu0 }
0x1e8d   :  { %v9458_v61 = vpop.f32.mrb[146].mxu0 }
0x1e8e   :  { %v9459_v12 = vpop.f32.mrb[147].mxu0  ;;  %v17073_v61 = vld [vmem:[%s21708_s4 + $0x48] sm:$0xff]  }
0x1e93   :  { %v9499_v13 = vpop.f32.mrb[148].mxu0 }
0x1e94   :  { %v9506_v14 = vmax.f32 %v9454_v10, %v9499_v13  ;;  %v9501_v15 = vpop.f32.mrb[149].mxu0 }
0x1e95   :  { %v9507_v17 = vmax.f32 %v9456_v11, %v9501_v15  ;;  %v9503_v18 = vpop.f32.mrb[150].mxu0  ;;  %v9770_v15 = vld [vmem:[#allocation2 + $0x4] sm:$0x4] }
0x1e96   :  { %v9504_v19 = vpop.f32.mrb[151].mxu0  ;;  %v9508_v23 = vpack.c.bf16 %v9506_v14, %v9506_v14 }
0x1e97   :  { %v9509_v21 = vpack.c.bf16 %v9507_v17, %v9507_v17  ;;  %v9780_v17 = vld [vmem:[#allocation2 + $0xc] sm:$0x4] }
0x1e99   :  { %15170 = vmatprep.mubr.msk.bf16.mxu0 %vm205_vm0, %v9509_v21 }
0x1e9a   :  { %9626 = vmatmul.mubr.bf16.vlgmr.msra.gmra.mrb[152].mxu0 %v9508_v23 }
0x1e9b   :  { %9714 = vmatpush1.bf16.msra.mxu0 %v17007_v22  ;;  %15201 = vmatprep.mubr.msk.bf16.mxu0 %vm205_vm0, %v9509_v21 }
0x1e9c   :  { %9715 = vmatprep.subr.bf16.mxu0 %v17408_v24 }
0x1e9f   :  { %9716 = vmatpush1.bf16.msra.mxu0 %v17008_v25  ;;  %v9765_v25 = vld [vmem:[#allocation2] sm:$0x4] }
0x1ea0   :  { %9717 = vmatprep.subr.bf16.mxu0 %v17408_v24 }
0x1ea3   :  { %9718 = vmatpush1.bf16.msra.mxu0 %v17009_v26  ;;  %v9775_v26 = vld [vmem:[#allocation2 + $0x8] sm:$0x4] }
0x1ea4   :  { %9719 = vmatprep.subr.bf16.mxu0 %v17408_v24 }
0x1ea7   :  { %9720 = vmatpush1.bf16.msra.mxu0 %v17010_v27 }
0x1ea8   :  { %9721 = vmatprep.subr.bf16.mxu0 %v17408_v24 }
0x1eab   :  { %9722 = vmatpush1.bf16.msra.mxu0 %v17011_v28 }
0x1eac   :  { %9723 = vmatprep.subr.bf16.mxu0 %v17408_v24 }
0x1eaf   :  { %9724 = vmatpush1.bf16.msra.mxu0 %v17012_v29 }
0x1eb0   :  { %9725 = vmatprep.subr.bf16.mxu0 %v17408_v24 }
0x1eb3   :  { %9726 = vmatpush1.bf16.msra.mxu0 %v17013_v30  ;;  %v9812_v30 = vld [vmem:[%s21709_s2] sm:$0x3] }
0x1eb4   :  { %9727 = vmatprep.subr.bf16.mxu0 %v17408_v24 }
0x1eb7   :  { %9728 = vmatpush1.bf16.msra.mxu0 %v17014_v31  ;;  %v9817_v31 = vrot.slane %v9812_v30, %v17590_v33 }
0x1eb8   :  { %9729 = vmatprep.subr.bf16.mxu0 %v17408_v24 }
0x1ebb   :  { %9730 = vmatpush1.bf16.msra.mxu0 %v17015_v32  ;;  %v9821_v32 = vrot.slane %v9812_v30, %v17592_v34 }
0x1ebc   :  { %9731 = vmatprep.subr.bf16.mxu0 %v17408_v24 }
0x1ebf   :  { %9732 = vmatpush1.bf16.msra.mxu0 %v17016_v16 }
0x1ec0   :  { %9948 = vmatprep.subr.bf16.mxu0 %v17019_v35 }
0x1ec2   :  { %9746 = vmatmul.mubr.bf16.vlgmr.msra.gmra.mrb[156].mxu0 %v9508_v23  ;;  %v9784_v23 = vld [vmem:[#allocation2 + $0x10] sm:$0x4] }
0x1ec3   :  { %9949 = vmatpush1.bf16.msra.mxu0 %v17017_v36  ;;  %15231 = vmatprep.mubr.msk.bf16.mxu0 %vm205_vm0, %v17047_v37 }
0x1ec4   :  { %9950 = vmatprep.subr.bf16.mxu0 %v17022_v20 }
0x1ec7   :  { %9951 = vmatpush1.bf16.msra.mxu0 %v17020_v38 }
0x1ec8   :  { %9952 = vmatprep.subr.bf16.mxu0 %v17025_v40 }
0x1ecb   :  { %9953 = vmatpush1.bf16.msra.mxu0 %v17023_v41 }
0x1ecc   :  { %9954 = vmatprep.subr.bf16.mxu0 %v17028_v43 }
0x1ecf   :  { %9955 = vmatpush1.bf16.msra.mxu0 %v17026_v44 }
0x1ed0   :  { %9956 = vmatprep.subr.bf16.mxu0 %v17031_v45 }
0x1ed3   :  { %9957 = vmatpush1.bf16.msra.mxu0 %v17029_v46 }
0x1ed4   :  { %9958 = vmatprep.subr.bf16.mxu0 %v17034_v47 }
0x1ed7   :  { %9959 = vmatpush1.bf16.msra.mxu0 %v17032_v48 }
0x1ed8   :  { %9960 = vmatprep.subr.bf16.mxu0 %v17037_v49 }
0x1edb   :  { %9961 = vmatpush1.bf16.msra.mxu0 %v17035_v50 }
0x1edc   :  { %9962 = vmatprep.subr.bf16.mxu0 %v17040_v51 }
0x1edf   :  { %9963 = vmatpush1.bf16.msra.mxu0 %v17038_v52 }
0x1ee0   :  { %9964 = vmatprep.subr.bf16.mxu0 %v17043_v53 }
0x1ee3   :  { %9965 = vmatpush1.bf16.msra.mxu0 %v17041_v54 }
0x1ee4   :  { %9966 = vmatprep.subr.bf16.mxu0 %v17046_v39 }
0x1ee7   :  { %9967 = vmatpush1.bf16.msra.mxu0 %v17044_v55 }
0x1ee8   :  { %10349 = vmatprep.subr.bf16.mxu0 %v17408_v24 }
0x1eea   :  { %9981 = vmatmul.mubr.bf16.vlgmr.msra.gmra.mrb[160].mxu0 %v17049_v56 }
0x1eeb   :  { %15232 = vmatprep.mubr.msk.bf16.mxu0 %vm205_vm0, %v17050_v42  ;;  %10350 = vmatpush1.bf16.msra.mxu0 %v17056_v58 }
0x1eec   :  { %10351 = vmatprep.subr.bf16.mxu0 %v17408_v24 }
0x1eef   :  { %10352 = vmatpush1.bf16.msra.mxu0 %v17058_v59 }
0x1ef0   :  { %10353 = vmatprep.subr.bf16.mxu0 %v17408_v24 }
0x1ef2   :  { %9991 = vmatmul.mubr.bf16.gmra.mrb[164].mxu0 %v17052_v57 }
0x1ef3   :  { %10354 = vmatpush1.bf16.msra.mxu0 %v17060_v60 }
0x1ef4   :  { %10355 = vmatprep.subr.bf16.mxu0 %v17408_v24 }
0x1ef7   :  { %10356 = vmatpush1.bf16.msra.mxu0 %v17062_v62 }
0x1ef8   :  { %10357 = vmatprep.subr.bf16.mxu0 %v17408_v24 }
0x1efb   :  { %10358 = vmatpush1.bf16.msra.mxu0 %v17064_v63  ;;  %v17053_v63 = vld [vmem:[%s21707_s3] sm:$0x7f]  }
0x1efc   :  { %10359 = vmatprep.subr.bf16.mxu0 %v17408_v24 }
0x1eff   :  { %10360 = vmatpush1.bf16.msra.mxu0 %v17066_v5  ;;  %v17061_v5 = vld [vmem:[%s21708_s4 + $0x18] sm:$0xff]  }
0x1f00   :  { %10361 = vmatprep.subr.bf16.mxu0 %v17408_v24 }
0x1f03   :  { %10362 = vmatpush1.bf16.msra.mxu0 %v17068_v6  ;;  %v17063_v6 = vld [vmem:[%s21708_s4 + $0x20] sm:$0xff]  }
0x1f04   :  { %10363 = vmatprep.subr.bf16.mxu0 %v17408_v24 }
0x1f6d   :  { %v9627_v0 = vpop.f32.mrb[152].mxu0 }
0x1f6e   :  { %v9629_v2 = vpop.f32.mrb[153].mxu0 }
0x1f6f   :  { %v9630_v3 = vpop.f32.mrb[154].mxu0  ;;  %v17055_v2 = vld [vmem:[%s21708_s4] sm:$0xff]  }
0x1f70   :  { %v9631_v4 = vpop.f32.mrb[155].mxu0  ;;  %v17057_v3 = vld [vmem:[%s21708_s4 + $0x8] sm:$0xff]  }
0x1f71   :  { %v17059_v4 = vld [vmem:[%s21708_s4 + $0x10] sm:$0xff]  }
0x1f95   :  { %v9747_v7 = vpop.f32.mrb[156].mxu0 }
0x1f96   :  { %v9753_v1 = vmax.f32 %v9627_v0, %v9747_v7  ;;  %v9749_v8 = vpop.f32.mrb[157].mxu0  ;;  %v17054_v0 = vld [vmem:[%s21707_s3 + $0x8] sm:$0x7f]  }
0x1f97   :  { %v9750_v9 = vpop.f32.mrb[158].mxu0  ;;  %v17065_v7 = vld [vmem:[%s21708_s4 + $0x28] sm:$0xff]   ;;  %v17069_v8 = vld [vmem:[%s21708_s4 + $0x38] sm:$0xff]  }
0x1f98   :  { %v15762_v10 = vpack.c.bf16 %v9753_v1, %v9753_v1  ;;  %v9751_v11 = vpop.f32.mrb[159].mxu0  ;;  %v17067_v1 = vld [vmem:[%s21708_s4 + $0x30] sm:$0xff]  }
0x1f99   :  { %v17070_v9 = vld [vmem:[%s21708_s4 + $0x8c] sm:$0xff]   ;;  %v17072_v11 = vld [vmem:[%s21708_s4 + $0x94] sm:$0xff]  }
0x1f9a   :  { %v9759_v12 = vshll.u32 %v15762_v10, 16  ;;  %v9768_v13 = vrot.slane %v15762_v10, 6  ;;  %v9778_v14 = vrot.slane %v15762_v10, 7  ;;  %10364 = vmatpush1.bf16.msra.mxu0 %v17070_v9  ;;  %v17071_v10 = vld [vmem:[%s21708_s4 + $0x40] sm:$0xff]   ;;  %v17105_v9 = vld [vmem:[%s21710_s5 + $0x34] ss:$8 sps:$4 sm:$0xff]  }
0x1f9b   :  { %10365 = vmatprep.subr.bf16.mxu0 %v17408_v24 }
0x1f9c   :  { %v9761_v18 = vrot.slane %v9759_v12, 6  ;;  %v9771_v19 = vsel %vm20585_vm9, %v9768_v13, %v9770_v15  ;;  %v9773_v21 = vrot.slane %v9759_v12, 7  ;;  %v9781_v22 = vsel %vm20585_vm9, %v9778_v14, %v9780_v17  ;;  %v17075_v13 = vld [vmem:[%s21708_s4 + $0x50] ss:$0 sps:$4 sm:$0xff]   ;;  %v17076_v14 = vld [vmem:[%s21708_s4 + $0xa4] ss:$0 sps:$4 sm:$0xff]  }
0x1f9d   :  { %9772 = vst [vmem:[#allocation2 + $0x4] sm:$0x4] %v9771_v19  ;;  %9782 = vst [vmem:[#allocation2 + $0xc] sm:$0x4] %v9781_v22  ;;  %v9785_v27 = vsel %vm20585_vm9, %v9759_v12, %v9784_v23  ;;  %v17074_v12 = vld [vmem:[%s21708_s4 + $0x9c] sm:$0xff]   ;;  %v10219_v15 = vsel %vm486_vm3, %v17075_v13, 0 }
0x1f9e   :  { %v9766_v28 = vsel %vm20585_vm9, %v9761_v18, %v9765_v25  ;;  %v9776_v29 = vsel %vm20585_vm9, %v9773_v21, %v9775_v26  ;;  %9786 = vst [vmem:[#allocation2 + $0x10] sm:$0x4] %v9785_v27  ;;  %10366 = vmatpush1.bf16.msra.mxu0 %v17072_v11  ;;  %v10347_v17 = vsel %vm486_vm3, %v17076_v14, 0  ;;  %v17079_v18 = vld [vmem:[%s21710_s5 + $0x5c] ss:$8 sps:$4 sm:$0xff]  }
0x1f9f   :  { %9767 = vst [vmem:[#allocation2] sm:$0x4] %v9766_v28  ;;  %9777 = vst [vmem:[#allocation2 + $0x8] sm:$0x4] %v9776_v29  ;;  %10367 = vmatprep.subr.bf16.mxu0 %v17408_v24  ;;  %v17108_v11 = vld [vmem:[%s21710_s5 + $0x44] ss:$8 sps:$4 sm:$0xff]  }
0x1fa2   :  { %10368 = vmatpush1.bf16.msra.mxu0 %v17074_v12  ;;  %v17106_v12 = vld [vmem:[%s21710_s5 + $0x40] ss:$8 sps:$4 sm:$0xff]  }
0x1fa3   :  { %10369 = vmatprep.subr.bf16.mxu0 %v17408_v24 }
0x1fa6   :  { %10370 = vmatpush1.bf16.msra.mxu0 %v10347_v17  ;;  %v17113_v17 = vld [vmem:[%s21710_s5 + $0xb4] ss:$8 sps:$4 sm:$0xff]  }
0x1fbd   :  { %v9982_v16 = vpop.f32.mrb[160].mxu0 }
0x1fbe   :  { %v9983_v35 = vadd.f32 %v9982_v16, %v9817_v31  ;;  %v9984_v36 = vpop.f32.mrb[161].mxu0 }
0x1fbf   :  { %v9985_v37 = vadd.f32 %v9984_v36, %v9821_v32  ;;  %v9986_v20 = vpop.f32.mrb[162].mxu0  ;;  %v17077_v36 = vld [vmem:[%s21710_s5 + $0x58] ss:$8 sps:$4 sm:$0xff]  }
0x1fc0   :  { %v9987_v38 = vadd.f32 %v9986_v20, %v9817_v31  ;;  %v9988_v40 = vpop.f32.mrb[163].mxu0  ;;  %v10001_v43 = vmax.f32 %v9983_v35, 0.0  ;;  %v17080_v20 = vld [vmem:[%s21710_s5 + $0x68] ss:$8 sps:$4 sm:$0xff]  }
0x1fc1   :  { %v9989_v41 = vadd.f32 %v9988_v40, %v9821_v32  ;;  %v10002_v45 = vmax.f32 %v9985_v37, 0.0  ;;  %v17082_v37 = vld [vmem:[%s21710_s5 + $0x6c] ss:$8 sps:$4 sm:$0xff]   ;;  %v17083_v40 = vld [vmem:[%s21710_s5 + $0x78] ss:$8 sps:$4 sm:$0xff]  }
0x1fc2   :  { %v10003_v44 = vmax.f32 %v9987_v38, 0.0  ;;  %v17085_v38 = vld [vmem:[%s21710_s5 + $0x7c] ss:$8 sps:$4 sm:$0xff]  }
0x1fc3   :  { %v10004_v46 = vmax.f32 %v9989_v41, 0.0  ;;  %v17088_v41 = vld [vmem:[%s21710_s5 + $0x8c] ss:$8 sps:$4 sm:$0xff]  }
0x1fc4   :  { %v10009_v47 = vpack.c.bf16 %v10003_v44, %v10001_v43  ;;  %v17086_v43 = vld [vmem:[%s21710_s5 + $0x88] ss:$8 sps:$4 sm:$0xff]   ;;  %v17091_v44 = vld [vmem:[%s21710_s5 + $0x9c] ss:$8 sps:$4 sm:$0xff]  }
0x1fc5   :  { %v10010_v48 = vpack.c.bf16 %v10004_v46, %v10002_v45  ;;  %v9992_v49 = vpop.f32.mrb[164].mxu0  ;;  %v17089_v45 = vld [vmem:[%s21710_s5 + $0x98] ss:$8 sps:$4 sm:$0xff]   ;;  %v15296_v46 = vld [vmem:[%s21710_s5 + $0xa8] sm:$0x33] }
0x1fc6   :  { %v9993_v50 = vadd.f32 %v9992_v49, %v9817_v31  ;;  %v9994_v51 = vpop.f32.mrb[165].mxu0  ;;  %v17096_v49 = vld [vmem:[%s21710_s5 + $0x4] ss:$8 sps:$4 sm:$0xff]  }
0x1fc7   :  { %v9995_v52 = vadd.f32 %v9994_v51, %v9821_v32  ;;  %v9996_v53 = vpop.f32.mrb[166].mxu0  ;;  %10029 = vmatprep.subr.bf16.mxu1 %v10010_v48 }
0x1fc8   :  { %v9997_v54 = vadd.f32 %v9996_v53, %v9817_v31  ;;  %v9998_v39 = vpop.f32.mrb[167].mxu0  ;;  %10030 = vmatpush1.bf16.msra.mxu1 %v10009_v47  ;;  %v10005_v56 = vmax.f32 %v9993_v50, 0.0 }
0x1fc9   :  { %v9999_v55 = vadd.f32 %v9998_v39, %v9821_v32  ;;  %v10006_v57 = vmax.f32 %v9995_v52, 0.0 }
0x1fca   :  { %v10007_v42 = vmax.f32 %v9997_v54, 0.0 }
0x1fcb   :  { %v10008_v58 = vmax.f32 %v9999_v55, 0.0 }
0x1fcc   :  { %v10011_v59 = vpack.c.bf16 %v10007_v42, %v10005_v56 }
0x1fcd   :  { %v10012_v60 = vpack.c.bf16 %v10008_v58, %v10006_v57 }
0x1fce   :  { %v10024_v62 = vsel %vm288_vm1, %v10011_v59, 0 }
0x1fcf   :  { %15234 = vmatprep.subr.msk.bf16.mxu1 %vm288_vm1, %v10012_v60 }
0x1fd0   :  { %10032 = vmatpush1.bf16.msra.mxu1 %v10024_v62 }
0x1fd1   :  { %10082 = vmatprep.subr.bf16.mxu1 %v10010_v48  ;;  %v15307_v48 = vcombine.low %v15296_v46, %v15296_v46 }
0x1fd3   :  { %15235 = vmatmul.mubr.msk.bf16.vlgmr.msra.gmra.mrb[104].mxu1 %vm284_vm2, %v17053_v63  ;;  %v10481_v50 = vsel %vm752_vm5, %v15307_v48, 0 }
0x1fd4   :  { %10083 = vmatpush1.bf16.msra.mxu1 %v10009_v47  ;;  %10114 = vmatprep.mubr.bf16.mxu1 %v17408_v24  ;;  %v15308_v47 = vcombine.high %v15296_v46, %v15296_v46  ;;  %v17140_v46 = vld [vmem:[%s21710_s5 + $0x148] ss:$8 sps:$4 sm:$0xff]  }
0x1fd5   :  { %15239 = vmatprep.subr.msk.bf16.mxu1 %vm288_vm1, %v10012_v60 }
0x1fd8   :  { %10085 = vmatpush1.bf16.msra.mxu1 %v10024_v62 }
0x1fd9   :  { %10221 = vmatprep.subr.bf16.mxu1 %v17408_v24 }
0x1fdb   :  { %15240 = vmatmul.mubr.msk.bf16.vlgmr.msra.gmra.mrb[108].mxu1 %vm284_vm2, %v17054_v0 }
0x1fdc   :  { %10222 = vmatpush1.bf16.msra.mxu1 %v17055_v2 }
0x1fdd   :  { %10223 = vmatprep.subr.bf16.mxu1 %v17408_v24 }
0x1fe0   :  { %10224 = vmatpush1.bf16.msra.mxu1 %v17057_v3  ;;  %v17094_v3 = vld [vmem:[%s21710_s5] ss:$8 sps:$4 sm:$0xff]  }
0x1fe1   :  { %10225 = vmatprep.subr.bf16.mxu1 %v17408_v24 }
0x1fe4   :  { %10226 = vmatpush1.bf16.msra.mxu1 %v17059_v4 }
0x1fe5   :  { %10227 = vmatprep.subr.bf16.mxu1 %v17408_v24 }
0x1fe8   :  { %10228 = vmatpush1.bf16.msra.mxu1 %v17061_v5  ;;  %v17099_v5 = vld [vmem:[%s21710_s5 + $0x14] ss:$8 sps:$4 sm:$0xff]  }
0x1fe9   :  { %10229 = vmatprep.subr.bf16.mxu1 %v17408_v24 }
0x1fec   :  { %10230 = vmatpush1.bf16.msra.mxu1 %v17063_v6 }
0x1fed   :  { %10231 = vmatprep.subr.bf16.mxu1 %v17408_v24 }
0x1ff0   :  { %10232 = vmatpush1.bf16.msra.mxu1 %v17065_v7  ;;  %v17097_v7 = vld [vmem:[%s21710_s5 + $0x10] ss:$8 sps:$4 sm:$0xff]  }
0x1ff1   :  { %10233 = vmatprep.subr.bf16.mxu1 %v17408_v24 }
0x1ff4   :  { %10234 = vmatpush1.bf16.msra.mxu1 %v17067_v1  ;;  %v17102_v1 = vld [vmem:[%s21710_s5 + $0x24] ss:$8 sps:$4 sm:$0xff]  }
0x1ff5   :  { %10235 = vmatprep.subr.bf16.mxu1 %v17408_v24 }
0x1ff8   :  { %10236 = vmatpush1.bf16.msra.mxu1 %v17069_v8  ;;  %v17100_v8 = vld [vmem:[%s21710_s5 + $0x20] ss:$8 sps:$4 sm:$0xff]  }
0x1ff9   :  { %10237 = vmatprep.subr.bf16.mxu1 %v17408_v24 }
0x1ffc   :  { %10238 = vmatpush1.bf16.msra.mxu1 %v17071_v10  ;;  %v17103_v10 = vld [vmem:[%s21710_s5 + $0x30] ss:$8 sps:$4 sm:$0xff]  }
0x1ffd   :  { %10239 = vmatprep.subr.bf16.mxu1 %v17408_v24 }
0x2000   :  { %10240 = vmatpush1.bf16.msra.mxu1 %v17073_v61  ;;  %v10403_v61 = vld [vmem:[%s21710_s5 + $0x50] sm:$0x33] }
0x2001   :  { %10241 = vmatprep.subr.bf16.mxu1 %v17408_v24  ;;  %v15322_v13 = vcombine.high %v10403_v61, %v10403_v61  ;;  %v15321_v14 = vcombine.low %v10403_v61, %v10403_v61 }
0x2004   :  { %10242 = vmatpush1.bf16.msra.mxu1 %v10219_v15  ;;  %v10587_v15 = vsel %vm752_vm5, %v15321_v14, 0 }
0x2005   :  { %10486 = vmatprep.subr.bf16.mxu1 %v17079_v18  ;;  %v17111_v18 = vld [vmem:[%s21710_s5 + $0xb0] ss:$8 sps:$4 sm:$0xff]  }
0x20a6   :  { %v10063_v19 = vpop.f32.mrb[104].mxu1 }
0x20a7   :  { %v10065_v21 = vpop.f32.mrb[105].mxu1 }
0x20a8   :  { %v10067_v22 = vpop.f32.mrb[106].mxu1 }
0x20a9   :  { %v10069_v23 = vpop.f32.mrb[107].mxu1 }
0x20ae   :  { %v10116_v25 = vpop.f32.mrb[108].mxu1 }
0x20af   :  { %v10125_v26 = vmax.f32 %v10063_v19, %v10116_v25  ;;  %v10118_v27 = vpop.f32.mrb[109].mxu1  ;;  %v17116_v19 = vld [vmem:[%s21710_s5 + $0xc4] ss:$8 sps:$4 sm:$0xff]  }
0x20b0   :  { %v10126_v28 = vmax.f32 %v10065_v21, %v10118_v27  ;;  %v10120_v29 = vpop.f32.mrb[110].mxu1  ;;  %v17114_v21 = vld [vmem:[%s21710_s5 + $0xc0] ss:$8 sps:$4 sm:$0xff]   ;;  %v17122_v25 = vld [vmem:[%s21710_s5 + $0xe4] ss:$8 sps:$4 sm:$0xff]  }
0x20b1   :  { %v10127_v30 = vmax.f32 %v10067_v22, %v10120_v29  ;;  %v10122_v31 = vpop.f32.mrb[111].mxu1  ;;  %v17119_v22 = vld [vmem:[%s21710_s5 + $0xd4] ss:$8 sps:$4 sm:$0xff]   ;;  %v17123_v29 = vld [vmem:[%s21710_s5 + $0xf0] ss:$8 sps:$4 sm:$0xff]  }
0x20b2   :  { %v10128_v32 = vmax.f32 %v10069_v23, %v10122_v31  ;;  %v17117_v23 = vld [vmem:[%s21710_s5 + $0xd0] ss:$8 sps:$4 sm:$0xff]   ;;  %v17125_v27 = vld [vmem:[%s21710_s5 + $0xf4] ss:$8 sps:$4 sm:$0xff]  }
0x20b3   :  { %v10129_v16 = vpack.c.bf16 %v10127_v30, %v10125_v26  ;;  %v17120_v26 = vld [vmem:[%s21710_s5 + $0xe0] ss:$8 sps:$4 sm:$0xff]  }
0x20b4   :  { %v10130_v35 = vpack.c.bf16 %v10128_v32, %v10126_v28  ;;  %v15335_v28 = vld [vmem:[%s21710_s5 + $0x100] sm:$0x33] }
0x20b5   :  { %v15347_v30 = vcombine.high %v15335_v28, %v15335_v28  ;;  %v15346_v31 = vcombine.low %v15335_v28, %v15335_v28  ;;  %v17168_v28 = vld [vmem:[%s21711_s8 + $0x30] sm:$0xff]  }
0x20b6   :  { %15252 = vmatprep.mubr.msk.bf16.mxu1 %vm482_vm4, %v10130_v35  ;;  %15285 = vmatprep.mubr.msk.bf16.mxu0 %vm482_vm4, %v10130_v35  ;;  %v17128_v35 = vld [vmem:[%s21710_s5 + $0x108] ss:$8 sps:$4 sm:$0xff]  }
0x20b7   :  { %10254 = vmatmul.mubr.bf16.vlgmr.msra.gmra.mrb[112].mxu1 %v10129_v16  ;;  %10382 = vmatmul.mubr.bf16.vlgmr.msra.gmra.mrb[168].mxu0 %v10129_v16  ;;  %v10707_v32 = vsel %vm752_vm5, %v15346_v31, 0  ;;  %v17130_v16 = vld [vmem:[%s21710_s5 + $0x10c] ss:$8 sps:$4 sm:$0xff]  }
0x20b8   :  { %10487 = vmatpush1.bf16.msra.mxu1 %v17077_v36  ;;  %10518 = vmatprep.mubr.bf16.mxu1 %v17408_v24  ;;  %v17171_v31 = vld [vmem:[%s21711_s8 + $0x48] sm:$0xff]  }
0x20b9   :  { %10488 = vmatprep.subr.bf16.mxu1 %v17082_v37  ;;  %11071 = vmatprep.mubr.bf16.mxu0 %v17408_v24  ;;  %v17133_v37 = vld [vmem:[%s21710_s5 + $0x11c] ss:$8 sps:$4 sm:$0xff]  }
0x20bc   :  { %10489 = vmatpush1.bf16.msra.mxu1 %v17080_v20  ;;  %v17131_v20 = vld [vmem:[%s21710_s5 + $0x118] ss:$8 sps:$4 sm:$0xff]  }
0x20bd   :  { %10490 = vmatprep.subr.bf16.mxu1 %v17085_v38  ;;  %v17136_v38 = vld [vmem:[%s21710_s5 + $0x12c] ss:$8 sps:$4 sm:$0xff]  }
0x20c0   :  { %10491 = vmatpush1.bf16.msra.mxu1 %v17083_v40  ;;  %v17134_v40 = vld [vmem:[%s21710_s5 + $0x128] ss:$8 sps:$4 sm:$0xff]  }
0x20c1   :  { %10492 = vmatprep.subr.bf16.mxu1 %v17088_v41  ;;  %v17139_v41 = vld [vmem:[%s21710_s5 + $0x13c] ss:$8 sps:$4 sm:$0xff]  }
0x20c4   :  { %10493 = vmatpush1.bf16.msra.mxu1 %v17086_v43  ;;  %v17137_v43 = vld [vmem:[%s21710_s5 + $0x138] ss:$8 sps:$4 sm:$0xff]  }
0x20c5   :  { %10494 = vmatprep.subr.bf16.mxu1 %v17091_v44  ;;  %v17142_v44 = vld [vmem:[%s21710_s5 + $0x14c] ss:$8 sps:$4 sm:$0xff]  }
0x20c8   :  { %10495 = vmatpush1.bf16.msra.mxu1 %v17089_v45  ;;  %v15360_v45 = vld [vmem:[%s21710_s5 + $0x158] sm:$0x33] }
0x20c9   :  { %15309 = vmatprep.subr.msk.bf16.mxu1 %vm752_vm5, %v15308_v47  ;;  %v15372_v47 = vcombine.high %v15360_v45, %v15360_v45  ;;  %v15371_v48 = vcombine.low %v15360_v45, %v15360_v45  ;;  %v17172_v45 = vld [vmem:[%s21711_s8 + $0x50] sm:$0xff]  }
0x20cc   :  { %10497 = vmatpush1.bf16.msra.mxu1 %v10481_v50  ;;  %v17147_v50 = vld [vmem:[%s21710_s5 + $0x164] ss:$8 sps:$4 sm:$0xff]  }
0x20cd   :  { %10592 = vmatprep.subr.bf16.mxu1 %v17096_v49  ;;  %v10832_v49 = vsel %vm752_vm5, %v15371_v48, 0  ;;  %v17174_v48 = vld [vmem:[%s21711_s8 + $0x60] sm:$0xff]  }
0x218a   :  { %v10255_v51 = vpop.f32.mrb[112].mxu1  ;;  %v10383_v52 = vpop.f32.mrb[168].mxu0 }
0x218b   :  { %v10390_v53 = vmax.f32 %v10255_v51, %v10383_v52  ;;  %v10257_v54 = vpop.f32.mrb[113].mxu1  ;;  %v10385_v39 = vpop.f32.mrb[169].mxu0  ;;  %v17145_v51 = vld [vmem:[%s21710_s5 + $0x160] ss:$8 sps:$4 sm:$0xff]   ;;  %v17150_v52 = vld [vmem:[%s21710_s5 + $0x174] ss:$8 sps:$4 sm:$0xff]  }
0x218c   :  { %v10258_v55 = vpop.f32.mrb[114].mxu1  ;;  %v10386_v56 = vpop.f32.mrb[170].mxu0  ;;  %v17153_v54 = vld [vmem:[%s21710_s5 + $0x184] ss:$8 sps:$4 sm:$0xff]   ;;  %v17151_v39 = vld [vmem:[%s21710_s5 + $0x180] ss:$8 sps:$4 sm:$0xff]  }
0x218d   :  { %v10391_v42 = vmax.f32 %v10258_v55, %v10386_v56  ;;  %v10260_v57 = vpop.f32.mrb[115].mxu1  ;;  %v10388_v58 = vpop.f32.mrb[171].mxu0  ;;  %v17156_v55 = vld [vmem:[%s21710_s5 + $0x194] ss:$8 sps:$4 sm:$0xff]   ;;  %v17154_v56 = vld [vmem:[%s21710_s5 + $0x190] ss:$8 sps:$4 sm:$0xff]  }
0x218e   :  { %v15385_v57 = vld [vmem:[%s21710_s5 + $0x1b0] sm:$0x33]  ;;  %v17157_v58 = vld [vmem:[%s21710_s5 + $0x1a0] ss:$8 sps:$4 sm:$0xff]  }
0x218f   :  { %v20719_v59 = vpack.c.bf16 %v10391_v42, %v10390_v53  ;;  %v17148_v53 = vld [vmem:[%s21710_s5 + $0x170] ss:$8 sps:$4 sm:$0xff]   ;;  %v17159_v42 = vld [vmem:[%s21710_s5 + $0x1a4] ss:$8 sps:$4 sm:$0xff]  }
0x2191   :  { %v10418_v60 = vshll.u32 %v20719_v59, 16  ;;  %v10416_v62 = vshrl.u32 %v20719_v59, 16  ;;  %v10647_v36 = vrot.slane %v20719_v59, 1 }
0x2193   :  { %v10420_v63 = vrot.slane %v10418_v60, 1  ;;  %v20723_v0 = vrot.slane %v10416_v62, 1  ;;  %v20725_v2 = vrot.slane %v10418_v60, 2  ;;  %v15397_v60 = vcombine.high %v15385_v57, %v15385_v57 }
0x2195   :  { %v10421_v4 = vor.u32 %v10420_v63, %v10416_v62  ;;  %v10772_v6 = vor.u32 %v20725_v2, %v20723_v0  ;;  %v15396_v62 = vcombine.low %v15385_v57, %v15385_v57  ;;  %v10895_v0 = vrot.slane %v20719_v59, 2  ;;  %v11007_v2 = vld [vmem:[%s21712_s6] sm:$0x3]  ;;  %v17187_v57 = vld [vmem:[%s21705_s1 + $0x14] ss:$8 sps:$4 sm:$0xff]  }
0x2197   :  { %15310 = vmatmul.mubr.msk.bf16.vlgmr.msra.gmra.mrb[116].mxu1 %vm748_vm6, %v10421_v4  ;;  %v10955_v63 = vsel %vm752_vm5, %v15396_v62, 0  ;;  %v11016_v4 = vrot.slane %v11007_v2, %v17592_v34  ;;  %v17188_v62 = vld [vmem:[%s21705_s1 + $0x20] ss:$8 sps:$4 sm:$0xff]  }
0x2198   :  { %10593 = vmatpush1.bf16.msra.mxu1 %v17094_v3  ;;  %10624 = vmatprep.mubr.bf16.mxu1 %v17408_v24  ;;  %v11012_v3 = vrot.slane %v11007_v2, %v17590_v33  ;;  %v17196_v2 = vld [vmem:[%s21705_s1 + $0x44] ss:$8 sps:$4 sm:$0xff]  }
0x2199   :  { %10594 = vmatprep.subr.bf16.mxu1 %v17099_v5 }
0x219c   :  { %10595 = vmatpush1.bf16.msra.mxu1 %v17097_v7 }
0x219d   :  { %10596 = vmatprep.subr.bf16.mxu1 %v17102_v1 }
0x21a0   :  { %10597 = vmatpush1.bf16.msra.mxu1 %v17100_v8 }
0x21a1   :  { %10598 = vmatprep.subr.bf16.mxu1 %v17105_v9 }
0x21a4   :  { %10599 = vmatpush1.bf16.msra.mxu1 %v17103_v10 }
0x21a5   :  { %10600 = vmatprep.subr.bf16.mxu1 %v17108_v11 }
0x21a8   :  { %10601 = vmatpush1.bf16.msra.mxu1 %v17106_v12 }
0x21a9   :  { %15323 = vmatprep.subr.msk.bf16.mxu1 %vm752_vm5, %v15322_v13 }
0x21ac   :  { %10603 = vmatpush1.bf16.msra.mxu1 %v10587_v15 }
0x21ad   :  { %10712 = vmatprep.subr.bf16.mxu1 %v17113_v17 }
0x21af   :  { %15324 = vmatmul.mubr.msk.bf16.vlgmr.msra.gmra.mrb[116].mxu1 %vm748_vm6, %v20719_v59 }
0x21b0   :  { %10713 = vmatpush1.bf16.msra.mxu1 %v17111_v18  ;;  %10744 = vmatprep.mubr.bf16.mxu1 %v17408_v24  ;;  %v11029_v18 = vld [vmem:[%s21713_s7] sm:$0x7] }
0x21b1   :  { %10714 = vmatprep.subr.bf16.mxu1 %v17116_v19  ;;  %v15402_v19 = vld [vmem:[%s21713_s7 + $0x4] sm:$0x7] }
0x21b4   :  { %10715 = vmatpush1.bf16.msra.mxu1 %v17114_v21  ;;  %v17162_v21 = vld [vmem:[%s21711_s8] sm:$0xff]  }
0x21b5   :  { %10716 = vmatprep.subr.bf16.mxu1 %v17119_v22  ;;  %v17163_v22 = vld [vmem:[%s21711_s8 + $0x8] sm:$0xff]  }
0x21b8   :  { %10717 = vmatpush1.bf16.msra.mxu1 %v17117_v23  ;;  %v17164_v23 = vld [vmem:[%s21711_s8 + $0x10] sm:$0xff]  }
0x21b9   :  { %10718 = vmatprep.subr.bf16.mxu1 %v17122_v25  ;;  %v17165_v25 = vld [vmem:[%s21711_s8 + $0x18] sm:$0xff]  }
0x21bc   :  { %10719 = vmatpush1.bf16.msra.mxu1 %v17120_v26  ;;  %v17166_v26 = vld [vmem:[%s21711_s8 + $0x20] sm:$0xff]  }
0x21bd   :  { %10720 = vmatprep.subr.bf16.mxu1 %v17125_v27  ;;  %v17167_v27 = vld [vmem:[%s21711_s8 + $0x28] sm:$0xff]  }
0x21c0   :  { %10721 = vmatpush1.bf16.msra.mxu1 %v17123_v29  ;;  %v17169_v29 = vld [vmem:[%s21711_s8 + $0x38] sm:$0xff]  }
0x21c1   :  { %15348 = vmatprep.subr.msk.bf16.mxu1 %vm752_vm5, %v15347_v30  ;;  %v17170_v30 = vld [vmem:[%s21711_s8 + $0x40] sm:$0xff]  }
0x21c4   :  { %10723 = vmatpush1.bf16.msra.mxu1 %v10707_v32 }
0x21c5   :  { %10837 = vmatprep.subr.bf16.mxu1 %v17130_v16 }
0x21c7   :  { %15349 = vmatmul.mubr.msk.bf16.vlgmr.msra.gmra.mrb[116].mxu1 %vm748_vm6, %v10647_v36 }
0x21c8   :  { %10838 = vmatpush1.bf16.msra.mxu1 %v17128_v35  ;;  %10869 = vmatprep.mubr.bf16.mxu1 %v17408_v24 }
0x21c9   :  { %10839 = vmatprep.subr.bf16.mxu1 %v17133_v37 }
0x21cc   :  { %10840 = vmatpush1.bf16.msra.mxu1 %v17131_v20 }
0x21cd   :  { %10841 = vmatprep.subr.bf16.mxu1 %v17136_v38 }
0x21d0   :  { %10842 = vmatpush1.bf16.msra.mxu1 %v17134_v40 }
0x21d1   :  { %10843 = vmatprep.subr.bf16.mxu1 %v17139_v41 }
0x21d4   :  { %10844 = vmatpush1.bf16.msra.mxu1 %v17137_v43 }
0x21d5   :  { %10845 = vmatprep.subr.bf16.mxu1 %v17142_v44 }
0x21d8   :  { %10846 = vmatpush1.bf16.msra.mxu1 %v17140_v46 }
0x21d9   :  { %15373 = vmatprep.subr.msk.bf16.mxu1 %vm752_vm5, %v15372_v47  ;;  %v17173_v47 = vld [vmem:[%s21711_s8 + $0x58] sm:$0xff]  }
0x21dc   :  { %10848 = vmatpush1.bf16.msra.mxu1 %v10832_v49  ;;  %v17175_v49 = vld [vmem:[%s21711_s8 + $0x68] sm:$0xff]  }
0x21dd   :  { %10960 = vmatprep.subr.bf16.mxu1 %v17147_v50  ;;  %v17176_v50 = vld [vmem:[%s21711_s8 + $0x70] sm:$0xff]  }
0x21df   :  { %15374 = vmatmul.mubr.msk.bf16.vlgmr.msra.gmra.mrb[116].mxu1 %vm748_vm6, %v10772_v6 }
0x21e0   :  { %10961 = vmatpush1.bf16.msra.mxu1 %v17145_v51  ;;  %10992 = vmatprep.mubr.bf16.mxu1 %v17408_v24  ;;  %v17177_v51 = vld [vmem:[%s21711_s8 + $0x78] sm:$0xff]  }
0x21e1   :  { %10962 = vmatprep.subr.bf16.mxu1 %v17150_v52  ;;  %v17178_v52 = vld [vmem:[%s21711_s8 + $0x80] sm:$0xff]  }
0x21e4   :  { %10963 = vmatpush1.bf16.msra.mxu1 %v17148_v53  ;;  %v17179_v53 = vld [vmem:[%s21711_s8 + $0x88] sm:$0xff]  }
0x21e5   :  { %10964 = vmatprep.subr.bf16.mxu1 %v17153_v54  ;;  %v17180_v54 = vld [vmem:[%s21711_s8 + $0x90] sm:$0xff]  }
0x21e8   :  { %10965 = vmatpush1.bf16.msra.mxu1 %v17151_v39  ;;  %v17181_v39 = vld [vmem:[%s21711_s8 + $0x98] sm:$0xff]  }
0x21e9   :  { %10966 = vmatprep.subr.bf16.mxu1 %v17156_v55  ;;  %v17184_v55 = vld [vmem:[%s21705_s1 + $0x4] ss:$8 sps:$4 sm:$0xff]  }
0x21ec   :  { %10967 = vmatpush1.bf16.msra.mxu1 %v17154_v56  ;;  %v17182_v56 = vld [vmem:[%s21705_s1] ss:$8 sps:$4 sm:$0xff]  }
0x21ed   :  { %10968 = vmatprep.subr.bf16.mxu1 %v17159_v42  ;;  %v17212_v42 = vld [vmem:[%s21706_s0 + $0xe4] ss:$8 sps:$4 sm:$0xff]  }
0x21f0   :  { %10969 = vmatpush1.bf16.msra.mxu1 %v17157_v58  ;;  %v17185_v58 = vld [vmem:[%s21705_s1 + $0x10] ss:$8 sps:$4 sm:$0xff]  }
0x21f1   :  { %15398 = vmatprep.subr.msk.bf16.mxu1 %vm752_vm5, %v15397_v60  ;;  %v17190_v60 = vld [vmem:[%s21705_s1 + $0x24] ss:$8 sps:$4 sm:$0xff]  }
0x21f4   :  { %10971 = vmatpush1.bf16.msra.mxu1 %v10955_v63  ;;  %v17193_v63 = vld [vmem:[%s21705_s1 + $0x34] ss:$8 sps:$4 sm:$0xff]  }
0x21f7   :  { %15399 = vmatmul.mubr.msk.bf16.vlgmr.msra.gmra.mrb[116].mxu1 %vm748_vm6, %v10895_v0  ;;  %v17191_v0 = vld [vmem:[%s21705_s1 + $0x30] ss:$8 sps:$4 sm:$0xff]  }
0x21f8   :  { %11682 = vmatprep.mubr.bf16.mxu1 %v17408_v24 }
0x22ca   :  { %v10994_v5 = vpop.f32.mrb[116].mxu1 }
0x22cb   :  { %v11019_v6 = vadd.f32 %v11012_v3, %v10994_v5  ;;  %v10996_v7 = vpop.f32.mrb[117].mxu1  ;;  %v17197_v5 = vld [vmem:[%s21705_s1 + $0x50] ss:$8 sps:$4 sm:$0xff]  }
0x22cc   :  { %v11020_v1 = vadd.f32 %v11016_v4, %v10996_v7  ;;  %v10998_v8 = vpop.f32.mrb[118].mxu1  ;;  %v17200_v7 = vld [vmem:[%s21705_s1 + $0x60] ss:$8 sps:$4 sm:$0xff]  }
0x22cd   :  { %v11021_v9 = vadd.f32 %v11012_v3, %v10998_v8  ;;  %v11000_v10 = vpop.f32.mrb[119].mxu1  ;;  %v11023_v11 = vmax.f32 %v11019_v6, 0.0  ;;  %v17194_v3 = vld [vmem:[%s21705_s1 + $0x40] ss:$8 sps:$4 sm:$0xff]   ;;  %v17202_v6 = vld [vmem:[%s21705_s1 + $0x64] ss:$8 sps:$4 sm:$0xff]  }
0x22ce   :  { %v11022_v59 = vadd.f32 %v11016_v4, %v11000_v10  ;;  %v11024_v12 = vmax.f32 %v11020_v1, 0.0  ;;  %v17199_v4 = vld [vmem:[%s21705_s1 + $0x54] ss:$8 sps:$4 sm:$0xff]   ;;  %v17203_v8 = vld [vmem:[%s21705_s1 + $0x70] ss:$8 sps:$4 sm:$0xff]  }
0x22cf   :  { %v11025_v61 = vmax.f32 %v11021_v9, 0.0  ;;  %v17205_v1 = vld [vmem:[%s21705_s1 + $0x74] ss:$8 sps:$4 sm:$0xff]   ;;  %v17208_v9 = vld [vmem:[%s21705_s1 + $0x84] ss:$8 sps:$4 sm:$0xff]  }
0x22d0   :  { %v11026_v13 = vmax.f32 %v11022_v59, 0.0  ;;  %v17206_v10 = vld [vmem:[%s21705_s1 + $0x80] ss:$8 sps:$4 sm:$0xff]   ;;  %v17211_v59 = vld [vmem:[%s21705_s1 + $0x94] ss:$8 sps:$4 sm:$0xff]  }
0x22d1   :  { %v11027_v14 = vpack.c.bf16 %v11025_v61, %v11023_v11  ;;  %v17209_v11 = vld [vmem:[%s21705_s1 + $0x90] ss:$8 sps:$4 sm:$0xff]   ;;  %v17214_v61 = vld [vmem:[%s21706_s0 + $0xe0] ss:$8 sps:$4 sm:$0xff]  }
0x22d2   :  { %v11028_v15 = vpack.c.bf16 %v11026_v13, %v11024_v12  ;;  %v17215_v12 = vld [vmem:[%s21706_s0 + $0xf4] ss:$8 sps:$4 sm:$0x3f]   ;;  %v17217_v13 = vld [vmem:[%s21706_s0 + $0xf0] ss:$8 sps:$4 sm:$0x3f]  }
0x22d3   :  { %v11034_v17 = vsel %vm1310_vm7, %v11027_v14, 0  ;;  %v17221_v14 = vld [vmem:[%s21708_s4 + $0x54] sm:$0xff]  }
0x22d4   :  { %15400 = vmatprep.subr.msk.bf16.mxu0 %vm1310_vm7, %v11028_v15 }
0x22d5   :  { %11040 = vmatpush1.bf16.msra.mxu0 %v11034_v17 }
0x22d6   :  { %15403 = vmatprep.subr.msk.bf16.mxu0 %vm1310_vm7, %v11028_v15  ;;  %v17223_v15 = vld [vmem:[%s21708_s4 + $0x5c] sm:$0xff]  }
0x22d8   :  { %15401 = vmatmul.mubr.msk.bf16.vlgmr.msra.gmra.mrb[172].mxu0 %vm1306_vm8, %v11029_v18  ;;  %v17227_v18 = vld [vmem:[%s21708_s4 + $0x6c] sm:$0xff]  }
0x22d9   :  { %11085 = vmatpush1.bf16.msra.mxu0 %v11034_v17  ;;  %11116 = vmatprep.mubr.bf16.mxu0 %v17408_v24  ;;  %v17225_v17 = vld [vmem:[%s21708_s4 + $0x64] sm:$0xff]  }
0x22da   :  { %11212 = vmatprep.subr.bf16.mxu0 %v17408_v24 }
0x22e0   :  { %15404 = vmatmul.mubr.msk.bf16.vlgmr.msra.gmra.mrb[176].mxu0 %vm1306_vm8, %v15402_v19  ;;  %v17229_v19 = vld [vmem:[%s21708_s4 + $0x74] sm:$0xff]  }
0x22e1   :  { %11213 = vmatpush1.bf16.msra.mxu0 %v17162_v21 }
0x22e2   :  { %11214 = vmatprep.subr.bf16.mxu0 %v17408_v24 }
0x22e5   :  { %11215 = vmatpush1.bf16.msra.mxu0 %v17163_v22 }
0x22e6   :  { %11216 = vmatprep.subr.bf16.mxu0 %v17408_v24 }
0x22e9   :  { %11217 = vmatpush1.bf16.msra.mxu0 %v17164_v23 }
0x22ea   :  { %11218 = vmatprep.subr.bf16.mxu0 %v17408_v24 }
0x22ed   :  { %11219 = vmatpush1.bf16.msra.mxu0 %v17165_v25 }
0x22ee   :  { %11220 = vmatprep.subr.bf16.mxu0 %v17408_v24 }
0x22f1   :  { %11221 = vmatpush1.bf16.msra.mxu0 %v17166_v26  ;;  %v17231_v26 = vld [vmem:[%s21708_s4 + $0x7c] sm:$0xff]  }
0x22f2   :  { %11222 = vmatprep.subr.bf16.mxu0 %v17408_v24 }
0x22f5   :  { %11223 = vmatpush1.bf16.msra.mxu0 %v17167_v27  ;;  %v17233_v27 = vld [vmem:[%s21708_s4 + $0x84] sm:$0xff]  }
0x22f6   :  { %11224 = vmatprep.subr.bf16.mxu0 %v17408_v24 }
0x22f9   :  { %11225 = vmatpush1.bf16.msra.mxu0 %v17168_v28 }
0x22fa   :  { %11226 = vmatprep.subr.bf16.mxu0 %v17408_v24 }
0x22fd   :  { %11227 = vmatpush1.bf16.msra.mxu0 %v17169_v29 }
0x22fe   :  { %11228 = vmatprep.subr.bf16.mxu0 %v17408_v24 }
0x2301   :  { %11229 = vmatpush1.bf16.msra.mxu0 %v17170_v30 }
0x2302   :  { %11230 = vmatprep.subr.bf16.mxu0 %v17408_v24 }
0x2305   :  { %11231 = vmatpush1.bf16.msra.mxu0 %v17171_v31 }
0x2306   :  { %11332 = vmatprep.subr.bf16.mxu0 %v17408_v24 }
0x23ab   :  { %v11073_v32 = vpop.f32.mrb[172].mxu0 }
0x23ac   :  { %v11075_v16 = vpop.f32.mrb[173].mxu0 }
0x23ad   :  { %v11077_v35 = vpop.f32.mrb[174].mxu0 }
0x23ae   :  { %v11078_v36 = vpop.f32.mrb[175].mxu0  ;;  %v17237_v35 = vld [vmem:[%s21708_s4 + $0x94] sm:$0xff]  }
0x23af   :  { %v11382_v36 = vld [vmem:[#allocation2] sm:$0x8] }
0x23b3   :  { %v11118_v37 = vpop.f32.mrb[176].mxu0 }
0x23b4   :  { %v11125_v20 = vmax.f32 %v11073_v32, %v11118_v37  ;;  %v11120_v38 = vpop.f32.mrb[177].mxu0  ;;  %v11395_v37 = vld [vmem:[#allocation2 + $0x8] sm:$0x8] }
0x23b5   :  { %v11126_v40 = vmax.f32 %v11075_v16, %v11120_v38  ;;  %v11122_v41 = vpop.f32.mrb[178].mxu0 }
0x23b6   :  { %v11123_v43 = vpop.f32.mrb[179].mxu0  ;;  %v11127_v46 = vpack.c.bf16 %v11125_v20, %v11125_v20 }
0x23b7   :  { %v11128_v44 = vpack.c.bf16 %v11126_v40, %v11126_v40  ;;  %v11405_v43 = vld [vmem:[#allocation2 + $0x10] sm:$0x8] }
0x23b9   :  { %15415 = vmatprep.mubr.msk.bf16.mxu0 %vm205_vm0, %v11128_v44 }
0x23ba   :  { %11245 = vmatmul.mubr.bf16.vlgmr.msra.gmra.mrb[180].mxu0 %v11127_v46 }
0x23bb   :  { %11333 = vmatpush1.bf16.msra.mxu0 %v17172_v45  ;;  %15446 = vmatprep.mubr.msk.bf16.mxu0 %vm205_vm0, %v11128_v44  ;;  %v11390_v44 = vld [vmem:[#allocation2 + $0x4] sm:$0x8]  ;;  %v11400_v45 = vld [vmem:[#allocation2 + $0xc] sm:$0x8] }
0x23bc   :  { %11334 = vmatprep.subr.bf16.mxu0 %v17408_v24 }
0x23bf   :  { %11335 = vmatpush1.bf16.msra.mxu0 %v17173_v47 }
0x23c0   :  { %11336 = vmatprep.subr.bf16.mxu0 %v17408_v24 }
0x23c3   :  { %11337 = vmatpush1.bf16.msra.mxu0 %v17174_v48 }
0x23c4   :  { %11338 = vmatprep.subr.bf16.mxu0 %v17408_v24 }
0x23c7   :  { %11339 = vmatpush1.bf16.msra.mxu0 %v17175_v49 }
0x23c8   :  { %11340 = vmatprep.subr.bf16.mxu0 %v17408_v24 }
0x23cb   :  { %11341 = vmatpush1.bf16.msra.mxu0 %v17176_v50 }
0x23cc   :  { %11342 = vmatprep.subr.bf16.mxu0 %v17408_v24 }
0x23cf   :  { %11343 = vmatpush1.bf16.msra.mxu0 %v17177_v51 }
0x23d0   :  { %11344 = vmatprep.subr.bf16.mxu0 %v17408_v24 }
0x23d3   :  { %11345 = vmatpush1.bf16.msra.mxu0 %v17178_v52 }
0x23d4   :  { %11346 = vmatprep.subr.bf16.mxu0 %v17408_v24 }
0x23d7   :  { %11347 = vmatpush1.bf16.msra.mxu0 %v17179_v53  ;;  %v11433_v53 = vld [vmem:[%s21709_s2] sm:$0x3] }
0x23d8   :  { %11348 = vmatprep.subr.bf16.mxu0 %v17408_v24 }
0x23db   :  { %11349 = vmatpush1.bf16.msra.mxu0 %v17180_v54  ;;  %v11438_v54 = vrot.slane %v11433_v53, %v17590_v33 }
0x23dc   :  { %11350 = vmatprep.subr.bf16.mxu0 %v17408_v24 }
0x23df   :  { %11351 = vmatpush1.bf16.msra.mxu0 %v17181_v39  ;;  %v11442_v39 = vrot.slane %v11433_v53, %v17592_v34 }
0x23e0   :  { %11569 = vmatprep.subr.bf16.mxu0 %v17184_v55 }
0x23e2   :  { %11365 = vmatmul.mubr.bf16.vlgmr.msra.gmra.mrb[184].mxu0 %v11127_v46 }
0x23e3   :  { %11570 = vmatpush1.bf16.msra.mxu0 %v17182_v56  ;;  %15476 = vmatprep.mubr.msk.bf16.mxu0 %vm205_vm0, %v17212_v42 }
0x23e4   :  { %11571 = vmatprep.subr.bf16.mxu0 %v17187_v57 }
0x23e7   :  { %11572 = vmatpush1.bf16.msra.mxu0 %v17185_v58 }
0x23e8   :  { %11573 = vmatprep.subr.bf16.mxu0 %v17190_v60 }
0x23eb   :  { %11574 = vmatpush1.bf16.msra.mxu0 %v17188_v62 }
0x23ec   :  { %11575 = vmatprep.subr.bf16.mxu0 %v17193_v63 }
0x23ef   :  { %11576 = vmatpush1.bf16.msra.mxu0 %v17191_v0 }
0x23f0   :  { %11577 = vmatprep.subr.bf16.mxu0 %v17196_v2 }
0x23f3   :  { %11578 = vmatpush1.bf16.msra.mxu0 %v17194_v3 }
0x23f4   :  { %11579 = vmatprep.subr.bf16.mxu0 %v17199_v4 }
0x23f7   :  { %11580 = vmatpush1.bf16.msra.mxu0 %v17197_v5 }
0x23f8   :  { %11581 = vmatprep.subr.bf16.mxu0 %v17202_v6 }
0x23fb   :  { %11582 = vmatpush1.bf16.msra.mxu0 %v17200_v7 }
0x23fc   :  { %11583 = vmatprep.subr.bf16.mxu0 %v17205_v1 }
0x23ff   :  { %11584 = vmatpush1.bf16.msra.mxu0 %v17203_v8 }
0x2400   :  { %11585 = vmatprep.subr.bf16.mxu0 %v17208_v9 }
0x2403   :  { %11586 = vmatpush1.bf16.msra.mxu0 %v17206_v10 }
0x2404   :  { %11587 = vmatprep.subr.bf16.mxu0 %v17211_v59 }
0x2407   :  { %11588 = vmatpush1.bf16.msra.mxu0 %v17209_v11 }
0x2408   :  { %11970 = vmatprep.subr.bf16.mxu0 %v17408_v24 }
0x240a   :  { %11602 = vmatmul.mubr.bf16.vlgmr.msra.gmra.mrb[188].mxu0 %v17214_v61 }
0x240b   :  { %15477 = vmatprep.mubr.msk.bf16.mxu0 %vm205_vm0, %v17215_v12  ;;  %11971 = vmatpush1.bf16.msra.mxu0 %v17221_v14 }
0x240c   :  { %11972 = vmatprep.subr.bf16.mxu0 %v17408_v24 }
0x240f   :  { %11973 = vmatpush1.bf16.msra.mxu0 %v17223_v15 }
0x2410   :  { %11974 = vmatprep.subr.bf16.mxu0 %v17408_v24 }
0x2412   :  { %11612 = vmatmul.mubr.bf16.gmra.mrb[192].mxu0 %v17217_v13 }
0x2413   :  { %11975 = vmatpush1.bf16.msra.mxu0 %v17225_v17 }
0x2414   :  { %11976 = vmatprep.subr.bf16.mxu0 %v17408_v24 }
0x2417   :  { %11977 = vmatpush1.bf16.msra.mxu0 %v17227_v18 }
0x2418   :  { %11978 = vmatprep.subr.bf16.mxu0 %v17408_v24 }
0x241b   :  { %11979 = vmatpush1.bf16.msra.mxu0 %v17229_v19 }
0x241c   :  { %11980 = vmatprep.subr.bf16.mxu0 %v17408_v24 }
0x241f   :  { %11981 = vmatpush1.bf16.msra.mxu0 %v17231_v26  ;;  %v17224_v26 = vld [vmem:[%s21708_s4 + $0x10] sm:$0xff]  }
0x2420   :  { %11982 = vmatprep.subr.bf16.mxu0 %v17408_v24 }
0x2423   :  { %11983 = vmatpush1.bf16.msra.mxu0 %v17233_v27  ;;  %v17226_v27 = vld [vmem:[%s21708_s4 + $0x18] sm:$0xff]  }
0x2424   :  { %11984 = vmatprep.subr.bf16.mxu0 %v17408_v24 }
0x248d   :  { %v11246_v21 = vpop.f32.mrb[180].mxu0 }
0x248e   :  { %v11248_v22 = vpop.f32.mrb[181].mxu0 }
0x248f   :  { %v11249_v23 = vpop.f32.mrb[182].mxu0  ;;  %v17219_v22 = vld [vmem:[%s21707_s3 + $0x8] sm:$0x7f]  }
0x2490   :  { %v11250_v25 = vpop.f32.mrb[183].mxu0  ;;  %v17220_v23 = vld [vmem:[%s21708_s4] sm:$0xff]  }
0x2491   :  { %v17222_v25 = vld [vmem:[%s21708_s4 + $0x8] sm:$0xff]  }
0x24b5   :  { %v11366_v28 = vpop.f32.mrb[184].mxu0 }
0x24b6   :  { %v11372_v29 = vmax.f32 %v11246_v21, %v11366_v28  ;;  %v11368_v30 = vpop.f32.mrb[185].mxu0  ;;  %v17218_v21 = vld [vmem:[%s21707_s3] sm:$0x7f]  }
0x24b7   :  { %v11369_v31 = vpop.f32.mrb[186].mxu0  ;;  %v17228_v28 = vld [vmem:[%s21708_s4 + $0x20] sm:$0xff]   ;;  %v17232_v30 = vld [vmem:[%s21708_s4 + $0x30] sm:$0xff]  }
0x24b8   :  { %v15763_v32 = vpack.c.bf16 %v11372_v29, %v11372_v29  ;;  %v11370_v16 = vpop.f32.mrb[187].mxu0  ;;  %v17230_v29 = vld [vmem:[%s21708_s4 + $0x28] sm:$0xff]   ;;  %v17234_v31 = vld [vmem:[%s21708_s4 + $0x38] sm:$0xff]  }
0x24b9   :  { %v17236_v16 = vld [vmem:[%s21708_s4 + $0x40] sm:$0xff]  }
0x24ba   :  { %v11377_v20 = vrot.slane %v15763_v32, 5  ;;  %v11386_v38 = vshrl.u32 %v15763_v32, 16  ;;  %v11393_v40 = vrot.slane %v15763_v32, 6  ;;  %v11403_v41 = vrot.slane %v15763_v32, 7  ;;  %v17235_v32 = vld [vmem:[%s21708_s4 + $0x8c] sm:$0xff]  }
0x24bb   :  { %11985 = vmatpush1.bf16.msra.mxu0 %v17235_v32  ;;  %v17270_v32 = vld [vmem:[%s21710_s5 + $0x34] ss:$8 sps:$4 sm:$0xff]  }
0x24bc   :  { %v11383_v46 = vsel %vm21085_vm12, %v11377_v20, %v11382_v36  ;;  %v11388_v47 = vrot.slane %v11386_v38, 5  ;;  %v11396_v48 = vsel %vm21085_vm12, %v11393_v40, %v11395_v37  ;;  %v11398_v49 = vrot.slane %v11386_v38, 6  ;;  %11986 = vmatprep.subr.bf16.mxu0 %v17408_v24  ;;  %v17238_v36 = vld [vmem:[%s21708_s4 + $0x48] sm:$0xff]   ;;  %v17239_v37 = vld [vmem:[%s21708_s4 + $0x9c] sm:$0xff]   ;;  %v17240_v20 = vld [vmem:[%s21708_s4 + $0x50] ss:$0 sps:$4 sm:$0xff]  }
0x24bd   :  { %11384 = vst [vmem:[#allocation2] sm:$0x8] %v11383_v46  ;;  %11397 = vst [vmem:[#allocation2 + $0x8] sm:$0x8] %v11396_v48  ;;  %v11406_v50 = vsel %vm21085_vm12, %v11403_v41, %v11405_v43  ;;  %v17241_v38 = vld [vmem:[%s21708_s4 + $0xa4] ss:$0 sps:$4 sm:$0xff]  }
0x24be   :  { %v11391_v51 = vsel %vm21085_vm12, %v11388_v47, %v11390_v44  ;;  %v11401_v52 = vsel %vm21085_vm12, %v11398_v49, %v11400_v45  ;;  %11407 = vst [vmem:[#allocation2 + $0x10] sm:$0x8] %v11406_v50  ;;  %v11840_v40 = vsel %vm486_vm3, %v17240_v20, 0  ;;  %v11968_v41 = vsel %vm486_vm3, %v17241_v38, 0  ;;  %v17244_v43 = vld [vmem:[%s21710_s5 + $0x5c] ss:$8 sps:$4 sm:$0xff]  }
0x24bf   :  { %11392 = vst [vmem:[#allocation2 + $0x4] sm:$0x8] %v11391_v51  ;;  %11402 = vst [vmem:[#allocation2 + $0xc] sm:$0x8] %v11401_v52  ;;  %11987 = vmatpush1.bf16.msra.mxu0 %v17237_v35  ;;  %v17273_v35 = vld [vmem:[%s21710_s5 + $0x44] ss:$8 sps:$4 sm:$0xff]  }
0x24c0   :  { %11988 = vmatprep.subr.bf16.mxu0 %v17408_v24 }
0x24c3   :  { %11989 = vmatpush1.bf16.msra.mxu0 %v17239_v37  ;;  %v17271_v37 = vld [vmem:[%s21710_s5 + $0x40] ss:$8 sps:$4 sm:$0xff]  }
0x24c4   :  { %11990 = vmatprep.subr.bf16.mxu0 %v17408_v24 }
0x24c7   :  { %11991 = vmatpush1.bf16.msra.mxu0 %v11968_v41  ;;  %v17278_v41 = vld [vmem:[%s21710_s5 + $0xb4] ss:$8 sps:$4 sm:$0xff]  }
0x24dd   :  { %v11603_v55 = vpop.f32.mrb[188].mxu0 }
0x24de   :  { %v11604_v56 = vadd.f32 %v11603_v55, %v11438_v54  ;;  %v11605_v42 = vpop.f32.mrb[189].mxu0 }
0x24df   :  { %v11606_v57 = vadd.f32 %v11605_v42, %v11442_v39  ;;  %v11607_v58 = vpop.f32.mrb[190].mxu0  ;;  %v17242_v42 = vld [vmem:[%s21710_s5 + $0x58] ss:$8 sps:$4 sm:$0xff]  }
0x24e0   :  { %v11608_v60 = vadd.f32 %v11607_v58, %v11438_v54  ;;  %v11609_v62 = vpop.f32.mrb[191].mxu0  ;;  %v11622_v0 = vmax.f32 %v11604_v56, 0.0  ;;  %v17245_v58 = vld [vmem:[%s21710_s5 + $0x68] ss:$8 sps:$4 sm:$0xff]  }
0x24e1   :  { %v11610_v63 = vadd.f32 %v11609_v62, %v11442_v39  ;;  %v11623_v3 = vmax.f32 %v11606_v57, 0.0  ;;  %v17247_v57 = vld [vmem:[%s21710_s5 + $0x6c] ss:$8 sps:$4 sm:$0xff]   ;;  %v17248_v62 = vld [vmem:[%s21710_s5 + $0x78] ss:$8 sps:$4 sm:$0xff]  }
0x24e2   :  { %v11624_v2 = vmax.f32 %v11608_v60, 0.0  ;;  %v17250_v60 = vld [vmem:[%s21710_s5 + $0x7c] ss:$8 sps:$4 sm:$0xff]  }
0x24e3   :  { %v11625_v4 = vmax.f32 %v11610_v63, 0.0  ;;  %v17253_v63 = vld [vmem:[%s21710_s5 + $0x8c] ss:$8 sps:$4 sm:$0xff]  }
0x24e4   :  { %v11630_v5 = vpack.c.bf16 %v11624_v2, %v11622_v0  ;;  %v17251_v0 = vld [vmem:[%s21710_s5 + $0x88] ss:$8 sps:$4 sm:$0xff]   ;;  %v17256_v2 = vld [vmem:[%s21710_s5 + $0x9c] ss:$8 sps:$4 sm:$0xff]  }
0x24e5   :  { %v11631_v6 = vpack.c.bf16 %v11625_v4, %v11623_v3  ;;  %v11613_v7 = vpop.f32.mrb[192].mxu0  ;;  %v17254_v3 = vld [vmem:[%s21710_s5 + $0x98] ss:$8 sps:$4 sm:$0xff]   ;;  %v15541_v4 = vld [vmem:[%s21710_s5 + $0xa8] sm:$0x33] }
0x24e6   :  { %v11614_v1 = vadd.f32 %v11613_v7, %v11438_v54  ;;  %v11615_v8 = vpop.f32.mrb[193].mxu0  ;;  %v17261_v7 = vld [vmem:[%s21710_s5 + $0x4] ss:$8 sps:$4 sm:$0xff]  }
0x24e7   :  { %v11616_v9 = vadd.f32 %v11615_v8, %v11442_v39  ;;  %v11617_v10 = vpop.f32.mrb[194].mxu0  ;;  %11650 = vmatprep.subr.bf16.mxu1 %v11631_v6 }
0x24e8   :  { %v11618_v59 = vadd.f32 %v11617_v10, %v11438_v54  ;;  %v11619_v11 = vpop.f32.mrb[195].mxu0  ;;  %11651 = vmatpush1.bf16.msra.mxu1 %v11630_v5  ;;  %v11626_v12 = vmax.f32 %v11614_v1, 0.0 }
0x24e9   :  { %v11620_v61 = vadd.f32 %v11619_v11, %v11442_v39  ;;  %v11627_v14 = vmax.f32 %v11616_v9, 0.0 }
0x24ea   :  { %v11628_v13 = vmax.f32 %v11618_v59, 0.0 }
0x24eb   :  { %v11629_v15 = vmax.f32 %v11620_v61, 0.0 }
0x24ec   :  { %v11632_v17 = vpack.c.bf16 %v11628_v13, %v11626_v12 }
0x24ed   :  { %v11633_v18 = vpack.c.bf16 %v11629_v15, %v11627_v14 }
0x24ee   :  { %v11645_v19 = vsel %vm288_vm1, %v11632_v17, 0 }
0x24ef   :  { %15479 = vmatprep.subr.msk.bf16.mxu1 %vm288_vm1, %v11633_v18 }
0x24f0   :  { %11653 = vmatpush1.bf16.msra.mxu1 %v11645_v19 }
0x24f1   :  { %11703 = vmatprep.subr.bf16.mxu1 %v11631_v6  ;;  %v15552_v6 = vcombine.low %v15541_v4, %v15541_v4 }
0x24f3   :  { %15480 = vmatmul.mubr.msk.bf16.vlgmr.msra.gmra.mrb[120].mxu1 %vm284_vm2, %v17218_v21  ;;  %v12102_v1 = vsel %vm752_vm5, %v15552_v6, 0 }
0x24f4   :  { %11704 = vmatpush1.bf16.msra.mxu1 %v11630_v5  ;;  %11735 = vmatprep.mubr.bf16.mxu1 %v17408_v24  ;;  %v15553_v5 = vcombine.high %v15541_v4, %v15541_v4  ;;  %v17305_v4 = vld [vmem:[%s21710_s5 + $0x148] ss:$8 sps:$4 sm:$0xff]  }
0x24f5   :  { %15484 = vmatprep.subr.msk.bf16.mxu1 %vm288_vm1, %v11633_v18 }
0x24f8   :  { %11706 = vmatpush1.bf16.msra.mxu1 %v11645_v19 }
0x24f9   :  { %11842 = vmatprep.subr.bf16.mxu1 %v17408_v24 }
0x24fb   :  { %15485 = vmatmul.mubr.msk.bf16.vlgmr.msra.gmra.mrb[124].mxu1 %vm284_vm2, %v17219_v22  ;;  %vm17410_vm2 = vmmov 0  }
0x24fc   :  { %11843 = vmatpush1.bf16.msra.mxu1 %v17220_v23 }
0x24fd   :  { %11844 = vmatprep.subr.bf16.mxu1 %v17408_v24 }
0x2500   :  { %11845 = vmatpush1.bf16.msra.mxu1 %v17222_v25  ;;  %v17259_v25 = vld [vmem:[%s21710_s5] ss:$8 sps:$4 sm:$0xff]  }
0x2501   :  { %11846 = vmatprep.subr.bf16.mxu1 %v17408_v24 }
0x2504   :  { %11847 = vmatpush1.bf16.msra.mxu1 %v17224_v26 }
0x2505   :  { %11848 = vmatprep.subr.bf16.mxu1 %v17408_v24 }
0x2508   :  { %11849 = vmatpush1.bf16.msra.mxu1 %v17226_v27  ;;  %v17264_v27 = vld [vmem:[%s21710_s5 + $0x14] ss:$8 sps:$4 sm:$0xff]  }
0x2509   :  { %11850 = vmatprep.subr.bf16.mxu1 %v17408_v24 }
0x250c   :  { %11851 = vmatpush1.bf16.msra.mxu1 %v17228_v28 }
0x250d   :  { %11852 = vmatprep.subr.bf16.mxu1 %v17408_v24 }
0x2510   :  { %11853 = vmatpush1.bf16.msra.mxu1 %v17230_v29  ;;  %v17262_v29 = vld [vmem:[%s21710_s5 + $0x10] ss:$8 sps:$4 sm:$0xff]  }
0x2511   :  { %11854 = vmatprep.subr.bf16.mxu1 %v17408_v24 }
0x2514   :  { %11855 = vmatpush1.bf16.msra.mxu1 %v17232_v30  ;;  %v17267_v30 = vld [vmem:[%s21710_s5 + $0x24] ss:$8 sps:$4 sm:$0xff]  }
0x2515   :  { %11856 = vmatprep.subr.bf16.mxu1 %v17408_v24 }
0x2518   :  { %11857 = vmatpush1.bf16.msra.mxu1 %v17234_v31  ;;  %v17265_v31 = vld [vmem:[%s21710_s5 + $0x20] ss:$8 sps:$4 sm:$0xff]  }
0x2519   :  { %11858 = vmatprep.subr.bf16.mxu1 %v17408_v24 }
0x251c   :  { %11859 = vmatpush1.bf16.msra.mxu1 %v17236_v16  ;;  %v17268_v16 = vld [vmem:[%s21710_s5 + $0x30] ss:$8 sps:$4 sm:$0xff]  }
0x251d   :  { %11860 = vmatprep.subr.bf16.mxu1 %v17408_v24 }
0x2520   :  { %11861 = vmatpush1.bf16.msra.mxu1 %v17238_v36  ;;  %v12024_v36 = vld [vmem:[%s21710_s5 + $0x50] sm:$0x33] }
0x2521   :  { %11862 = vmatprep.subr.bf16.mxu1 %v17408_v24  ;;  %v15567_v20 = vcombine.high %v12024_v36, %v12024_v36  ;;  %v15566_v38 = vcombine.low %v12024_v36, %v12024_v36 }
0x2524   :  { %11863 = vmatpush1.bf16.msra.mxu1 %v11840_v40  ;;  %v12208_v40 = vsel %vm752_vm5, %v15566_v38, 0 }
0x2525   :  { %12107 = vmatprep.subr.bf16.mxu1 %v17244_v43  ;;  %v17276_v43 = vld [vmem:[%s21710_s5 + $0xb0] ss:$8 sps:$4 sm:$0xff]  }
0x25c6   :  { %v11684_v44 = vpop.f32.mrb[120].mxu1 }
0x25c7   :  { %v11686_v45 = vpop.f32.mrb[121].mxu1 }
0x25c8   :  { %v11688_v46 = vpop.f32.mrb[122].mxu1 }
0x25c9   :  { %v11690_v47 = vpop.f32.mrb[123].mxu1 }
0x25ce   :  { %v11737_v48 = vpop.f32.mrb[124].mxu1 }
0x25cf   :  { %v11746_v49 = vmax.f32 %v11684_v44, %v11737_v48  ;;  %v11739_v50 = vpop.f32.mrb[125].mxu1  ;;  %v17281_v44 = vld [vmem:[%s21710_s5 + $0xc4] ss:$8 sps:$4 sm:$0xff]  }
0x25d0   :  { %v11747_v51 = vmax.f32 %v11686_v45, %v11739_v50  ;;  %v11741_v52 = vpop.f32.mrb[126].mxu1  ;;  %v17279_v45 = vld [vmem:[%s21710_s5 + $0xc0] ss:$8 sps:$4 sm:$0xff]   ;;  %v17287_v48 = vld [vmem:[%s21710_s5 + $0xe4] ss:$8 sps:$4 sm:$0xff]  }
0x25d1   :  { %v11748_v53 = vmax.f32 %v11688_v46, %v11741_v52  ;;  %v11743_v54 = vpop.f32.mrb[127].mxu1  ;;  %v17284_v46 = vld [vmem:[%s21710_s5 + $0xd4] ss:$8 sps:$4 sm:$0xff]   ;;  %v17288_v52 = vld [vmem:[%s21710_s5 + $0xf0] ss:$8 sps:$4 sm:$0xff]  }
0x25d2   :  { %v11749_v39 = vmax.f32 %v11690_v47, %v11743_v54  ;;  %v17282_v47 = vld [vmem:[%s21710_s5 + $0xd0] ss:$8 sps:$4 sm:$0xff]   ;;  %v17290_v50 = vld [vmem:[%s21710_s5 + $0xf4] ss:$8 sps:$4 sm:$0xff]  }
0x25d3   :  { %v11750_v55 = vpack.c.bf16 %v11748_v53, %v11746_v49  ;;  %v17285_v49 = vld [vmem:[%s21710_s5 + $0xe0] ss:$8 sps:$4 sm:$0xff]  }
0x25d4   :  { %v11751_v56 = vpack.c.bf16 %v11749_v39, %v11747_v51  ;;  %v15580_v51 = vld [vmem:[%s21710_s5 + $0x100] sm:$0x33] }
0x25d5   :  { %v15592_v53 = vcombine.high %v15580_v51, %v15580_v51  ;;  %v15591_v54 = vcombine.low %v15580_v51, %v15580_v51  ;;  %v17335_v51 = vld [vmem:[%s21711_s8 + $0x40] sm:$0xff]  }
0x25d6   :  { %15497 = vmatprep.mubr.msk.bf16.mxu1 %vm482_vm4, %v11751_v56  ;;  %15530 = vmatprep.mubr.msk.bf16.mxu0 %vm482_vm4, %v11751_v56  ;;  %v17293_v56 = vld [vmem:[%s21710_s5 + $0x108] ss:$8 sps:$4 sm:$0xff]  }
0x25d7   :  { %11875 = vmatmul.mubr.bf16.vlgmr.msra.gmra.mrb[128].mxu1 %v11750_v55  ;;  %12003 = vmatmul.mubr.bf16.vlgmr.msra.gmra.mrb[196].mxu0 %v11750_v55  ;;  %v12328_v39 = vsel %vm752_vm5, %v15591_v54, 0  ;;  %v17295_v55 = vld [vmem:[%s21710_s5 + $0x10c] ss:$8 sps:$4 sm:$0xff]  }
0x25d8   :  { %12108 = vmatpush1.bf16.msra.mxu1 %v17242_v42  ;;  %12139 = vmatprep.mubr.bf16.mxu1 %v17408_v24 }
0x25d9   :  { %12109 = vmatprep.subr.bf16.mxu1 %v17247_v57  ;;  %12692 = vmatprep.mubr.bf16.mxu0 %v17408_v24  ;;  %v17298_v57 = vld [vmem:[%s21710_s5 + $0x11c] ss:$8 sps:$4 sm:$0xff]  }
0x25dc   :  { %12110 = vmatpush1.bf16.msra.mxu1 %v17245_v58  ;;  %v17296_v58 = vld [vmem:[%s21710_s5 + $0x118] ss:$8 sps:$4 sm:$0xff]  }
0x25dd   :  { %12111 = vmatprep.subr.bf16.mxu1 %v17250_v60  ;;  %v17301_v60 = vld [vmem:[%s21710_s5 + $0x12c] ss:$8 sps:$4 sm:$0xff]  }
0x25e0   :  { %12112 = vmatpush1.bf16.msra.mxu1 %v17248_v62  ;;  %v17299_v62 = vld [vmem:[%s21710_s5 + $0x128] ss:$8 sps:$4 sm:$0xff]  }
0x25e1   :  { %12113 = vmatprep.subr.bf16.mxu1 %v17253_v63  ;;  %v17304_v63 = vld [vmem:[%s21710_s5 + $0x13c] ss:$8 sps:$4 sm:$0xff]  }
0x25e4   :  { %12114 = vmatpush1.bf16.msra.mxu1 %v17251_v0  ;;  %v17302_v0 = vld [vmem:[%s21710_s5 + $0x138] ss:$8 sps:$4 sm:$0xff]  }
0x25e5   :  { %12115 = vmatprep.subr.bf16.mxu1 %v17256_v2  ;;  %v17307_v2 = vld [vmem:[%s21710_s5 + $0x14c] ss:$8 sps:$4 sm:$0xff]  }
0x25e8   :  { %12116 = vmatpush1.bf16.msra.mxu1 %v17254_v3  ;;  %v15605_v3 = vld [vmem:[%s21710_s5 + $0x158] sm:$0x33] }
0x25e9   :  { %15554 = vmatprep.subr.msk.bf16.mxu1 %vm752_vm5, %v15553_v5  ;;  %v15617_v5 = vcombine.high %v15605_v3, %v15605_v3  ;;  %v15616_v6 = vcombine.low %v15605_v3, %v15605_v3  ;;  %v17338_v3 = vld [vmem:[%s21711_s8 + $0x58] sm:$0xff]  }
0x25ec   :  { %12118 = vmatpush1.bf16.msra.mxu1 %v12102_v1  ;;  %v17312_v1 = vld [vmem:[%s21710_s5 + $0x164] ss:$8 sps:$4 sm:$0xff]  }
0x25ed   :  { %12213 = vmatprep.subr.bf16.mxu1 %v17261_v7  ;;  %v12453_v7 = vsel %vm752_vm5, %v15616_v6, 0  ;;  %v17341_v6 = vld [vmem:[%s21711_s8 + $0x70] sm:$0xff]  }
0x26aa   :  { %v11876_v8 = vpop.f32.mrb[128].mxu1  ;;  %v12004_v9 = vpop.f32.mrb[196].mxu0 }
0x26ab   :  { %v12011_v10 = vmax.f32 %v11876_v8, %v12004_v9  ;;  %v11878_v59 = vpop.f32.mrb[129].mxu1  ;;  %v12006_v11 = vpop.f32.mrb[197].mxu0  ;;  %v17310_v8 = vld [vmem:[%s21710_s5 + $0x160] ss:$8 sps:$4 sm:$0xff]   ;;  %v17315_v9 = vld [vmem:[%s21710_s5 + $0x174] ss:$8 sps:$4 sm:$0xff]  }
0x26ac   :  { %v11879_v61 = vpop.f32.mrb[130].mxu1  ;;  %v12007_v12 = vpop.f32.mrb[198].mxu0  ;;  %v17318_v59 = vld [vmem:[%s21710_s5 + $0x184] ss:$8 sps:$4 sm:$0xff]   ;;  %v17316_v11 = vld [vmem:[%s21710_s5 + $0x180] ss:$8 sps:$4 sm:$0xff]  }
0x26ad   :  { %v12012_v13 = vmax.f32 %v11879_v61, %v12007_v12  ;;  %v11881_v14 = vpop.f32.mrb[131].mxu1  ;;  %v12009_v15 = vpop.f32.mrb[199].mxu0  ;;  %v17321_v61 = vld [vmem:[%s21710_s5 + $0x194] ss:$8 sps:$4 sm:$0xff]   ;;  %v17319_v12 = vld [vmem:[%s21710_s5 + $0x190] ss:$8 sps:$4 sm:$0xff]  }
0x26ae   :  { %v15630_v14 = vld [vmem:[%s21710_s5 + $0x1b0] sm:$0x33]  ;;  %v17322_v15 = vld [vmem:[%s21710_s5 + $0x1a0] ss:$8 sps:$4 sm:$0xff]  }
0x26af   :  { %v21219_v17 = vpack.c.bf16 %v12012_v13, %v12011_v10  ;;  %v17313_v10 = vld [vmem:[%s21710_s5 + $0x170] ss:$8 sps:$4 sm:$0xff]   ;;  %v17324_v13 = vld [vmem:[%s21710_s5 + $0x1a4] ss:$8 sps:$4 sm:$0xff]  }
0x26b1   :  { %v12039_v18 = vshll.u32 %v21219_v17, 16  ;;  %v12037_v19 = vshrl.u32 %v21219_v17, 16  ;;  %v12268_v42 = vrot.slane %v21219_v17, 1 }
0x26b3   :  { %v12041_v21 = vrot.slane %v12039_v18, 1  ;;  %v21223_v22 = vrot.slane %v12037_v19, 1  ;;  %v21225_v23 = vrot.slane %v12039_v18, 2  ;;  %v15642_v18 = vcombine.high %v15630_v14, %v15630_v14 }
0x26b5   :  { %v12042_v26 = vor.u32 %v12041_v21, %v12037_v19  ;;  %v12393_v28 = vor.u32 %v21225_v23, %v21223_v22  ;;  %v15641_v19 = vcombine.low %v15630_v14, %v15630_v14  ;;  %v12516_v22 = vrot.slane %v21219_v17, 2  ;;  %v12628_v23 = vld [vmem:[%s21712_s6] sm:$0x3]  ;;  %v17353_v14 = vld [vmem:[%s21714_s9 + $0xc8] sm:$0xff]  }
0x26b7   :  { %15555 = vmatmul.mubr.msk.bf16.vlgmr.msra.gmra.mrb[132].mxu1 %vm748_vm6, %v12042_v26  ;;  %v12576_v21 = vsel %vm752_vm5, %v15641_v19, 0  ;;  %v12637_v26 = vrot.slane %v12628_v23, %v17592_v34  ;;  %v15647_v34 = vld [vmem:[%s21713_s7 + $0x4] sm:$0x7]  ;;  %v17356_v19 = vld [vmem:[%s21714_s9 + $0x10] sm:$0xff]  }
0x26b8   :  { %12214 = vmatpush1.bf16.msra.mxu1 %v17259_v25  ;;  %12245 = vmatprep.mubr.bf16.mxu1 %v17408_v24  ;;  %v12633_v25 = vrot.slane %v12628_v23, %v17590_v33  ;;  %v12650_v33 = vld [vmem:[%s21713_s7] sm:$0x7]  ;;  %v17359_v23 = vld [vmem:[%s21714_s9 + $0x58] sm:$0xff]  }
0x26b9   :  { %12215 = vmatprep.subr.bf16.mxu1 %v17264_v27 }
0x26bc   :  { %12216 = vmatpush1.bf16.msra.mxu1 %v17262_v29 }
0x26bd   :  { %12217 = vmatprep.subr.bf16.mxu1 %v17267_v30 }
0x26c0   :  { %12218 = vmatpush1.bf16.msra.mxu1 %v17265_v31 }
0x26c1   :  { %12219 = vmatprep.subr.bf16.mxu1 %v17270_v32 }
0x26c4   :  { %12220 = vmatpush1.bf16.msra.mxu1 %v17268_v16 }
0x26c5   :  { %12221 = vmatprep.subr.bf16.mxu1 %v17273_v35 }
0x26c8   :  { %12222 = vmatpush1.bf16.msra.mxu1 %v17271_v37 }
0x26c9   :  { %15568 = vmatprep.subr.msk.bf16.mxu1 %vm752_vm5, %v15567_v20 }
0x26cc   :  { %12224 = vmatpush1.bf16.msra.mxu1 %v12208_v40 }
0x26cd   :  { %12333 = vmatprep.subr.bf16.mxu1 %v17278_v41 }
0x26cf   :  { %15569 = vmatmul.mubr.msk.bf16.vlgmr.msra.gmra.mrb[132].mxu1 %vm748_vm6, %v21219_v17 }
0x26d0   :  { %12334 = vmatpush1.bf16.msra.mxu1 %v17276_v43  ;;  %12365 = vmatprep.mubr.bf16.mxu1 %v17408_v24  ;;  %v17327_v43 = vld [vmem:[%s21711_s8] sm:$0xff]  }
0x26d1   :  { %12335 = vmatprep.subr.bf16.mxu1 %v17281_v44  ;;  %v17328_v44 = vld [vmem:[%s21711_s8 + $0x8] sm:$0xff]  }
0x26d4   :  { %12336 = vmatpush1.bf16.msra.mxu1 %v17279_v45  ;;  %v17329_v45 = vld [vmem:[%s21711_s8 + $0x10] sm:$0xff]  }
0x26d5   :  { %12337 = vmatprep.subr.bf16.mxu1 %v17284_v46  ;;  %v17330_v46 = vld [vmem:[%s21711_s8 + $0x18] sm:$0xff]  }
0x26d8   :  { %12338 = vmatpush1.bf16.msra.mxu1 %v17282_v47  ;;  %v17331_v47 = vld [vmem:[%s21711_s8 + $0x20] sm:$0xff]  }
0x26d9   :  { %12339 = vmatprep.subr.bf16.mxu1 %v17287_v48  ;;  %v17332_v48 = vld [vmem:[%s21711_s8 + $0x28] sm:$0xff]  }
0x26dc   :  { %12340 = vmatpush1.bf16.msra.mxu1 %v17285_v49  ;;  %v17333_v49 = vld [vmem:[%s21711_s8 + $0x30] sm:$0xff]  }
0x26dd   :  { %12341 = vmatprep.subr.bf16.mxu1 %v17290_v50  ;;  %v17334_v50 = vld [vmem:[%s21711_s8 + $0x38] sm:$0xff]  }
0x26e0   :  { %12342 = vmatpush1.bf16.msra.mxu1 %v17288_v52  ;;  %v17336_v52 = vld [vmem:[%s21711_s8 + $0x48] sm:$0xff]  }
0x26e1   :  { %15593 = vmatprep.subr.msk.bf16.mxu1 %vm752_vm5, %v15592_v53 }
0x26e4   :  { %12344 = vmatpush1.bf16.msra.mxu1 %v12328_v39 }
0x26e5   :  { %12458 = vmatprep.subr.bf16.mxu1 %v17295_v55 }
0x26e7   :  { %15594 = vmatmul.mubr.msk.bf16.vlgmr.msra.gmra.mrb[132].mxu1 %vm748_vm6, %v12268_v42 }
0x26e8   :  { %12459 = vmatpush1.bf16.msra.mxu1 %v17293_v56  ;;  %12490 = vmatprep.mubr.bf16.mxu1 %v17408_v24 }
0x26e9   :  { %12460 = vmatprep.subr.bf16.mxu1 %v17298_v57 }
0x26ec   :  { %12461 = vmatpush1.bf16.msra.mxu1 %v17296_v58 }
0x26ed   :  { %12462 = vmatprep.subr.bf16.mxu1 %v17301_v60 }
0x26f0   :  { %12463 = vmatpush1.bf16.msra.mxu1 %v17299_v62 }
0x26f1   :  { %12464 = vmatprep.subr.bf16.mxu1 %v17304_v63 }
0x26f4   :  { %12465 = vmatpush1.bf16.msra.mxu1 %v17302_v0  ;;  %v17337_v0 = vld [vmem:[%s21711_s8 + $0x50] sm:$0xff]  }
0x26f5   :  { %12466 = vmatprep.subr.bf16.mxu1 %v17307_v2 }
0x26f8   :  { %12467 = vmatpush1.bf16.msra.mxu1 %v17305_v4  ;;  %v17339_v4 = vld [vmem:[%s21711_s8 + $0x60] sm:$0xff]  }
0x26f9   :  { %15618 = vmatprep.subr.msk.bf16.mxu1 %vm752_vm5, %v15617_v5  ;;  %v17340_v5 = vld [vmem:[%s21711_s8 + $0x68] sm:$0xff]  }
0x26fc   :  { %12469 = vmatpush1.bf16.msra.mxu1 %v12453_v7  ;;  %v17342_v7 = vld [vmem:[%s21711_s8 + $0x78] sm:$0xff]  }
0x26fd   :  { %12581 = vmatprep.subr.bf16.mxu1 %v17312_v1  ;;  %v17343_v1 = vld [vmem:[%s21711_s8 + $0x80] sm:$0xff]  }
0x26ff   :  { %15619 = vmatmul.mubr.msk.bf16.vlgmr.msra.gmra.mrb[132].mxu1 %vm748_vm6, %v12393_v28 }
0x2700   :  { %12582 = vmatpush1.bf16.msra.mxu1 %v17310_v8  ;;  %12613 = vmatprep.mubr.bf16.mxu1 %v17408_v24  ;;  %v17344_v8 = vld [vmem:[%s21711_s8 + $0x88] sm:$0xff]  }
0x2701   :  { %12583 = vmatprep.subr.bf16.mxu1 %v17315_v9  ;;  %v17345_v9 = vld [vmem:[%s21711_s8 + $0x90] sm:$0xff]  }
0x2704   :  { %12584 = vmatpush1.bf16.msra.mxu1 %v17313_v10  ;;  %v17346_v10 = vld [vmem:[%s21711_s8 + $0x98] sm:$0xff]  }
0x2705   :  { %12585 = vmatprep.subr.bf16.mxu1 %v17318_v59  ;;  %v17347_v59 = vld [vmem:[%s21714_s9 + $0x40] sm:$0xff]  }
0x2708   :  { %12586 = vmatpush1.bf16.msra.mxu1 %v17316_v11  ;;  %v17348_v11 = vld [vmem:[%s21714_s9] sm:$0xff]  }
0x2709   :  { %12587 = vmatprep.subr.bf16.mxu1 %v17321_v61  ;;  %v17349_v61 = vld [vmem:[%s21714_s9 + $0xc0] sm:$0xff]  }
0x270c   :  { %12588 = vmatpush1.bf16.msra.mxu1 %v17319_v12  ;;  %v17351_v12 = vld [vmem:[%s21714_s9 + $0x48] sm:$0xff]  }
0x270d   :  { %12589 = vmatprep.subr.bf16.mxu1 %v17324_v13  ;;  %v17352_v13 = vld [vmem:[%s21714_s9 + $0x8] sm:$0xff]  }
0x2710   :  { %12590 = vmatpush1.bf16.msra.mxu1 %v17322_v15  ;;  %v17354_v15 = vld [vmem:[%s21714_s9 + $0x88] sm:$0xff]  }
0x2711   :  { %15643 = vmatprep.subr.msk.bf16.mxu1 %vm752_vm5, %v15642_v18  ;;  %v17355_v18 = vld [vmem:[%s21714_s9 + $0x50] sm:$0xff]  }
0x2714   :  { %12592 = vmatpush1.bf16.msra.mxu1 %v12576_v21  ;;  %v17357_v21 = vld [vmem:[%s21714_s9 + $0xd0] sm:$0xff]  }
0x2715   :  { %15787 = vmatprep.subr.bf16.mxu1 %v17349_v61  ;;  %v17383_v61 = vld [vmem:[%s21714_s9 + $0x100] sm:$0xff]  }
0x2717   :  { %15644 = vmatmul.mubr.msk.bf16.vlgmr.msra.gmra.mrb[132].mxu1 %vm748_vm6, %v12516_v22  ;;  %v17358_v22 = vld [vmem:[%s21714_s9 + $0x90] sm:$0xff]  }
0x27ea   :  { %v12615_v27 = vpop.f32.mrb[132].mxu1 }
0x27eb   :  { %v12640_v28 = vadd.f32 %v12633_v25, %v12615_v27  ;;  %v12617_v29 = vpop.f32.mrb[133].mxu1  ;;  %v17362_v27 = vld [vmem:[%s21714_s9 + $0x98] sm:$0xff]  }
0x27ec   :  { %v12641_v30 = vadd.f32 %v12637_v26, %v12617_v29  ;;  %v12619_v31 = vpop.f32.mrb[134].mxu1  ;;  %v17364_v29 = vld [vmem:[%s21714_s9 + $0x20] sm:$0xff]  }
0x27ed   :  { %v12642_v32 = vadd.f32 %v12633_v25, %v12619_v31  ;;  %v12621_v16 = vpop.f32.mrb[135].mxu1  ;;  %v12644_v36 = vmax.f32 %v12640_v28, 0.0  ;;  %v17360_v25 = vld [vmem:[%s21714_s9 + $0x18] sm:$0xff]   ;;  %v17363_v28 = vld [vmem:[%s21714_s9 + $0x60] sm:$0xff]  }
0x27ee   :  { %v12643_v35 = vadd.f32 %v12637_v26, %v12621_v16  ;;  %v12645_v37 = vmax.f32 %v12641_v30, 0.0  ;;  %v17361_v26 = vld [vmem:[%s21714_s9 + $0xd8] sm:$0xff]   ;;  %v17365_v30 = vld [vmem:[%s21714_s9 + $0xe0] sm:$0xff]   ;;  %v17368_v16 = vld [vmem:[%s21714_s9 + $0x28] sm:$0xff]  }
0x27ef   :  { %v12646_v17 = vmax.f32 %v12642_v32, 0.0  ;;  %v17366_v31 = vld [vmem:[%s21714_s9 + $0xa0] sm:$0xff]   ;;  %v17367_v32 = vld [vmem:[%s21714_s9 + $0x68] sm:$0xff]  }
0x27f0   :  { %v12647_v20 = vmax.f32 %v12643_v35, 0.0  ;;  %v17369_v35 = vld [vmem:[%s21714_s9 + $0xe8] sm:$0xff]  }
0x27f1   :  { %v12648_v38 = vpack.c.bf16 %v12646_v17, %v12644_v36  ;;  %v17370_v36 = vld [vmem:[%s21714_s9 + $0xa8] sm:$0xff]   ;;  %v17371_v17 = vld [vmem:[%s21714_s9 + $0x70] sm:$0xff]  }
0x27f2   :  { %v12649_v40 = vpack.c.bf16 %v12647_v20, %v12645_v37  ;;  %v17372_v37 = vld [vmem:[%s21714_s9 + $0x30] sm:$0xff]  }
0x27f3   :  { %v12655_v41 = vsel %vm1310_vm7, %v12648_v38, 0  ;;  %v17373_v20 = vld [vmem:[%s21714_s9 + $0xf0] sm:$0xff]  }
0x27f4   :  { %15645 = vmatprep.subr.msk.bf16.mxu0 %vm1310_vm7, %v12649_v40  ;;  %v17374_v38 = vld [vmem:[%s21714_s9 + $0xb0] sm:$0xff]  }
0x27f5   :  { %12661 = vmatpush1.bf16.msra.mxu0 %v12655_v41 }
0x27f6   :  { %15648 = vmatprep.subr.msk.bf16.mxu0 %vm1310_vm7, %v12649_v40  ;;  %v17375_v40 = vld [vmem:[%s21714_s9 + $0x78] sm:$0xff]  }
0x27f8   :  { %15646 = vmatmul.mubr.msk.bf16.vlgmr.msra.gmra.mrb[200].mxu0 %vm1306_vm8, %v12650_v33  ;;  %v17376_v33 = vld [vmem:[%s21714_s9 + $0x38] sm:$0xff]  }
0x27f9   :  { %12706 = vmatpush1.bf16.msra.mxu0 %v12655_v41  ;;  %12737 = vmatprep.mubr.bf16.mxu0 %v17408_v24  ;;  %v17377_v41 = vld [vmem:[%s21714_s9 + $0xf8] sm:$0xff]  }
0x27fa   :  { %12833 = vmatprep.subr.bf16.mxu0 %v17408_v24 }
0x2800   :  { %15649 = vmatmul.mubr.msk.bf16.vlgmr.msra.gmra.mrb[204].mxu0 %vm1306_vm8, %v15647_v34  ;;  %v17378_v34 = vld [vmem:[%s21714_s9 + $0xb8] sm:$0xff]  }
0x2801   :  { %12834 = vmatpush1.bf16.msra.mxu0 %v17327_v43  ;;  %v17409_v43 = vmov 0.0  }
0x2802   :  { %12835 = vmatprep.subr.bf16.mxu0 %v17408_v24 }
0x2805   :  { %12836 = vmatpush1.bf16.msra.mxu0 %v17328_v44 }
0x2806   :  { %12837 = vmatprep.subr.bf16.mxu0 %v17408_v24 }
0x2809   :  { %12838 = vmatpush1.bf16.msra.mxu0 %v17329_v45 }
0x280a   :  { %12839 = vmatprep.subr.bf16.mxu0 %v17408_v24 }
0x280d   :  { %12840 = vmatpush1.bf16.msra.mxu0 %v17330_v46 }
0x280e   :  { %12841 = vmatprep.subr.bf16.mxu0 %v17408_v24 }
0x2811   :  { %12842 = vmatpush1.bf16.msra.mxu0 %v17331_v47 }
0x2812   :  { %12843 = vmatprep.subr.bf16.mxu0 %v17408_v24 }
0x2815   :  { %12844 = vmatpush1.bf16.msra.mxu0 %v17332_v48 }
0x2816   :  { %12845 = vmatprep.subr.bf16.mxu0 %v17408_v24 }
0x2819   :  { %12846 = vmatpush1.bf16.msra.mxu0 %v17333_v49 }
0x281a   :  { %12847 = vmatprep.subr.bf16.mxu0 %v17408_v24 }
0x281d   :  { %12848 = vmatpush1.bf16.msra.mxu0 %v17334_v50 }
0x281e   :  { %12849 = vmatprep.subr.bf16.mxu0 %v17408_v24 }
0x2821   :  { %12850 = vmatpush1.bf16.msra.mxu0 %v17335_v51 }
0x2822   :  { %12851 = vmatprep.subr.bf16.mxu0 %v17408_v24 }
0x2825   :  { %12852 = vmatpush1.bf16.msra.mxu0 %v17336_v52 }
0x2826   :  { %12953 = vmatprep.subr.bf16.mxu0 %v17408_v24 }
0x28cb   :  { %v12694_v53 = vpop.f32.mrb[200].mxu0 }
0x28cc   :  { %v12696_v54 = vpop.f32.mrb[201].mxu0 }
0x28cd   :  { %v12698_v39 = vpop.f32.mrb[202].mxu0 }
0x28ce   :  { %v12699_v55 = vpop.f32.mrb[203].mxu0 }
0x28d3   :  { %v12739_v56 = vpop.f32.mrb[204].mxu0 }
0x28d4   :  { %v12746_v42 = vmax.f32 %v12694_v53, %v12739_v56  ;;  %v12741_v57 = vpop.f32.mrb[205].mxu0 }
0x28d5   :  { %v12747_v58 = vmax.f32 %v12696_v54, %v12741_v57  ;;  %v12743_v60 = vpop.f32.mrb[206].mxu0  ;;  %v13020_v57 = vld [vmem:[#allocation2 + $0xc] sm:$0x8] }
0x28d6   :  { %v12744_v62 = vpop.f32.mrb[207].mxu0  ;;  %v12748_v2 = vpack.c.bf16 %v12746_v42, %v12746_v42  ;;  %v13010_v42 = vld [vmem:[#allocation2 + $0x4] sm:$0x8] }
0x28d7   :  { %v12749_v63 = vpack.c.bf16 %v12747_v58, %v12747_v58 }
0x28d9   :  { %15660 = vmatprep.mubr.msk.bf16.mxu0 %vm205_vm0, %v12749_v63 }
0x28da   :  { %12866 = vmatmul.mubr.bf16.vlgmr.msra.gmra.mrb[208].mxu0 %v12748_v2 }
0x28db   :  { %12954 = vmatpush1.bf16.msra.mxu0 %v17337_v0  ;;  %15691 = vmatprep.mubr.msk.bf16.mxu0 %vm205_vm0, %v12749_v63  ;;  %vm13003_vm0 = vsmask.f32 7950  ;;  %v13005_v0 = vld [vmem:[#allocation2] sm:$0x8] }
0x28dc   :  { %12955 = vmatprep.subr.bf16.mxu0 %v17408_v24  ;;  %vm21579_vm1 = vmand %vm11379_vm10, %vm13003_vm0 }
0x28df   :  { %12956 = vmatpush1.bf16.msra.mxu0 %v17338_v3 }
0x28e0   :  { %12957 = vmatprep.subr.bf16.mxu0 %v17408_v24 }
0x28e3   :  { %12958 = vmatpush1.bf16.msra.mxu0 %v17339_v4 }
0x28e4   :  { %12959 = vmatprep.subr.bf16.mxu0 %v17408_v24 }
0x28e7   :  { %12960 = vmatpush1.bf16.msra.mxu0 %v17340_v5 }
0x28e8   :  { %12961 = vmatprep.subr.bf16.mxu0 %v17408_v24 }
0x28eb   :  { %12962 = vmatpush1.bf16.msra.mxu0 %v17341_v6  ;;  %v13025_v6 = vld [vmem:[#allocation2 + $0x10] sm:$0x8] }
0x28ec   :  { %12963 = vmatprep.subr.bf16.mxu0 %v17408_v24 }
0x28ef   :  { %12964 = vmatpush1.bf16.msra.mxu0 %v17342_v7 }
0x28f0   :  { %12965 = vmatprep.subr.bf16.mxu0 %v17408_v24 }
0x28f3   :  { %12966 = vmatpush1.bf16.msra.mxu0 %v17343_v1 }
0x28f4   :  { %12967 = vmatprep.subr.bf16.mxu0 %v17408_v24 }
0x28f7   :  { %12968 = vmatpush1.bf16.msra.mxu0 %v17344_v8 }
0x28f8   :  { %12969 = vmatprep.subr.bf16.mxu0 %v17408_v24 }
0x28fb   :  { %12970 = vmatpush1.bf16.msra.mxu0 %v17345_v9 }
0x28fc   :  { %12971 = vmatprep.subr.bf16.mxu0 %v17408_v24  ;;  %v17350_v24 = vld [vmem:[%s21714_s9 + $0x80] sm:$0xff]  }
0x28fd   :  { %15788 = vmatpush3.bf16.msra.mxu1 %v17350_v24  ;;  %v17384_v24 = vld [vmem:[%s21714_s9 + $0x108] sm:$0xff]  }
0x28fe   :  { %15789 = vmatprep.subr.bf16.mxu1 %v17353_v14  ;;  %v17387_v14 = vld [vmem:[%s21714_s9 + $0x120] sm:$0xff]  }
0x28ff   :  { %12972 = vmatpush1.bf16.msra.mxu0 %v17346_v10 }
0x2900   :  { %15765 = vmatprep.subr.bf16.mxu0 %v17347_v59 }
0x2901   :  { %15790 = vmatpush3.bf16.msra.mxu1 %v17354_v15  ;;  %v17388_v15 = vld [vmem:[%s21714_s9 + $0x128] sm:$0xff]  }
0x2902   :  { %12986 = vmatmul.mubr.bf16.vlgmr.msra.gmra.mrb[212].mxu0 %v12748_v2  ;;  %15791 = vmatprep.subr.bf16.mxu1 %v17357_v21  ;;  %v13015_v2 = vld [vmem:[#allocation2 + $0x8] sm:$0x8]  ;;  %v17391_v21 = vld [vmem:[#allocation2 + $0x10] ss:$0 sps:$4 sm:$0xff]  }
0x2903   :  { %15766 = vmatpush3.bf16.msra.mxu0 %v17348_v11 }
0x2904   :  { %15767 = vmatprep.subr.bf16.mxu0 %v17351_v12  ;;  %v17385_v12 = vld [vmem:[%s21714_s9 + $0x110] sm:$0xff]  }
0x2905   :  { %15792 = vmatpush3.bf16.msra.mxu1 %v17358_v22  ;;  %v17392_v22 = vld [vmem:[%s21715_s11] sm:$0xff]  }
0x2906   :  { %15793 = vmatprep.subr.bf16.mxu1 %v17361_v26  ;;  %v17395_v26 = vld [vmem:[%s21715_s11 + $0x18] sm:$0xff]  }
0x2907   :  { %15768 = vmatpush3.bf16.msra.mxu0 %v17352_v13  ;;  %v17386_v13 = vld [vmem:[%s21714_s9 + $0x118] sm:$0xff]  }
0x2908   :  { %15769 = vmatprep.subr.bf16.mxu0 %v17355_v18  ;;  %v17389_v18 = vld [vmem:[%s21714_s9 + $0x130] sm:$0xff]  }
0x2909   :  { %15794 = vmatpush3.bf16.msra.mxu1 %v17362_v27  ;;  %v17396_v27 = vld [vmem:[%s21715_s11 + $0x20] sm:$0xff]  }
0x290a   :  { %15795 = vmatprep.subr.bf16.mxu1 %v17365_v30  ;;  %v17399_v30 = vld [vmem:[%s21715_s11 + $0x38] sm:$0xff]  }
0x290b   :  { %15770 = vmatpush3.bf16.msra.mxu0 %v17356_v19  ;;  %v17390_v19 = vld [vmem:[%s21714_s9 + $0x138] sm:$0xff]  }
0x290c   :  { %15771 = vmatprep.subr.bf16.mxu0 %v17359_v23  ;;  %v17393_v23 = vld [vmem:[%s21715_s11 + $0x8] sm:$0xff]  }
0x290d   :  { %15796 = vmatpush3.bf16.msra.mxu1 %v17366_v31  ;;  %v17400_v31 = vld [vmem:[%s21716_s13] sm:$0xff]  }
0x290e   :  { %15797 = vmatprep.subr.bf16.mxu1 %v17369_v35  ;;  %v17403_v35 = vld [vmem:[%s21716_s13 + $0x18] sm:$0xff]  }
0x290f   :  { %15772 = vmatpush3.bf16.msra.mxu0 %v17360_v25  ;;  %v17394_v25 = vld [vmem:[%s21715_s11 + $0x10] sm:$0xff]  }
0x2910   :  { %15773 = vmatprep.subr.bf16.mxu0 %v17363_v28  ;;  %v17397_v28 = vld [vmem:[%s21715_s11 + $0x28] sm:$0xff]  }
0x2911   :  { %15798 = vmatpush3.bf16.msra.mxu1 %v17370_v36  ;;  %v17404_v36 = vld [vmem:[%s21716_s13 + $0x20] sm:$0xff]  }
0x2912   :  { %15799 = vmatprep.subr.bf16.mxu1 %v17373_v20 }
0x2913   :  { %15774 = vmatpush3.bf16.msra.mxu0 %v17364_v29  ;;  %v17398_v29 = vld [vmem:[%s21715_s11 + $0x30] sm:$0xff]  }
0x2914   :  { %15775 = vmatprep.subr.bf16.mxu0 %v17367_v32  ;;  %v17401_v32 = vld [vmem:[%s21716_s13 + $0x8] sm:$0xff]  }
0x2915   :  { %15800 = vmatpush3.bf16.msra.mxu1 %v17374_v38  ;;  %v15693_v38 = vld [vmem:[%s21717_s10] ss:$0 sm:$0xff] }
0x2916   :  { %15801 = vmatprep.subr.bf16.mxu1 %v17377_v41 }
0x2917   :  { %15776 = vmatpush3.bf16.msra.mxu0 %v17368_v16  ;;  %v17402_v16 = vld [vmem:[%s21716_s13 + $0x10] sm:$0xff]  }
0x2918   :  { %15777 = vmatprep.subr.bf16.mxu0 %v17371_v17  ;;  %v17405_v17 = vld [vmem:[%s21716_s13 + $0x28] sm:$0xff]  }
0x2919   :  { %15802 = vmatpush3.bf16.msra.mxu1 %v17378_v34 }
0x291a   :  { %15856 = vmatprep.subr.bf16.mxu1 %v17409_v43 }
0x291b   :  { %15778 = vmatpush3.bf16.msra.mxu0 %v17372_v37 }
0x291c   :  { %15779 = vmatprep.subr.bf16.mxu0 %v17375_v40 }
0x291f   :  { %15780 = vmatpush3.bf16.msra.mxu0 %v17376_v33 }
0x2920   :  { %15836 = vmatprep.subr.bf16.mxu0 %v17409_v43 }
0x29ad   :  { %v12867_v44 = vpop.f32.mrb[208].mxu0 }
0x29ae   :  { %v12869_v45 = vpop.f32.mrb[209].mxu0 }
0x29af   :  { %v12870_v46 = vpop.f32.mrb[210].mxu0 }
0x29b0   :  { %v12871_v47 = vpop.f32.mrb[211].mxu0 }
0x29d5   :  { %v12987_v48 = vpop.f32.mrb[212].mxu0 }
0x29d6   :  { %v12993_v49 = vmax.f32 %v12867_v44, %v12987_v48  ;;  %v12989_v50 = vpop.f32.mrb[213].mxu0 }
0x29d7   :  { %v12990_v51 = vpop.f32.mrb[214].mxu0 }
0x29d8   :  { %v15764_v52 = vpack.c.bf16 %v12993_v49, %v12993_v49  ;;  %v12991_v53 = vpop.f32.mrb[215].mxu0 }
0x29da   :  { %v12999_v39 = vshll.u32 %v15764_v52, 16  ;;  %v13008_v55 = vrot.slane %v15764_v52, 5  ;;  %v13018_v56 = vrot.slane %v15764_v52, 6 }
0x29dc   :  { %v13001_v58 = vrot.slane %v12999_v39, 5  ;;  %v13011_v60 = vsel %vm21579_vm1, %v13008_v55, %v13010_v42  ;;  %v13013_v62 = vrot.slane %v12999_v39, 6  ;;  %v13021_v63 = vsel %vm21579_vm1, %v13018_v56, %v13020_v57  ;;  %v17406_v56 = vld [vmem:[%s21716_s13 + $0x30] sm:$0xff]   ;;  %v17407_v42 = vld [vmem:[%s21716_s13 + $0x38] sm:$0xff]   ;;  %v15739_v57 = vld [vmem:[%s21718_s12] ss:$0 sm:$0xff] }
0x29dd   :  { %13012 = vst [vmem:[#allocation2 + $0x4] sm:$0x8] %v13011_v60  ;;  %13022 = vst [vmem:[#allocation2 + $0xc] sm:$0x8] %v13021_v63  ;;  %v13023_v3 = vrot.slane %v12999_v39, 7 }
0x29de   :  { %v13006_v4 = vsel %vm21579_vm1, %v13001_v58, %v13005_v0  ;;  %v13016_v5 = vsel %vm21579_vm1, %v13013_v62, %v13015_v2 }
0x29df   :  { %13007 = vst [vmem:[#allocation2] sm:$0x8] %v13006_v4  ;;  %13017 = vst [vmem:[#allocation2 + $0x8] sm:$0x8] %v13016_v5  ;;  %v13026_v7 = vsel %vm21579_vm1, %v13023_v3, %v13025_v6 }
0x29e0   :  { %13027 = vst [vmem:[#allocation2 + $0x10] sm:$0x8] %v13026_v7 }
0x29e6   :  { %v13028_v1 = vld [vmem:[#allocation2] sm:$0xff]  ;;  %v13029_v8 = vld [vmem:[#allocation2 + $0x8] sm:$0xff] }
0x29e7   :  { %v15694_v9 = vcombine.low %v13028_v1, %v13028_v1  ;;  %v15695_v10 = vcombine.high %v13028_v1, %v13028_v1  ;;  %v15696_v59 = vcombine.low %v13029_v8, %v13029_v8  ;;  %v15697_v11 = vcombine.high %v13029_v8, %v13029_v8 }
0x29e9   :  { %13408 = vmatprep.mubr.bf16.mxu0 %v15695_v10  ;;  %13448 = vmatprep.mubr.bf16.mxu1 %v15697_v11 }
0x29ea   :  { %13409 = vmatmul.mubr.bf16.vlgmr.msra.gmra.mrb[216].mxu0 %v15694_v9  ;;  %13449 = vmatmul.mubr.bf16.vlgmr.msra.gmra.mrb[136].mxu1 %v15696_v59 }
0x29eb   :  { %15837 = vmatpush3.bf16.msra.mxu0 %v17383_v61  ;;  %15852 = vmatprep.mubr.msk.bf16.mxu0 %vm17410_vm2, %v17409_v43 }
0x29ec   :  { %15838 = vmatprep.subr.bf16.mxu0 %v17409_v43  ;;  %15872 = vmatprep.mubr.msk.bf16.mxu1 %vm17410_vm2, %v17409_v43 }
0x29ed   :  { %15857 = vmatpush3.bf16.msra.mxu1 %v17392_v22 }
0x29ee   :  { %15858 = vmatprep.subr.bf16.mxu1 %v17409_v43 }
0x29ef   :  { %15839 = vmatpush3.bf16.msra.mxu0 %v17384_v24 }
0x29f0   :  { %15840 = vmatprep.subr.bf16.mxu0 %v17409_v43 }
0x29f1   :  { %15859 = vmatpush3.bf16.msra.mxu1 %v17393_v23 }
0x29f2   :  { %15860 = vmatprep.subr.bf16.mxu1 %v17409_v43 }
0x29f3   :  { %15841 = vmatpush3.bf16.msra.mxu0 %v17385_v12 }
0x29f4   :  { %15842 = vmatprep.subr.bf16.mxu0 %v17409_v43 }
0x29f5   :  { %15861 = vmatpush3.bf16.msra.mxu1 %v17394_v25 }
0x29f6   :  { %15862 = vmatprep.subr.bf16.mxu1 %v17409_v43 }
0x29f7   :  { %15843 = vmatpush3.bf16.msra.mxu0 %v17386_v13 }
0x29f8   :  { %15844 = vmatprep.subr.bf16.mxu0 %v17409_v43 }
0x29f9   :  { %15863 = vmatpush3.bf16.msra.mxu1 %v17395_v26 }
0x29fa   :  { %15864 = vmatprep.subr.bf16.mxu1 %v17409_v43 }
0x29fb   :  { %15845 = vmatpush3.bf16.msra.mxu0 %v17387_v14 }
0x29fc   :  { %15846 = vmatprep.subr.bf16.mxu0 %v17409_v43 }
0x29fd   :  { %15865 = vmatpush3.bf16.msra.mxu1 %v17396_v27 }
0x29fe   :  { %15866 = vmatprep.subr.bf16.mxu1 %v17409_v43 }
0x29ff   :  { %15847 = vmatpush3.bf16.msra.mxu0 %v17388_v15 }
0x2a00   :  { %15848 = vmatprep.subr.bf16.mxu0 %v17409_v43 }
0x2a01   :  { %15867 = vmatpush3.bf16.msra.mxu1 %v17397_v28 }
0x2a02   :  { %15868 = vmatprep.subr.bf16.mxu1 %v17409_v43 }
0x2a03   :  { %15849 = vmatpush3.bf16.msra.mxu0 %v17389_v18 }
0x2a04   :  { %15850 = vmatprep.subr.bf16.mxu0 %v17409_v43 }
0x2a05   :  { %15869 = vmatpush3.bf16.msra.mxu1 %v17398_v29 }
0x2a06   :  { %15870 = vmatprep.subr.bf16.mxu1 %v17409_v43 }
0x2a07   :  { %15851 = vmatpush3.bf16.msra.mxu0 %v17390_v19 }
0x2a08   :  { %15876 = vmatprep.subr.bf16.mxu0 %v17409_v43 }
0x2a09   :  { %15871 = vmatpush3.bf16.msra.mxu1 %v17399_v30 }
0x2a0a   :  { %15853 = vmatmul.mubr.bf16.vlgmr.msra.gmra.mrb[220].mxu0 %v17391_v21 }
0x2a0b   :  { %15892 = vmatprep.mubr.msk.bf16.mxu0 %vm17410_vm2, %v17409_v43  ;;  %15877 = vmatpush3.bf16.msra.mxu0 %v17400_v31 }
0x2a0c   :  { %15878 = vmatprep.subr.bf16.mxu0 %v17409_v43 }
0x2a0f   :  { %15879 = vmatpush3.bf16.msra.mxu0 %v17401_v32 }
0x2a10   :  { %15880 = vmatprep.subr.bf16.mxu0 %v17409_v43 }
0x2a13   :  { %15881 = vmatpush3.bf16.msra.mxu0 %v17402_v16 }
0x2a14   :  { %15882 = vmatprep.subr.bf16.mxu0 %v17409_v43 }
0x2a17   :  { %15883 = vmatpush3.bf16.msra.mxu0 %v17403_v35 }
0x2a18   :  { %15884 = vmatprep.subr.bf16.mxu0 %v17409_v43 }
0x2a1b   :  { %15885 = vmatpush3.bf16.msra.mxu0 %v17404_v36 }
0x2a1c   :  { %15886 = vmatprep.subr.bf16.mxu0 %v17409_v43 }
0x2a1f   :  { %15887 = vmatpush3.bf16.msra.mxu0 %v17405_v17 }
0x2a20   :  { %15888 = vmatprep.subr.bf16.mxu0 %v17409_v43 }
0x2a23   :  { %15889 = vmatpush3.bf16.msra.mxu0 %v17406_v56 }
0x2a24   :  { %15890 = vmatprep.subr.bf16.mxu0 %v17409_v43  ;;  %v15748_v43 = vld [vmem:[%s21719_s14] ss:$0 sm:$0xff] }
0x2a27   :  { %15891 = vmatpush3.bf16.msra.mxu0 %v17407_v42 }
0x2abd   :  { %v15781_v37 = vpop.f32.mrb[216].mxu0  ;;  %v15803_v20 = vpop.f32.mrb[136].mxu1 }
0x2abe   :  { %v15782_v40 = vpop.f32.mrb[217].mxu0  ;;  %v15804_v41 = vpop.f32.mrb[137].mxu1 }
0x2abf   :  { %v15783_v33 = vadd.f32 %v15782_v40, %v15781_v37  ;;  %v15805_v34 = vadd.f32 %v15804_v41, %v15803_v20  ;;  %v15784_v44 = vpop.f32.mrb[218].mxu0  ;;  %v15806_v45 = vpop.f32.mrb[138].mxu1 }
0x2ac0   :  { %v15785_v46 = vpop.f32.mrb[219].mxu0  ;;  %v15807_v47 = vpop.f32.mrb[139].mxu1 }
0x2ac1   :  { %v13411_v48 = vadd.f32 %v15783_v33, %v15693_v38 }
0x2ac3   :  { %v13451_v49 = vadd.f32 %v15805_v34, %v13411_v48 }
0x2add   :  { %v13490_v50 = vpop.f32.mrb[220].mxu0 }
0x2ade   :  { %v13491_v51 = vadd.f32 %v13490_v50, %v13451_v49  ;;  %v15854_v52 = vpop.f32.mrb[221].mxu0 }
0x2adf   :  { %v13493_v53 = vpop.f32.mrb[222].mxu0 }
0x2ae0   :  { %v13496_v54 = vmax.f32 %v13491_v51, 0.0  ;;  %v15855_v39 = vpop.f32.mrb[223].mxu0 }
0x2ae2   :  { %v13497_v55 = vpack.c.bf16 %v13496_v54, %v13496_v54 }
0x2ae4   :  { %15873 = vmatmul.mubr.bf16.vlgmr.msra.gmra.mrb[140].mxu1 %v13497_v55 }
0x2bb7   :  { %v13603_v58 = vpop.f32.mrb[140].mxu1 }
0x2bb8   :  { %v13604_v60 = vadd.f32 %v15739_v57, %v13603_v58  ;;  %v15874_v62 = vpop.f32.mrb[141].mxu1 }
0x2bb9   :  { %v13606_v63 = vpop.f32.mrb[142].mxu1 }
0x2bba   :  { %v13609_v0 = vmax.f32 %v13604_v60, 0.0  ;;  %v15875_v2 = vpop.f32.mrb[143].mxu1 }
0x2bbc   :  { %v13610_v3 = vpack.c.bf16 %v13609_v0, %v13609_v0 }
0x2bbe   :  { %15893 = vmatmul.mubr.bf16.vlgmr.msra.gmra.mrb[224].mxu0 %v13610_v3 }
0x2c91   :  { %v13716_v4 = vpop.f32.mrb[224].mxu0 }
0x2c92   :  { %v13717_v5 = vadd.f32 %v15748_v43, %v13716_v4  ;;  %v15894_v6 = vpop.f32.mrb[225].mxu0 }
0x2c93   :  { %v13719_v7 = vpop.f32.mrb[226].mxu0 }
0x2c94   :  { %13722 = vst [vmem:[%s21720_s15] sm:$0xff] %v13717_v5  ;;  %v15895_v1 = vpop.f32.mrb[227].mxu0 }

</bundles_post_ra>
